<compile_context>
chip_gen: v7x
topology: tpu7x:2x2x1
jax: 0.10.0
libtpu: 0.0.40
codegen_flags: <defaults>
</compile_context>

<pallas_src>
import jax
import jax.numpy as jnp
import numpy as np
from jax.experimental import pallas as pl
from jax.experimental.pallas import tpu as pltpu


def _full_spec(shape):
    n = len(shape)
    return pl.BlockSpec(tuple(shape), lambda i: (0,) * n)


# ------------------------------ Pallas kernel ------------------------------- #

def chess_fused_kernel(xcol1_ref, w1_ref, b1_ref, w2_ref, b2_ref, mask_ref,
                       bfc1_ref, whead_ref, bhead_ref, wfc1_hbm,
                       o_ref,
                       wfc1_vmem, wsem, h1pad_ref, xcol2_ref, h2_ref):
    """Fused conv1+conv2+fc1+heads.

    xcol1_ref : (M, 128)     conv1 im2col slab (K padded 126->128), rows m=p*B+b
    w1_ref    : (128, 128)   conv1 weight, K/Cout zero-padded, f32
    b1_ref    : (1, 128)
    w2_ref    : (1152, 128)  conv2 weight, rows = tap*128 + ci (bf16)
    b2_ref    : (1, 128)
    mask_ref  : (9, M, 1)    per-tap board-validity masks (0/1, f32)
    bfc1_ref  : (1, 256)
    whead_ref : (256, 128)   [w_from | w_to] fused heads
    bhead_ref : (1, 128)
    wfc1_hbm  : (64,128,256) fc1 weight, bf16, left in HBM (pl.ANY)
    o_ref     : (B, 128)     [out_from | out_to]
    scratch   : wfc1_vmem (64,128,256) bf16, wsem DMA(1,),
                h1pad (M+2*PAD,128) bf16, xcol2 (M,1152) bf16, h2 (M,128) bf16
    """
    B = o_ref.shape[0]
    M = xcol1_ref.shape[0]
    C = 128
    PAD = (h1pad_ref.shape[0] - M) // 2

    # 1) Kick off the fc1 weight DMA immediately; it overlaps the conv stage.
    wcopy = pltpu.make_async_copy(wfc1_hbm, wfc1_vmem, wsem.at[0])
    wcopy.start()

    # 2) conv1: one wide-K MXU matmul + bias + ReLU (padded lanes >= 64 stay 0).
    h1 = jnp.dot(xcol1_ref[...], w1_ref[...], preferred_element_type=jnp.float32)
    h1 = jnp.maximum(h1 + b1_ref[...], 0.0)                       # (M, 128) f32

    # 3) In-kernel im2col for conv2 (bf16; h1 never leaves VMEM).  Only the
    #    border rows of the padded scratch are zeroed -- the middle M rows are
    #    fully overwritten by h1.
    zpad = jnp.zeros((PAD, C), h1pad_ref.dtype)
    h1pad_ref[pl.ds(0, PAD), :] = zpad
    h1pad_ref[pl.ds(PAD + M, PAD), :] = zpad
    h1pad_ref[pl.ds(PAD, M), :] = h1.astype(h1pad_ref.dtype)

    for k in range(9):
        dy, dx = k // 3, k % 3
        off = ((dy - 1) * 8 + (dx - 1)) * B            # row shift, position-major
        piece = h1pad_ref[pl.ds(PAD + off, M), :]      # (M, 128) bf16, shifted
        valid = mask_ref[k].astype(piece.dtype)        # (M, 1) 0/1
        # 128-wide, 128-aligned lane slot per tap -> unmasked lane-dense stores.
        xcol2_ref[:, k * C:(k + 1) * C] = piece * valid

    # 4) conv2: single K = 1152 bf16 matmul + bias + ReLU; stage result in bf16.
    h2 = jnp.dot(xcol2_ref[...], w2_ref[...], preferred_element_type=jnp.float32)
    h2 = jnp.maximum(h2 + b2_ref[...], 0.0)                       # (M, 128) f32
    h2_ref[...] = h2.astype(h2_ref.dtype)

    # 5) fc1 + ReLU + fused heads.  Rows are position-major (m = p*B + b), so
    #    position p's (B, 128) slab is contiguous and contracts against the
    #    p-th (128, 256) slice of the fc1 weight -- no flatten transpose.
    wcopy.wait()                                       # weight is now in VMEM
    acc = jnp.zeros((B, 256), jnp.float32)
    for p in range(64):
        xb = h2_ref[pl.ds(p * B, B), :]                            # (B, 128) bf16
        acc = acc + jnp.dot(xb, wfc1_vmem[p],
                            preferred_element_type=jnp.float32)
    hid = jnp.maximum(acc + bfc1_ref[...], 0.0)                    # (B, 256)
    o_ref[...] = (jnp.dot(hid, whead_ref[...],
                          preferred_element_type=jnp.float32) + bhead_ref[...])


# ------------------------------ JAX wrapper --------------------------------- #

def chess_model_forward(x_nchw, kp):
    B = x_nchw.shape[0]
    M = B * 64
    PAD = max(((9 * B + 7) // 8) * 8, 8)               # covers max tap shift 9*B

    # Tiny XLA glue: NCHW -> NHWC and conv1 im2col slab (input is ~7 KB).
    # Rows are position-major: m = (h*8 + w)*B + b.
    x = jnp.transpose(x_nchw, (0, 2, 3, 1)).astype(jnp.float32)   # (B, 8, 8, 14)
    xp = jnp.pad(x, ((0, 0), (1, 1), (1, 1), (0, 0)))             # (B, 10, 10, 14)
    cols = []
    for dy in range(3):
        for dx in range(3):
            t = xp[:, dy:dy + 8, dx:dx + 8, :]                     # (B, 8, 8, 14)
            cols.append(jnp.transpose(t, (1, 2, 0, 3)).reshape(M, 14))
    xcol1 = jnp.concatenate(cols, axis=1)                          # (M, 126)
    xcol1 = jnp.pad(xcol1, ((0, 0), (0, 2)))                       # (M, 128) lane-dense

    # Constant per-tap validity masks (precomputed, position-major rows).
    pidx = np.arange(64)
    hh, ww = pidx // 8, pidx % 8
    mk = np.zeros((9, 64), np.float32)
    for k in range(9):
        dy, dx = k // 3, k % 3
        mk[k] = ((hh + dy - 1 >= 0) & (hh + dy - 1 <= 7) &
                 (ww + dx - 1 >= 0) & (ww + dx - 1 <= 7)).astype(np.float32)
    mask = jnp.asarray(np.repeat(mk[:, :, None], B, axis=1))       # (9, M, 1)

    out = pl.pallas_call(
        chess_fused_kernel,
        grid=(1,),
        in_specs=[_full_spec((M, 128)),                  # xcol1
                  _full_spec((128, 128)),                # w1
                  _full_spec((1, 128)),                  # b1
                  _full_spec((1152, 128)),               # w2
                  _full_spec((1, 128)),                  # b2
                  _full_spec((9, M, 1)),                 # masks
                  _full_spec((1, 256)),                  # b_fc1
                  _full_spec((256, 128)),                # fused head weight
                  _full_spec((1, 128)),                  # fused head bias
                  pl.BlockSpec(memory_space=pl.ANY)],    # fc1 weight stays in HBM
        out_specs=_full_spec((B, 128)),
        out_shape=jax.ShapeDtypeStruct((B, 128), jnp.float32),
        scratch_shapes=[pltpu.VMEM((64, 128, 256), jnp.bfloat16),  # fc1 w landing
                        pltpu.SemaphoreType.DMA((1,)),
                        pltpu.VMEM((M + 2 * PAD, 128), jnp.bfloat16),
                        pltpu.VMEM((M, 9 * 128), jnp.bfloat16),
                        pltpu.VMEM((M, 128), jnp.bfloat16)],
        compiler_params=pltpu.CompilerParams(
            dimension_semantics=("arbitrary",),
            vmem_limit_bytes=10 << 20),
    )(xcol1, kp["w1k"], kp["b1k"], kp["w2k"], kp["b2k"], mask,
      kp["bfc1k"], kp["wheadk"], kp["bheadk"], kp["wfc1k"])

    return out[:, :64], out[:, 64:]


# --------------------------- deterministic params --------------------------- #

def init_params(key):
    ks = jax.random.split(key, 10)

    def kaiming_uniform(k, shape, fan_in):              # gain=sqrt(2) (relu)
        bound = float(np.sqrt(6.0 / fan_in))
        return jax.random.uniform(k, shape, jnp.float32, -bound, bound)

    def xavier_uniform(k, shape, fan_in, fan_out):
        bound = float(np.sqrt(6.0 / (fan_in + fan_out)))
        return jax.random.uniform(k, shape, jnp.float32, -bound, bound)

    def default_bias(k, shape, fan_in):                  # PyTorch default bias init
        bound = float(1.0 / np.sqrt(fan_in))
        return jax.random.uniform(k, shape, jnp.float32, -bound, bound)

    # conv2 and fc1 weights are pre-rounded to bf16 precision (the kernel
    # streams them as bf16), stored in f32 so the reference uses identical
    # values.  Freshly-initialized weights -> semantically equivalent module.
    w2 = kaiming_uniform(ks[2], (3, 3, 64, 128), fan_in=64 * 9)
    w2 = w2.astype(jnp.bfloat16).astype(jnp.float32)
    w_fc1 = xavier_uniform(ks[4], (8 * 8 * 128, 256), 8 * 8 * 128, 256)
    w_fc1 = w_fc1.astype(jnp.bfloat16).astype(jnp.float32)

    return {
        # conv weights in HWIO; fc1 rows indexed in NHWC flatten order
        # ((h*8 + w)*128 + c).  TODO(synk): a real PyTorch checkpoint would
        # need its fc1 rows permuted from NCHW flatten order (c*64 + h*8 + w).
        "w1": kaiming_uniform(ks[0], (3, 3, 14, 64), fan_in=14 * 9),
        "b1": default_bias(ks[1], (64,), fan_in=14 * 9),
        "w2": w2,
        "b2": default_bias(ks[3], (128,), fan_in=64 * 9),
        "w_fc1": w_fc1,
        "b_fc1": default_bias(ks[5], (256,), fan_in=8 * 8 * 128),
        "w_from": xavier_uniform(ks[6], (256, 64), 256, 64),
        "b_from": default_bias(ks[7], (64,), fan_in=256),
        "w_to": xavier_uniform(ks[8], (256, 64), 256, 64),
        "b_to": default_bias(ks[9], (64,), fan_in=256),
    }


def prepare_kernel_params(p):
    """One-time repack of canonical params into kernel layouts."""
    w1k = p["w1"].reshape(9 * 14, 64)                   # rows = tap*14 + ci
    w1k = jnp.pad(w1k, ((0, 2), (0, 64)))               # K 126->128, Cout 64->128
    b1k = jnp.pad(p["b1"], (0, 64)).reshape(1, 128)

    w2r = p["w2"].reshape(9, 64, 128)
    w2k = jnp.pad(w2r, ((0, 0), (0, 64), (0, 0))).reshape(9 * 128, 128)
    w2k = w2k.astype(jnp.bfloat16)                       # bf16 stream
    b2k = p["b2"].reshape(1, 128)

    return {
        "w1k": w1k, "b1k": b1k, "w2k": w2k, "b2k": b2k,
        # (64, 128, 256): slice p matches the position-major conv2 rows.
        "wfc1k": p["w_fc1"].reshape(64, 128, 256).astype(jnp.bfloat16),
        "bfc1k": p["b_fc1"].reshape(1, 256),
        "wheadk": jnp.concatenate([p["w_from"], p["w_to"]], axis=1),   # (256,128)
        "bheadk": jnp.concatenate([p["b_from"], p["b_to"]]).reshape(1, 128),
    }


# ------------------------------ pure-JAX reference --------------------------- #

def reference_forward(x_nchw, p):
    x = jnp.transpose(x_nchw, (0, 2, 3, 1)).astype(jnp.float32)

    def conv(h, w, b):
        y = jax.lax.conv_general_dilated(
            h, w, window_strides=(1, 1), padding=((1, 1), (1, 1)),
            dimension_numbers=("NHWC", "HWIO", "NHWC"))
        return jnp.maximum(y + b.reshape(1, 1, 1, -1), 0.0)

    h = conv(conv(x, p["w1"], p["b1"]), p["w2"], p["b2"])       # (B, 8, 8, 128)
    flat = h.reshape(x.shape[0], 8 * 8 * 128)                   # NHWC flatten
    hidden = jnp.maximum(flat @ p["w_fc1"] + p["b_fc1"], 0.0)
    return (hidden @ p["w_from"] + p["b_from"],
            hidden @ p["w_to"] + p["b_to"])


if __name__ == "__main__":
    key = jax.random.PRNGKey(0)
    pkey, xkey = jax.random.split(key)
    params = init_params(pkey)
    kparams = prepare_kernel_params(params)

    # Input like PyTorch: NCHW (batch=2, channels=14, 8x8 board).
    x = jax.random.normal(xkey, (2, 14, 8, 8), jnp.float32)

    fwd = jax.jit(chess_model_forward)
    out_from, out_to = fwd(x, kparams)
    jax.block_until_ready((out_from, out_to))

    assert out_from.shape == (2, 64) and out_to.shape == (2, 64)

    # Kernel runs conv2/fc1 activations through bf16 MXU paths (f32 accumulate);
    # reference is f32 end-to-end, hence the relaxed tolerance.
    ref_from, ref_to = reference_forward(x, params)
    np.testing.assert_allclose(np.asarray(out_from), np.asarray(ref_from),
                               rtol=2e-2, atol=2e-2)
    np.testing.assert_allclose(np.asarray(out_to), np.asarray(ref_to),
                               rtol=2e-2, atol=2e-2)
    print("KERNEL_OK")
</pallas_src>

<mosaic_0001>
module attributes {stable_mosaic.version = 11 : i64} {
  func.func @chess_fused_kernel(%arg0: i32, %arg1: memref<128x128xf32, #tpu.memory_space<vmem>>, %arg2: memref<128x128xf32, #tpu.memory_space<vmem>>, %arg3: memref<1x128xf32, #tpu.memory_space<vmem>>, %arg4: memref<1152x128xbf16, #tpu.memory_space<vmem>>, %arg5: memref<1x128xf32, #tpu.memory_space<vmem>>, %arg6: memref<9x128x1xf32, #tpu.memory_space<vmem>>, %arg7: memref<1x256xf32, #tpu.memory_space<vmem>>, %arg8: memref<256x128xf32, #tpu.memory_space<vmem>>, %arg9: memref<1x128xf32, #tpu.memory_space<vmem>>, %arg10: memref<64x128x256xbf16, #tpu.memory_space<any>>, %arg11: memref<2x128xf32, #tpu.memory_space<vmem>>, %arg12: memref<64x128x256xbf16, #tpu.memory_space<vmem>>, %arg13: memref<1x!tpu.dma_semaphore, #tpu.memory_space<semaphore_mem>>, %arg14: memref<176x128xbf16, #tpu.memory_space<vmem>>, %arg15: memref<128x1152xbf16, #tpu.memory_space<vmem>>, %arg16: memref<128x128xbf16, #tpu.memory_space<vmem>>) attributes {dimension_semantics = [#tpu.dimension_semantics<arbitrary>], iteration_bounds = array<i64: 1>, scalar_prefetch = 0 : i64, scratch_operands = 5 : i64, tpu.core_type = #tpu.core_type<tc>, window_params = [{pipeline_mode = #tpu.pipeline_mode<synchronous>, transform_indices = @transform_0, window_bounds = array<i64: 128, 128>}, {pipeline_mode = #tpu.pipeline_mode<synchronous>, transform_indices = @transform_1, window_bounds = array<i64: 128, 128>}, {pipeline_mode = #tpu.pipeline_mode<synchronous>, transform_indices = @transform_2, window_bounds = array<i64: 1, 128>}, {pipeline_mode = #tpu.pipeline_mode<synchronous>, transform_indices = @transform_3, window_bounds = array<i64: 1152, 128>}, {pipeline_mode = #tpu.pipeline_mode<synchronous>, transform_indices = @transform_4, window_bounds = array<i64: 1, 128>}, {pipeline_mode = #tpu.pipeline_mode<synchronous>, transform_indices = @transform_5, window_bounds = array<i64: 9, 128, 1>}, {pipeline_mode = #tpu.pipeline_mode<synchronous>, transform_indices = @transform_6, window_bounds = array<i64: 1, 256>}, {pipeline_mode = #tpu.pipeline_mode<synchronous>, transform_indices = @transform_7, window_bounds = array<i64: 256, 128>}, {pipeline_mode = #tpu.pipeline_mode<synchronous>, transform_indices = @transform_8, window_bounds = array<i64: 1, 128>}, {}, {pipeline_mode = #tpu.pipeline_mode<synchronous>, transform_indices = @transform_10, window_bounds = array<i64: 2, 128>}]} {
    %c0_i32 = arith.constant 0 : i32
    %0 = tpu.memref_slice %arg13[%c0_i32] : memref<1x!tpu.dma_semaphore, #tpu.memory_space<semaphore_mem>> -> memref<1x!tpu.dma_semaphore, #tpu.memory_space<semaphore_mem>>
    %1 = tpu.memref_squeeze %0 : memref<1x!tpu.dma_semaphore, #tpu.memory_space<semaphore_mem>> -> memref<!tpu.dma_semaphore, #tpu.memory_space<semaphore_mem>>
    tpu.enqueue_dma source(%arg10 : memref<64x128x256xbf16, #tpu.memory_space<any>>) target(%arg12 : memref<64x128x256xbf16, #tpu.memory_space<vmem>>) target_semaphore(%1 : memref<!tpu.dma_semaphore, #tpu.memory_space<semaphore_mem>>)
    %c0 = arith.constant 0 : index
    %c0_0 = arith.constant 0 : index
    %2 = vector.load %arg1[%c0, %c0_0] : memref<128x128xf32, #tpu.memory_space<vmem>>, vector<128x128xf32>
    %c0_1 = arith.constant 0 : index
    %c0_2 = arith.constant 0 : index
    %3 = vector.load %arg2[%c0_1, %c0_2] : memref<128x128xf32, #tpu.memory_space<vmem>>, vector<128x128xf32>
    %cst = arith.constant dense<0.000000e+00> : vector<128x128xf32>
    %4 = tpu.matmul %2, %3, %cst {dimension_numbers = #tpu.dot_dimension_numbers<[1], [0], [0], [1], [0, 0, 1, 1], [], []>} : vector<128x128xf32>, vector<128x128xf32>, vector<128x128xf32> -> vector<128x128xf32>
    %c0_3 = arith.constant 0 : index
    %c0_4 = arith.constant 0 : index
    %5 = vector.load %arg3[%c0_3, %c0_4] : memref<1x128xf32, #tpu.memory_space<vmem>>, vector<1x128xf32>
    %6 = vector.broadcast %5 : vector<1x128xf32> to vector<128x128xf32>
    %7 = arith.addf %4, %6 : vector<128x128xf32>
    %cst_5 = arith.constant 0.000000e+00 : f32
    %8 = vector.broadcast %cst_5 : f32 to vector<128x128xf32>
    %9 = arith.maximumf %7, %8 : vector<128x128xf32>
    %cst_6 = arith.constant 0.000000e+00 : bf16
    %10 = vector.broadcast %cst_6 : bf16 to vector<24x128xbf16>
    %c0_7 = arith.constant 0 : index
    %c0_8 = arith.constant 0 : index
    %11 = vector.load %arg14[%c0_7, %c0_8] : memref<176x128xbf16, #tpu.memory_space<vmem>>, vector<24x128xbf16>
    tpu.vector_store %arg14[%c0_7, %c0_8], %10 {strides = array<i32>} : memref<176x128xbf16, #tpu.memory_space<vmem>>, vector<24x128xbf16>,
    %c152 = arith.constant 152 : index
    %c0_9 = arith.constant 0 : index
    %12 = vector.load %arg14[%c152, %c0_9] : memref<176x128xbf16, #tpu.memory_space<vmem>>, vector<24x128xbf16>
    tpu.vector_store %arg14[%c152, %c0_9], %10 {strides = array<i32>} : memref<176x128xbf16, #tpu.memory_space<vmem>>, vector<24x128xbf16>,
    %13 = arith.truncf %9 : vector<128x128xf32> to vector<128x128xbf16>
    %c24 = arith.constant 24 : index
    %c0_10 = arith.constant 0 : index
    %14 = vector.load %arg14[%c24, %c0_10] : memref<176x128xbf16, #tpu.memory_space<vmem>>, vector<128x128xbf16>
    tpu.vector_store %arg14[%c24, %c0_10], %13 {strides = array<i32>} : memref<176x128xbf16, #tpu.memory_space<vmem>>, vector<128x128xbf16>,
    %c6 = arith.constant 6 : index
    %c0_11 = arith.constant 0 : index
    %15 = vector.load %arg14[%c6, %c0_11] : memref<176x128xbf16, #tpu.memory_space<vmem>>, vector<128x128xbf16>
    %c0_12 = arith.constant 0 : index
    %c0_13 = arith.constant 0 : index
    %c0_14 = arith.constant 0 : index
    %16 = vector.load %arg6[%c0_12, %c0_13, %c0_14] : memref<9x128x1xf32, #tpu.memory_space<vmem>>, vector<1x128x1xf32>
    %17 = vector.shape_cast %16 : vector<1x128x1xf32> to vector<128x1xf32>
    %18 = arith.truncf %17 : vector<128x1xf32> to vector<128x1xbf16>
    %19 = vector.broadcast %18 : vector<128x1xbf16> to vector<128x128xbf16>
    %20 = arith.mulf %15, %19 : vector<128x128xbf16>
    %c0_15 = arith.constant 0 : index
    %c0_16 = arith.constant 0 : index
    %21 = vector.load %arg15[%c0_15, %c0_16] : memref<128x1152xbf16, #tpu.memory_space<vmem>>, vector<128x128xbf16>
    tpu.vector_store %arg15[%c0_15, %c0_16], %20 {strides = array<i32>} : memref<128x1152xbf16, #tpu.memory_space<vmem>>, vector<128x128xbf16>,
    %c8 = arith.constant 8 : index
    %c0_17 = arith.constant 0 : index
    %22 = vector.load %arg14[%c8, %c0_17] : memref<176x128xbf16, #tpu.memory_space<vmem>>, vector<128x128xbf16>
    %c1 = arith.constant 1 : index
    %c0_18 = arith.constant 0 : index
    %c0_19 = arith.constant 0 : index
    %23 = vector.load %arg6[%c1, %c0_18, %c0_19] : memref<9x128x1xf32, #tpu.memory_space<vmem>>, vector<1x128x1xf32>
    %24 = vector.shape_cast %23 : vector<1x128x1xf32> to vector<128x1xf32>
    %25 = arith.truncf %24 : vector<128x1xf32> to vector<128x1xbf16>
    %26 = vector.broadcast %25 : vector<128x1xbf16> to vector<128x128xbf16>
    %27 = arith.mulf %22, %26 : vector<128x128xbf16>
    %c0_20 = arith.constant 0 : index
    %c128 = arith.constant 128 : index
    %28 = vector.load %arg15[%c0_20, %c128] : memref<128x1152xbf16, #tpu.memory_space<vmem>>, vector<128x128xbf16>
    tpu.vector_store %arg15[%c0_20, %c128], %27 {strides = array<i32>} : memref<128x1152xbf16, #tpu.memory_space<vmem>>, vector<128x128xbf16>,
    %c10 = arith.constant 10 : index
    %c0_21 = arith.constant 0 : index
    %29 = vector.load %arg14[%c10, %c0_21] : memref<176x128xbf16, #tpu.memory_space<vmem>>, vector<128x128xbf16>
    %c2 = arith.constant 2 : index
    %c0_22 = arith.constant 0 : index
    %c0_23 = arith.constant 0 : index
    %30 = vector.load %arg6[%c2, %c0_22, %c0_23] : memref<9x128x1xf32, #tpu.memory_space<vmem>>, vector<1x128x1xf32>
    %31 = vector.shape_cast %30 : vector<1x128x1xf32> to vector<128x1xf32>
    %32 = arith.truncf %31 : vector<128x1xf32> to vector<128x1xbf16>
    %33 = vector.broadcast %32 : vector<128x1xbf16> to vector<128x128xbf16>
    %34 = arith.mulf %29, %33 : vector<128x128xbf16>
    %c0_24 = arith.constant 0 : index
    %c256 = arith.constant 256 : index
    %35 = vector.load %arg15[%c0_24, %c256] : memref<128x1152xbf16, #tpu.memory_space<vmem>>, vector<128x128xbf16>
    tpu.vector_store %arg15[%c0_24, %c256], %34 {strides = array<i32>} : memref<128x1152xbf16, #tpu.memory_space<vmem>>, vector<128x128xbf16>,
    %c22 = arith.constant 22 : index
    %c0_25 = arith.constant 0 : index
    %36 = vector.load %arg14[%c22, %c0_25] : memref<176x128xbf16, #tpu.memory_space<vmem>>, vector<128x128xbf16>
    %c3 = arith.constant 3 : index
    %c0_26 = arith.constant 0 : index
    %c0_27 = arith.constant 0 : index
    %37 = vector.load %arg6[%c3, %c0_26, %c0_27] : memref<9x128x1xf32, #tpu.memory_space<vmem>>, vector<1x128x1xf32>
    %38 = vector.shape_cast %37 : vector<1x128x1xf32> to vector<128x1xf32>
    %39 = arith.truncf %38 : vector<128x1xf32> to vector<128x1xbf16>
    %40 = vector.broadcast %39 : vector<128x1xbf16> to vector<128x128xbf16>
    %41 = arith.mulf %36, %40 : vector<128x128xbf16>
    %c0_28 = arith.constant 0 : index
    %c384 = arith.constant 384 : index
    %42 = vector.load %arg15[%c0_28, %c384] : memref<128x1152xbf16, #tpu.memory_space<vmem>>, vector<128x128xbf16>
    tpu.vector_store %arg15[%c0_28, %c384], %41 {strides = array<i32>} : memref<128x1152xbf16, #tpu.memory_space<vmem>>, vector<128x128xbf16>,
    %c24_29 = arith.constant 24 : index
    %c0_30 = arith.constant 0 : index
    %43 = vector.load %arg14[%c24_29, %c0_30] : memref<176x128xbf16, #tpu.memory_space<vmem>>, vector<128x128xbf16>
    %c4 = arith.constant 4 : index
    %c0_31 = arith.constant 0 : index
    %c0_32 = arith.constant 0 : index
    %44 = vector.load %arg6[%c4, %c0_31, %c0_32] : memref<9x128x1xf32, #tpu.memory_space<vmem>>, vector<1x128x1xf32>
    %45 = vector.shape_cast %44 : vector<1x128x1xf32> to vector<128x1xf32>
    %46 = arith.truncf %45 : vector<128x1xf32> to vector<128x1xbf16>
    %47 = vector.broadcast %46 : vector<128x1xbf16> to vector<128x128xbf16>
    %48 = arith.mulf %43, %47 : vector<128x128xbf16>
    %c0_33 = arith.constant 0 : index
    %c512 = arith.constant 512 : index
    %49 = vector.load %arg15[%c0_33, %c512] : memref<128x1152xbf16, #tpu.memory_space<vmem>>, vector<128x128xbf16>
    tpu.vector_store %arg15[%c0_33, %c512], %48 {strides = array<i32>} : memref<128x1152xbf16, #tpu.memory_space<vmem>>, vector<128x128xbf16>,
    %c26 = arith.constant 26 : index
    %c0_34 = arith.constant 0 : index
    %50 = vector.load %arg14[%c26, %c0_34] : memref<176x128xbf16, #tpu.memory_space<vmem>>, vector<128x128xbf16>
    %c5 = arith.constant 5 : index
    %c0_35 = arith.constant 0 : index
    %c0_36 = arith.constant 0 : index
    %51 = vector.load %arg6[%c5, %c0_35, %c0_36] : memref<9x128x1xf32, #tpu.memory_space<vmem>>, vector<1x128x1xf32>
    %52 = vector.shape_cast %51 : vector<1x128x1xf32> to vector<128x1xf32>
    %53 = arith.truncf %52 : vector<128x1xf32> to vector<128x1xbf16>
    %54 = vector.broadcast %53 : vector<128x1xbf16> to vector<128x128xbf16>
    %55 = arith.mulf %50, %54 : vector<128x128xbf16>
    %c0_37 = arith.constant 0 : index
    %c640 = arith.constant 640 : index
    %56 = vector.load %arg15[%c0_37, %c640] : memref<128x1152xbf16, #tpu.memory_space<vmem>>, vector<128x128xbf16>
    tpu.vector_store %arg15[%c0_37, %c640], %55 {strides = array<i32>} : memref<128x1152xbf16, #tpu.memory_space<vmem>>, vector<128x128xbf16>,
    %c38 = arith.constant 38 : index
    %c0_38 = arith.constant 0 : index
    %57 = vector.load %arg14[%c38, %c0_38] : memref<176x128xbf16, #tpu.memory_space<vmem>>, vector<128x128xbf16>
    %c6_39 = arith.constant 6 : index
    %c0_40 = arith.constant 0 : index
    %c0_41 = arith.constant 0 : index
    %58 = vector.load %arg6[%c6_39, %c0_40, %c0_41] : memref<9x128x1xf32, #tpu.memory_space<vmem>>, vector<1x128x1xf32>
    %59 = vector.shape_cast %58 : vector<1x128x1xf32> to vector<128x1xf32>
    %60 = arith.truncf %59 : vector<128x1xf32> to vector<128x1xbf16>
    %61 = vector.broadcast %60 : vector<128x1xbf16> to vector<128x128xbf16>
    %62 = arith.mulf %57, %61 : vector<128x128xbf16>
    %c0_42 = arith.constant 0 : index
    %c768 = arith.constant 768 : index
    %63 = vector.load %arg15[%c0_42, %c768] : memref<128x1152xbf16, #tpu.memory_space<vmem>>, vector<128x128xbf16>
    tpu.vector_store %arg15[%c0_42, %c768], %62 {strides = array<i32>} : memref<128x1152xbf16, #tpu.memory_space<vmem>>, vector<128x128xbf16>,
    %c40 = arith.constant 40 : index
    %c0_43 = arith.constant 0 : index
    %64 = vector.load %arg14[%c40, %c0_43] : memref<176x128xbf16, #tpu.memory_space<vmem>>, vector<128x128xbf16>
    %c7 = arith.constant 7 : index
    %c0_44 = arith.constant 0 : index
    %c0_45 = arith.constant 0 : index
    %65 = vector.load %arg6[%c7, %c0_44, %c0_45] : memref<9x128x1xf32, #tpu.memory_space<vmem>>, vector<1x128x1xf32>
    %66 = vector.shape_cast %65 : vector<1x128x1xf32> to vector<128x1xf32>
    %67 = arith.truncf %66 : vector<128x1xf32> to vector<128x1xbf16>
    %68 = vector.broadcast %67 : vector<128x1xbf16> to vector<128x128xbf16>
    %69 = arith.mulf %64, %68 : vector<128x128xbf16>
    %c0_46 = arith.constant 0 : index
    %c896 = arith.constant 896 : index
    %70 = vector.load %arg15[%c0_46, %c896] : memref<128x1152xbf16, #tpu.memory_space<vmem>>, vector<128x128xbf16>
    tpu.vector_store %arg15[%c0_46, %c896], %69 {strides = array<i32>} : memref<128x1152xbf16, #tpu.memory_space<vmem>>, vector<128x128xbf16>,
    %c42 = arith.constant 42 : index
    %c0_47 = arith.constant 0 : index
    %71 = vector.load %arg14[%c42, %c0_47] : memref<176x128xbf16, #tpu.memory_space<vmem>>, vector<128x128xbf16>
    %c8_48 = arith.constant 8 : index
    %c0_49 = arith.constant 0 : index
    %c0_50 = arith.constant 0 : index
    %72 = vector.load %arg6[%c8_48, %c0_49, %c0_50] : memref<9x128x1xf32, #tpu.memory_space<vmem>>, vector<1x128x1xf32>
    %73 = vector.shape_cast %72 : vector<1x128x1xf32> to vector<128x1xf32>
    %74 = arith.truncf %73 : vector<128x1xf32> to vector<128x1xbf16>
    %75 = vector.broadcast %74 : vector<128x1xbf16> to vector<128x128xbf16>
    %76 = arith.mulf %71, %75 : vector<128x128xbf16>
    %c0_51 = arith.constant 0 : index
    %c1024 = arith.constant 1024 : index
    %77 = vector.load %arg15[%c0_51, %c1024] : memref<128x1152xbf16, #tpu.memory_space<vmem>>, vector<128x128xbf16>
    tpu.vector_store %arg15[%c0_51, %c1024], %76 {strides = array<i32>} : memref<128x1152xbf16, #tpu.memory_space<vmem>>, vector<128x128xbf16>,
    %c0_52 = arith.constant 0 : index
    %c0_53 = arith.constant 0 : index
    %78 = vector.load %arg15[%c0_52, %c0_53] : memref<128x1152xbf16, #tpu.memory_space<vmem>>, vector<128x1152xbf16>
    %c0_54 = arith.constant 0 : index
    %c0_55 = arith.constant 0 : index
    %79 = vector.load %arg4[%c0_54, %c0_55] : memref<1152x128xbf16, #tpu.memory_space<vmem>>, vector<1152x128xbf16>
    %cst_56 = arith.constant dense<0.000000e+00> : vector<128x128xf32>
    %80 = tpu.matmul %78, %79, %cst_56 {dimension_numbers = #tpu.dot_dimension_numbers<[1], [0], [0], [1], [0, 0, 1, 1], [], []>} : vector<128x1152xbf16>, vector<1152x128xbf16>, vector<128x128xf32> -> vector<128x128xf32>
    %c0_57 = arith.constant 0 : index
    %c0_58 = arith.constant 0 : index
    %81 = vector.load %arg5[%c0_57, %c0_58] : memref<1x128xf32, #tpu.memory_space<vmem>>, vector<1x128xf32>
    %82 = vector.broadcast %81 : vector<1x128xf32> to vector<128x128xf32>
    %83 = arith.addf %80, %82 : vector<128x128xf32>
    %cst_59 = arith.constant 0.000000e+00 : f32
    %84 = vector.broadcast %cst_59 : f32 to vector<128x128xf32>
    %85 = arith.maximumf %83, %84 : vector<128x128xf32>
    %86 = arith.truncf %85 : vector<128x128xf32> to vector<128x128xbf16>
    %c0_60 = arith.constant 0 : index
    %c0_61 = arith.constant 0 : index
    %87 = vector.load %arg16[%c0_60, %c0_61] : memref<128x128xbf16, #tpu.memory_space<vmem>>, vector<128x128xbf16>
    tpu.vector_store %arg16[%c0_60, %c0_61], %86 {strides = array<i32>} : memref<128x128xbf16, #tpu.memory_space<vmem>>, vector<128x128xbf16>,
    %c0_i32_62 = arith.constant 0 : i32
    %88 = tpu.memref_slice %arg13[%c0_i32_62] : memref<1x!tpu.dma_semaphore, #tpu.memory_space<semaphore_mem>> -> memref<1x!tpu.dma_semaphore, #tpu.memory_space<semaphore_mem>>
    %89 = tpu.memref_squeeze %88 : memref<1x!tpu.dma_semaphore, #tpu.memory_space<semaphore_mem>> -> memref<!tpu.dma_semaphore, #tpu.memory_space<semaphore_mem>>
    tpu.wait_dma2 semaphore(%89 : memref<!tpu.dma_semaphore, #tpu.memory_space<semaphore_mem>>) src(%arg10 : memref<64x128x256xbf16, #tpu.memory_space<any>>) dst(%arg12 : memref<64x128x256xbf16, #tpu.memory_space<vmem>>)
    %cst_63 = arith.constant 0.000000e+00 : f32
    %90 = vector.broadcast %cst_63 : f32 to vector<2x256xf32>
    %c0_64 = arith.constant 0 : index
    %c0_65 = arith.constant 0 : index
    %91 = vector.load %arg16[%c0_64, %c0_65] : memref<128x128xbf16, #tpu.memory_space<vmem>>, vector<2x128xbf16>
    %c0_66 = arith.constant 0 : index
    %c0_67 = arith.constant 0 : index
    %c0_68 = arith.constant 0 : index
    %92 = vector.load %arg12[%c0_66, %c0_67, %c0_68] : memref<64x128x256xbf16, #tpu.memory_space<vmem>>, vector<1x128x256xbf16>
    %93 = vector.shape_cast %92 : vector<1x128x256xbf16> to vector<128x256xbf16>
    %cst_69 = arith.constant dense<0.000000e+00> : vector<2x256xf32>
    %94 = tpu.matmul %91, %93, %cst_69 {dimension_numbers = #tpu.dot_dimension_numbers<[1], [0], [0], [1], [0, 0, 1, 1], [], []>} : vector<2x128xbf16>, vector<128x256xbf16>, vector<2x256xf32> -> vector<2x256xf32>
    %95 = arith.addf %90, %94 : vector<2x256xf32>
    %c2_70 = arith.constant 2 : index
    %c0_71 = arith.constant 0 : index
    %96 = vector.load %arg16[%c2_70, %c0_71] : memref<128x128xbf16, #tpu.memory_space<vmem>>, vector<2x128xbf16>
    %c1_72 = arith.constant 1 : index
    %c0_73 = arith.constant 0 : index
    %c0_74 = arith.constant 0 : index
    %97 = vector.load %arg12[%c1_72, %c0_73, %c0_74] : memref<64x128x256xbf16, #tpu.memory_space<vmem>>, vector<1x128x256xbf16>
    %98 = vector.shape_cast %97 : vector<1x128x256xbf16> to vector<128x256xbf16>
    %cst_75 = arith.constant dense<0.000000e+00> : vector<2x256xf32>
    %99 = tpu.matmul %96, %98, %cst_75 {dimension_numbers = #tpu.dot_dimension_numbers<[1], [0], [0], [1], [0, 0, 1, 1], [], []>} : vector<2x128xbf16>, vector<128x256xbf16>, vector<2x256xf32> -> vector<2x256xf32>
    %100 = arith.addf %95, %99 : vector<2x256xf32>
    %c4_76 = arith.constant 4 : index
    %c0_77 = arith.constant 0 : index
    %101 = vector.load %arg16[%c4_76, %c0_77] : memref<128x128xbf16, #tpu.memory_space<vmem>>, vector<2x128xbf16>
    %c2_78 = arith.constant 2 : index
    %c0_79 = arith.constant 0 : index
    %c0_80 = arith.constant 0 : index
    %102 = vector.load %arg12[%c2_78, %c0_79, %c0_80] : memref<64x128x256xbf16, #tpu.memory_space<vmem>>, vector<1x128x256xbf16>
    %103 = vector.shape_cast %102 : vector<1x128x256xbf16> to vector<128x256xbf16>
    %cst_81 = arith.constant dense<0.000000e+00> : vector<2x256xf32>
    %104 = tpu.matmul %101, %103, %cst_81 {dimension_numbers = #tpu.dot_dimension_numbers<[1], [0], [0], [1], [0, 0, 1, 1], [], []>} : vector<2x128xbf16>, vector<128x256xbf16>, vector<2x256xf32> -> vector<2x256xf32>
    %105 = arith.addf %100, %104 : vector<2x256xf32>
    %c6_82 = arith.constant 6 : index
    %c0_83 = arith.constant 0 : index
    %106 = vector.load %arg16[%c6_82, %c0_83] : memref<128x128xbf16, #tpu.memory_space<vmem>>, vector<2x128xbf16>
    %c3_84 = arith.constant 3 : index
    %c0_85 = arith.constant 0 : index
    %c0_86 = arith.constant 0 : index
    %107 = vector.load %arg12[%c3_84, %c0_85, %c0_86] : memref<64x128x256xbf16, #tpu.memory_space<vmem>>, vector<1x128x256xbf16>
    %108 = vector.shape_cast %107 : vector<1x128x256xbf16> to vector<128x256xbf16>
    %cst_87 = arith.constant dense<0.000000e+00> : vector<2x256xf32>
    %109 = tpu.matmul %106, %108, %cst_87 {dimension_numbers = #tpu.dot_dimension_numbers<[1], [0], [0], [1], [0, 0, 1, 1], [], []>} : vector<2x128xbf16>, vector<128x256xbf16>, vector<2x256xf32> -> vector<2x256xf32>
    %110 = arith.addf %105, %109 : vector<2x256xf32>
    %c8_88 = arith.constant 8 : index
    %c0_89 = arith.constant 0 : index
    %111 = vector.load %arg16[%c8_88, %c0_89] : memref<128x128xbf16, #tpu.memory_space<vmem>>, vector<2x128xbf16>
    %c4_90 = arith.constant 4 : index
    %c0_91 = arith.constant 0 : index
    %c0_92 = arith.constant 0 : index
    %112 = vector.load %arg12[%c4_90, %c0_91, %c0_92] : memref<64x128x256xbf16, #tpu.memory_space<vmem>>, vector<1x128x256xbf16>
    %113 = vector.shape_cast %112 : vector<1x128x256xbf16> to vector<128x256xbf16>
    %cst_93 = arith.constant dense<0.000000e+00> : vector<2x256xf32>
    %114 = tpu.matmul %111, %113, %cst_93 {dimension_numbers = #tpu.dot_dimension_numbers<[1], [0], [0], [1], [0, 0, 1, 1], [], []>} : vector<2x128xbf16>, vector<128x256xbf16>, vector<2x256xf32> -> vector<2x256xf32>
    %115 = arith.addf %110, %114 : vector<2x256xf32>
    %c10_94 = arith.constant 10 : index
    %c0_95 = arith.constant 0 : index
    %116 = vector.load %arg16[%c10_94, %c0_95] : memref<128x128xbf16, #tpu.memory_space<vmem>>, vector<2x128xbf16>
    %c5_96 = arith.constant 5 : index
    %c0_97 = arith.constant 0 : index
    %c0_98 = arith.constant 0 : index
    %117 = vector.load %arg12[%c5_96, %c0_97, %c0_98] : memref<64x128x256xbf16, #tpu.memory_space<vmem>>, vector<1x128x256xbf16>
    %118 = vector.shape_cast %117 : vector<1x128x256xbf16> to vector<128x256xbf16>
    %cst_99 = arith.constant dense<0.000000e+00> : vector<2x256xf32>
    %119 = tpu.matmul %116, %118, %cst_99 {dimension_numbers = #tpu.dot_dimension_numbers<[1], [0], [0], [1], [0, 0, 1, 1], [], []>} : vector<2x128xbf16>, vector<128x256xbf16>, vector<2x256xf32> -> vector<2x256xf32>
    %120 = arith.addf %115, %119 : vector<2x256xf32>
    %c12 = arith.constant 12 : index
    %c0_100 = arith.constant 0 : index
    %121 = vector.load %arg16[%c12, %c0_100] : memref<128x128xbf16, #tpu.memory_space<vmem>>, vector<2x128xbf16>
    %c6_101 = arith.constant 6 : index
    %c0_102 = arith.constant 0 : index
    %c0_103 = arith.constant 0 : index
    %122 = vector.load %arg12[%c6_101, %c0_102, %c0_103] : memref<64x128x256xbf16, #tpu.memory_space<vmem>>, vector<1x128x256xbf16>
    %123 = vector.shape_cast %122 : vector<1x128x256xbf16> to vector<128x256xbf16>
    %cst_104 = arith.constant dense<0.000000e+00> : vector<2x256xf32>
    %124 = tpu.matmul %121, %123, %cst_104 {dimension_numbers = #tpu.dot_dimension_numbers<[1], [0], [0], [1], [0, 0, 1, 1], [], []>} : vector<2x128xbf16>, vector<128x256xbf16>, vector<2x256xf32> -> vector<2x256xf32>
    %125 = arith.addf %120, %124 : vector<2x256xf32>
    %c14 = arith.constant 14 : index
    %c0_105 = arith.constant 0 : index
    %126 = vector.load %arg16[%c14, %c0_105] : memref<128x128xbf16, #tpu.memory_space<vmem>>, vector<2x128xbf16>
    %c7_106 = arith.constant 7 : index
    %c0_107 = arith.constant 0 : index
    %c0_108 = arith.constant 0 : index
    %127 = vector.load %arg12[%c7_106, %c0_107, %c0_108] : memref<64x128x256xbf16, #tpu.memory_space<vmem>>, vector<1x128x256xbf16>
    %128 = vector.shape_cast %127 : vector<1x128x256xbf16> to vector<128x256xbf16>
    %cst_109 = arith.constant dense<0.000000e+00> : vector<2x256xf32>
    %129 = tpu.matmul %126, %128, %cst_109 {dimension_numbers = #tpu.dot_dimension_numbers<[1], [0], [0], [1], [0, 0, 1, 1], [], []>} : vector<2x128xbf16>, vector<128x256xbf16>, vector<2x256xf32> -> vector<2x256xf32>
    %130 = arith.addf %125, %129 : vector<2x256xf32>
    %c16 = arith.constant 16 : index
    %c0_110 = arith.constant 0 : index
    %131 = vector.load %arg16[%c16, %c0_110] : memref<128x128xbf16, #tpu.memory_space<vmem>>, vector<2x128xbf16>
    %c8_111 = arith.constant 8 : index
    %c0_112 = arith.constant 0 : index
    %c0_113 = arith.constant 0 : index
    %132 = vector.load %arg12[%c8_111, %c0_112, %c0_113] : memref<64x128x256xbf16, #tpu.memory_space<vmem>>, vector<1x128x256xbf16>
    %133 = vector.shape_cast %132 : vector<1x128x256xbf16> to vector<128x256xbf16>
    %cst_114 = arith.constant dense<0.000000e+00> : vector<2x256xf32>
    %134 = tpu.matmul %131, %133, %cst_114 {dimension_numbers = #tpu.dot_dimension_numbers<[1], [0], [0], [1], [0, 0, 1, 1], [], []>} : vector<2x128xbf16>, vector<128x256xbf16>, vector<2x256xf32> -> vector<2x256xf32>
    %135 = arith.addf %130, %134 : vector<2x256xf32>
    %c18 = arith.constant 18 : index
    %c0_115 = arith.constant 0 : index
    %136 = vector.load %arg16[%c18, %c0_115] : memref<128x128xbf16, #tpu.memory_space<vmem>>, vector<2x128xbf16>
    %c9 = arith.constant 9 : index
    %c0_116 = arith.constant 0 : index
    %c0_117 = arith.constant 0 : index
    %137 = vector.load %arg12[%c9, %c0_116, %c0_117] : memref<64x128x256xbf16, #tpu.memory_space<vmem>>, vector<1x128x256xbf16>
    %138 = vector.shape_cast %137 : vector<1x128x256xbf16> to vector<128x256xbf16>
    %cst_118 = arith.constant dense<0.000000e+00> : vector<2x256xf32>
    %139 = tpu.matmul %136, %138, %cst_118 {dimension_numbers = #tpu.dot_dimension_numbers<[1], [0], [0], [1], [0, 0, 1, 1], [], []>} : vector<2x128xbf16>, vector<128x256xbf16>, vector<2x256xf32> -> vector<2x256xf32>
    %140 = arith.addf %135, %139 : vector<2x256xf32>
    %c20 = arith.constant 20 : index
    %c0_119 = arith.constant 0 : index
    %141 = vector.load %arg16[%c20, %c0_119] : memref<128x128xbf16, #tpu.memory_space<vmem>>, vector<2x128xbf16>
    %c10_120 = arith.constant 10 : index
    %c0_121 = arith.constant 0 : index
    %c0_122 = arith.constant 0 : index
    %142 = vector.load %arg12[%c10_120, %c0_121, %c0_122] : memref<64x128x256xbf16, #tpu.memory_space<vmem>>, vector<1x128x256xbf16>
    %143 = vector.shape_cast %142 : vector<1x128x256xbf16> to vector<128x256xbf16>
    %cst_123 = arith.constant dense<0.000000e+00> : vector<2x256xf32>
    %144 = tpu.matmul %141, %143, %cst_123 {dimension_numbers = #tpu.dot_dimension_numbers<[1], [0], [0], [1], [0, 0, 1, 1], [], []>} : vector<2x128xbf16>, vector<128x256xbf16>, vector<2x256xf32> -> vector<2x256xf32>
    %145 = arith.addf %140, %144 : vector<2x256xf32>
    %c22_124 = arith.constant 22 : index
    %c0_125 = arith.constant 0 : index
    %146 = vector.load %arg16[%c22_124, %c0_125] : memref<128x128xbf16, #tpu.memory_space<vmem>>, vector<2x128xbf16>
    %c11 = arith.constant 11 : index
    %c0_126 = arith.constant 0 : index
    %c0_127 = arith.constant 0 : index
    %147 = vector.load %arg12[%c11, %c0_126, %c0_127] : memref<64x128x256xbf16, #tpu.memory_space<vmem>>, vector<1x128x256xbf16>
    %148 = vector.shape_cast %147 : vector<1x128x256xbf16> to vector<128x256xbf16>
    %cst_128 = arith.constant dense<0.000000e+00> : vector<2x256xf32>
    %149 = tpu.matmul %146, %148, %cst_128 {dimension_numbers = #tpu.dot_dimension_numbers<[1], [0], [0], [1], [0, 0, 1, 1], [], []>} : vector<2x128xbf16>, vector<128x256xbf16>, vector<2x256xf32> -> vector<2x256xf32>
    %150 = arith.addf %145, %149 : vector<2x256xf32>
    %c24_129 = arith.constant 24 : index
    %c0_130 = arith.constant 0 : index
    %151 = vector.load %arg16[%c24_129, %c0_130] : memref<128x128xbf16, #tpu.memory_space<vmem>>, vector<2x128xbf16>
    %c12_131 = arith.constant 12 : index
    %c0_132 = arith.constant 0 : index
    %c0_133 = arith.constant 0 : index
    %152 = vector.load %arg12[%c12_131, %c0_132, %c0_133] : memref<64x128x256xbf16, #tpu.memory_space<vmem>>, vector<1x128x256xbf16>
    %153 = vector.shape_cast %152 : vector<1x128x256xbf16> to vector<128x256xbf16>
    %cst_134 = arith.constant dense<0.000000e+00> : vector<2x256xf32>
    %154 = tpu.matmul %151, %153, %cst_134 {dimension_numbers = #tpu.dot_dimension_numbers<[1], [0], [0], [1], [0, 0, 1, 1], [], []>} : vector<2x128xbf16>, vector<128x256xbf16>, vector<2x256xf32> -> vector<2x256xf32>
    %155 = arith.addf %150, %154 : vector<2x256xf32>
    %c26_135 = arith.constant 26 : index
    %c0_136 = arith.constant 0 : index
    %156 = vector.load %arg16[%c26_135, %c0_136] : memref<128x128xbf16, #tpu.memory_space<vmem>>, vector<2x128xbf16>
    %c13 = arith.constant 13 : index
    %c0_137 = arith.constant 0 : index
    %c0_138 = arith.constant 0 : index
    %157 = vector.load %arg12[%c13, %c0_137, %c0_138] : memref<64x128x256xbf16, #tpu.memory_space<vmem>>, vector<1x128x256xbf16>
    %158 = vector.shape_cast %157 : vector<1x128x256xbf16> to vector<128x256xbf16>
    %cst_139 = arith.constant dense<0.000000e+00> : vector<2x256xf32>
    %159 = tpu.matmul %156, %158, %cst_139 {dimension_numbers = #tpu.dot_dimension_numbers<[1], [0], [0], [1], [0, 0, 1, 1], [], []>} : vector<2x128xbf16>, vector<128x256xbf16>, vector<2x256xf32> -> vector<2x256xf32>
    %160 = arith.addf %155, %159 : vector<2x256xf32>
    %c28 = arith.constant 28 : index
    %c0_140 = arith.constant 0 : index
    %161 = vector.load %arg16[%c28, %c0_140] : memref<128x128xbf16, #tpu.memory_space<vmem>>, vector<2x128xbf16>
    %c14_141 = arith.constant 14 : index
    %c0_142 = arith.constant 0 : index
    %c0_143 = arith.constant 0 : index
    %162 = vector.load %arg12[%c14_141, %c0_142, %c0_143] : memref<64x128x256xbf16, #tpu.memory_space<vmem>>, vector<1x128x256xbf16>
    %163 = vector.shape_cast %162 : vector<1x128x256xbf16> to vector<128x256xbf16>
    %cst_144 = arith.constant dense<0.000000e+00> : vector<2x256xf32>
    %164 = tpu.matmul %161, %163, %cst_144 {dimension_numbers = #tpu.dot_dimension_numbers<[1], [0], [0], [1], [0, 0, 1, 1], [], []>} : vector<2x128xbf16>, vector<128x256xbf16>, vector<2x256xf32> -> vector<2x256xf32>
    %165 = arith.addf %160, %164 : vector<2x256xf32>
    %c30 = arith.constant 30 : index
    %c0_145 = arith.constant 0 : index
    %166 = vector.load %arg16[%c30, %c0_145] : memref<128x128xbf16, #tpu.memory_space<vmem>>, vector<2x128xbf16>
    %c15 = arith.constant 15 : index
    %c0_146 = arith.constant 0 : index
    %c0_147 = arith.constant 0 : index
    %167 = vector.load %arg12[%c15, %c0_146, %c0_147] : memref<64x128x256xbf16, #tpu.memory_space<vmem>>, vector<1x128x256xbf16>
    %168 = vector.shape_cast %167 : vector<1x128x256xbf16> to vector<128x256xbf16>
    %cst_148 = arith.constant dense<0.000000e+00> : vector<2x256xf32>
    %169 = tpu.matmul %166, %168, %cst_148 {dimension_numbers = #tpu.dot_dimension_numbers<[1], [0], [0], [1], [0, 0, 1, 1], [], []>} : vector<2x128xbf16>, vector<128x256xbf16>, vector<2x256xf32> -> vector<2x256xf32>
    %170 = arith.addf %165, %169 : vector<2x256xf32>
    %c32 = arith.constant 32 : index
    %c0_149 = arith.constant 0 : index
    %171 = vector.load %arg16[%c32, %c0_149] : memref<128x128xbf16, #tpu.memory_space<vmem>>, vector<2x128xbf16>
    %c16_150 = arith.constant 16 : index
    %c0_151 = arith.constant 0 : index
    %c0_152 = arith.constant 0 : index
    %172 = vector.load %arg12[%c16_150, %c0_151, %c0_152] : memref<64x128x256xbf16, #tpu.memory_space<vmem>>, vector<1x128x256xbf16>
    %173 = vector.shape_cast %172 : vector<1x128x256xbf16> to vector<128x256xbf16>
    %cst_153 = arith.constant dense<0.000000e+00> : vector<2x256xf32>
    %174 = tpu.matmul %171, %173, %cst_153 {dimension_numbers = #tpu.dot_dimension_numbers<[1], [0], [0], [1], [0, 0, 1, 1], [], []>} : vector<2x128xbf16>, vector<128x256xbf16>, vector<2x256xf32> -> vector<2x256xf32>
    %175 = arith.addf %170, %174 : vector<2x256xf32>
    %c34 = arith.constant 34 : index
    %c0_154 = arith.constant 0 : index
    %176 = vector.load %arg16[%c34, %c0_154] : memref<128x128xbf16, #tpu.memory_space<vmem>>, vector<2x128xbf16>
    %c17 = arith.constant 17 : index
    %c0_155 = arith.constant 0 : index
    %c0_156 = arith.constant 0 : index
    %177 = vector.load %arg12[%c17, %c0_155, %c0_156] : memref<64x128x256xbf16, #tpu.memory_space<vmem>>, vector<1x128x256xbf16>
    %178 = vector.shape_cast %177 : vector<1x128x256xbf16> to vector<128x256xbf16>
    %cst_157 = arith.constant dense<0.000000e+00> : vector<2x256xf32>
    %179 = tpu.matmul %176, %178, %cst_157 {dimension_numbers = #tpu.dot_dimension_numbers<[1], [0], [0], [1], [0, 0, 1, 1], [], []>} : vector<2x128xbf16>, vector<128x256xbf16>, vector<2x256xf32> -> vector<2x256xf32>
    %180 = arith.addf %175, %179 : vector<2x256xf32>
    %c36 = arith.constant 36 : index
    %c0_158 = arith.constant 0 : index
    %181 = vector.load %arg16[%c36, %c0_158] : memref<128x128xbf16, #tpu.memory_space<vmem>>, vector<2x128xbf16>
    %c18_159 = arith.constant 18 : index
    %c0_160 = arith.constant 0 : index
    %c0_161 = arith.constant 0 : index
    %182 = vector.load %arg12[%c18_159, %c0_160, %c0_161] : memref<64x128x256xbf16, #tpu.memory_space<vmem>>, vector<1x128x256xbf16>
    %183 = vector.shape_cast %182 : vector<1x128x256xbf16> to vector<128x256xbf16>
    %cst_162 = arith.constant dense<0.000000e+00> : vector<2x256xf32>
    %184 = tpu.matmul %181, %183, %cst_162 {dimension_numbers = #tpu.dot_dimension_numbers<[1], [0], [0], [1], [0, 0, 1, 1], [], []>} : vector<2x128xbf16>, vector<128x256xbf16>, vector<2x256xf32> -> vector<2x256xf32>
    %185 = arith.addf %180, %184 : vector<2x256xf32>
    %c38_163 = arith.constant 38 : index
    %c0_164 = arith.constant 0 : index
    %186 = vector.load %arg16[%c38_163, %c0_164] : memref<128x128xbf16, #tpu.memory_space<vmem>>, vector<2x128xbf16>
    %c19 = arith.constant 19 : index
    %c0_165 = arith.constant 0 : index
    %c0_166 = arith.constant 0 : index
    %187 = vector.load %arg12[%c19, %c0_165, %c0_166] : memref<64x128x256xbf16, #tpu.memory_space<vmem>>, vector<1x128x256xbf16>
    %188 = vector.shape_cast %187 : vector<1x128x256xbf16> to vector<128x256xbf16>
    %cst_167 = arith.constant dense<0.000000e+00> : vector<2x256xf32>
    %189 = tpu.matmul %186, %188, %cst_167 {dimension_numbers = #tpu.dot_dimension_numbers<[1], [0], [0], [1], [0, 0, 1, 1], [], []>} : vector<2x128xbf16>, vector<128x256xbf16>, vector<2x256xf32> -> vector<2x256xf32>
    %190 = arith.addf %185, %189 : vector<2x256xf32>
    %c40_168 = arith.constant 40 : index
    %c0_169 = arith.constant 0 : index
    %191 = vector.load %arg16[%c40_168, %c0_169] : memref<128x128xbf16, #tpu.memory_space<vmem>>, vector<2x128xbf16>
    %c20_170 = arith.constant 20 : index
    %c0_171 = arith.constant 0 : index
    %c0_172 = arith.constant 0 : index
    %192 = vector.load %arg12[%c20_170, %c0_171, %c0_172] : memref<64x128x256xbf16, #tpu.memory_space<vmem>>, vector<1x128x256xbf16>
    %193 = vector.shape_cast %192 : vector<1x128x256xbf16> to vector<128x256xbf16>
    %cst_173 = arith.constant dense<0.000000e+00> : vector<2x256xf32>
    %194 = tpu.matmul %191, %193, %cst_173 {dimension_numbers = #tpu.dot_dimension_numbers<[1], [0], [0], [1], [0, 0, 1, 1], [], []>} : vector<2x128xbf16>, vector<128x256xbf16>, vector<2x256xf32> -> vector<2x256xf32>
    %195 = arith.addf %190, %194 : vector<2x256xf32>
    %c42_174 = arith.constant 42 : index
    %c0_175 = arith.constant 0 : index
    %196 = vector.load %arg16[%c42_174, %c0_175] : memref<128x128xbf16, #tpu.memory_space<vmem>>, vector<2x128xbf16>
    %c21 = arith.constant 21 : index
    %c0_176 = arith.constant 0 : index
    %c0_177 = arith.constant 0 : index
    %197 = vector.load %arg12[%c21, %c0_176, %c0_177] : memref<64x128x256xbf16, #tpu.memory_space<vmem>>, vector<1x128x256xbf16>
    %198 = vector.shape_cast %197 : vector<1x128x256xbf16> to vector<128x256xbf16>
    %cst_178 = arith.constant dense<0.000000e+00> : vector<2x256xf32>
    %199 = tpu.matmul %196, %198, %cst_178 {dimension_numbers = #tpu.dot_dimension_numbers<[1], [0], [0], [1], [0, 0, 1, 1], [], []>} : vector<2x128xbf16>, vector<128x256xbf16>, vector<2x256xf32> -> vector<2x256xf32>
    %200 = arith.addf %195, %199 : vector<2x256xf32>
    %c44 = arith.constant 44 : index
    %c0_179 = arith.constant 0 : index
    %201 = vector.load %arg16[%c44, %c0_179] : memref<128x128xbf16, #tpu.memory_space<vmem>>, vector<2x128xbf16>
    %c22_180 = arith.constant 22 : index
    %c0_181 = arith.constant 0 : index
    %c0_182 = arith.constant 0 : index
    %202 = vector.load %arg12[%c22_180, %c0_181, %c0_182] : memref<64x128x256xbf16, #tpu.memory_space<vmem>>, vector<1x128x256xbf16>
    %203 = vector.shape_cast %202 : vector<1x128x256xbf16> to vector<128x256xbf16>
    %cst_183 = arith.constant dense<0.000000e+00> : vector<2x256xf32>
    %204 = tpu.matmul %201, %203, %cst_183 {dimension_numbers = #tpu.dot_dimension_numbers<[1], [0], [0], [1], [0, 0, 1, 1], [], []>} : vector<2x128xbf16>, vector<128x256xbf16>, vector<2x256xf32> -> vector<2x256xf32>
    %205 = arith.addf %200, %204 : vector<2x256xf32>
    %c46 = arith.constant 46 : index
    %c0_184 = arith.constant 0 : index
    %206 = vector.load %arg16[%c46, %c0_184] : memref<128x128xbf16, #tpu.memory_space<vmem>>, vector<2x128xbf16>
    %c23 = arith.constant 23 : index
    %c0_185 = arith.constant 0 : index
    %c0_186 = arith.constant 0 : index
    %207 = vector.load %arg12[%c23, %c0_185, %c0_186] : memref<64x128x256xbf16, #tpu.memory_space<vmem>>, vector<1x128x256xbf16>
    %208 = vector.shape_cast %207 : vector<1x128x256xbf16> to vector<128x256xbf16>
    %cst_187 = arith.constant dense<0.000000e+00> : vector<2x256xf32>
    %209 = tpu.matmul %206, %208, %cst_187 {dimension_numbers = #tpu.dot_dimension_numbers<[1], [0], [0], [1], [0, 0, 1, 1], [], []>} : vector<2x128xbf16>, vector<128x256xbf16>, vector<2x256xf32> -> vector<2x256xf32>
    %210 = arith.addf %205, %209 : vector<2x256xf32>
    %c48 = arith.constant 48 : index
    %c0_188 = arith.constant 0 : index
    %211 = vector.load %arg16[%c48, %c0_188] : memref<128x128xbf16, #tpu.memory_space<vmem>>, vector<2x128xbf16>
    %c24_189 = arith.constant 24 : index
    %c0_190 = arith.constant 0 : index
    %c0_191 = arith.constant 0 : index
    %212 = vector.load %arg12[%c24_189, %c0_190, %c0_191] : memref<64x128x256xbf16, #tpu.memory_space<vmem>>, vector<1x128x256xbf16>
    %213 = vector.shape_cast %212 : vector<1x128x256xbf16> to vector<128x256xbf16>
    %cst_192 = arith.constant dense<0.000000e+00> : vector<2x256xf32>
    %214 = tpu.matmul %211, %213, %cst_192 {dimension_numbers = #tpu.dot_dimension_numbers<[1], [0], [0], [1], [0, 0, 1, 1], [], []>} : vector<2x128xbf16>, vector<128x256xbf16>, vector<2x256xf32> -> vector<2x256xf32>
    %215 = arith.addf %210, %214 : vector<2x256xf32>
    %c50 = arith.constant 50 : index
    %c0_193 = arith.constant 0 : index
    %216 = vector.load %arg16[%c50, %c0_193] : memref<128x128xbf16, #tpu.memory_space<vmem>>, vector<2x128xbf16>
    %c25 = arith.constant 25 : index
    %c0_194 = arith.constant 0 : index
    %c0_195 = arith.constant 0 : index
    %217 = vector.load %arg12[%c25, %c0_194, %c0_195] : memref<64x128x256xbf16, #tpu.memory_space<vmem>>, vector<1x128x256xbf16>
    %218 = vector.shape_cast %217 : vector<1x128x256xbf16> to vector<128x256xbf16>
    %cst_196 = arith.constant dense<0.000000e+00> : vector<2x256xf32>
    %219 = tpu.matmul %216, %218, %cst_196 {dimension_numbers = #tpu.dot_dimension_numbers<[1], [0], [0], [1], [0, 0, 1, 1], [], []>} : vector<2x128xbf16>, vector<128x256xbf16>, vector<2x256xf32> -> vector<2x256xf32>
    %220 = arith.addf %215, %219 : vector<2x256xf32>
    %c52 = arith.constant 52 : index
    %c0_197 = arith.constant 0 : index
    %221 = vector.load %arg16[%c52, %c0_197] : memref<128x128xbf16, #tpu.memory_space<vmem>>, vector<2x128xbf16>
    %c26_198 = arith.constant 26 : index
    %c0_199 = arith.constant 0 : index
    %c0_200 = arith.constant 0 : index
    %222 = vector.load %arg12[%c26_198, %c0_199, %c0_200] : memref<64x128x256xbf16, #tpu.memory_space<vmem>>, vector<1x128x256xbf16>
    %223 = vector.shape_cast %222 : vector<1x128x256xbf16> to vector<128x256xbf16>
    %cst_201 = arith.constant dense<0.000000e+00> : vector<2x256xf32>
    %224 = tpu.matmul %221, %223, %cst_201 {dimension_numbers = #tpu.dot_dimension_numbers<[1], [0], [0], [1], [0, 0, 1, 1], [], []>} : vector<2x128xbf16>, vector<128x256xbf16>, vector<2x256xf32> -> vector<2x256xf32>
    %225 = arith.addf %220, %224 : vector<2x256xf32>
    %c54 = arith.constant 54 : index
    %c0_202 = arith.constant 0 : index
    %226 = vector.load %arg16[%c54, %c0_202] : memref<128x128xbf16, #tpu.memory_space<vmem>>, vector<2x128xbf16>
    %c27 = arith.constant 27 : index
    %c0_203 = arith.constant 0 : index
    %c0_204 = arith.constant 0 : index
    %227 = vector.load %arg12[%c27, %c0_203, %c0_204] : memref<64x128x256xbf16, #tpu.memory_space<vmem>>, vector<1x128x256xbf16>
    %228 = vector.shape_cast %227 : vector<1x128x256xbf16> to vector<128x256xbf16>
    %cst_205 = arith.constant dense<0.000000e+00> : vector<2x256xf32>
    %229 = tpu.matmul %226, %228, %cst_205 {dimension_numbers = #tpu.dot_dimension_numbers<[1], [0], [0], [1], [0, 0, 1, 1], [], []>} : vector<2x128xbf16>, vector<128x256xbf16>, vector<2x256xf32> -> vector<2x256xf32>
    %230 = arith.addf %225, %229 : vector<2x256xf32>
    %c56 = arith.constant 56 : index
    %c0_206 = arith.constant 0 : index
    %231 = vector.load %arg16[%c56, %c0_206] : memref<128x128xbf16, #tpu.memory_space<vmem>>, vector<2x128xbf16>
    %c28_207 = arith.constant 28 : index
    %c0_208 = arith.constant 0 : index
    %c0_209 = arith.constant 0 : index
    %232 = vector.load %arg12[%c28_207, %c0_208, %c0_209] : memref<64x128x256xbf16, #tpu.memory_space<vmem>>, vector<1x128x256xbf16>
    %233 = vector.shape_cast %232 : vector<1x128x256xbf16> to vector<128x256xbf16>
    %cst_210 = arith.constant dense<0.000000e+00> : vector<2x256xf32>
    %234 = tpu.matmul %231, %233, %cst_210 {dimension_numbers = #tpu.dot_dimension_numbers<[1], [0], [0], [1], [0, 0, 1, 1], [], []>} : vector<2x128xbf16>, vector<128x256xbf16>, vector<2x256xf32> -> vector<2x256xf32>
    %235 = arith.addf %230, %234 : vector<2x256xf32>
    %c58 = arith.constant 58 : index
    %c0_211 = arith.constant 0 : index
    %236 = vector.load %arg16[%c58, %c0_211] : memref<128x128xbf16, #tpu.memory_space<vmem>>, vector<2x128xbf16>
    %c29 = arith.constant 29 : index
    %c0_212 = arith.constant 0 : index
    %c0_213 = arith.constant 0 : index
    %237 = vector.load %arg12[%c29, %c0_212, %c0_213] : memref<64x128x256xbf16, #tpu.memory_space<vmem>>, vector<1x128x256xbf16>
    %238 = vector.shape_cast %237 : vector<1x128x256xbf16> to vector<128x256xbf16>
    %cst_214 = arith.constant dense<0.000000e+00> : vector<2x256xf32>
    %239 = tpu.matmul %236, %238, %cst_214 {dimension_numbers = #tpu.dot_dimension_numbers<[1], [0], [0], [1], [0, 0, 1, 1], [], []>} : vector<2x128xbf16>, vector<128x256xbf16>, vector<2x256xf32> -> vector<2x256xf32>
    %240 = arith.addf %235, %239 : vector<2x256xf32>
    %c60 = arith.constant 60 : index
    %c0_215 = arith.constant 0 : index
    %241 = vector.load %arg16[%c60, %c0_215] : memref<128x128xbf16, #tpu.memory_space<vmem>>, vector<2x128xbf16>
    %c30_216 = arith.constant 30 : index
    %c0_217 = arith.constant 0 : index
    %c0_218 = arith.constant 0 : index
    %242 = vector.load %arg12[%c30_216, %c0_217, %c0_218] : memref<64x128x256xbf16, #tpu.memory_space<vmem>>, vector<1x128x256xbf16>
    %243 = vector.shape_cast %242 : vector<1x128x256xbf16> to vector<128x256xbf16>
    %cst_219 = arith.constant dense<0.000000e+00> : vector<2x256xf32>
    %244 = tpu.matmul %241, %243, %cst_219 {dimension_numbers = #tpu.dot_dimension_numbers<[1], [0], [0], [1], [0, 0, 1, 1], [], []>} : vector<2x128xbf16>, vector<128x256xbf16>, vector<2x256xf32> -> vector<2x256xf32>
    %245 = arith.addf %240, %244 : vector<2x256xf32>
    %c62 = arith.constant 62 : index
    %c0_220 = arith.constant 0 : index
    %246 = vector.load %arg16[%c62, %c0_220] : memref<128x128xbf16, #tpu.memory_space<vmem>>, vector<2x128xbf16>
    %c31 = arith.constant 31 : index
    %c0_221 = arith.constant 0 : index
    %c0_222 = arith.constant 0 : index
    %247 = vector.load %arg12[%c31, %c0_221, %c0_222] : memref<64x128x256xbf16, #tpu.memory_space<vmem>>, vector<1x128x256xbf16>
    %248 = vector.shape_cast %247 : vector<1x128x256xbf16> to vector<128x256xbf16>
    %cst_223 = arith.constant dense<0.000000e+00> : vector<2x256xf32>
    %249 = tpu.matmul %246, %248, %cst_223 {dimension_numbers = #tpu.dot_dimension_numbers<[1], [0], [0], [1], [0, 0, 1, 1], [], []>} : vector<2x128xbf16>, vector<128x256xbf16>, vector<2x256xf32> -> vector<2x256xf32>
    %250 = arith.addf %245, %249 : vector<2x256xf32>
    %c64 = arith.constant 64 : index
    %c0_224 = arith.constant 0 : index
    %251 = vector.load %arg16[%c64, %c0_224] : memref<128x128xbf16, #tpu.memory_space<vmem>>, vector<2x128xbf16>
    %c32_225 = arith.constant 32 : index
    %c0_226 = arith.constant 0 : index
    %c0_227 = arith.constant 0 : index
    %252 = vector.load %arg12[%c32_225, %c0_226, %c0_227] : memref<64x128x256xbf16, #tpu.memory_space<vmem>>, vector<1x128x256xbf16>
    %253 = vector.shape_cast %252 : vector<1x128x256xbf16> to vector<128x256xbf16>
    %cst_228 = arith.constant dense<0.000000e+00> : vector<2x256xf32>
    %254 = tpu.matmul %251, %253, %cst_228 {dimension_numbers = #tpu.dot_dimension_numbers<[1], [0], [0], [1], [0, 0, 1, 1], [], []>} : vector<2x128xbf16>, vector<128x256xbf16>, vector<2x256xf32> -> vector<2x256xf32>
    %255 = arith.addf %250, %254 : vector<2x256xf32>
    %c66 = arith.constant 66 : index
    %c0_229 = arith.constant 0 : index
    %256 = vector.load %arg16[%c66, %c0_229] : memref<128x128xbf16, #tpu.memory_space<vmem>>, vector<2x128xbf16>
    %c33 = arith.constant 33 : index
    %c0_230 = arith.constant 0 : index
    %c0_231 = arith.constant 0 : index
    %257 = vector.load %arg12[%c33, %c0_230, %c0_231] : memref<64x128x256xbf16, #tpu.memory_space<vmem>>, vector<1x128x256xbf16>
    %258 = vector.shape_cast %257 : vector<1x128x256xbf16> to vector<128x256xbf16>
    %cst_232 = arith.constant dense<0.000000e+00> : vector<2x256xf32>
    %259 = tpu.matmul %256, %258, %cst_232 {dimension_numbers = #tpu.dot_dimension_numbers<[1], [0], [0], [1], [0, 0, 1, 1], [], []>} : vector<2x128xbf16>, vector<128x256xbf16>, vector<2x256xf32> -> vector<2x256xf32>
    %260 = arith.addf %255, %259 : vector<2x256xf32>
    %c68 = arith.constant 68 : index
    %c0_233 = arith.constant 0 : index
    %261 = vector.load %arg16[%c68, %c0_233] : memref<128x128xbf16, #tpu.memory_space<vmem>>, vector<2x128xbf16>
    %c34_234 = arith.constant 34 : index
    %c0_235 = arith.constant 0 : index
    %c0_236 = arith.constant 0 : index
    %262 = vector.load %arg12[%c34_234, %c0_235, %c0_236] : memref<64x128x256xbf16, #tpu.memory_space<vmem>>, vector<1x128x256xbf16>
    %263 = vector.shape_cast %262 : vector<1x128x256xbf16> to vector<128x256xbf16>
    %cst_237 = arith.constant dense<0.000000e+00> : vector<2x256xf32>
    %264 = tpu.matmul %261, %263, %cst_237 {dimension_numbers = #tpu.dot_dimension_numbers<[1], [0], [0], [1], [0, 0, 1, 1], [], []>} : vector<2x128xbf16>, vector<128x256xbf16>, vector<2x256xf32> -> vector<2x256xf32>
    %265 = arith.addf %260, %264 : vector<2x256xf32>
    %c70 = arith.constant 70 : index
    %c0_238 = arith.constant 0 : index
    %266 = vector.load %arg16[%c70, %c0_238] : memref<128x128xbf16, #tpu.memory_space<vmem>>, vector<2x128xbf16>
    %c35 = arith.constant 35 : index
    %c0_239 = arith.constant 0 : index
    %c0_240 = arith.constant 0 : index
    %267 = vector.load %arg12[%c35, %c0_239, %c0_240] : memref<64x128x256xbf16, #tpu.memory_space<vmem>>, vector<1x128x256xbf16>
    %268 = vector.shape_cast %267 : vector<1x128x256xbf16> to vector<128x256xbf16>
    %cst_241 = arith.constant dense<0.000000e+00> : vector<2x256xf32>
    %269 = tpu.matmul %266, %268, %cst_241 {dimension_numbers = #tpu.dot_dimension_numbers<[1], [0], [0], [1], [0, 0, 1, 1], [], []>} : vector<2x128xbf16>, vector<128x256xbf16>, vector<2x256xf32> -> vector<2x256xf32>
    %270 = arith.addf %265, %269 : vector<2x256xf32>
    %c72 = arith.constant 72 : index
    %c0_242 = arith.constant 0 : index
    %271 = vector.load %arg16[%c72, %c0_242] : memref<128x128xbf16, #tpu.memory_space<vmem>>, vector<2x128xbf16>
    %c36_243 = arith.constant 36 : index
    %c0_244 = arith.constant 0 : index
    %c0_245 = arith.constant 0 : index
    %272 = vector.load %arg12[%c36_243, %c0_244, %c0_245] : memref<64x128x256xbf16, #tpu.memory_space<vmem>>, vector<1x128x256xbf16>
    %273 = vector.shape_cast %272 : vector<1x128x256xbf16> to vector<128x256xbf16>
    %cst_246 = arith.constant dense<0.000000e+00> : vector<2x256xf32>
    %274 = tpu.matmul %271, %273, %cst_246 {dimension_numbers = #tpu.dot_dimension_numbers<[1], [0], [0], [1], [0, 0, 1, 1], [], []>} : vector<2x128xbf16>, vector<128x256xbf16>, vector<2x256xf32> -> vector<2x256xf32>
    %275 = arith.addf %270, %274 : vector<2x256xf32>
    %c74 = arith.constant 74 : index
    %c0_247 = arith.constant 0 : index
    %276 = vector.load %arg16[%c74, %c0_247] : memref<128x128xbf16, #tpu.memory_space<vmem>>, vector<2x128xbf16>
    %c37 = arith.constant 37 : index
    %c0_248 = arith.constant 0 : index
    %c0_249 = arith.constant 0 : index
    %277 = vector.load %arg12[%c37, %c0_248, %c0_249] : memref<64x128x256xbf16, #tpu.memory_space<vmem>>, vector<1x128x256xbf16>
    %278 = vector.shape_cast %277 : vector<1x128x256xbf16> to vector<128x256xbf16>
    %cst_250 = arith.constant dense<0.000000e+00> : vector<2x256xf32>
    %279 = tpu.matmul %276, %278, %cst_250 {dimension_numbers = #tpu.dot_dimension_numbers<[1], [0], [0], [1], [0, 0, 1, 1], [], []>} : vector<2x128xbf16>, vector<128x256xbf16>, vector<2x256xf32> -> vector<2x256xf32>
    %280 = arith.addf %275, %279 : vector<2x256xf32>
    %c76 = arith.constant 76 : index
    %c0_251 = arith.constant 0 : index
    %281 = vector.load %arg16[%c76, %c0_251] : memref<128x128xbf16, #tpu.memory_space<vmem>>, vector<2x128xbf16>
    %c38_252 = arith.constant 38 : index
    %c0_253 = arith.constant 0 : index
    %c0_254 = arith.constant 0 : index
    %282 = vector.load %arg12[%c38_252, %c0_253, %c0_254] : memref<64x128x256xbf16, #tpu.memory_space<vmem>>, vector<1x128x256xbf16>
    %283 = vector.shape_cast %282 : vector<1x128x256xbf16> to vector<128x256xbf16>
    %cst_255 = arith.constant dense<0.000000e+00> : vector<2x256xf32>
    %284 = tpu.matmul %281, %283, %cst_255 {dimension_numbers = #tpu.dot_dimension_numbers<[1], [0], [0], [1], [0, 0, 1, 1], [], []>} : vector<2x128xbf16>, vector<128x256xbf16>, vector<2x256xf32> -> vector<2x256xf32>
    %285 = arith.addf %280, %284 : vector<2x256xf32>
    %c78 = arith.constant 78 : index
    %c0_256 = arith.constant 0 : index
    %286 = vector.load %arg16[%c78, %c0_256] : memref<128x128xbf16, #tpu.memory_space<vmem>>, vector<2x128xbf16>
    %c39 = arith.constant 39 : index
    %c0_257 = arith.constant 0 : index
    %c0_258 = arith.constant 0 : index
    %287 = vector.load %arg12[%c39, %c0_257, %c0_258] : memref<64x128x256xbf16, #tpu.memory_space<vmem>>, vector<1x128x256xbf16>
    %288 = vector.shape_cast %287 : vector<1x128x256xbf16> to vector<128x256xbf16>
    %cst_259 = arith.constant dense<0.000000e+00> : vector<2x256xf32>
    %289 = tpu.matmul %286, %288, %cst_259 {dimension_numbers = #tpu.dot_dimension_numbers<[1], [0], [0], [1], [0, 0, 1, 1], [], []>} : vector<2x128xbf16>, vector<128x256xbf16>, vector<2x256xf32> -> vector<2x256xf32>
    %290 = arith.addf %285, %289 : vector<2x256xf32>
    %c80 = arith.constant 80 : index
    %c0_260 = arith.constant 0 : index
    %291 = vector.load %arg16[%c80, %c0_260] : memref<128x128xbf16, #tpu.memory_space<vmem>>, vector<2x128xbf16>
    %c40_261 = arith.constant 40 : index
    %c0_262 = arith.constant 0 : index
    %c0_263 = arith.constant 0 : index
    %292 = vector.load %arg12[%c40_261, %c0_262, %c0_263] : memref<64x128x256xbf16, #tpu.memory_space<vmem>>, vector<1x128x256xbf16>
    %293 = vector.shape_cast %292 : vector<1x128x256xbf16> to vector<128x256xbf16>
    %cst_264 = arith.constant dense<0.000000e+00> : vector<2x256xf32>
    %294 = tpu.matmul %291, %293, %cst_264 {dimension_numbers = #tpu.dot_dimension_numbers<[1], [0], [0], [1], [0, 0, 1, 1], [], []>} : vector<2x128xbf16>, vector<128x256xbf16>, vector<2x256xf32> -> vector<2x256xf32>
    %295 = arith.addf %290, %294 : vector<2x256xf32>
    %c82 = arith.constant 82 : index
    %c0_265 = arith.constant 0 : index
    %296 = vector.load %arg16[%c82, %c0_265] : memref<128x128xbf16, #tpu.memory_space<vmem>>, vector<2x128xbf16>
    %c41 = arith.constant 41 : index
    %c0_266 = arith.constant 0 : index
    %c0_267 = arith.constant 0 : index
    %297 = vector.load %arg12[%c41, %c0_266, %c0_267] : memref<64x128x256xbf16, #tpu.memory_space<vmem>>, vector<1x128x256xbf16>
    %298 = vector.shape_cast %297 : vector<1x128x256xbf16> to vector<128x256xbf16>
    %cst_268 = arith.constant dense<0.000000e+00> : vector<2x256xf32>
    %299 = tpu.matmul %296, %298, %cst_268 {dimension_numbers = #tpu.dot_dimension_numbers<[1], [0], [0], [1], [0, 0, 1, 1], [], []>} : vector<2x128xbf16>, vector<128x256xbf16>, vector<2x256xf32> -> vector<2x256xf32>
    %300 = arith.addf %295, %299 : vector<2x256xf32>
    %c84 = arith.constant 84 : index
    %c0_269 = arith.constant 0 : index
    %301 = vector.load %arg16[%c84, %c0_269] : memref<128x128xbf16, #tpu.memory_space<vmem>>, vector<2x128xbf16>
    %c42_270 = arith.constant 42 : index
    %c0_271 = arith.constant 0 : index
    %c0_272 = arith.constant 0 : index
    %302 = vector.load %arg12[%c42_270, %c0_271, %c0_272] : memref<64x128x256xbf16, #tpu.memory_space<vmem>>, vector<1x128x256xbf16>
    %303 = vector.shape_cast %302 : vector<1x128x256xbf16> to vector<128x256xbf16>
    %cst_273 = arith.constant dense<0.000000e+00> : vector<2x256xf32>
    %304 = tpu.matmul %301, %303, %cst_273 {dimension_numbers = #tpu.dot_dimension_numbers<[1], [0], [0], [1], [0, 0, 1, 1], [], []>} : vector<2x128xbf16>, vector<128x256xbf16>, vector<2x256xf32> -> vector<2x256xf32>
    %305 = arith.addf %300, %304 : vector<2x256xf32>
    %c86 = arith.constant 86 : index
    %c0_274 = arith.constant 0 : index
    %306 = vector.load %arg16[%c86, %c0_274] : memref<128x128xbf16, #tpu.memory_space<vmem>>, vector<2x128xbf16>
    %c43 = arith.constant 43 : index
    %c0_275 = arith.constant 0 : index
    %c0_276 = arith.constant 0 : index
    %307 = vector.load %arg12[%c43, %c0_275, %c0_276] : memref<64x128x256xbf16, #tpu.memory_space<vmem>>, vector<1x128x256xbf16>
    %308 = vector.shape_cast %307 : vector<1x128x256xbf16> to vector<128x256xbf16>
    %cst_277 = arith.constant dense<0.000000e+00> : vector<2x256xf32>
    %309 = tpu.matmul %306, %308, %cst_277 {dimension_numbers = #tpu.dot_dimension_numbers<[1], [0], [0], [1], [0, 0, 1, 1], [], []>} : vector<2x128xbf16>, vector<128x256xbf16>, vector<2x256xf32> -> vector<2x256xf32>
    %310 = arith.addf %305, %309 : vector<2x256xf32>
    %c88 = arith.constant 88 : index
    %c0_278 = arith.constant 0 : index
    %311 = vector.load %arg16[%c88, %c0_278] : memref<128x128xbf16, #tpu.memory_space<vmem>>, vector<2x128xbf16>
    %c44_279 = arith.constant 44 : index
    %c0_280 = arith.constant 0 : index
    %c0_281 = arith.constant 0 : index
    %312 = vector.load %arg12[%c44_279, %c0_280, %c0_281] : memref<64x128x256xbf16, #tpu.memory_space<vmem>>, vector<1x128x256xbf16>
    %313 = vector.shape_cast %312 : vector<1x128x256xbf16> to vector<128x256xbf16>
    %cst_282 = arith.constant dense<0.000000e+00> : vector<2x256xf32>
    %314 = tpu.matmul %311, %313, %cst_282 {dimension_numbers = #tpu.dot_dimension_numbers<[1], [0], [0], [1], [0, 0, 1, 1], [], []>} : vector<2x128xbf16>, vector<128x256xbf16>, vector<2x256xf32> -> vector<2x256xf32>
    %315 = arith.addf %310, %314 : vector<2x256xf32>
    %c90 = arith.constant 90 : index
    %c0_283 = arith.constant 0 : index
    %316 = vector.load %arg16[%c90, %c0_283] : memref<128x128xbf16, #tpu.memory_space<vmem>>, vector<2x128xbf16>
    %c45 = arith.constant 45 : index
    %c0_284 = arith.constant 0 : index
    %c0_285 = arith.constant 0 : index
    %317 = vector.load %arg12[%c45, %c0_284, %c0_285] : memref<64x128x256xbf16, #tpu.memory_space<vmem>>, vector<1x128x256xbf16>
    %318 = vector.shape_cast %317 : vector<1x128x256xbf16> to vector<128x256xbf16>
    %cst_286 = arith.constant dense<0.000000e+00> : vector<2x256xf32>
    %319 = tpu.matmul %316, %318, %cst_286 {dimension_numbers = #tpu.dot_dimension_numbers<[1], [0], [0], [1], [0, 0, 1, 1], [], []>} : vector<2x128xbf16>, vector<128x256xbf16>, vector<2x256xf32> -> vector<2x256xf32>
    %320 = arith.addf %315, %319 : vector<2x256xf32>
    %c92 = arith.constant 92 : index
    %c0_287 = arith.constant 0 : index
    %321 = vector.load %arg16[%c92, %c0_287] : memref<128x128xbf16, #tpu.memory_space<vmem>>, vector<2x128xbf16>
    %c46_288 = arith.constant 46 : index
    %c0_289 = arith.constant 0 : index
    %c0_290 = arith.constant 0 : index
    %322 = vector.load %arg12[%c46_288, %c0_289, %c0_290] : memref<64x128x256xbf16, #tpu.memory_space<vmem>>, vector<1x128x256xbf16>
    %323 = vector.shape_cast %322 : vector<1x128x256xbf16> to vector<128x256xbf16>
    %cst_291 = arith.constant dense<0.000000e+00> : vector<2x256xf32>
    %324 = tpu.matmul %321, %323, %cst_291 {dimension_numbers = #tpu.dot_dimension_numbers<[1], [0], [0], [1], [0, 0, 1, 1], [], []>} : vector<2x128xbf16>, vector<128x256xbf16>, vector<2x256xf32> -> vector<2x256xf32>
    %325 = arith.addf %320, %324 : vector<2x256xf32>
    %c94 = arith.constant 94 : index
    %c0_292 = arith.constant 0 : index
    %326 = vector.load %arg16[%c94, %c0_292] : memref<128x128xbf16, #tpu.memory_space<vmem>>, vector<2x128xbf16>
    %c47 = arith.constant 47 : index
    %c0_293 = arith.constant 0 : index
    %c0_294 = arith.constant 0 : index
    %327 = vector.load %arg12[%c47, %c0_293, %c0_294] : memref<64x128x256xbf16, #tpu.memory_space<vmem>>, vector<1x128x256xbf16>
    %328 = vector.shape_cast %327 : vector<1x128x256xbf16> to vector<128x256xbf16>
    %cst_295 = arith.constant dense<0.000000e+00> : vector<2x256xf32>
    %329 = tpu.matmul %326, %328, %cst_295 {dimension_numbers = #tpu.dot_dimension_numbers<[1], [0], [0], [1], [0, 0, 1, 1], [], []>} : vector<2x128xbf16>, vector<128x256xbf16>, vector<2x256xf32> -> vector<2x256xf32>
    %330 = arith.addf %325, %329 : vector<2x256xf32>
    %c96 = arith.constant 96 : index
    %c0_296 = arith.constant 0 : index
    %331 = vector.load %arg16[%c96, %c0_296] : memref<128x128xbf16, #tpu.memory_space<vmem>>, vector<2x128xbf16>
    %c48_297 = arith.constant 48 : index
    %c0_298 = arith.constant 0 : index
    %c0_299 = arith.constant 0 : index
    %332 = vector.load %arg12[%c48_297, %c0_298, %c0_299] : memref<64x128x256xbf16, #tpu.memory_space<vmem>>, vector<1x128x256xbf16>
    %333 = vector.shape_cast %332 : vector<1x128x256xbf16> to vector<128x256xbf16>
    %cst_300 = arith.constant dense<0.000000e+00> : vector<2x256xf32>
    %334 = tpu.matmul %331, %333, %cst_300 {dimension_numbers = #tpu.dot_dimension_numbers<[1], [0], [0], [1], [0, 0, 1, 1], [], []>} : vector<2x128xbf16>, vector<128x256xbf16>, vector<2x256xf32> -> vector<2x256xf32>
    %335 = arith.addf %330, %334 : vector<2x256xf32>
    %c98 = arith.constant 98 : index
    %c0_301 = arith.constant 0 : index
    %336 = vector.load %arg16[%c98, %c0_301] : memref<128x128xbf16, #tpu.memory_space<vmem>>, vector<2x128xbf16>
    %c49 = arith.constant 49 : index
    %c0_302 = arith.constant 0 : index
    %c0_303 = arith.constant 0 : index
    %337 = vector.load %arg12[%c49, %c0_302, %c0_303] : memref<64x128x256xbf16, #tpu.memory_space<vmem>>, vector<1x128x256xbf16>
    %338 = vector.shape_cast %337 : vector<1x128x256xbf16> to vector<128x256xbf16>
    %cst_304 = arith.constant dense<0.000000e+00> : vector<2x256xf32>
    %339 = tpu.matmul %336, %338, %cst_304 {dimension_numbers = #tpu.dot_dimension_numbers<[1], [0], [0], [1], [0, 0, 1, 1], [], []>} : vector<2x128xbf16>, vector<128x256xbf16>, vector<2x256xf32> -> vector<2x256xf32>
    %340 = arith.addf %335, %339 : vector<2x256xf32>
    %c100 = arith.constant 100 : index
    %c0_305 = arith.constant 0 : index
    %341 = vector.load %arg16[%c100, %c0_305] : memref<128x128xbf16, #tpu.memory_space<vmem>>, vector<2x128xbf16>
    %c50_306 = arith.constant 50 : index
    %c0_307 = arith.constant 0 : index
    %c0_308 = arith.constant 0 : index
    %342 = vector.load %arg12[%c50_306, %c0_307, %c0_308] : memref<64x128x256xbf16, #tpu.memory_space<vmem>>, vector<1x128x256xbf16>
    %343 = vector.shape_cast %342 : vector<1x128x256xbf16> to vector<128x256xbf16>
    %cst_309 = arith.constant dense<0.000000e+00> : vector<2x256xf32>
    %344 = tpu.matmul %341, %343, %cst_309 {dimension_numbers = #tpu.dot_dimension_numbers<[1], [0], [0], [1], [0, 0, 1, 1], [], []>} : vector<2x128xbf16>, vector<128x256xbf16>, vector<2x256xf32> -> vector<2x256xf32>
    %345 = arith.addf %340, %344 : vector<2x256xf32>
    %c102 = arith.constant 102 : index
    %c0_310 = arith.constant 0 : index
    %346 = vector.load %arg16[%c102, %c0_310] : memref<128x128xbf16, #tpu.memory_space<vmem>>, vector<2x128xbf16>
    %c51 = arith.constant 51 : index
    %c0_311 = arith.constant 0 : index
    %c0_312 = arith.constant 0 : index
    %347 = vector.load %arg12[%c51, %c0_311, %c0_312] : memref<64x128x256xbf16, #tpu.memory_space<vmem>>, vector<1x128x256xbf16>
    %348 = vector.shape_cast %347 : vector<1x128x256xbf16> to vector<128x256xbf16>
    %cst_313 = arith.constant dense<0.000000e+00> : vector<2x256xf32>
    %349 = tpu.matmul %346, %348, %cst_313 {dimension_numbers = #tpu.dot_dimension_numbers<[1], [0], [0], [1], [0, 0, 1, 1], [], []>} : vector<2x128xbf16>, vector<128x256xbf16>, vector<2x256xf32> -> vector<2x256xf32>
    %350 = arith.addf %345, %349 : vector<2x256xf32>
    %c104 = arith.constant 104 : index
    %c0_314 = arith.constant 0 : index
    %351 = vector.load %arg16[%c104, %c0_314] : memref<128x128xbf16, #tpu.memory_space<vmem>>, vector<2x128xbf16>
    %c52_315 = arith.constant 52 : index
    %c0_316 = arith.constant 0 : index
    %c0_317 = arith.constant 0 : index
    %352 = vector.load %arg12[%c52_315, %c0_316, %c0_317] : memref<64x128x256xbf16, #tpu.memory_space<vmem>>, vector<1x128x256xbf16>
    %353 = vector.shape_cast %352 : vector<1x128x256xbf16> to vector<128x256xbf16>
    %cst_318 = arith.constant dense<0.000000e+00> : vector<2x256xf32>
    %354 = tpu.matmul %351, %353, %cst_318 {dimension_numbers = #tpu.dot_dimension_numbers<[1], [0], [0], [1], [0, 0, 1, 1], [], []>} : vector<2x128xbf16>, vector<128x256xbf16>, vector<2x256xf32> -> vector<2x256xf32>
    %355 = arith.addf %350, %354 : vector<2x256xf32>
    %c106 = arith.constant 106 : index
    %c0_319 = arith.constant 0 : index
    %356 = vector.load %arg16[%c106, %c0_319] : memref<128x128xbf16, #tpu.memory_space<vmem>>, vector<2x128xbf16>
    %c53 = arith.constant 53 : index
    %c0_320 = arith.constant 0 : index
    %c0_321 = arith.constant 0 : index
    %357 = vector.load %arg12[%c53, %c0_320, %c0_321] : memref<64x128x256xbf16, #tpu.memory_space<vmem>>, vector<1x128x256xbf16>
    %358 = vector.shape_cast %357 : vector<1x128x256xbf16> to vector<128x256xbf16>
    %cst_322 = arith.constant dense<0.000000e+00> : vector<2x256xf32>
    %359 = tpu.matmul %356, %358, %cst_322 {dimension_numbers = #tpu.dot_dimension_numbers<[1], [0], [0], [1], [0, 0, 1, 1], [], []>} : vector<2x128xbf16>, vector<128x256xbf16>, vector<2x256xf32> -> vector<2x256xf32>
    %360 = arith.addf %355, %359 : vector<2x256xf32>
    %c108 = arith.constant 108 : index
    %c0_323 = arith.constant 0 : index
    %361 = vector.load %arg16[%c108, %c0_323] : memref<128x128xbf16, #tpu.memory_space<vmem>>, vector<2x128xbf16>
    %c54_324 = arith.constant 54 : index
    %c0_325 = arith.constant 0 : index
    %c0_326 = arith.constant 0 : index
    %362 = vector.load %arg12[%c54_324, %c0_325, %c0_326] : memref<64x128x256xbf16, #tpu.memory_space<vmem>>, vector<1x128x256xbf16>
    %363 = vector.shape_cast %362 : vector<1x128x256xbf16> to vector<128x256xbf16>
    %cst_327 = arith.constant dense<0.000000e+00> : vector<2x256xf32>
    %364 = tpu.matmul %361, %363, %cst_327 {dimension_numbers = #tpu.dot_dimension_numbers<[1], [0], [0], [1], [0, 0, 1, 1], [], []>} : vector<2x128xbf16>, vector<128x256xbf16>, vector<2x256xf32> -> vector<2x256xf32>
    %365 = arith.addf %360, %364 : vector<2x256xf32>
    %c110 = arith.constant 110 : index
    %c0_328 = arith.constant 0 : index
    %366 = vector.load %arg16[%c110, %c0_328] : memref<128x128xbf16, #tpu.memory_space<vmem>>, vector<2x128xbf16>
    %c55 = arith.constant 55 : index
    %c0_329 = arith.constant 0 : index
    %c0_330 = arith.constant 0 : index
    %367 = vector.load %arg12[%c55, %c0_329, %c0_330] : memref<64x128x256xbf16, #tpu.memory_space<vmem>>, vector<1x128x256xbf16>
    %368 = vector.shape_cast %367 : vector<1x128x256xbf16> to vector<128x256xbf16>
    %cst_331 = arith.constant dense<0.000000e+00> : vector<2x256xf32>
    %369 = tpu.matmul %366, %368, %cst_331 {dimension_numbers = #tpu.dot_dimension_numbers<[1], [0], [0], [1], [0, 0, 1, 1], [], []>} : vector<2x128xbf16>, vector<128x256xbf16>, vector<2x256xf32> -> vector<2x256xf32>
    %370 = arith.addf %365, %369 : vector<2x256xf32>
    %c112 = arith.constant 112 : index
    %c0_332 = arith.constant 0 : index
    %371 = vector.load %arg16[%c112, %c0_332] : memref<128x128xbf16, #tpu.memory_space<vmem>>, vector<2x128xbf16>
    %c56_333 = arith.constant 56 : index
    %c0_334 = arith.constant 0 : index
    %c0_335 = arith.constant 0 : index
    %372 = vector.load %arg12[%c56_333, %c0_334, %c0_335] : memref<64x128x256xbf16, #tpu.memory_space<vmem>>, vector<1x128x256xbf16>
    %373 = vector.shape_cast %372 : vector<1x128x256xbf16> to vector<128x256xbf16>
    %cst_336 = arith.constant dense<0.000000e+00> : vector<2x256xf32>
    %374 = tpu.matmul %371, %373, %cst_336 {dimension_numbers = #tpu.dot_dimension_numbers<[1], [0], [0], [1], [0, 0, 1, 1], [], []>} : vector<2x128xbf16>, vector<128x256xbf16>, vector<2x256xf32> -> vector<2x256xf32>
    %375 = arith.addf %370, %374 : vector<2x256xf32>
    %c114 = arith.constant 114 : index
    %c0_337 = arith.constant 0 : index
    %376 = vector.load %arg16[%c114, %c0_337] : memref<128x128xbf16, #tpu.memory_space<vmem>>, vector<2x128xbf16>
    %c57 = arith.constant 57 : index
    %c0_338 = arith.constant 0 : index
    %c0_339 = arith.constant 0 : index
    %377 = vector.load %arg12[%c57, %c0_338, %c0_339] : memref<64x128x256xbf16, #tpu.memory_space<vmem>>, vector<1x128x256xbf16>
    %378 = vector.shape_cast %377 : vector<1x128x256xbf16> to vector<128x256xbf16>
    %cst_340 = arith.constant dense<0.000000e+00> : vector<2x256xf32>
    %379 = tpu.matmul %376, %378, %cst_340 {dimension_numbers = #tpu.dot_dimension_numbers<[1], [0], [0], [1], [0, 0, 1, 1], [], []>} : vector<2x128xbf16>, vector<128x256xbf16>, vector<2x256xf32> -> vector<2x256xf32>
    %380 = arith.addf %375, %379 : vector<2x256xf32>
    %c116 = arith.constant 116 : index
    %c0_341 = arith.constant 0 : index
    %381 = vector.load %arg16[%c116, %c0_341] : memref<128x128xbf16, #tpu.memory_space<vmem>>, vector<2x128xbf16>
    %c58_342 = arith.constant 58 : index
    %c0_343 = arith.constant 0 : index
    %c0_344 = arith.constant 0 : index
    %382 = vector.load %arg12[%c58_342, %c0_343, %c0_344] : memref<64x128x256xbf16, #tpu.memory_space<vmem>>, vector<1x128x256xbf16>
    %383 = vector.shape_cast %382 : vector<1x128x256xbf16> to vector<128x256xbf16>
    %cst_345 = arith.constant dense<0.000000e+00> : vector<2x256xf32>
    %384 = tpu.matmul %381, %383, %cst_345 {dimension_numbers = #tpu.dot_dimension_numbers<[1], [0], [0], [1], [0, 0, 1, 1], [], []>} : vector<2x128xbf16>, vector<128x256xbf16>, vector<2x256xf32> -> vector<2x256xf32>
    %385 = arith.addf %380, %384 : vector<2x256xf32>
    %c118 = arith.constant 118 : index
    %c0_346 = arith.constant 0 : index
    %386 = vector.load %arg16[%c118, %c0_346] : memref<128x128xbf16, #tpu.memory_space<vmem>>, vector<2x128xbf16>
    %c59 = arith.constant 59 : index
    %c0_347 = arith.constant 0 : index
    %c0_348 = arith.constant 0 : index
    %387 = vector.load %arg12[%c59, %c0_347, %c0_348] : memref<64x128x256xbf16, #tpu.memory_space<vmem>>, vector<1x128x256xbf16>
    %388 = vector.shape_cast %387 : vector<1x128x256xbf16> to vector<128x256xbf16>
    %cst_349 = arith.constant dense<0.000000e+00> : vector<2x256xf32>
    %389 = tpu.matmul %386, %388, %cst_349 {dimension_numbers = #tpu.dot_dimension_numbers<[1], [0], [0], [1], [0, 0, 1, 1], [], []>} : vector<2x128xbf16>, vector<128x256xbf16>, vector<2x256xf32> -> vector<2x256xf32>
    %390 = arith.addf %385, %389 : vector<2x256xf32>
    %c120 = arith.constant 120 : index
    %c0_350 = arith.constant 0 : index
    %391 = vector.load %arg16[%c120, %c0_350] : memref<128x128xbf16, #tpu.memory_space<vmem>>, vector<2x128xbf16>
    %c60_351 = arith.constant 60 : index
    %c0_352 = arith.constant 0 : index
    %c0_353 = arith.constant 0 : index
    %392 = vector.load %arg12[%c60_351, %c0_352, %c0_353] : memref<64x128x256xbf16, #tpu.memory_space<vmem>>, vector<1x128x256xbf16>
    %393 = vector.shape_cast %392 : vector<1x128x256xbf16> to vector<128x256xbf16>
    %cst_354 = arith.constant dense<0.000000e+00> : vector<2x256xf32>
    %394 = tpu.matmul %391, %393, %cst_354 {dimension_numbers = #tpu.dot_dimension_numbers<[1], [0], [0], [1], [0, 0, 1, 1], [], []>} : vector<2x128xbf16>, vector<128x256xbf16>, vector<2x256xf32> -> vector<2x256xf32>
    %395 = arith.addf %390, %394 : vector<2x256xf32>
    %c122 = arith.constant 122 : index
    %c0_355 = arith.constant 0 : index
    %396 = vector.load %arg16[%c122, %c0_355] : memref<128x128xbf16, #tpu.memory_space<vmem>>, vector<2x128xbf16>
    %c61 = arith.constant 61 : index
    %c0_356 = arith.constant 0 : index
    %c0_357 = arith.constant 0 : index
    %397 = vector.load %arg12[%c61, %c0_356, %c0_357] : memref<64x128x256xbf16, #tpu.memory_space<vmem>>, vector<1x128x256xbf16>
    %398 = vector.shape_cast %397 : vector<1x128x256xbf16> to vector<128x256xbf16>
    %cst_358 = arith.constant dense<0.000000e+00> : vector<2x256xf32>
    %399 = tpu.matmul %396, %398, %cst_358 {dimension_numbers = #tpu.dot_dimension_numbers<[1], [0], [0], [1], [0, 0, 1, 1], [], []>} : vector<2x128xbf16>, vector<128x256xbf16>, vector<2x256xf32> -> vector<2x256xf32>
    %400 = arith.addf %395, %399 : vector<2x256xf32>
    %c124 = arith.constant 124 : index
    %c0_359 = arith.constant 0 : index
    %401 = vector.load %arg16[%c124, %c0_359] : memref<128x128xbf16, #tpu.memory_space<vmem>>, vector<2x128xbf16>
    %c62_360 = arith.constant 62 : index
    %c0_361 = arith.constant 0 : index
    %c0_362 = arith.constant 0 : index
    %402 = vector.load %arg12[%c62_360, %c0_361, %c0_362] : memref<64x128x256xbf16, #tpu.memory_space<vmem>>, vector<1x128x256xbf16>
    %403 = vector.shape_cast %402 : vector<1x128x256xbf16> to vector<128x256xbf16>
    %cst_363 = arith.constant dense<0.000000e+00> : vector<2x256xf32>
    %404 = tpu.matmul %401, %403, %cst_363 {dimension_numbers = #tpu.dot_dimension_numbers<[1], [0], [0], [1], [0, 0, 1, 1], [], []>} : vector<2x128xbf16>, vector<128x256xbf16>, vector<2x256xf32> -> vector<2x256xf32>
    %405 = arith.addf %400, %404 : vector<2x256xf32>
    %c126 = arith.constant 126 : index
    %c0_364 = arith.constant 0 : index
    %406 = vector.load %arg16[%c126, %c0_364] : memref<128x128xbf16, #tpu.memory_space<vmem>>, vector<2x128xbf16>
    %c63 = arith.constant 63 : index
    %c0_365 = arith.constant 0 : index
    %c0_366 = arith.constant 0 : index
    %407 = vector.load %arg12[%c63, %c0_365, %c0_366] : memref<64x128x256xbf16, #tpu.memory_space<vmem>>, vector<1x128x256xbf16>
    %408 = vector.shape_cast %407 : vector<1x128x256xbf16> to vector<128x256xbf16>
    %cst_367 = arith.constant dense<0.000000e+00> : vector<2x256xf32>
    %409 = tpu.matmul %406, %408, %cst_367 {dimension_numbers = #tpu.dot_dimension_numbers<[1], [0], [0], [1], [0, 0, 1, 1], [], []>} : vector<2x128xbf16>, vector<128x256xbf16>, vector<2x256xf32> -> vector<2x256xf32>
    %410 = arith.addf %405, %409 : vector<2x256xf32>
    %c0_368 = arith.constant 0 : index
    %c0_369 = arith.constant 0 : index
    %411 = vector.load %arg7[%c0_368, %c0_369] : memref<1x256xf32, #tpu.memory_space<vmem>>, vector<1x256xf32>
    %412 = vector.broadcast %411 : vector<1x256xf32> to vector<2x256xf32>
    %413 = arith.addf %410, %412 : vector<2x256xf32>
    %cst_370 = arith.constant 0.000000e+00 : f32
    %414 = vector.broadcast %cst_370 : f32 to vector<2x256xf32>
    %415 = arith.maximumf %413, %414 : vector<2x256xf32>
    %c0_371 = arith.constant 0 : index
    %c0_372 = arith.constant 0 : index
    %416 = vector.load %arg8[%c0_371, %c0_372] : memref<256x128xf32, #tpu.memory_space<vmem>>, vector<256x128xf32>
    %cst_373 = arith.constant dense<0.000000e+00> : vector<2x128xf32>
    %417 = tpu.matmul %415, %416, %cst_373 {dimension_numbers = #tpu.dot_dimension_numbers<[1], [0], [0], [1], [0, 0, 1, 1], [], []>} : vector<2x256xf32>, vector<256x128xf32>, vector<2x128xf32> -> vector<2x128xf32>
    %c0_374 = arith.constant 0 : index
    %c0_375 = arith.constant 0 : index
    %418 = vector.load %arg9[%c0_374, %c0_375] : memref<1x128xf32, #tpu.memory_space<vmem>>, vector<1x128xf32>
    %419 = vector.broadcast %418 : vector<1x128xf32> to vector<2x128xf32>
    %420 = arith.addf %417, %419 : vector<2x128xf32>
    %c0_376 = arith.constant 0 : index
    %c0_377 = arith.constant 0 : index
    %421 = vector.load %arg11[%c0_376, %c0_377] : memref<2x128xf32, #tpu.memory_space<vmem>>, vector<2x128xf32>
    tpu.vector_store %arg11[%c0_376, %c0_377], %420 {strides = array<i32>} : memref<2x128xf32, #tpu.memory_space<vmem>>, vector<2x128xf32>,
    return
  }
  func.func @transform_0(%arg0: i32) -> (i32, i32) {
    %c0_i32 = arith.constant 0 : i32
    %c0_i32_0 = arith.constant 0 : i32
    %c0_i32_1 = arith.constant 0 : i32
    return %c0_i32, %c0_i32_0 : i32, i32
  }
  func.func @transform_1(%arg0: i32) -> (i32, i32) {
    %c0_i32 = arith.constant 0 : i32
    %c0_i32_0 = arith.constant 0 : i32
    %c0_i32_1 = arith.constant 0 : i32
    return %c0_i32, %c0_i32_0 : i32, i32
  }
  func.func @transform_2(%arg0: i32) -> (i32, i32) {
    %c0_i32 = arith.constant 0 : i32
    %c0_i32_0 = arith.constant 0 : i32
    %c0_i32_1 = arith.constant 0 : i32
    return %c0_i32, %c0_i32_0 : i32, i32
  }
  func.func @transform_3(%arg0: i32) -> (i32, i32) {
    %c0_i32 = arith.constant 0 : i32
    %c0_i32_0 = arith.constant 0 : i32
    %c0_i32_1 = arith.constant 0 : i32
    return %c0_i32, %c0_i32_0 : i32, i32
  }
  func.func @transform_4(%arg0: i32) -> (i32, i32) {
    %c0_i32 = arith.constant 0 : i32
    %c0_i32_0 = arith.constant 0 : i32
    %c0_i32_1 = arith.constant 0 : i32
    return %c0_i32, %c0_i32_0 : i32, i32
  }
  func.func @transform_5(%arg0: i32) -> (i32, i32, i32) {
    %c0_i32 = arith.constant 0 : i32
    %c0_i32_0 = arith.constant 0 : i32
    %c0_i32_1 = arith.constant 0 : i32
    %c0_i32_2 = arith.constant 0 : i32
    return %c0_i32, %c0_i32_0, %c0_i32_1 : i32, i32, i32
  }
  func.func @transform_6(%arg0: i32) -> (i32, i32) {
    %c0_i32 = arith.constant 0 : i32
    %c0_i32_0 = arith.constant 0 : i32
    %c0_i32_1 = arith.constant 0 : i32
    return %c0_i32, %c0_i32_0 : i32, i32
  }
  func.func @transform_7(%arg0: i32) -> (i32, i32) {
    %c0_i32 = arith.constant 0 : i32
    %c0_i32_0 = arith.constant 0 : i32
    %c0_i32_1 = arith.constant 0 : i32
    return %c0_i32, %c0_i32_0 : i32, i32
  }
  func.func @transform_8(%arg0: i32) -> (i32, i32) {
    %c0_i32 = arith.constant 0 : i32
    %c0_i32_0 = arith.constant 0 : i32
    %c0_i32_1 = arith.constant 0 : i32
    return %c0_i32, %c0_i32_0 : i32, i32
  }
  func.func @transform_10(%arg0: i32) -> (i32, i32) {
    %c0_i32 = arith.constant 0 : i32
    %c0_i32_0 = arith.constant 0 : i32
    %c0_i32_1 = arith.constant 0 : i32
    return %c0_i32, %c0_i32_0 : i32, i32
  }
}

</mosaic_0001>

<bundles_post_ra>
// kernel: chess_model_forward.1
= control target key start
LH: loop header
LB: loop body
LE: loop exit
PB: predicated region body
PF: predicated region fallthrough
CT: control target
= control target key end

     0   :  { %15 = vsyncpa [#allocation8], 0  ;;  %s9447_s0 = inlined_call_operand.vmem [shape: f32[128,128], index: 0, kind: input, shape index: {}]   ;;  %s9448_s1 = inlined_call_operand.hbm [shape: f32[128,128], index: 1, kind: input, shape index: {}]   ;;  %s9449_s2 = inlined_call_operand.hbm [shape: f32[1,128], index: 2, kind: input, shape index: {}]   ;;  %s9450_s3 = inlined_call_operand.hbm [shape: bf16[1152,128], index: 3, kind: input, shape index: {}]   ;;  %s9451_s4 = inlined_call_operand.hbm [shape: f32[1,128], index: 4, kind: input, shape index: {}]   ;;  %s9452_s5 = inlined_call_operand.hbm [shape: f32[9,128,1], index: 5, kind: input, shape index: {}]   ;;  %s9453_s6 = inlined_call_operand.hbm [shape: f32[1,256], index: 6, kind: input, shape index: {}]   ;;  %s9454_s7 = inlined_call_operand.hbm [shape: f32[256,128], index: 7, kind: input, shape index: {}]   ;;  %s9455_s8 = inlined_call_operand.hbm [shape: f32[1,128], index: 8, kind: input, shape index: {}]   ;;  %s9456_s9 = inlined_call_operand.hbm [shape: bf16[64,128,256], index: 9, kind: input, shape index: {}]   ;;  %s9457_s10 = inlined_call_operand.vmem [shape: f32[2,128], index: 10, kind: output, shape index: {}]  }
   0x1   :  { %16 = vsyncpa [#allocation10], 0 }
   0x2   :  { %17 = vsyncpa [#allocation13], 0 }
   0x3   :  { %18 = vsyncpa [#allocation16], 0 }
   0x4   :  { %19 = vsyncpa [#allocation19], 0  ;;  %s8000_s13 = smov [#allocation9]   ;;  %s8001_s15 = smov [#allocation12]  }
   0x5   :  { %s40_s14 = sshll.u32 %s8000_s13, 4  ;;  %s62_s16 = sshll.u32 %s8001_s15, 4  ;;  %s41_s14 = int_to_ptr.vmem [resolvable:$true] %s40_s14  ;;  %s63_s16 = int_to_ptr.vmem [resolvable:$true] %s62_s16 }
   0x6   :  { %s7812_s19 = scalar_lea.hbm %s9449_s2, 16 }
   0x7   :  { %p7813_p0 = scmp.ne.s32.totalorder %s9449_s2, %s7812_s19  ;;  %p7816_p1 = scmp.lt.u32.totalorder %s7812_s19, %s9449_s2 }
   0x9   :  { %p7818_p2 = pnand %p7816_p1, %p7813_p0 }
   0xb   :  { %7821 = shalt.err (!%p7818_p2)
}
   0xc   :  { %s7822_s24 = scalar_lea.vmem %s41_s14, 16  ;;  %s7826_s25 = scalar_lea.vmem %s41_s14, 32 }
   0xd   :  { %p7823_p3 = scmp.ne.s32.totalorder %s41_s14, %s7822_s24  ;;  %p7827_p4 = scmp.lt.s32.totalorder %s41_s14, %s41_s14 }
   0xe   :  { %p7828_p5 = scmp.lt.s32.totalorder %s7826_s25, %s7822_s24 }
  0x10   :  { %p7829_p6 = por %p7828_p5, %p7827_p4 }
  0x12   :  { %p7830_p7 = pnand %p7829_p6, %p7823_p3 }
  0x14   :  { %7833 = shalt.err (!%p7830_p7)
}
  0x15   :  { %43 = dma.hbm_to_vmem [thread:$0]  %s9449_s2, 16, %s41_s14, [#allocation10]  }
  0x16   :  { %s7834_s30 = scalar_lea.hbm %s9451_s4, 16 }
  0x17   :  { %p7835_p8 = scmp.ne.s32.totalorder %s9451_s4, %s7834_s30  ;;  %p7838_p9 = scmp.lt.u32.totalorder %s7834_s30, %s9451_s4 }
  0x19   :  { %p7840_p10 = pnand %p7838_p9, %p7835_p8 }
  0x1b   :  { %7843 = shalt.err (!%p7840_p10)
}
  0x1c   :  { %s7844_s17 = scalar_lea.vmem %s63_s16, 16  ;;  %s7848_s18 = scalar_lea.vmem %s63_s16, 32 }
  0x1d   :  { %p7845_p11 = scmp.ne.s32.totalorder %s63_s16, %s7844_s17  ;;  %p7849_p12 = scmp.lt.s32.totalorder %s63_s16, %s63_s16 }
  0x1e   :  { %p7850_p13 = scmp.lt.s32.totalorder %s7848_s18, %s7844_s17 }
  0x20   :  { %p7851_p0 = por %p7850_p13, %p7849_p12 }
  0x22   :  { %p7852_p1 = pnand %p7851_p0, %p7845_p11 }
  0x24   :  { %7855 = shalt.err (!%p7852_p1)
}
  0x25   :  { %65 = dma.hbm_to_vmem [thread:$0]  %s9451_s4, 16, %s63_s16, [#allocation13]  }
  0x26   :  { %s8002_s19 = smov [#allocation15]   ;;  %s8003_s21 = smov [#allocation7]  }
  0x27   :  { %s84_s20 = sshll.u32 %s8002_s19, 4  ;;  %s27_s22 = sshll.u32 %s8003_s21, 4  ;;  %s85_s20 = int_to_ptr.vmem [resolvable:$true] %s84_s20  ;;  %s8097_s22 = int_to_ptr.vmem [resolvable:$true] %s27_s22 }
  0x28   :  { %s7856_s25 = scalar_lea.hbm %s9453_s6, 32 }
  0x29   :  { %p7857_p2 = scmp.ne.s32.totalorder %s9453_s6, %s7856_s25  ;;  %p7860_p3 = scmp.lt.u32.totalorder %s7856_s25, %s9453_s6 }
  0x2b   :  { %p7862_p4 = pnand %p7860_p3, %p7857_p2 }
  0x2d   :  { %7865 = shalt.err (!%p7862_p4)
}
  0x2e   :  { %s7866_s4 = scalar_lea.vmem %s85_s20, 32  ;;  %p7871_p6 = scmp.lt.s32.totalorder %s85_s20, %s85_s20 }
  0x2f   :  { %p7867_p5 = scmp.ne.s32.totalorder %s85_s20, %s7866_s4  ;;  %p7872_p7 = scmp.lt.s32.totalorder %s7866_s4, %s7866_s4 }
  0x31   :  { %p7873_p8 = por %p7872_p7, %p7871_p6 }
  0x33   :  { %p7874_p9 = pnand %p7873_p8, %p7867_p5 }
  0x35   :  { %7877 = shalt.err (!%p7874_p9)
}
  0x36   :  { %87 = dma.hbm_to_vmem [thread:$0]  %s9453_s6, 32, %s85_s20, [#allocation16]  }
  0x37   :  { %s7878_s13 = scalar_lea.hbm %s9448_s1, 2048 }
  0x38   :  { %p7879_p10 = scmp.ne.s32.totalorder %s9448_s1, %s7878_s13  ;;  %p7882_p11 = scmp.lt.u32.totalorder %s7878_s13, %s9448_s1 }
  0x3a   :  { %p7884_p12 = pnand %p7882_p11, %p7879_p10 }
  0x3c   :  { %7887 = shalt.err (!%p7884_p12)
}
  0x3d   :  { %s7888_s14 = scalar_lea.vmem %s8097_s22, 2048  ;;  %p7893_p0 = scmp.lt.s32.totalorder %s8097_s22, %s8097_s22 }
  0x3e   :  { %p7889_p13 = scmp.ne.s32.totalorder %s8097_s22, %s7888_s14  ;;  %p7894_p1 = scmp.lt.s32.totalorder %s7888_s14, %s7888_s14 }
  0x40   :  { %p7895_p2 = por %p7894_p1, %p7893_p0 }
  0x42   :  { %p7896_p3 = pnand %p7895_p2, %p7889_p13 }
  0x44   :  { %7899 = shalt.err (!%p7896_p3)
}
  0x45   :  { %s8004_s6 = smov 128   ;;  %s8005_s19 = smov 8  }
  0x46   :  { %33 = dma.hbm_to_vmem [thread:$0]  %s9448_s1, 2048, %s8097_s22, [#allocation8], %s8004_s6, %s8004_s6, %s8005_s19  }
  0x47   :  { %s8006_s23 = smov [#allocation11]   ;;  %s7900_s27 = scalar_lea.hbm %s9450_s3, 9216 }
  0x48   :  { %s49_s24 = sshll.u32 %s8006_s23, 4  ;;  %p7901_p4 = scmp.ne.s32.totalorder %s9450_s3, %s7900_s27  ;;  %s50_s24 = int_to_ptr.vmem [resolvable:$true] %s49_s24 }
  0x49   :  { %p7904_p5 = scmp.lt.u32.totalorder %s7900_s27, %s9450_s3 }
  0x4b   :  { %p7906_p6 = pnand %p7904_p5, %p7901_p4 }
  0x4d   :  { %7909 = shalt.err (!%p7906_p6)
}
  0x4e   :  { %s7910_s30 = scalar_lea.vmem %s50_s24, 9216  ;;  %p7915_p8 = scmp.lt.s32.totalorder %s50_s24, %s50_s24 }
  0x4f   :  { %p7911_p7 = scmp.ne.s32.totalorder %s50_s24, %s7910_s30  ;;  %p7916_p9 = scmp.lt.s32.totalorder %s7910_s30, %s7910_s30 }
  0x51   :  { %p7917_p10 = por %p7916_p9, %p7915_p8 }
  0x53   :  { %p7918_p11 = pnand %p7917_p10, %p7911_p7 }
  0x55   :  { %7921 = shalt.err (!%p7918_p11)
}
  0x56   :  { %s8007_s1 = smov 64   ;;  %s8008_s22 = smov 4  }
  0x57   :  { %55 = dma.hbm_to_vmem [thread:$0]  %s9450_s3, 9216, %s50_s24, [#allocation10], %s8007_s1, %s8007_s1, %s8008_s22  }
  0x58   :  { %s8009_s13 = smov [#allocation14]   ;;  %s8010_s17 = smov [#allocation17]  }
  0x59   :  { %s71_s15 = sshll.u32 %s8009_s13, 4  ;;  %s93_s18 = sshll.u32 %s8010_s17, 4  ;;  %s72_s15 = int_to_ptr.vmem [resolvable:$true] %s71_s15  ;;  %s94_s18 = int_to_ptr.vmem [resolvable:$true] %s93_s18 }
  0x5a   :  { %s7922_s20 = scalar_lea.hbm %s9452_s5, 18432 }
  0x5b   :  { %p7923_p12 = scmp.ne.s32.totalorder %s9452_s5, %s7922_s20  ;;  %p7926_p13 = scmp.lt.u32.totalorder %s7922_s20, %s9452_s5 }
  0x5d   :  { %p7928_p0 = pnand %p7926_p13, %p7923_p12 }
  0x5f   :  { %7931 = shalt.err (!%p7928_p0)
}
  0x60   :  { %s7932_s3 = scalar_lea.vmem %s72_s15, 18432  ;;  %p7937_p2 = scmp.lt.s32.totalorder %s72_s15, %s72_s15 }
  0x61   :  { %p7933_p1 = scmp.ne.s32.totalorder %s72_s15, %s7932_s3  ;;  %p7938_p3 = scmp.lt.s32.totalorder %s7932_s3, %s7932_s3 }
  0x63   :  { %p7939_p4 = por %p7938_p3, %p7937_p2 }
  0x65   :  { %p7940_p5 = pnand %p7939_p4, %p7933_p1 }
  0x67   :  { %7943 = shalt.err (!%p7940_p5)
}
  0x68   :  { %77 = dma.hbm_to_vmem [thread:$0]  %s9452_s5, 18432, %s72_s15, [#allocation13], %s8004_s6, %s8004_s6, %s8005_s19  }
  0x69   :  { %s7944_s4 = scalar_lea.hbm %s9454_s7, 4096 }
  0x6a   :  { %p7945_p6 = scmp.ne.s32.totalorder %s9454_s7, %s7944_s4  ;;  %p7948_p7 = scmp.lt.u32.totalorder %s7944_s4, %s9454_s7 }
  0x6c   :  { %p7950_p8 = pnand %p7948_p7, %p7945_p6 }
  0x6e   :  { %7953 = shalt.err (!%p7950_p8)
}
  0x6f   :  { %s7954_s13 = scalar_lea.vmem %s94_s18, 4096  ;;  %p7959_p10 = scmp.lt.s32.totalorder %s94_s18, %s94_s18 }
  0x70   :  { %p7955_p9 = scmp.ne.s32.totalorder %s94_s18, %s7954_s13  ;;  %p7960_p11 = scmp.lt.s32.totalorder %s7954_s13, %s7954_s13 }
  0x72   :  { %p7961_p12 = por %p7960_p11, %p7959_p10 }
  0x74   :  { %p7962_p13 = pnand %p7961_p12, %p7955_p9 }
  0x76   :  { %7965 = shalt.err (!%p7962_p13)
}
  0x77   :  { %99 = dma.hbm_to_vmem [thread:$0]  %s9454_s7, 4096, %s94_s18, [#allocation16], %s8004_s6, %s8004_s6, %s8005_s19  }
  0x78   :  { %s8011_s17 = smov [#allocation18]   ;;  %s7966_s21 = scalar_lea.hbm %s9455_s8, 16 }
  0x79   :  { %s106_s2 = sshll.u32 %s8011_s17, 4  ;;  %p7967_p0 = scmp.ne.s32.totalorder %s9455_s8, %s7966_s21  ;;  %s107_s2 = int_to_ptr.vmem [resolvable:$true] %s106_s2 }
  0x7a   :  { %p7970_p1 = scmp.lt.u32.totalorder %s7966_s21, %s9455_s8 }
  0x7c   :  { %p7972_p2 = pnand %p7970_p1, %p7967_p0 }
  0x7e   :  { %7975 = shalt.err (!%p7972_p2)
}
  0x7f   :  { %s7976_s24 = scalar_lea.vmem %s107_s2, 16  ;;  %s7980_s7 = scalar_lea.vmem %s107_s2, 32 }
  0x80   :  { %p7977_p3 = scmp.ne.s32.totalorder %s107_s2, %s7976_s24  ;;  %p7981_p4 = scmp.lt.s32.totalorder %s107_s2, %s107_s2 }
  0x81   :  { %p7982_p5 = scmp.lt.s32.totalorder %s7980_s7, %s7976_s24 }
  0x83   :  { %p7983_p6 = por %p7982_p5, %p7981_p4 }
  0x85   :  { %p7984_p7 = pnand %p7983_p6, %p7977_p3 }
  0x87   :  { %7987 = shalt.err (!%p7984_p7)
}
  0x88   :  { %109 = dma.hbm_to_vmem [thread:$0]  %s9455_s8, 16, %s107_s2, [#allocation19]  }
  0x89   :  { %7988 = dma.done.wait [#allocation8], 2048  }
  0x8a   :  { %7989 = vsyncadd [#allocation8], 4294965248 }
  0x8b   :  { %7990 = dma.done.wait [#allocation10], 9232  }
  0x8c   :  { %7991 = vsyncadd [#allocation10], 4294958064 }
  0x8d   :  { %7992 = dma.done.wait [#allocation13], 18448  }
  0x8e   :  { %7993 = vsyncadd [#allocation13], 4294948848 }
  0x8f   :  { %7994 = dma.done.wait [#allocation16], 4128  }
  0x90   :  { %7995 = vsyncadd [#allocation16], 4294963168 }
  0x91   :  { %7996 = dma.done.wait [#allocation19], 16  }
  0x92   :  { %7997 = vsyncadd [#allocation19], 4294967280  ;;  %s139_s27 = sld [smem:[#allocation0]]   ;;  %s8012_s28 = smov 256   ;;  %v9458_v0 = vmov 0   ;;  %vm390_vm0 = vcmask 1043456  }
  0x93   :  { %151 = sst [smem:[#allocation21]] %s8012_s28  ;;  %7739 = vset.pattern.permute.xlu1 %v9458_v0  ;;  %7738 = vset.pattern.permute.xlu0 %v9458_v0  ;;  %s8014_s8 = smov 2   ;;  %vm497_vm1 = vcmask 1042432   ;;  %vm540_vm2 = vcmask 1044480  }
  0x94   :  { %153 = sst [smem:[#allocation21 + $0x1]] %s8012_s28  ;;  %s8015_s29 = smov [#allocation2]  }
  0x95   :  { %155 = sst [smem:[#allocation21 + $0x2]] %s8014_s8  ;;  %s147_s4 = sshll.u32 %s8015_s29, 4  ;;  %s148_s4 = int_to_ptr.vmem [resolvable:$true] %s147_s4 }
  0x96   :  { %157 = sst [smem:[#allocation21 + $0x3]] %s8007_s1  ;;  %s8016_s11 = smov [#allocation3]  }
  0x97   :  { %159 = sst [smem:[#allocation21 + $0x4]] %s8004_s6  ;;  %s8017_s12 = smov [#allocation20]  }
  0x98   :  { %161 = sst [smem:[#allocation21 + $0x5]] %s8014_s8  ;;  %s7151_s16 = sshll.u32 %s139_s27, 26 }
  0x99   :  { %163 = sst [smem:[#allocation21 + $0x6]] %s8004_s6  ;;  %s7152_s30 = sadd.s32 134217728, %s7151_s16 }
  0x9a   :  { %165 = sst [smem:[#allocation21 + $0x7]] %s8007_s1 }
  0x9b   :  { %167 = sst [smem:[#allocation21 + $0x8]] %s8008_s22 }
  0x9c   :  { %169 = dma.general %s9456_s9, 131072, %s148_s4, %s8016_s11, %s8017_s12, [#allocation21], %s7152_s30, 0  }
  0x9d   :  { %370 = vst [vmem:[#allocation4] sm:$0xff] %v9458_v0  ;;  %371 = vst [vmem:[#allocation4 + $0x8] sm:$0xf] %v9458_v0  ;;  %v584_v1 = vld [vmem:[#allocation14 + $0x80] sm:$0xff]  ;;  %v585_v2 = vld [vmem:[#allocation14 + $0x88] sm:$0xff] }
  0x9e   :  { %372 = vst [vmem:[#allocation4 + $0x48] sm:$0xf0] %v9458_v0  ;;  %373 = vst [vmem:[#allocation4 + $0x50] sm:$0xff] %v9458_v0  ;;  %v433_v3 = vld [vmem:[#allocation14] sm:$0xff]  ;;  %v600_v4 = vpack.c.bf16 %v585_v2, %v584_v1  ;;  %v434_v5 = vld [vmem:[#allocation14 + $0x8] sm:$0xff] }
  0x9f   :  { %v186_v6 = vld [vmem:[#allocation7] sm:$0xff]  ;;  %v187_v7 = vld [vmem:[#allocation7 + $0x8] sm:$0xff]  ;;  %v449_v8 = vpack.c.bf16 %v434_v5, %v433_v3  ;;  %v586_v10 = vld [vmem:[#allocation14 + $0x90] sm:$0xff] }
  0xa0   :  { %v7656_v9 = vpack.c.bf16 %v187_v7, %v186_v6  ;;  %v587_v11 = vld [vmem:[#allocation14 + $0x98] sm:$0xff]  ;;  %v435_v12 = vld [vmem:[#allocation14 + $0x10] sm:$0xff]  ;;  %610 = vperm.xlu0 %7738, %v600_v4   ;;  %v588_v19 = vld [vmem:[#allocation14 + $0xa0] sm:$0xff] }
  0xa1   :  { %v601_v13 = vpack.c.bf16 %v587_v11, %v586_v10  ;;  %v436_v14 = vld [vmem:[#allocation14 + $0x18] sm:$0xff]  ;;  %v188_v15 = vld [vmem:[#allocation7 + $0x10] sm:$0xff]  ;;  %459 = vperm.xlu1 %7739, %v449_v8   ;;  %v437_v21 = vld [vmem:[#allocation14 + $0x20] sm:$0xff] }
  0xa2   :  { %v189_v16 = vld [vmem:[#allocation7 + $0x18] sm:$0xff]  ;;  %7657 = vmatprep.subr.bf16.mxu0 %v7656_v9  ;;  %v450_v17 = vpack.c.bf16 %v436_v14, %v435_v12  ;;  %v589_v20 = vld [vmem:[#allocation14 + $0xa8] sm:$0xff]  ;;  %v190_v23 = vld [vmem:[#allocation7 + $0x20] sm:$0xff] }
  0xa3   :  { %v7660_v18 = vpack.c.bf16 %v189_v16, %v188_v15  ;;  %7659 = vmatpush3.bf16.msra.mxu0 %v7656_v9  ;;  %v438_v22 = vld [vmem:[#allocation14 + $0x28] sm:$0xff]  ;;  %v602_v26 = vpack.c.bf16 %v589_v20, %v588_v19  ;;  %v193_v28 = vld [vmem:[#allocation7 + $0x38] sm:$0xff]  ;;  %v194_v36 = vld [vmem:[#allocation7 + $0x40] sm:$0xff] }
  0xa4   :  { %v191_v24 = vld [vmem:[#allocation7 + $0x28] sm:$0xff]  ;;  %614 = vperm.xlu0 %7738, %v601_v13   ;;  %v192_v27 = vld [vmem:[#allocation7 + $0x30] sm:$0xff]  ;;  %v451_v29 = vpack.c.bf16 %v438_v22, %v437_v21  ;;  %v591_v31 = vld [vmem:[#allocation14 + $0xb8] sm:$0xff] }
  0xa5   :  { %7661 = vmatprep.subr.bf16.mxu0 %v7660_v18  ;;  %v7664_v25 = vpack.c.bf16 %v191_v24, %v190_v23  ;;  %463 = vperm.xlu1 %7739, %v450_v17   ;;  %v590_v30 = vld [vmem:[#allocation14 + $0xb0] sm:$0xff]  ;;  %v440_v33 = vld [vmem:[#allocation14 + $0x38] sm:$0xff]  ;;  %v7668_v34 = vpack.c.bf16 %v193_v28, %v192_v27  ;;  %v195_v37 = vld [vmem:[#allocation7 + $0x48] sm:$0xff] }
  0xa6   :  { %v439_v32 = vld [vmem:[#allocation14 + $0x30] sm:$0xff]  ;;  %v603_v35 = vpack.c.bf16 %v591_v31, %v590_v30  ;;  %v592_v39 = vld [vmem:[#allocation14 + $0xc0] sm:$0xff]  ;;  %v593_v40 = vld [vmem:[#allocation14 + $0xc8] sm:$0xff]  ;;  %v7672_v43 = vpack.c.bf16 %v195_v37, %v194_v36 }
  0xa7   :  { %7663 = vmatpush3.bf16.msra.mxu0 %v7660_v18  ;;  %v452_v38 = vpack.c.bf16 %v440_v33, %v439_v32  ;;  %v441_v41 = vld [vmem:[#allocation14 + $0x40] sm:$0xff]  ;;  %v442_v42 = vld [vmem:[#allocation14 + $0x48] sm:$0xff]  ;;  %v604_v44 = vpack.c.bf16 %v593_v40, %v592_v39  ;;  %v197_v46 = vld [vmem:[#allocation7 + $0x58] sm:$0xff] }
  0xa8   :  { %7665 = vmatprep.subr.bf16.mxu0 %v7664_v25  ;;  %618 = vperm.xlu0 %7738, %v602_v26   ;;  %v196_v45 = vld [vmem:[#allocation7 + $0x50] sm:$0xff]  ;;  %v453_v47 = vpack.c.bf16 %v442_v42, %v441_v41  ;;  %v882_v48 = vld [vmem:[#allocation14 + $0x180] sm:$0xff]  ;;  %v885_v52 = vld [vmem:[#allocation14 + $0x198] sm:$0xff] }
  0xa9   :  { %467 = vperm.xlu1 %7739, %v451_v29   ;;  %v883_v49 = vld [vmem:[#allocation14 + $0x188] sm:$0xff]  ;;  %v884_v51 = vld [vmem:[#allocation14 + $0x190] sm:$0xff]  ;;  %v7676_v53 = vpack.c.bf16 %v197_v46, %v196_v45  ;;  %v198_v55 = vld [vmem:[#allocation7 + $0x60] sm:$0xff] }
  0xaa   :  { %v170_v50 = vld [vmem:[%s9447_s0] sm:$0xff]  ;;  %v898_v54 = vpack.c.bf16 %v883_v49, %v882_v48  ;;  %v899_v57 = vpack.c.bf16 %v885_v52, %v884_v51  ;;  %v735_v60 = vld [vmem:[#allocation14 + $0x110] sm:$0xff]  ;;  %v736_v61 = vld [vmem:[#allocation14 + $0x118] sm:$0xff] }
  0xab   :  { %7667 = vmatpush3.bf16.msra.mxu0 %v7664_v25  ;;  %7600 = vmatprep.mubr.f32.mxu0 %v170_v50  ;;  %v199_v56 = vld [vmem:[#allocation7 + $0x68] sm:$0xff]  ;;  %v200_v1 = vld [vmem:[#allocation7 + $0x70] sm:$0xff]  ;;  %v201_v2 = vld [vmem:[#allocation7 + $0x78] sm:$0xff]  ;;  %v750_v3 = vpack.c.bf16 %v736_v61, %v735_v60 }
  0xac   :  { %7669 = vmatprep.subr.bf16.mxu0 %v7668_v34  ;;  %622 = vperm.xlu0 %7738, %v603_v35   ;;  %v733_v58 = vld [vmem:[#allocation14 + $0x100] sm:$0xff]  ;;  %v734_v59 = vld [vmem:[#allocation14 + $0x108] sm:$0xff]  ;;  %v7680_v62 = vpack.c.bf16 %v199_v56, %v198_v55  ;;  %v594_v4 = vld [vmem:[#allocation14 + $0xd0] sm:$0xff]  ;;  %v7684_v8 = vpack.c.bf16 %v201_v2, %v200_v1 }
  0xad   :  { %471 = vperm.xlu1 %7739, %v452_v38   ;;  %v749_v63 = vpack.c.bf16 %v734_v59, %v733_v58  ;;  %v595_v5 = vld [vmem:[#allocation14 + $0xd8] sm:$0xff]  ;;  %v443_v6 = vld [vmem:[#allocation14 + $0x50] sm:$0xff]  ;;  %v886_v11 = vld [vmem:[#allocation14 + $0x1a0] sm:$0xff] }
  0xae   :  { %v444_v7 = vld [vmem:[#allocation14 + $0x58] sm:$0xff]  ;;  %v605_v9 = vpack.c.bf16 %v595_v5, %v594_v4  ;;  %v887_v12 = vld [vmem:[#allocation14 + $0x1a8] sm:$0xff]  ;;  %v737_v13 = vld [vmem:[#allocation14 + $0x120] sm:$0xff] }
  0xaf   :  { %7671 = vmatpush3.bf16.msra.mxu0 %v7668_v34  ;;  %v454_v10 = vpack.c.bf16 %v444_v7, %v443_v6  ;;  %v738_v14 = vld [vmem:[#allocation14 + $0x128] sm:$0xff]  ;;  %v900_v15 = vpack.c.bf16 %v887_v12, %v886_v11  ;;  %v596_v17 = vld [vmem:[#allocation14 + $0xe0] sm:$0xff]  ;;  %v172_v22 = vld [vmem:[%s9447_s0 + $0x10] sm:$0xff] }
  0xb0   :  { %7673 = vmatprep.subr.bf16.mxu0 %v7672_v43  ;;  %626 = vperm.xlu0 %7738, %v604_v44   ;;  %v751_v16 = vpack.c.bf16 %v738_v14, %v737_v13  ;;  %v597_v18 = vld [vmem:[#allocation14 + $0xe8] sm:$0xff]  ;;  %v445_v20 = vld [vmem:[#allocation14 + $0x60] sm:$0xff]  ;;  %v888_v25 = vld [vmem:[#allocation14 + $0x1b0] sm:$0xff] }
  0xb1   :  { %475 = vperm.xlu1 %7739, %v453_v47   ;;  %v171_v19 = vld [vmem:[%s9447_s0 + $0x8] sm:$0xff]  ;;  %v606_v23 = vpack.c.bf16 %v597_v18, %v596_v17  ;;  %v889_v26 = vld [vmem:[#allocation14 + $0x1b8] sm:$0xff]  ;;  %v174_v30 = vld [vmem:[%s9447_s0 + $0x20] sm:$0xff] }
  0xb2   :  { %v446_v21 = vld [vmem:[#allocation14 + $0x68] sm:$0xff]  ;;  %v173_v27 = vld [vmem:[%s9447_s0 + $0x18] sm:$0xff]  ;;  %v739_v28 = vld [vmem:[#allocation14 + $0x130] sm:$0xff]  ;;  %v901_v31 = vpack.c.bf16 %v889_v26, %v888_v25 }
  0xb3   :  { %7675 = vmatpush3.bf16.msra.mxu0 %v7672_v43  ;;  %v455_v24 = vpack.c.bf16 %v446_v21, %v445_v20  ;;  %v740_v29 = vld [vmem:[#allocation14 + $0x138] sm:$0xff]  ;;  %v598_v33 = vld [vmem:[#allocation14 + $0xf0] sm:$0xff]  ;;  %v890_v41 = vld [vmem:[#allocation14 + $0x1c0] sm:$0xff] }
  0xb4   :  { %7677 = vmatprep.subr.bf16.mxu0 %v7676_v53  ;;  %908 = vperm.xlu0 %7738, %v898_v54   ;;  %v752_v32 = vpack.c.bf16 %v740_v29, %v739_v28  ;;  %v599_v34 = vld [vmem:[#allocation14 + $0xf8] sm:$0xff]  ;;  %v175_v35 = vld [vmem:[%s9447_s0 + $0x28] sm:$0xff]  ;;  %v741_v44 = vld [vmem:[#allocation14 + $0x140] sm:$0xff] }
  0xb5   :  { %912 = vperm.xlu1 %7739, %v899_v57   ;;  %v447_v36 = vld [vmem:[#allocation14 + $0x70] sm:$0xff]  ;;  %v448_v37 = vld [vmem:[#allocation14 + $0x78] sm:$0xff]  ;;  %v607_v39 = vpack.c.bf16 %v599_v34, %v598_v33  ;;  %v891_v42 = vld [vmem:[#allocation14 + $0x1c8] sm:$0xff] }
  0xb6   :  { %v176_v38 = vld [vmem:[%s9447_s0 + $0x30] sm:$0xff]  ;;  %v456_v40 = vpack.c.bf16 %v448_v37, %v447_v36  ;;  %v177_v43 = vld [vmem:[%s9447_s0 + $0x38] sm:$0xff]  ;;  %v742_v45 = vld [vmem:[#allocation14 + $0x148] sm:$0xff]  ;;  %v902_v47 = vpack.c.bf16 %v891_v42, %v890_v41 }
  0xb7   :  { %7679 = vmatpush3.bf16.msra.mxu0 %v7676_v53  ;;  %v178_v46 = vld [vmem:[%s9447_s0 + $0x40] sm:$0xff]  ;;  %v753_v48 = vpack.c.bf16 %v742_v45, %v741_v44  ;;  %v892_v49 = vld [vmem:[#allocation14 + $0x1d0] sm:$0xff]  ;;  %v893_v50 = vld [vmem:[#allocation14 + $0x1d8] sm:$0xff] }
  0xb8   :  { %7681 = vmatprep.subr.bf16.mxu0 %v7680_v62  ;;  %759 = vperm.xlu0 %7738, %v749_v63   ;;  %v179_v51 = vld [vmem:[%s9447_s0 + $0x48] sm:$0xff]  ;;  %v744_v53 = vld [vmem:[#allocation14 + $0x158] sm:$0xff]  ;;  %v903_v55 = vpack.c.bf16 %v893_v50, %v892_v49  ;;  %v1180_v57 = vld [vmem:[#allocation14 + $0x280] sm:$0xff] }
  0xb9   :  { %763 = vperm.xlu1 %7739, %v750_v3   ;;  %v743_v52 = vld [vmem:[#allocation14 + $0x150] sm:$0xff]  ;;  %v1181_v58 = vld [vmem:[#allocation14 + $0x288] sm:$0xff]  ;;  %v181_v59 = vld [vmem:[%s9447_s0 + $0x58] sm:$0xff] }
  0xba   :  { %v180_v54 = vld [vmem:[%s9447_s0 + $0x50] sm:$0xff]  ;;  %v754_v56 = vpack.c.bf16 %v744_v53, %v743_v52  ;;  %v1196_v63 = vpack.c.bf16 %v1181_v58, %v1180_v57  ;;  %v1031_v2 = vld [vmem:[#allocation14 + $0x200] sm:$0xff]  ;;  %v1032_v3 = vld [vmem:[#allocation14 + $0x208] sm:$0xff] }
  0xbb   :  { %7683 = vmatpush3.bf16.msra.mxu0 %v7680_v62  ;;  %v1182_v60 = vld [vmem:[#allocation14 + $0x290] sm:$0xff]  ;;  %v1183_v61 = vld [vmem:[#allocation14 + $0x298] sm:$0xff]  ;;  %v182_v62 = vld [vmem:[%s9447_s0 + $0x60] sm:$0xff] }
  0xbc   :  { %7685 = vmatprep.subr.bf16.mxu0 %v7684_v8  ;;  %630 = vperm.xlu0 %7738, %v605_v9   ;;  %v1197_v1 = vpack.c.bf16 %v1183_v61, %v1182_v60  ;;  %v183_v4 = vld [vmem:[%s9447_s0 + $0x68] sm:$0xff]  ;;  %v1034_v6 = vld [vmem:[#allocation14 + $0x218] sm:$0xff]  ;;  %v745_v12 = vld [vmem:[#allocation14 + $0x160] sm:$0xff] }
  0xbd   :  { %479 = vperm.xlu1 %7739, %v454_v10   ;;  %v1033_v5 = vld [vmem:[#allocation14 + $0x210] sm:$0xff]  ;;  %v895_v9 = vld [vmem:[#allocation14 + $0x1e8] sm:$0xff]  ;;  %v1047_v10 = vpack.c.bf16 %v1032_v3, %v1031_v2  ;;  %v185_v11 = vld [vmem:[%s9447_s0 + $0x78] sm:$0xff] }
  0xbe   :  { %v184_v7 = vld [vmem:[%s9447_s0 + $0x70] sm:$0xff]  ;;  %v746_v13 = vld [vmem:[#allocation14 + $0x168] sm:$0xff]  ;;  %v1048_v14 = vpack.c.bf16 %v1034_v6, %v1033_v5  ;;  %v1035_v18 = vld [vmem:[#allocation14 + $0x220] sm:$0xff] }
  0xbf   :  { %7687 = vmatpush3.bf16.msra.mxu0 %v7684_v8  ;;  %v894_v8 = vld [vmem:[#allocation14 + $0x1e0] sm:$0xff]  ;;  %v755_v20 = vpack.c.bf16 %v746_v13, %v745_v12  ;;  %v896_v21 = vld [vmem:[#allocation14 + $0x1f0] sm:$0xff]  ;;  %v748_v25 = vld [vmem:[#allocation14 + $0x178] sm:$0xff] }
  0xc0   :  { %916 = vperm.xlu0 %7738, %v900_v15   ;;  %v1184_v15 = vld [vmem:[#allocation14 + $0x2a0] sm:$0xff]  ;;  %v904_v17 = vpack.c.bf16 %v895_v9, %v894_v8  ;;  %v1187_v28 = vld [vmem:[#allocation14 + $0x2b8] sm:$0xff]  ;;  %v1189_v34 = vld [vmem:[#allocation14 + $0x2c8] sm:$0xff] }
  0xc1   :  { %767 = vperm.xlu1 %7739, %v751_v16   ;;  %v1185_v16 = vld [vmem:[#allocation14 + $0x2a8] sm:$0xff]  ;;  %v1188_v33 = vld [vmem:[#allocation14 + $0x2c0] sm:$0xff]  ;;  %v1480_v42 = vld [vmem:[#allocation14 + $0x390] sm:$0xff] }
  0xc2   :  { %7601 = vmatmul.mubr.f32.vlgmr.msra.gmra.mrb[0].mxu0 %v171_v19  ;;  %v1036_v19 = vld [vmem:[#allocation14 + $0x228] sm:$0xff]  ;;  %v1039_v36 = vld [vmem:[#allocation14 + $0x240] sm:$0xff]  ;;  %v1200_v41 = vpack.c.bf16 %v1189_v34, %v1188_v33  ;;  %v1332_v49 = vld [vmem:[#allocation14 + $0x318] sm:$0xff] }
  0xc3   :  { %7603 = vmatprep.mubr.f32.mxu0 %v172_v22  ;;  %v897_v22 = vld [vmem:[#allocation14 + $0x1f8] sm:$0xff]  ;;  %v1049_v26 = vpack.c.bf16 %v1036_v19, %v1035_v18  ;;  %v1040_v37 = vld [vmem:[#allocation14 + $0x248] sm:$0xff]  ;;  %v1329_v45 = vld [vmem:[#allocation14 + $0x300] sm:$0xff] }
  0xc4   :  { %634 = vperm.xlu0 %7738, %v606_v23   ;;  %v1198_v23 = vpack.c.bf16 %v1185_v16, %v1184_v15  ;;  %v905_v29 = vpack.c.bf16 %v897_v22, %v896_v21  ;;  %v1051_v44 = vpack.c.bf16 %v1040_v37, %v1039_v36  ;;  %v1191_v52 = vld [vmem:[#allocation14 + $0x2d8] sm:$0xff]  ;;  %v1482_v57 = vld [vmem:[#allocation14 + $0x3a0] sm:$0xff]  ;;  %v1483_v58 = vld [vmem:[#allocation14 + $0x3a8] sm:$0xff] }
  0xc5   :  { %483 = vperm.xlu1 %7739, %v455_v24   ;;  %v747_v24 = vld [vmem:[#allocation14 + $0x170] sm:$0xff]  ;;  %v1333_v60 = vld [vmem:[#allocation14 + $0x320] sm:$0xff]  ;;  %v1334_v61 = vld [vmem:[#allocation14 + $0x328] sm:$0xff]  ;;  %v1496_v2 = vpack.c.bf16 %v1483_v58, %v1482_v57 }
  0xc6   :  { %7604 = vmatmul.mubr.f32.gmra.mrb[2].mxu0 %v173_v27  ;;  %v1186_v27 = vld [vmem:[#allocation14 + $0x2b0] sm:$0xff]  ;;  %v1043_v3 = vld [vmem:[#allocation14 + $0x260] sm:$0xff]  ;;  %v1347_v5 = vpack.c.bf16 %v1334_v61, %v1333_v60  ;;  %v1195_v13 = vld [vmem:[#allocation14 + $0x2f8] sm:$0xff] }
  0xc7   :  { %7606 = vmatprep.mubr.f32.mxu0 %v174_v30  ;;  %v1037_v30 = vld [vmem:[#allocation14 + $0x230] sm:$0xff]  ;;  %v1046_v16 = vld [vmem:[#allocation14 + $0x278] sm:$0xff]  ;;  %v1487_v21 = vld [vmem:[#allocation14 + $0x3c8] sm:$0xff] }
  0xc8   :  { %920 = vperm.xlu0 %7738, %v901_v31   ;;  %v1038_v31 = vld [vmem:[#allocation14 + $0x238] sm:$0xff]  ;;  %v1484_v6 = vld [vmem:[#allocation14 + $0x3b0] sm:$0xff]  ;;  %v1337_v22 = vld [vmem:[#allocation14 + $0x340] sm:$0xff] }
  0xc9   :  { %771 = vperm.xlu1 %7739, %v752_v32   ;;  %v756_v32 = vpack.c.bf16 %v748_v25, %v747_v24  ;;  %v1335_v9 = vld [vmem:[#allocation14 + $0x330] sm:$0xff]  ;;  %v7740_v24 = vld [vmem:[#allocation11 + $0x40] sm:$0xff]   ;;  %v7742_v34 = vld [vmem:[#allocation11 + $0x48] sm:$0xff]  }
  0xca   :  { %7607 = vmatmul.mubr.f32.gmra.mrb[4].mxu0 %v175_v35  ;;  %v1199_v35 = vpack.c.bf16 %v1187_v28, %v1186_v27  ;;  %v1194_v12 = vld [vmem:[#allocation14 + $0x2f0] sm:$0xff]  ;;  %v7744_v25 = vld [vmem:[#allocation11 + $0xc0] sm:$0xff]   ;;  %7261 = vmatprep.subr.bf16.mxu1 %v7740_v24  ;;  %v7743_v36 = vld [vmem:[#allocation11 + $0x8] sm:$0xff]  }
  0xcb   :  { %7609 = vmatprep.mubr.f32.mxu0 %v176_v38  ;;  %v1050_v38 = vpack.c.bf16 %v1038_v31, %v1037_v30  ;;  %v1045_v15 = vld [vmem:[#allocation14 + $0x270] sm:$0xff]  ;;  %v1203_v18 = vpack.c.bf16 %v1195_v13, %v1194_v12  ;;  %v7745_v27 = vld [vmem:[#allocation11 + $0x80] sm:$0xff]   ;;  %7325 = vmatprep.subr.bf16.mxu0 %v7744_v25  ;;  %v7749_v37 = vld [vmem:[#allocation11 + $0x88] sm:$0xff]  }
  0xcc   :  { %638 = vperm.xlu0 %7738, %v607_v39   ;;  %v1478_v39 = vld [vmem:[#allocation14 + $0x380] sm:$0xff]  ;;  %v1054_v19 = vpack.c.bf16 %v1046_v16, %v1045_v15  ;;  %v1488_v30 = vld [vmem:[#allocation14 + $0x3d0] sm:$0xff]  ;;  %v1489_v31 = vld [vmem:[#allocation14 + $0x3d8] sm:$0xff]  ;;  %7326 = vmatpush3.bf16.msra.mxu0 %v7745_v27 }
  0xcd   :  { %487 = vperm.xlu1 %7739, %v456_v40   ;;  %v1479_v40 = vld [vmem:[#allocation14 + $0x388] sm:$0xff]  ;;  %v1340_v33 = vld [vmem:[#allocation14 + $0x358] sm:$0xff]  ;;  %v1341_v60 = vld [vmem:[#allocation14 + $0x360] sm:$0xff] }
  0xce   :  { %7610 = vmatmul.mubr.f32.gmra.mrb[6].mxu0 %v177_v43  ;;  %v1481_v43 = vld [vmem:[#allocation14 + $0x398] sm:$0xff]  ;;  %v1342_v61 = vld [vmem:[#allocation14 + $0x368] sm:$0xff] }
  0xcf   :  { %7612 = vmatprep.mubr.f32.mxu0 %v178_v46  ;;  %v1330_v46 = vld [vmem:[#allocation14 + $0x308] sm:$0xff]  ;;  %v1495_v50 = vpack.c.bf16 %v1481_v43, %v1480_v42  ;;  %v1629_v42 = vld [vmem:[#allocation14 + $0x410] sm:$0xff]  ;;  %v1630_v43 = vld [vmem:[#allocation14 + $0x418] sm:$0xff] }
  0xd0   :  { %924 = vperm.xlu0 %7738, %v902_v47   ;;  %v1494_v47 = vpack.c.bf16 %v1479_v40, %v1478_v39  ;;  %v1345_v53 = vpack.c.bf16 %v1330_v46, %v1329_v45  ;;  %v1627_v40 = vld [vmem:[#allocation14 + $0x400] sm:$0xff]  ;;  %v7752_v45 = vld [vmem:[#allocation11 + $0xd0] sm:$0xff]   ;;  %v7757_v57 = vld [vmem:[#allocation11 + $0x98] sm:$0xff]  }
  0xd1   :  { %775 = vperm.xlu1 %7739, %v753_v48   ;;  %v1331_v48 = vld [vmem:[#allocation14 + $0x310] sm:$0xff]  ;;  %v7764_v12 = vld [vmem:[#allocation11 + $0xe8] sm:$0xff]  }
  0xd2   :  { %7613 = vmatmul.mubr.f32.gmra.mrb[8].mxu0 %v179_v51  ;;  %v1190_v51 = vld [vmem:[#allocation14 + $0x2d0] sm:$0xff]  ;;  %v7765_v15 = vld [vmem:[#allocation11 + $0xa8] sm:$0xff]  }
  0xd3   :  { %7615 = vmatprep.mubr.f32.mxu0 %v180_v54  ;;  %v1041_v54 = vld [vmem:[#allocation14 + $0x250] sm:$0xff] }
  0xd4   :  { %928 = vperm.xlu0 %7738, %v903_v55   ;;  %v1042_v55 = vld [vmem:[#allocation14 + $0x258] sm:$0xff]  ;;  %v7747_v46 = vld [vmem:[#allocation11 + $0x10] sm:$0xff]  }
  0xd5   :  { %779 = vperm.xlu1 %7739, %v754_v56   ;;  %v1346_v56 = vpack.c.bf16 %v1332_v49, %v1331_v48  ;;  %v1644_v49 = vpack.c.bf16 %v1630_v43, %v1629_v42  ;;  %v7763_v25 = vld [vmem:[#allocation11 + $0x30] sm:$0xff]   ;;  %v7773_v43 = vld [vmem:[#allocation11 + $0xb8] sm:$0xff]  }
  0xd6   :  { %7616 = vmatmul.mubr.f32.gmra.mrb[10].mxu0 %v181_v59  ;;  %v1201_v59 = vpack.c.bf16 %v1191_v52, %v1190_v51  ;;  %v1632_v51 = vld [vmem:[#allocation14 + $0x428] sm:$0xff]  ;;  %v1490_v52 = vld [vmem:[#allocation14 + $0x3e0] sm:$0xff] }
  0xd7   :  { %7618 = vmatprep.mubr.f32.mxu0 %v182_v62  ;;  %v1052_v62 = vpack.c.bf16 %v1042_v55, %v1041_v54  ;;  %v7750_v54 = vld [vmem:[#allocation11 + $0x58] sm:$0xff]  }
  0xd8   :  { %1206 = vperm.xlu0 %7738, %v1196_v63   ;;  %v1192_v63 = vld [vmem:[#allocation14 + $0x2e0] sm:$0xff]  ;;  %v7756_v55 = vld [vmem:[#allocation11 + $0xd8] sm:$0xff]  }
  0xd9   :  { %1210 = vperm.xlu1 %7739, %v1197_v1   ;;  %v1193_v1 = vld [vmem:[#allocation14 + $0x2e8] sm:$0xff] }
  0xda   :  { %7619 = vmatmul.mubr.f32.gmra.mrb[12].mxu0 %v183_v4  ;;  %v1044_v4 = vld [vmem:[#allocation14 + $0x268] sm:$0xff]  ;;  %v1202_v8 = vpack.c.bf16 %v1193_v1, %v1192_v63  ;;  %v1634_v63 = vld [vmem:[#allocation14 + $0x438] sm:$0xff] }
  0xdb   :  { %7621 = vmatprep.mubr.f32.mxu0 %v184_v7  ;;  %v1485_v7 = vld [vmem:[#allocation14 + $0x3b8] sm:$0xff] }
  0xdc   :  { %1057 = vperm.xlu0 %7738, %v1047_v10   ;;  %v1336_v10 = vld [vmem:[#allocation14 + $0x338] sm:$0xff] }
  0xdd   :  { %1061 = vperm.xlu1 %7739, %v1048_v14   ;;  %v1497_v14 = vpack.c.bf16 %v1485_v7, %v1484_v6  ;;  %v7754_v1 = vld [vmem:[#allocation11 + $0x60] sm:$0xff]  }
  0xde   :  { %7622 = vmatmul.mubr.f32.gmra.mrb[14].mxu0 %v185_v11  ;;  %v1053_v11 = vpack.c.bf16 %v1044_v4, %v1043_v3  ;;  %v7755_v3 = vld [vmem:[#allocation11 + $0x20] sm:$0xff]  }
  0xdf   :  { %v7761_v4 = vld [vmem:[#allocation11 + $0xa0] sm:$0xff]  }
  0xe0   :  { %932 = vperm.xlu0 %7738, %v904_v17   ;;  %v1348_v17 = vpack.c.bf16 %v1336_v10, %v1335_v9  ;;  %v1635_v7 = vld [vmem:[#allocation14 + $0x440] sm:$0xff]  ;;  %v1492_v9 = vld [vmem:[#allocation14 + $0x3f0] sm:$0xff]  ;;  %v1493_v10 = vld [vmem:[#allocation14 + $0x3f8] sm:$0xff] }
  0xe1   :  { %783 = vperm.xlu1 %7739, %v755_v20   ;;  %v1486_v20 = vld [vmem:[#allocation14 + $0x3c0] sm:$0xff] }
  0xe2   :  { %v1498_v28 = vpack.c.bf16 %v1487_v21, %v1486_v20  ;;  %v1344_v20 = vld [vmem:[#allocation14 + $0x378] sm:$0xff]  ;;  %v1637_v21 = vld [vmem:[#allocation14 + $0x450] sm:$0xff] }
  0xe4   :  { %1214 = vperm.xlu0 %7738, %v1198_v23   ;;  %v1338_v23 = vld [vmem:[#allocation14 + $0x348] sm:$0xff] }
  0xe5   :  { %1065 = vperm.xlu1 %7739, %v1049_v26   ;;  %v7741_v26 = vld [vmem:[#allocation11] sm:$0xff]  }
  0xe6   :  { %7262 = vmatpush3.bf16.msra.mxu1 %v7741_v26  ;;  %v7768_v26 = vld [vmem:[#allocation11 + $0xf0] sm:$0xff]  }
  0xe7   :  { %7263 = vmatprep.subr.bf16.mxu1 %v7742_v34  ;;  %v1642_v34 = vld [vmem:[#allocation14 + $0x478] sm:$0xff] }
  0xe8   :  { %936 = vperm.xlu0 %7738, %v905_v29   ;;  %v1349_v29 = vpack.c.bf16 %v1338_v23, %v1337_v22  ;;  %v1638_v22 = vld [vmem:[#allocation14 + $0x458] sm:$0xff]  ;;  %v7762_v23 = vld [vmem:[#allocation11 + $0x70] sm:$0xff]  }
  0xe9   :  { %787 = vperm.xlu1 %7739, %v756_v32   ;;  %v1339_v32 = vld [vmem:[#allocation14 + $0x350] sm:$0xff] }
  0xea   :  { %v1350_v39 = vpack.c.bf16 %v1340_v33, %v1339_v32  ;;  %7264 = vmatpush3.bf16.msra.mxu1 %v7743_v36  ;;  %v1640_v32 = vld [vmem:[#allocation14 + $0x468] sm:$0xff]  ;;  %v1641_v33 = vld [vmem:[#allocation14 + $0x470] sm:$0xff] }
  0xec   :  { %1218 = vperm.xlu0 %7738, %v1199_v35   ;;  %v7748_v35 = vld [vmem:[#allocation11 + $0xc8] sm:$0xff]  }
  0xed   :  { %1069 = vperm.xlu1 %7739, %v1050_v38   ;;  %v1499_v38 = vpack.c.bf16 %v1489_v31, %v1488_v30  ;;  %7327 = vmatprep.subr.bf16.mxu0 %v7748_v35  ;;  %v1648_v30 = vpack.c.bf16 %v1638_v22, %v1637_v21  ;;  %v1639_v31 = vld [vmem:[#allocation14 + $0x460] sm:$0xff]  ;;  %v7766_v35 = vld [vmem:[#allocation11 + $0x78] sm:$0xff]  }
  0xee   :  { %7328 = vmatpush3.bf16.msra.mxu0 %v7749_v37  ;;  %v7767_v37 = vld [vmem:[#allocation11 + $0x38] sm:$0xff]  }
  0xef   :  { %7329 = vmatprep.subr.bf16.mxu0 %v7752_v45 }
  0xf0   :  { %1222 = vperm.xlu0 %7738, %v1200_v41   ;;  %v1628_v41 = vld [vmem:[#allocation14 + $0x408] sm:$0xff] }
  0xf1   :  { %1073 = vperm.xlu1 %7739, %v1051_v44   ;;  %v7746_v44 = vld [vmem:[#allocation11 + $0x50] sm:$0xff]   ;;  %v1643_v48 = vpack.c.bf16 %v1628_v41, %v1627_v40  ;;  %v1650_v40 = vpack.c.bf16 %v1642_v34, %v1641_v33  ;;  %v7772_v41 = vld [vmem:[#allocation11 + $0xf8] sm:$0xff]  }
  0xf2   :  { %7265 = vmatprep.subr.bf16.mxu1 %v7746_v44 }
  0xf3   :  { %7266 = vmatpush3.bf16.msra.mxu1 %v7747_v46 }
  0xf4   :  { %1504 = vperm.xlu0 %7738, %v1494_v47   ;;  %v7753_v47 = vld [vmem:[#allocation11 + $0x90] sm:$0xff]   ;;  %7267 = vmatprep.subr.bf16.mxu1 %v7750_v54 }
  0xf5   :  { %1508 = vperm.xlu1 %7739, %v1495_v50   ;;  %v1631_v50 = vld [vmem:[#allocation14 + $0x420] sm:$0xff]  ;;  %7330 = vmatpush3.bf16.msra.mxu0 %v7753_v47 }
  0xf6   :  { %v1645_v58 = vpack.c.bf16 %v1632_v51, %v1631_v50  ;;  %7331 = vmatprep.subr.bf16.mxu0 %v7756_v55 }
  0xf8   :  { %1355 = vperm.xlu0 %7738, %v1345_v53   ;;  %v1491_v53 = vld [vmem:[#allocation14 + $0x3e8] sm:$0xff] }
  0xf9   :  { %1359 = vperm.xlu1 %7739, %v1346_v56   ;;  %v7751_v56 = vld [vmem:[#allocation11 + $0x18] sm:$0xff]   ;;  %7332 = vmatpush3.bf16.msra.mxu0 %v7757_v57 }
  0xfa   :  { %7268 = vmatpush3.bf16.msra.mxu1 %v7751_v56 }
  0xfb   :  { %7269 = vmatprep.subr.bf16.mxu1 %v7754_v1 }
  0xfc   :  { %1226 = vperm.xlu0 %7738, %v1201_v59   ;;  %v1500_v59 = vpack.c.bf16 %v1491_v53, %v1490_v52 }
  0xfd   :  { %1077 = vperm.xlu1 %7739, %v1052_v62   ;;  %v1633_v62 = vld [vmem:[#allocation14 + $0x430] sm:$0xff] }
  0xfe   :  { %v1646_v6 = vpack.c.bf16 %v1634_v63, %v1633_v62  ;;  %7270 = vmatpush3.bf16.msra.mxu1 %v7755_v3 }
 0x100   :  { %1512 = vperm.xlu0 %7738, %v1496_v2   ;;  %v7760_v2 = vld [vmem:[#allocation11 + $0xe0] sm:$0xff]  }
 0x101   :  { %1363 = vperm.xlu1 %7739, %v1347_v5   ;;  %v1351_v5 = vpack.c.bf16 %v1342_v61, %v1341_v60  ;;  %7333 = vmatprep.subr.bf16.mxu0 %v7760_v2 }
 0x102   :  { %7334 = vmatpush3.bf16.msra.mxu0 %v7761_v4 }
 0x103   :  { %7335 = vmatprep.subr.bf16.mxu0 %v7764_v12 }
 0x104   :  { %1230 = vperm.xlu0 %7738, %v1202_v8   ;;  %v1636_v8 = vld [vmem:[#allocation14 + $0x448] sm:$0xff] }
 0x105   :  { %1081 = vperm.xlu1 %7739, %v1053_v11   ;;  %v7758_v11 = vld [vmem:[#allocation11 + $0x68] sm:$0xff]  }
 0x106   :  { %7271 = vmatprep.subr.bf16.mxu1 %v7758_v11  ;;  %7336 = vmatpush3.bf16.msra.mxu0 %v7765_v15 }
 0x107   :  { %7337 = vmatprep.subr.bf16.mxu0 %v7768_v26 }
 0x108   :  { %1516 = vperm.xlu0 %7738, %v1497_v14   ;;  %v7759_v14 = vld [vmem:[#allocation11 + $0x28] sm:$0xff]  }
 0x109   :  { %1367 = vperm.xlu1 %7739, %v1348_v17   ;;  %v1647_v17 = vpack.c.bf16 %v1636_v8, %v1635_v7  ;;  %7272 = vmatpush3.bf16.msra.mxu1 %v7759_v14 }
 0x10a   :  { %7273 = vmatprep.subr.bf16.mxu1 %v7762_v23  ;;  %v574_v23 = vld [vmem:[#allocation4] sm:$0xf0] }
 0x10c   :  { %1234 = vperm.xlu0 %7738, %v1203_v18   ;;  %v1501_v18 = vpack.c.bf16 %v1493_v10, %v1492_v9 }
 0x10d   :  { %1085 = vperm.xlu1 %7739, %v1054_v19   ;;  %v1343_v19 = vld [vmem:[#allocation14 + $0x370] sm:$0xff]  ;;  %7274 = vmatpush3.bf16.msra.mxu1 %v7763_v25  ;;  %v424_v25 = vld [vmem:[#allocation4] sm:$0xf8] }
 0x10e   :  { %7275 = vmatprep.subr.bf16.mxu1 %v7766_v35 }
 0x110   :  { %1520 = vperm.xlu0 %7738, %v1498_v28   ;;  %v1352_v28 = vpack.c.bf16 %v1344_v20, %v1343_v19 }
 0x111   :  { %1371 = vperm.xlu1 %7739, %v1349_v29   ;;  %v7769_v29 = vld [vmem:[#allocation11 + $0xb0] sm:$0xff]   ;;  %7276 = vmatpush3.bf16.msra.mxu1 %v7767_v37 }
 0x112   :  { %7338 = vmatpush3.bf16.msra.mxu0 %v7769_v29 }
 0x113   :  { %7339 = vmatprep.subr.bf16.mxu0 %v7772_v41 }
 0x114   :  { %1524 = vperm.xlu0 %7738, %v1499_v38  }
 0x115   :  { %1375 = vperm.xlu1 %7739, %v1350_v39   ;;  %v1649_v39 = vpack.c.bf16 %v1640_v32, %v1639_v31 }
 0x116   :  { %7340 = vmatpush3.bf16.msra.mxu0 %v7773_v43 }
 0x118   :  { %1653 = vperm.xlu0 %7738, %v1643_v48  }
 0x119   :  { %1657 = vperm.xlu1 %7739, %v1644_v49   ;;  %v7770_v49 = vld [vmem:[#allocation11 + $0x140] sm:$0xff]  }
 0x11a   :  { %7389 = vmatprep.subr.bf16.mxu1 %v7770_v49 }
 0x11c   :  { %1661 = vperm.xlu0 %7738, %v1645_v58  }
 0x11d   :  { %1528 = vperm.xlu1 %7739, %v1500_v59   ;;  %v7780_v59 = vld [vmem:[#allocation11 + $0x1c0] sm:$0xff]  }
 0x11e   :  { %7453 = vmatprep.subr.bf16.mxu0 %v7780_v59 }
 0x11f   :  { %v8250_v13 = vpop.permute.xlu0 %610 }
 0x120   :  { %v8252_v16 = vpop.permute.xlu1 %459  ;;  %1379 = vperm.xlu0 %7738, %v1351_v5   ;;  %v648_v20 = vrot.slane %v8250_v13, 4 }
 0x121   :  { %1665 = vperm.xlu1 %7739, %v1646_v6   ;;  %v498_v21 = vrot.slane %v8252_v16, 5 }
 0x122   :  { %v8338_v26 = vmul.bf16 %v648_v20, %v574_v23 }
 0x123   :  { %v8254_v24 = vpop.permute.xlu0 %614 }
 0x124   :  { %v8256_v27 = vpop.permute.xlu1 %463  ;;  %1669 = vperm.xlu0 %7738, %v1647_v17  }
 0x125   :  { %1532 = vperm.xlu1 %7739, %v1501_v18   ;;  %v499_v31 = vrot.slane %v8256_v27, 5 }
 0x127   :  { %v8258_v36 = vpop.permute.xlu0 %618 }
 0x128   :  { %v8260_v38 = vpop.permute.xlu1 %467  ;;  %1383 = vperm.xlu0 %7738, %v1352_v28   ;;  %v8340_v28 = vmul.bf16 %v498_v21, %v424_v25  ;;  %v651_v13 = vrot.slane %v8258_v36, 4 }
 0x129   :  { %1673 = vperm.xlu1 %7739, %v1648_v30   ;;  %v649_v30 = vrot.slane %v8254_v24, 4  ;;  %v501_v16 = vrot.slane %v8260_v38, 5  ;;  %v8361_v38 = vsel %vm497_vm1, %v498_v21, %v499_v31 }
 0x12b   :  { %v8262_v42 = vpop.permute.xlu0 %622  ;;  %v8358_v36 = vsel %vm390_vm0, %v648_v20, %v649_v30  ;;  %v8366_v43 = vsel %vm390_vm0, %v649_v30, %v651_v13 }
 0x12c   :  { %v8264_v44 = vpop.permute.xlu1 %471  ;;  %1677 = vperm.xlu0 %7738, %v1649_v39   ;;  %v653_v32 = vrot.slane %v8262_v42, 4 }
 0x12d   :  { %1681 = vperm.xlu1 %7739, %v1650_v40   ;;  %v503_v34 = vrot.slane %v8264_v44, 5  ;;  %v723_v40 = vld [vmem:[#allocation4] sm:$0xe0]  ;;  %v8369_v44 = vsel %vm497_vm1, %v499_v31, %v501_v16 }
 0x12f   :  { %v8266_v45 = vpop.permute.xlu0 %626 }
 0x130   :  { %v8268_v46 = vpop.permute.xlu1 %475  ;;  %v655_v35 = vrot.slane %v8266_v45, 4  ;;  %v8372_v45 = vsel %vm390_vm0, %v651_v13, %v653_v32 }
 0x131   :  { %v505_v27 = vrot.slane %v8268_v46, 5 }
 0x132   :  { %v8381_v59 = vsel %vm390_vm0, %v653_v32, %v655_v35  ;;  %v8402_v32 = vld [vmem:[#allocation9] ss:$0 sm:$0xff] }
 0x133   :  { %v8270_v47 = vpop.permute.xlu0 %908  ;;  %v8387_v21 = vsel %vm497_vm1, %v503_v34, %v505_v27 }
 0x134   :  { %v8272_v48 = vpop.permute.xlu1 %912  ;;  %v9460_v41 = vrot.slane %v8270_v47, 5 }
 0x135   :  { %v947_v42 = vrot.slane %v8272_v48, 5 }
 0x137   :  { %v8274_v50 = vpop.permute.xlu0 %759  ;;  %v8397_v31 = vsel %vm497_vm1, %v9460_v41, %v947_v42 }
 0x138   :  { %v8276_v51 = vpop.permute.xlu1 %763  ;;  %v797_v37 = vrot.slane %v8274_v50, 3  ;;  %v8378_v50 = vsel %vm497_vm1, %v501_v16, %v503_v34 }
 0x139   :  { %v798_v46 = vrot.slane %v8276_v51, 3 }
 0x13a   :  { %v8383_v48 = vmul.bf16 %v797_v37, %v723_v40 }
 0x13b   :  { %v8278_v52 = vpop.permute.xlu0 %630 }
 0x13c   :  { %v8280_v53 = vpop.permute.xlu1 %479  ;;  %v657_v20 = vrot.slane %v8278_v52, 4 }
 0x13d   :  { %v507_v23 = vrot.slane %v8280_v53, 5  ;;  %v8405_v53 = vsel %vm540_vm2, %v797_v37, %v798_v46 }
 0x13e   :  { %v8412_v0 = vsel %vm390_vm0, %v655_v35, %v657_v20 }
 0x13f   :  { %v8282_v54 = vpop.permute.xlu0 %916  ;;  %v8417_v41 = vsel %vm497_vm1, %v505_v27, %v507_v23 }
 0x140   :  { %v8284_v55 = vpop.permute.xlu1 %767  ;;  %v949_v25 = vrot.slane %v8282_v54, 5  ;;  %9483 = vst [vmem:[#allocation36_spill] sm:$0xff] %v8417_v41 }
 0x141   :  { %v800_v51 = vrot.slane %v8284_v55, 3 }
 0x142   :  { %v8420_v37 = vsel %vm497_vm1, %v947_v42, %v949_v25 }
 0x143   :  { %v8286_v56 = vpop.permute.xlu0 %634 }
 0x144   :  { %v8288_v57 = vpop.permute.xlu1 %483  ;;  %v659_v13 = vrot.slane %v8286_v56, 4 }
 0x145   :  { %v509_v52 = vrot.slane %v8288_v57, 5 }
 0x146   :  { %v8429_v39 = vsel %vm390_vm0, %v657_v20, %v659_v13 }
 0x147   :  { %v8290_v58 = vpop.permute.xlu0 %920  ;;  %9484 = vst [vmem:[#allocation37_spill] sm:$0xff] %v8429_v39 }
 0x148   :  { %v8292_v60 = vpop.permute.xlu1 %771  ;;  %v951_v16 = vrot.slane %v8290_v58, 5 }
 0x149   :  { %v802_v54 = vrot.slane %v8292_v60, 3  ;;  %v8423_v60 = vsel %vm540_vm2, %v798_v46, %v800_v51 }
 0x14b   :  { %v8294_v61 = vpop.permute.xlu0 %638  ;;  %v8439_v42 = vsel %vm540_vm2, %v800_v51, %v802_v54 }
 0x14c   :  { %9475 = vst [vmem:[#allocation28_spill] sm:$0xff] %v8294_v61  ;;  %v8296_v62 = vpop.permute.xlu1 %487  ;;  %v9462_v55 = vrot.slane %v8294_v61, 4 }
 0x14d   :  { %9476 = vst [vmem:[#allocation29_spill] sm:$0xff] %v8296_v62  ;;  %v9463_v34 = vrot.slane %v8296_v62, 5 }
 0x14e   :  { %v8444_v46 = vsel %vm390_vm0, %v659_v13, %v9462_v55 }
 0x14f   :  { %v8298_v63 = vpop.permute.xlu0 %924  ;;  %9486 = vst [vmem:[#allocation39_spill] sm:$0xff] %v8444_v46  ;;  %v8449_v20 = vsel %vm497_vm1, %v509_v52, %v9463_v34 }
 0x150   :  { %v8302_v2 = vpop.permute.xlu1 %775  ;;  %v953_v56 = vrot.slane %v8298_v63, 5  ;;  %v8432_v63 = vsel %vm497_vm1, %v507_v23, %v509_v52  ;;  %9487 = vst [vmem:[#allocation40_spill] sm:$0xff] %v8449_v20 }
 0x151   :  { %v804_v57 = vrot.slane %v8302_v2, 3  ;;  %9485 = vst [vmem:[#allocation38_spill] sm:$0xff] %v8432_v63  ;;  %v8435_v2 = vsel %vm497_vm1, %v949_v25, %v951_v16 }
 0x152   :  { %v8454_v25 = vsel %vm497_vm1, %v951_v16, %v953_v56 }
 0x153   :  { %v8300_v1 = vpop.permute.xlu0 %928 }
 0x154   :  { %v8306_v4 = vpop.permute.xlu1 %779  ;;  %v955_v51 = vrot.slane %v8300_v1, 5 }
 0x155   :  { %v806_v13 = vrot.slane %v8306_v4, 3 }
 0x157   :  { %v8304_v3 = vpop.permute.xlu0 %1206 }
 0x158   :  { %9477 = vst [vmem:[#allocation30_spill] sm:$0xff] %v8304_v3  ;;  %v8310_v6 = vpop.permute.xlu1 %1210 }
 0x159   :  { %v1245_v52 = vrot.slane %v8310_v6, 3 }
 0x15b   :  { %v8308_v5 = vpop.permute.xlu0 %1057 }
 0x15c   :  { %9478 = vst [vmem:[#allocation31_spill] sm:$0xff] %v8308_v5  ;;  %v8314_v8 = vpop.permute.xlu1 %1061 }
 0x15d   :  { %v1096_v16 = vrot.slane %v8314_v8, 4 }
 0x15f   :  { %v8312_v7 = vpop.permute.xlu0 %932 }
 0x160   :  { %v8318_v10 = vpop.permute.xlu1 %783  ;;  %v957_v1 = vrot.slane %v8312_v7, 5  ;;  %v9488_v7 = vrot.slane %v8304_v3, 3 }
 0x162   :  { %v8483_v8 = vsel %vm540_vm2, %v9488_v7, %v1245_v52 }
 0x163   :  { %v8316_v9 = vpop.permute.xlu0 %1214  ;;  %9489 = vst [vmem:[#allocation41_spill] sm:$0xff] %v8483_v8 }
 0x164   :  { %v8322_v12 = vpop.permute.xlu1 %1065  ;;  %v1247_v4 = vrot.slane %v8316_v9, 3 }
 0x165   :  { %v1098_v6 = vrot.slane %v8322_v12, 4 }
 0x167   :  { %v8320_v11 = vpop.permute.xlu0 %936 }
 0x168   :  { %9479 = vst [vmem:[#allocation32_spill] sm:$0xff] %v8320_v11  ;;  %v8326_v15 = vpop.permute.xlu1 %787 }
 0x169   :  { %9480 = vst [vmem:[#allocation33_spill] sm:$0xff] %v8326_v15 }
 0x16b   :  { %v8324_v14 = vpop.permute.xlu0 %1218 }
 0x16c   :  { %v8330_v18 = vpop.permute.xlu1 %1069 }
 0x16f   :  { %v8328_v17 = vpop.permute.xlu0 %1222 }
 0x170   :  { %v8336_v22 = vpop.permute.xlu1 %1073  ;;  %v1251_v3 = vrot.slane %v8328_v17, 3 }
 0x173   :  { %v8332_v19 = vpop.permute.xlu0 %1504 }
 0x174   :  { %9481 = vst [vmem:[#allocation34_spill] sm:$0xff] %v8332_v19  ;;  %v8349_v33 = vpop.permute.xlu1 %1508 }
 0x177   :  { %v8342_v29 = vpop.permute.xlu0 %1355 }
 0x178   :  { %9482 = vst [vmem:[#allocation35_spill] sm:$0xff] %v8342_v29  ;;  %v8392_v30 = vpop.permute.xlu1 %1359 }
 0x17b   :  { %v8375_v49 = vpop.permute.xlu0 %1226 }
 0x17c   :  { %v8451_v23 = vpop.permute.xlu1 %1077 }
 0x17f   :  { %v8425_v24 = vpop.permute.xlu0 %1512 }
 0x180   :  { %v8485_v9 = vpop.permute.xlu1 %1363 }
 0x183   :  { %v8470_v46 = vpop.permute.xlu0 %1230 }
 0x195   :  { %v7602_v58 = vpop.f32.mrb[0].mxu0 }
 0x196   :  { %v281_v40 = vadd.f32 %v7602_v58, %v8402_v32  ;;  %v275_v35 = vpop.f32.mrb[1].mxu0 }
 0x197   :  { %v276_v27 = vadd.f32 %v8402_v32, %v275_v35  ;;  %v8457_v35 = vsel %vm540_vm2, %v802_v54, %v804_v57 }
 0x198   :  { %v355_v58 = vmax.f32 %v281_v40, 0.0 }
 0x199   :  { %v354_v61 = vmax.f32 %v276_v27, 0.0  ;;  %v7605_v63 = vpop.f32.mrb[2].mxu0  ;;  %v808_v27 = vrot.slane %v8318_v10, 3 }
 0x19a   :  { %v291_v34 = vadd.f32 %v7605_v63, %v8402_v32  ;;  %v285_v62 = vpop.f32.mrb[3].mxu0 }
 0x19b   :  { %v374_v20 = vpack.c.bf16 %v355_v58, %v354_v61  ;;  %v286_v54 = vadd.f32 %v8402_v32, %v285_v62  ;;  %v8475_v61 = vsel %vm497_vm1, %v953_v56, %v955_v51  ;;  %v8478_v62 = vsel %vm540_vm2, %v804_v57, %v806_v13 }
 0x19c   :  { %v357_v55 = vmax.f32 %v291_v34, 0.0  ;;  %v9490_v34 = vrot.slane %v8308_v5, 4  ;;  %v8499_v7 = vsel %vm540_vm2, %v806_v13, %v808_v27  ;;  %v8505_v5 = vsel %vm390_vm0, %v1096_v16, %v1098_v6 }
 0x19d   :  { %v391_v39 = vrot.slane %v374_v20, 4  ;;  %v356_v40 = vmax.f32 %v286_v54, 0.0  ;;  %v7608_v41 = vpop.f32.mrb[4].mxu0  ;;  %v8496_v54 = vsel %vm497_vm1, %v955_v51, %v957_v1  ;;  %9493 = vst [vmem:[#allocation44_spill] sm:$0xff] %v8505_v5  ;;  %v1249_v51 = vrot.slane %v8324_v14, 3 }
 0x19e   :  { %v301_v10 = vadd.f32 %v7608_v41, %v8402_v32  ;;  %v295_v12 = vpop.f32.mrb[5].mxu0  ;;  %v8491_v20 = vsel %vm390_vm0, %v9490_v34, %v1096_v16  ;;  %v8502_v41 = vsel %vm540_vm2, %v1245_v52, %v1247_v4  ;;  %v9494_v34 = vrot.slane %v8320_v11, 5  ;;  %v8515_v52 = vpop.permute.xlu0 %1516 }
 0x19f   :  { %9491 = vst [vmem:[#allocation42_spill] sm:$0xff] %v8491_v20  ;;  %415 = vst [vmem:[#allocation4 + $0x8] sm:$0xf0] %v391_v39  ;;  %v375_v57 = vpack.c.bf16 %v357_v55, %v356_v40  ;;  %v296_v58 = vadd.f32 %v8402_v32, %v295_v12  ;;  %v1100_v13 = vrot.slane %v8330_v18, 4  ;;  %v9495_v5 = vrot.slane %v8326_v15, 3 }
 0x1a0   :  { %9492 = vst [vmem:[#allocation43_spill] sm:$0xff] %v8502_v41  ;;  %v359_v63 = vmax.f32 %v301_v10, 0.0  ;;  %v8510_v56 = vsel %vm497_vm1, %v957_v1, %v9494_v34  ;;  %v8530_v34 = vpop.permute.xlu1 %1081  ;;  %v8542_v17 = vsel %vm540_vm2, %v1249_v51, %v1251_v3 }
 0x1a1   :  { %v392_v55 = vrot.slane %v375_v57, 4  ;;  %v358_v40 = vmax.f32 %v296_v58, 0.0  ;;  %v7611_v12 = vpop.f32.mrb[6].mxu0  ;;  %v8521_v11 = vsel %vm540_vm2, %v808_v27, %v9495_v5  ;;  %9498 = vst [vmem:[#allocation47_spill] sm:$0xff] %v8542_v17  ;;  %v9499_v27 = vrot.slane %v8336_v22, 4 }
 0x1a2   :  { %v311_v10 = vadd.f32 %v7611_v12, %v8402_v32  ;;  %v305_v16 = vpop.f32.mrb[7].mxu0 }
 0x1a3   :  { %v8524_v1 = vsel %vm390_vm0, %v391_v39, %v392_v55  ;;  %v376_v57 = vpack.c.bf16 %v359_v63, %v358_v40  ;;  %v306_v14 = vadd.f32 %v8402_v32, %v305_v16  ;;  %v8536_v40 = vsel %vm540_vm2, %v1247_v4, %v1249_v51 }
 0x1a4   :  { %416 = vst [vmem:[#allocation4 + $0x10] sm:$0xff] %v8524_v1  ;;  %v361_v12 = vmax.f32 %v311_v10, 0.0  ;;  %9496 = vst [vmem:[#allocation45_spill] sm:$0xff] %v8536_v40  ;;  %v8539_v16 = vsel %vm390_vm0, %v1098_v6, %v1100_v13  ;;  %v8555_v6 = vsel %vm390_vm0, %v1100_v13, %v9499_v27  ;;  %v9501_v51 = vrot.slane %v8349_v33, 4 }
 0x1a5   :  { %v394_v39 = vrot.slane %v376_v57, 4  ;;  %v360_v15 = vmax.f32 %v306_v14, 0.0  ;;  %v7614_v63 = vpop.f32.mrb[8].mxu0  ;;  %9497 = vst [vmem:[#allocation46_spill] sm:$0xff] %v8539_v16  ;;  %9500 = vst [vmem:[#allocation48_spill] sm:$0xff] %v8555_v6  ;;  %v8564_v16 = vpop.permute.xlu0 %1234  ;;  %v9505_v13 = vrot.slane %v8342_v29, 5  ;;  %v674_v29 = vmul.bf16 %v8366_v43, %v8524_v1 }
 0x1a6   :  { %v321_v58 = vadd.f32 %v7614_v63, %v8402_v32  ;;  %v315_v18 = vpop.f32.mrb[9].mxu0  ;;  %v8545_v10 = vld [vmem:[#allocation4 + $0x8] sm:$0xff]  ;;  %v9502_v63 = vrot.slane %v8332_v19, 4  ;;  %v8579_v6 = vpop.permute.xlu1 %1367  ;;  %v9509_v43 = vrot.slane %v8338_v26, 4  ;;  %v823_v8 = vmul.bf16 %v8423_v60, %v8524_v1 }
 0x1a7   :  { %v8549_v57 = vsel %vm390_vm0, %v392_v55, %v394_v39  ;;  %v377_v14 = vpack.c.bf16 %v361_v12, %v360_v15  ;;  %v316_v4 = vadd.f32 %v8402_v32, %v315_v18  ;;  %v673_v15 = vmul.bf16 %v8358_v36, %v8545_v10  ;;  %v872_v26 = vld [vmem:[#allocation4 + $0x8] sm:$0xf8] }
 0x1a8   :  { %v8562_v17 = vsel %vm390_vm0, %v9502_v63, %v9501_v51  ;;  %417 = vst [vmem:[#allocation4 + $0x18] sm:$0xff] %v8549_v57  ;;  %v363_v55 = vmax.f32 %v321_v58, 0.0  ;;  %v9504_v18 = vrot.slane %v8392_v30, 5  ;;  %v523_v51 = vmul.bf16 %v8545_v10, %v8361_v38 }
 0x1a9   :  { %9503 = vst [vmem:[#allocation49_spill] sm:$0xff] %v8562_v17  ;;  %v396_v27 = vrot.slane %v377_v14, 4  ;;  %v362_v5 = vmax.f32 %v316_v4, 0.0  ;;  %v7617_v19 = vpop.f32.mrb[10].mxu0  ;;  %v691_v40 = vrot.slane %v673_v15, 4  ;;  %v8605_v41 = vrot.slane %v674_v29, 4 }
 0x1aa   :  { %v8574_v12 = vsel %vm497_vm1, %v9505_v13, %v9504_v18  ;;  %v331_v58 = vadd.f32 %v7617_v19, %v8402_v32  ;;  %v325_v36 = vpop.f32.mrb[11].mxu0  ;;  %v9507_v18 = vrot.slane %v8375_v49, 3  ;;  %v8618_v29 = vpop.permute.xlu1 %1085 }
 0x1ab   :  { %9506 = vst [vmem:[#allocation50_spill] sm:$0xff] %v8574_v12  ;;  %v8591_v38 = vsel %vm390_vm0, %v394_v39, %v396_v27  ;;  %v378_v13 = vpack.c.bf16 %v363_v55, %v362_v5  ;;  %v326_v15 = vadd.f32 %v8402_v32, %v325_v36  ;;  %v692_v12 = vsel %vm390_vm0, %v9509_v43, %v691_v40  ;;  %v7771_v39 = vld [vmem:[#allocation11 + $0x100] sm:$0xff]   ;;  %v8602_v55 = vpop.permute.xlu0 %1520  ;;  %v7774_v43 = vld [vmem:[#allocation11 + $0x148] sm:$0xff]  }
 0x1ac   :  { %v8587_v14 = vsel %vm540_vm2, %v1251_v3, %v9507_v18  ;;  %418 = vst [vmem:[#allocation4 + $0x20] sm:$0xff] %v8591_v38  ;;  %v365_v19 = vmax.f32 %v331_v58, 0.0  ;;  %2453 = vmatprep.mubr.bf16.mxu1 %v692_v12  ;;  %v971_v5 = vmul.bf16 %v8397_v31, %v8524_v1  ;;  %v9510_v31 = vrot.slane %v8340_v28, 3  ;;  %9511 = vst [vmem:[#allocation52_spill] sm:$0xff] %v8618_v29 }
 0x1ad   :  { %9508 = vst [vmem:[#allocation51_spill] sm:$0xff] %v8587_v14  ;;  %v398_v18 = vrot.slane %v378_v13, 4  ;;  %v7620_v4 = vpop.f32.mrb[12].mxu0  ;;  %v542_v14 = vrot.slane %v523_v51, 3  ;;  %v364_v63 = vmax.f32 %v326_v15, 0.0  ;;  %v524_v13 = vmul.bf16 %v8369_v44, %v8524_v1 }
 0x1ae   :  { %v341_v58 = vadd.f32 %v7620_v4, %v8402_v32  ;;  %v335_v36 = vpop.f32.mrb[13].mxu0  ;;  %v694_v44 = vsel %vm390_vm0, %v691_v40, %v8605_v41  ;;  %v9512_v28 = vrot.slane %v8270_v47, 5  ;;  %v7775_v4 = vld [vmem:[#allocation11 + $0x108] sm:$0xff]  }
 0x1af   :  { %v8611_v51 = vsel %vm390_vm0, %v396_v27, %v398_v18  ;;  %v543_v3 = vsel %vm540_vm2, %v9510_v31, %v542_v14  ;;  %v336_v15 = vadd.f32 %v8402_v32, %v335_v36  ;;  %v379_v20 = vpack.c.bf16 %v365_v19, %v364_v63 }
 0x1b0   :  { %419 = vst [vmem:[#allocation4 + $0x28] sm:$0xff] %v8611_v51  ;;  %v367_v17 = vmax.f32 %v341_v58, 0.0  ;;  %2454 = vmatmul.mubr.bf16.vlgmr.msra.gmra.mrb[0].mxu1 %v543_v3  ;;  %v970_v31 = vmul.bf16 %v9512_v28, %v872_v26  ;;  %v822_v36 = vmul.bf16 %v8405_v53, %v8545_v10  ;;  %v989_v3 = vrot.slane %v971_v5, 3  ;;  %v8631_v28 = vpop.permute.xlu0 %1524  ;;  %v7781_v5 = vld [vmem:[#allocation11 + $0x180] sm:$0xff]  }
 0x1b1   :  { %7390 = vmatpush3.bf16.msra.mxu1 %v7771_v39  ;;  %v366_v27 = vmax.f32 %v336_v15, 0.0  ;;  %v7623_v12 = vpop.f32.mrb[14].mxu0  ;;  %2461 = vmatprep.mubr.bf16.mxu1 %v694_v44  ;;  %v400_v63 = vrot.slane %v379_v20, 4  ;;  %v544_v40 = vrot.slane %v524_v13, 3  ;;  %v7776_v39 = vld [vmem:[#allocation11 + $0x150] sm:$0xff]   ;;  %v972_v20 = vmul.bf16 %v8420_v37, %v8549_v57 }
 0x1b2   :  { %v351_v19 = vadd.f32 %v7623_v12, %v8402_v32  ;;  %v345_v58 = vpop.f32.mrb[15].mxu0  ;;  %7391 = vmatprep.subr.bf16.mxu1 %v7774_v43  ;;  %v988_v44 = vrot.slane %v970_v31, 3  ;;  %v840_v26 = vrot.slane %v822_v36, 5  ;;  %v675_v37 = vmul.bf16 %v8372_v45, %v8549_v57 }
 0x1b3   :  { %v380_v15 = vpack.c.bf16 %v367_v17, %v366_v27  ;;  %v346_v47 = vadd.f32 %v8402_v32, %v345_v58  ;;  %v8634_v53 = vsel %vm390_vm0, %v398_v18, %v400_v63  ;;  %v545_v60 = vsel %vm540_vm2, %v542_v14, %v544_v40  ;;  %v7777_v18 = vld [vmem:[#allocation11 + $0x110] sm:$0xff]   ;;  %v8644_v27 = vpop.permute.xlu1 %1371 }
 0x1b4   :  { %v369_v10 = vmax.f32 %v351_v19, 0.0  ;;  %420 = vst [vmem:[#allocation4 + $0x30] sm:$0xff] %v8634_v53  ;;  %v990_v17 = vsel %vm540_vm2, %v988_v44, %v989_v3  ;;  %v9513_v32 = vrot.slane %v8383_v48, 5  ;;  %v991_v14 = vrot.slane %v972_v20, 3  ;;  %v7778_v19 = vld [vmem:[#allocation11 + $0x158] sm:$0xff]   ;;  %v7784_v44 = vld [vmem:[#allocation11 + $0x1c8] sm:$0xff]  }
 0x1b5   :  { %v402_v43 = vrot.slane %v380_v15, 4  ;;  %v368_v13 = vmax.f32 %v346_v47, 0.0  ;;  %7392 = vmatpush3.bf16.msra.mxu1 %v7775_v4  ;;  %2550 = vmatprep.mubr.bf16.mxu0 %v990_v17  ;;  %v842_v31 = vrot.slane %v823_v8, 5  ;;  %v973_v36 = vmul.bf16 %v8435_v2, %v8591_v38  ;;  %v7779_v20 = vld [vmem:[#allocation11 + $0x118] sm:$0xff]   ;;  %v8662_v17 = vpop.permute.xlu0 %1653 }
 0x1b6   :  { %v841_v12 = vsel %vm497_vm1, %v9513_v32, %v840_v26  ;;  %7393 = vmatprep.subr.bf16.mxu1 %v7776_v39  ;;  %v525_v4 = vmul.bf16 %v8378_v50, %v8549_v57  ;;  %v676_v15 = vmul.bf16 %v8381_v59, %v8591_v38  ;;  %v992_v45 = vsel %vm540_vm2, %v989_v3, %v991_v14  ;;  %v7788_v32 = vld [vmem:[#allocation11 + $0x1d0] sm:$0xff]  }
 0x1b7   :  { %v8651_v58 = vsel %vm390_vm0, %v400_v63, %v402_v43  ;;  %v381_v48 = vpack.c.bf16 %v369_v10, %v368_v13  ;;  %2551 = vmatmul.mubr.bf16.vlgmr.msra.gmra.mrb[16].mxu0 %v841_v12  ;;  %v695_v2 = vrot.slane %v675_v37, 4  ;;  %v843_v8 = vsel %vm497_vm1, %v840_v26, %v842_v31  ;;  %v7785_v63 = vld [vmem:[#allocation11 + $0x188] sm:$0xff]   ;;  %v7782_v13 = vld [vmem:[#allocation11 + $0x160] sm:$0xff]  }
 0x1b8   :  { %421 = vst [vmem:[#allocation4 + $0x38] sm:$0xff] %v8651_v58  ;;  %2462 = vmatmul.mubr.bf16.gmra.mrb[4].mxu1 %v545_v60  ;;  %v993_v39 = vrot.slane %v973_v36, 3  ;;  %7454 = vmatpush3.bf16.msra.mxu0 %v7781_v5  ;;  %v546_v10 = vrot.slane %v525_v4, 3  ;;  %v697_v50 = vrot.slane %v676_v15, 4  ;;  %v824_v59 = vmul.bf16 %v8439_v42, %v8549_v57  ;;  %v7783_v4 = vld [vmem:[#allocation11 + $0x120] sm:$0xff]   ;;  %v9515_v15 = vld [vmem:[#allocation37_spill] sm:$0xff] }
 0x1b9   :  { %v404_v47 = vrot.slane %v381_v48, 4  ;;  %2558 = vmatprep.mubr.bf16.mxu0 %v992_v45  ;;  %7394 = vmatpush3.bf16.msra.mxu1 %v7777_v18  ;;  %v696_v3 = vsel %vm390_vm0, %v8605_v41, %v695_v2  ;;  %v974_v26 = vmul.bf16 %v8454_v25, %v8611_v51  ;;  %v526_v5 = vmul.bf16 %v8387_v21, %v8591_v38 }
 0x1ba   :  { %v994_v60 = vsel %vm540_vm2, %v991_v14, %v993_v39  ;;  %7395 = vmatprep.subr.bf16.mxu1 %v7778_v19  ;;  %2469 = vmatprep.mubr.bf16.mxu1 %v696_v3  ;;  %v547_v42 = vsel %vm540_vm2, %v544_v40, %v546_v10  ;;  %v698_v41 = vsel %vm390_vm0, %v695_v2, %v697_v50  ;;  %v844_v18 = vrot.slane %v824_v59, 5  ;;  %v8676_v14 = vpop.permute.xlu1 %1375  ;;  %v9514_v19 = vld [vmem:[#allocation36_spill] sm:$0xff]  ;;  %v7792_v3 = vld [vmem:[#allocation11 + $0x1d8] sm:$0xff]  }
 0x1bb   :  { %v8672_v12 = vsel %vm390_vm0, %v402_v43, %v404_v47  ;;  %423 = vst [vmem:[#allocation4 + $0x48] sm:$0xf] %v404_v47  ;;  %7455 = vmatprep.subr.bf16.mxu0 %v7784_v44  ;;  %v995_v25 = vrot.slane %v974_v26, 3  ;;  %v548_v37 = vrot.slane %v526_v5, 3  ;;  %v677_v21 = vmul.bf16 %v8412_v0, %v8611_v51  ;;  %v7786_v2 = vld [vmem:[#allocation11 + $0x168] sm:$0xff]   ;;  %v8701_v26 = vpop.permute.xlu0 %1661 }
 0x1bc   :  { %422 = vst [vmem:[#allocation4 + $0x40] sm:$0xff] %v8672_v12  ;;  %v825_v43 = vmul.bf16 %v8457_v35, %v8591_v38  ;;  %7456 = vmatpush3.bf16.msra.mxu0 %v7785_v63  ;;  %v8684_v36 = vsel %vm497_vm1, %v842_v31, %v844_v18  ;;  %v975_v40 = vmul.bf16 %v8475_v61, %v8634_v53  ;;  %v7789_v63 = vld [vmem:[#allocation11 + $0x190] sm:$0xff]   ;;  %9516 = vst [vmem:[#allocation36_spill] sm:$0xff] %v8701_v26  ;;  %v9550_v26 = vld [vmem:[#allocation51_spill] sm:$0xff] }
 0x1bd   :  { %7396 = vmatpush3.bf16.msra.mxu1 %v7779_v20  ;;  %v527_v48 = vmul.bf16 %v9514_v19, %v8611_v51  ;;  %v678_v44 = vmul.bf16 %v9515_v15, %v8634_v53  ;;  %v8693_v0 = vsel %vm540_vm2, %v993_v39, %v995_v25  ;;  %v8696_v35 = vsel %vm540_vm2, %v546_v10, %v548_v37 }
 0x1be   :  { %v699_v45 = vrot.slane %v677_v21, 4  ;;  %v846_v31 = vrot.slane %v825_v43, 5  ;;  %7397 = vmatprep.subr.bf16.mxu1 %v7782_v13  ;;  %7457 = vmatprep.subr.bf16.mxu0 %v7788_v32  ;;  %v997_v61 = vrot.slane %v975_v40, 3  ;;  %v826_v20 = vmul.bf16 %v8478_v62, %v8611_v51  ;;  %v9517_v21 = vld [vmem:[#allocation38_spill] sm:$0xff] }
 0x1bf   :  { %2559 = vmatmul.mubr.bf16.gmra.mrb[20].mxu0 %v843_v8  ;;  %v550_v47 = vrot.slane %v527_v48, 3  ;;  %v701_v59 = vrot.slane %v678_v44, 4  ;;  %v1398_v39 = vrot.slane %v8579_v6, 5  ;;  %v976_v8 = vmul.bf16 %v8496_v54, %v8651_v58  ;;  %v7790_v43 = vld [vmem:[#allocation11 + $0x170] sm:$0xff]   ;;  %v7793_v40 = vld [vmem:[#allocation11 + $0x198] sm:$0xff]  }
 0x1c0   :  { %2566 = vmatprep.mubr.bf16.mxu0 %v994_v60  ;;  %2470 = vmatmul.mubr.bf16.gmra.mrb[8].mxu1 %v547_v42  ;;  %v700_v10 = vsel %vm390_vm0, %v697_v50, %v699_v45  ;;  %v8705_v5 = vsel %vm497_vm1, %v844_v18, %v846_v31  ;;  %v8710_v13 = vsel %vm540_vm2, %v995_v25, %v997_v61  ;;  %v848_v60 = vrot.slane %v826_v20, 5  ;;  %v7787_v42 = vld [vmem:[#allocation11 + $0x128] sm:$0xff]   ;;  %v8718_v50 = vpop.permute.xlu1 %1657 }
 0x1c1   :  { %2477 = vmatprep.mubr.bf16.mxu1 %v698_v41  ;;  %v8713_v62 = vsel %vm540_vm2, %v548_v37, %v550_v47  ;;  %7398 = vmatpush3.bf16.msra.mxu1 %v7783_v4  ;;  %v8716_v32 = vsel %vm390_vm0, %v699_v45, %v701_v59  ;;  %v999_v18 = vrot.slane %v976_v8, 3  ;;  %v528_v54 = vmul.bf16 %v9517_v21, %v8634_v53  ;;  %v9518_v41 = vld [vmem:[#allocation39_spill] sm:$0xff]  ;;  %v9519_v4 = vld [vmem:[#allocation40_spill] sm:$0xff]  ;;  %v7791_v21 = vld [vmem:[#allocation11 + $0x130] sm:$0xff]  }
 0x1c2   :  { %7399 = vmatprep.subr.bf16.mxu1 %v7786_v2  ;;  %v679_v25 = vmul.bf16 %v9518_v41, %v8651_v58  ;;  %7458 = vmatpush3.bf16.msra.mxu0 %v7789_v63  ;;  %v827_v37 = vmul.bf16 %v8499_v7, %v8634_v53  ;;  %v8727_v19 = vsel %vm497_vm1, %v846_v31, %v848_v60  ;;  %v7794_v45 = vld [vmem:[#allocation11 + $0x1e0] sm:$0xff]   ;;  %v9471_v31 = vrot.slane %v8564_v16, 3  ;;  %v8748_v41 = vpop.permute.xlu0 %1379 }
 0x1c3   :  { %v977_v48 = vmul.bf16 %v8510_v56, %v8672_v12  ;;  %v529_v15 = vmul.bf16 %v9519_v4, %v8651_v58  ;;  %7459 = vmatprep.subr.bf16.mxu0 %v7792_v3  ;;  %v828_v44 = vmul.bf16 %v8521_v11, %v8651_v58  ;;  %v8736_v2 = vsel %vm540_vm2, %v997_v61, %v999_v18 }
 0x1c4   :  { %v552_v7 = vrot.slane %v528_v54, 3  ;;  %v8738_v63 = vrot.slane %v679_v25, 4  ;;  %v850_v20 = vrot.slane %v827_v37, 5  ;;  %v7795_v25 = vld [vmem:[#allocation11 + $0x1a0] sm:$0xff]   ;;  %v7796_v37 = vld [vmem:[#allocation11 + $0x178] sm:$0xff]   ;;  %v8794_v11 = vpop.permute.xlu1 %1528 }
 0x1c5   :  { %7400 = vmatpush3.bf16.msra.mxu1 %v7787_v42  ;;  %v8741_v8 = vrot.slane %v977_v48, 3  ;;  %v8743_v56 = vrot.slane %v529_v15, 3  ;;  %v8745_v3 = vrot.slane %v828_v44, 5  ;;  %v1549_v48 = vrot.slane %v8602_v55, 4 }
 0x1c6   :  { %v8751_v61 = vsel %vm540_vm2, %v550_v47, %v552_v7  ;;  %v8755_v54 = vsel %vm390_vm0, %v701_v59, %v8738_v63  ;;  %v8758_v42 = vsel %vm497_vm1, %v848_v60, %v850_v20  ;;  %7401 = vmatprep.subr.bf16.mxu1 %v7790_v43  ;;  %7460 = vmatpush3.bf16.msra.mxu0 %v7793_v40  ;;  %v7798_v60 = vld [vmem:[#allocation11 + $0x1e8] sm:$0xff]   ;;  %v9520_v43 = vrot.slane %v8451_v23, 4 }
 0x1c7   :  { %2567 = vmatmul.mubr.bf16.gmra.mrb[24].mxu0 %v8684_v36  ;;  %v8764_v4 = vsel %vm540_vm2, %v999_v18, %v8741_v8  ;;  %v8768_v47 = vsel %vm540_vm2, %v552_v7, %v8743_v56  ;;  %v8772_v59 = vsel %vm497_vm1, %v850_v20, %v8745_v3  ;;  %7461 = vmatprep.subr.bf16.mxu0 %v7794_v45  ;;  %v9521_v55 = vrot.slane %v8336_v22, 4 }
 0x1c8   :  { %v9522_v18 = vrot.slane %v8425_v24, 4  ;;  %v9523_v40 = vrot.slane %v8349_v33, 4  ;;  %v9524_v44 = vrot.slane %v8485_v9, 5  ;;  %v9525_v7 = vrot.slane %v8392_v30, 5  ;;  %2574 = vmatprep.mubr.bf16.mxu0 %v8693_v0  ;;  %2478 = vmatmul.mubr.bf16.gmra.mrb[12].mxu1 %v8696_v35  ;;  %v7797_v30 = vld [vmem:[#allocation11 + $0x138] sm:$0xff]  }
 0x1c9   :  { %v8779_v36 = vsel %vm390_vm0, %v9521_v55, %v9520_v43  ;;  %v1400_v20 = vrot.slane %v8644_v27, 5  ;;  %v1551_v22 = vrot.slane %v8631_v28, 4  ;;  %v1402_v33 = vrot.slane %v8676_v14, 5  ;;  %2485 = vmatprep.mubr.bf16.mxu1 %v700_v10  ;;  %7402 = vmatpush3.bf16.msra.mxu1 %v7791_v21 }
 0x1ca   :  { %v1546_v15 = vsel %vm390_vm0, %v9523_v40, %v9522_v18  ;;  %v8791_v45 = vsel %vm497_vm1, %v9525_v7, %v9524_v44  ;;  %v9472_v43 = vrot.slane %v8794_v11, 4  ;;  %v9473_v55 = vrot.slane %v8748_v41, 5  ;;  %7462 = vmatpush3.bf16.msra.mxu0 %v7795_v25  ;;  %7403 = vmatprep.subr.bf16.mxu1 %v7796_v37  ;;  %v7799_v44 = vld [vmem:[#allocation11 + $0x1a8] sm:$0xff]  }
 0x1cb   :  { %v9526_v18 = vrot.slane %v8470_v46, 3  ;;  %v9527_v27 = vrot.slane %v8375_v49, 3  ;;  %v9528_v0 = vrot.slane %v8530_v34, 4  ;;  %v9529_v28 = vrot.slane %v8451_v23, 4  ;;  %v8821_v49 = vld [vmem:[#allocation11 + $0x200] sm:$0xff]   ;;  %7463 = vmatprep.subr.bf16.mxu0 %v7798_v60  ;;  %v9537_v34 = vld [vmem:[#allocation49_spill] sm:$0xff] }
 0x1cc   :  { %v9530_v35 = vrot.slane %v8515_v52, 4  ;;  %v9531_v10 = vrot.slane %v8425_v24, 4  ;;  %v9532_v7 = vrot.slane %v8485_v9, 5  ;;  %v9533_v25 = vrot.slane %v8618_v29, 4 }
 0x1cd   :  { %v8807_v40 = vsel %vm540_vm2, %v9527_v27, %v9526_v18  ;;  %v8814_v14 = vsel %vm390_vm0, %v9529_v28, %v9528_v0  ;;  %v8835_v24 = vsel %vm540_vm2, %v9526_v18, %v9471_v31  ;;  %v9534_v37 = vmov %v9528_v0  ;;  %v582_v28 = vld [vmem:[#allocation4 + $0x40] sm:$0xf]  ;;  %7404 = vmatpush3.bf16.msra.mxu1 %v7797_v30  ;;  %v7803_v30 = vld [vmem:[#allocation11 + $0x1f8] sm:$0xff]  }
 0x1ce   :  { %v1548_v21 = vsel %vm390_vm0, %v9531_v10, %v9530_v35  ;;  %v8828_v23 = vsel %vm497_vm1, %v9532_v7, %v1398_v39  ;;  %v8842_v27 = vsel %vm390_vm0, %v9534_v37, %v9533_v25  ;;  %v9535_v0 = vmov %v9530_v35  ;;  %v7800_v35 = vld [vmem:[#allocation11 + $0x1f0] sm:$0xff]   ;;  %7464 = vmatpush3.bf16.msra.mxu0 %v7799_v44  ;;  %v9545_v44 = vld [vmem:[#allocation44_spill] sm:$0xff] }
 0x1cf   :  { %v1550_v9 = vsel %vm390_vm0, %v9535_v0, %v1549_v48  ;;  %v8850_v46 = vsel %vm497_vm1, %v1398_v39, %v1400_v20  ;;  %v880_v10 = vld [vmem:[#allocation4 + $0x48] sm:$0x7]  ;;  %v1567_v25 = vmul.bf16 %v9537_v34, %v8549_v57  ;;  %v9538_v37 = vld [vmem:[#allocation42_spill] sm:$0xff]  ;;  %v8859_v0 = vsel %vm390_vm0, %v1549_v48, %v1551_v22  ;;  %7624 = vmatprep.subr.bf16.mxu1 %v8821_v49 }
 0x1d0   :  { %v9536_v7 = vld [vmem:[#allocation41_spill] sm:$0xff]  ;;  %v1120_v52 = vmul.bf16 %v9538_v37, %v8524_v1  ;;  %v8862_v60 = vsel %vm497_vm1, %v1400_v20, %v1402_v33  ;;  %v8867_v6 = vsel %vm390_vm0, %v1551_v22, %v9472_v43  ;;  %v8872_v39 = vsel %vm497_vm1, %v1402_v33, %v9473_v55  ;;  %v9541_v20 = vld [vmem:[#allocation43_spill] sm:$0xff]  ;;  %v9542_v22 = vld [vmem:[#allocation50_spill] sm:$0xff]  ;;  %2575 = vmatmul.mubr.bf16.gmra.mrb[28].mxu0 %v8705_v5 }
 0x1d1   :  { %v1269_v18 = vmul.bf16 %v9536_v7, %v8524_v1  ;;  %v9539_v7 = vld [vmem:[#allocation28_spill] sm:$0xff]  ;;  %v7801_v48 = vld [vmem:[#allocation11 + $0x1b0] sm:$0xff]   ;;  %v1270_v37 = vmul.bf16 %v9541_v20, %v8549_v57  ;;  %v1418_v31 = vmul.bf16 %v9542_v22, %v8549_v57  ;;  %7465 = vmatprep.subr.bf16.mxu0 %v7800_v35  ;;  %2582 = vmatprep.mubr.bf16.mxu0 %v8710_v13  ;;  %v8895_v20 = vrot.slane %v1567_v25, 4 }
 0x1d2   :  { %v9540_v34 = vrot.slane %v9539_v7, 4  ;;  %v9543_v43 = vld [vmem:[#allocation32_spill] sm:$0xff]  ;;  %v1121_v7 = vmul.bf16 %v9545_v44, %v8549_v57  ;;  %2486 = vmatmul.mubr.bf16.gmra.mrb[16].mxu1 %v8713_v62  ;;  %v8897_v5 = vrot.slane %v1120_v52, 4  ;;  %v1419_v57 = vmul.bf16 %v8791_v45, %v8591_v38  ;;  %7466 = vmatpush3.bf16.msra.mxu0 %v7801_v48  ;;  %v7804_v62 = vld [vmem:[#allocation11 + $0x1b8] sm:$0xff]  }
 0x1d3   :  { %v9544_v33 = vrot.slane %v9543_v43, 5  ;;  %v1289_v43 = vrot.slane %v1270_v37, 5  ;;  %2493 = vmatprep.mubr.bf16.mxu1 %v8716_v32  ;;  %v1569_v25 = vmul.bf16 %v1548_v21, %v8611_v51  ;;  %v9547_v32 = vld [vmem:[#allocation46_spill] sm:$0xff]  ;;  %7467 = vmatprep.subr.bf16.mxu0 %v7803_v30  ;;  %v1420_v21 = vmul.bf16 %v8828_v23, %v8611_v51 }
 0x1d4   :  { %v8876_v1 = vmul.bf16 %v9540_v34, %v582_v28  ;;  %v1568_v28 = vmul.bf16 %v1546_v15, %v8591_v38  ;;  %v8893_v34 = vrot.slane %v1269_v18, 5  ;;  %v9546_v15 = vld [vmem:[#allocation45_spill] sm:$0xff]  ;;  %v8908_v18 = vrot.slane %v1418_v31, 3  ;;  %v9548_v31 = vld [vmem:[#allocation47_spill] sm:$0xff] }
 0x1d5   :  { %v8886_v55 = vmul.bf16 %v9544_v33, %v880_v10  ;;  %v1140_v10 = vrot.slane %v1121_v7, 4  ;;  %v1271_v22 = vmul.bf16 %v9546_v15, %v8591_v38  ;;  %v1122_v52 = vmul.bf16 %v9547_v32, %v8591_v38 }
 0x1d6   :  { %v1587_v35 = vrot.slane %v1568_v28, 4  ;;  %v8906_v13 = vsel %vm497_vm1, %v8893_v34, %v1289_v43  ;;  %v1438_v33 = vrot.slane %v1419_v57, 3  ;;  %v1589_v28 = vrot.slane %v1569_v25, 4  ;;  %7468 = vmatpush3.bf16.msra.mxu0 %v7804_v62 }
 0x1d7   :  { %v8919_v45 = vsel %vm390_vm0, %v8897_v5, %v1140_v10  ;;  %v1291_v48 = vrot.slane %v1271_v22, 5  ;;  %v1142_v44 = vrot.slane %v1122_v52, 4  ;;  %v1272_v7 = vmul.bf16 %v9548_v31, %v8611_v51  ;;  %v9549_v22 = vld [vmem:[#allocation48_spill] sm:$0xff] }
 0x1d8   :  { %v8915_v37 = vsel %vm390_vm0, %v8895_v20, %v1587_v35  ;;  %v8930_v30 = vsel %vm540_vm2, %v8908_v18, %v1438_v33  ;;  %v1570_v15 = vmul.bf16 %v1550_v9, %v8634_v53  ;;  %v1123_v57 = vmul.bf16 %v9549_v22, %v8611_v51  ;;  %2583 = vmatmul.mubr.bf16.gmra.mrb[32].mxu0 %v8727_v19 }
 0x1d9   :  { %v8926_v38 = vsel %vm497_vm1, %v1289_v43, %v1291_v48  ;;  %v8936_v25 = vsel %vm390_vm0, %v1587_v35, %v1589_v28  ;;  %v8939_v32 = vsel %vm390_vm0, %v1140_v10, %v1142_v44  ;;  %v1293_v23 = vrot.slane %v1272_v7, 5  ;;  %2590 = vmatprep.mubr.bf16.mxu0 %v8736_v2 }
 0x1da   :  { %v1440_v52 = vrot.slane %v1420_v21, 3  ;;  %v1591_v43 = vrot.slane %v1570_v15, 4  ;;  %v1144_v31 = vrot.slane %v1123_v57, 4  ;;  %v1273_v29 = vmul.bf16 %v9550_v26, %v8634_v53  ;;  %2494 = vmatmul.mubr.bf16.gmra.mrb[20].mxu1 %v8751_v61 }
 0x1db   :  { %v1421_v9 = vmul.bf16 %v8850_v46, %v8634_v53  ;;  %v705_v51 = vrot.slane %v8876_v1, 4  ;;  %v8950_v35 = vsel %vm497_vm1, %v1291_v48, %v1293_v23  ;;  %v1571_v19 = vmul.bf16 %v8859_v0, %v8651_v58  ;;  %2501 = vmatprep.mubr.bf16.mxu1 %v8755_v54 }
 0x1dc   :  { %v8953_v10 = vsel %vm540_vm2, %v1438_v33, %v1440_v52  ;;  %v8959_v26 = vsel %vm390_vm0, %v1589_v28, %v1591_v43  ;;  %v8962_v2 = vsel %vm390_vm0, %v1142_v44, %v1144_v31  ;;  %v1295_v61 = vrot.slane %v1273_v29, 5  ;;  %v432_v33 = vld [vmem:[#allocation4 + $0x40] sm:$0x7] }
 0x1dd   :  { %v1442_v46 = vrot.slane %v1421_v9, 3  ;;  %v1593_v1 = vrot.slane %v1571_v19, 4  ;;  %v1124_v62 = vmul.bf16 %v8779_v36, %v8634_v53  ;;  %v1274_v48 = vmul.bf16 %v8807_v40, %v8651_v58 }
 0x1de   :  { %v1422_v0 = vmul.bf16 %v8862_v60, %v8651_v58  ;;  %v8971_v54 = vsel %vm497_vm1, %v1293_v23, %v1295_v61  ;;  %v1572_v29 = vmul.bf16 %v8867_v6, %v8672_v12  ;;  %v1125_v44 = vmul.bf16 %v8814_v14, %v8651_v58  ;;  %v1170_v60 = vld [vmem:[#allocation4 + $0x8] sm:$0xe0] }
 0x1df   :  { %v8974_v28 = vsel %vm540_vm2, %v1440_v52, %v1442_v46  ;;  %v8981_v53 = vsel %vm390_vm0, %v1591_v43, %v1593_v1  ;;  %v1146_v36 = vrot.slane %v1124_v62, 4  ;;  %v1297_v40 = vrot.slane %v1274_v48, 5  ;;  %v9551_v6 = vld [vmem:[#allocation29_spill] sm:$0xff] }
 0x1e0   :  { %v1444_v7 = vrot.slane %v1422_v0, 3  ;;  %v8983_v21 = vrot.slane %v1572_v29, 4  ;;  %v1148_v15 = vrot.slane %v1125_v44, 4  ;;  %v1275_v22 = vmul.bf16 %v8835_v24, %v8672_v12  ;;  %2591 = vmatmul.mubr.bf16.gmra.mrb[36].mxu0 %v8758_v42  ;;  %v1021_v29 = vld [vmem:[#allocation4 + $0x8] sm:$0xf0] }
 0x1e1   :  { %v1423_v57 = vmul.bf16 %v8872_v39, %v8672_v12  ;;  %v9552_v23 = vrot.slane %v9551_v6, 5  ;;  %v8992_v58 = vsel %vm390_vm0, %v1144_v31, %v1146_v36  ;;  %v8995_v14 = vsel %vm497_vm1, %v1295_v61, %v1297_v40  ;;  %2598 = vmatprep.mubr.bf16.mxu0 %v8764_v4  ;;  %v9553_v61 = vld [vmem:[#allocation30_spill] sm:$0xff]  ;;  %v9555_v44 = vld [vmem:[#allocation33_spill] sm:$0xff]  ;;  %v9559_v6 = vld [vmem:[#allocation31_spill] sm:$0xff] }
 0x1e2   :  { %v8998_v43 = vsel %vm540_vm2, %v1442_v46, %v1444_v7  ;;  %v9003_v24 = vsel %vm390_vm0, %v1593_v1, %v8983_v21  ;;  %v9006_v39 = vsel %vm390_vm0, %v1146_v36, %v1148_v15  ;;  %v9008_v9 = vrot.slane %v1275_v22, 5  ;;  %2502 = vmatmul.mubr.bf16.gmra.mrb[24].mxu1 %v8768_v47 }
 0x1e3   :  { %v530_v52 = vmul.bf16 %v9552_v23, %v432_v33  ;;  %v9010_v19 = vrot.slane %v1423_v57, 3  ;;  %v706_v31 = vsel %vm390_vm0, %v8738_v63, %v705_v51  ;;  %v9554_v42 = vrot.slane %v9553_v61, 3  ;;  %v731_v51 = vld [vmem:[#allocation4 + $0x40] sm:$0x1f]  ;;  %v1468_v33 = vld [vmem:[#allocation4 + $0x10] sm:$0xf0] }
 0x1e4   :  { %v1126_v1 = vmul.bf16 %v8842_v27, %v8672_v12  ;;  %2509 = vmatprep.mubr.bf16.mxu1 %v706_v31  ;;  %v9022_v62 = vsel %vm497_vm1, %v1297_v40, %v9008_v9  ;;  %v1003_v47 = vrot.slane %v8886_v55, 3  ;;  %v9556_v36 = vrot.slane %v9555_v44, 3 }
 0x1e5   :  { %v1268_v46 = vmul.bf16 %v9554_v42, %v1170_v60  ;;  %v9026_v48 = vsel %vm540_vm2, %v1444_v7, %v9010_v19  ;;  %v556_v63 = vrot.slane %v530_v52, 3  ;;  %v9557_v60 = vld [vmem:[#allocation34_spill] sm:$0xff]  ;;  %v9560_v23 = vrot.slane %v9559_v6, 4 }
 0x1e6   :  { %v9028_v4 = vrot.slane %v1126_v1, 4  ;;  %v829_v40 = vmul.bf16 %v9556_v36, %v731_v51  ;;  %v1004_v7 = vsel %vm540_vm2, %v8741_v8, %v1003_v47  ;;  %v9558_v22 = vrot.slane %v9557_v60, 4  ;;  %v1319_v42 = vld [vmem:[#allocation4 + $0x10] sm:$0xf8]  ;;  %v7805_v47 = vld [vmem:[#allocation11 + $0x208] sm:$0xff]  }
 0x1e7   :  { %v1286_v0 = vrot.slane %v1268_v46, 5  ;;  %v557_v55 = vsel %vm540_vm2, %v8743_v56, %v556_v63  ;;  %v1119_v52 = vmul.bf16 %v9560_v23, %v1021_v29  ;;  %v9561_v56 = vld [vmem:[#allocation35_spill] sm:$0xff]  ;;  %v1029_v29 = vld [vmem:[#allocation4 + $0x48] sm:$0xf]  ;;  %v1476_v36 = vld [vmem:[#allocation4 + $0x50] sm:$0xf] }
 0x1e8   :  { %v9033_v27 = vsel %vm390_vm0, %v1148_v15, %v9028_v4  ;;  %2599 = vmatmul.mubr.bf16.gmra.mrb[40].mxu0 %v8772_v59  ;;  %v1566_v57 = vmul.bf16 %v9558_v22, %v1468_v33  ;;  %v854_v31 = vrot.slane %v829_v40, 5  ;;  %v9562_v46 = vrot.slane %v9561_v56, 5  ;;  %v7807_v33 = vld [vmem:[#allocation11 + $0x218] sm:$0xff]   ;;  %v9568_v22 = vld [vmem:[#allocation36_spill] sm:$0xff] }
 0x1e9   :  { %2606 = vmatprep.mubr.bf16.mxu0 %v1004_v7  ;;  %v1288_v15 = vsel %vm497_vm1, %v1286_v0, %v8893_v34  ;;  %v1137_v61 = vrot.slane %v1119_v52, 4  ;;  %v1617_v7 = vld [vmem:[#allocation4 + $0x10] sm:$0xe0] }
 0x1ea   :  { %2510 = vmatmul.mubr.bf16.gmra.mrb[28].mxu1 %v557_v55  ;;  %v1584_v59 = vrot.slane %v1566_v57, 4  ;;  %v855_v8 = vsel %vm497_vm1, %v8745_v3, %v854_v31  ;;  %v1417_v1 = vmul.bf16 %v9562_v46, %v1319_v42  ;;  %v7806_v3 = vld [vmem:[#allocation11 + $0x210] sm:$0xff]   ;;  %v1694_v57 = vrot.slane %v9568_v22, 3 }
 0x1eb   :  { %2647 = vmatprep.mubr.bf16.mxu1 %v1288_v15  ;;  %v1139_v51 = vsel %vm390_vm0, %v1137_v61, %v8897_v5  ;;  %v7810_v5 = vld [vmem:[#allocation11 + $0x230] sm:$0xff]   ;;  %v1619_v15 = vld [vmem:[#allocation4 + $0x20] sm:$0xff] }
 0x1ec   :  { %v1586_v63 = vsel %vm390_vm0, %v1584_v59, %v8895_v20  ;;  %v1435_v34 = vrot.slane %v1417_v1, 3  ;;  %v7809_v20 = vld [vmem:[#allocation11 + $0x228] sm:$0xff]   ;;  %v1327_v59 = vld [vmem:[#allocation4 + $0x50] sm:$0x7] }
 0x1ed   :  { %v1620_v61 = vld [vmem:[#allocation4 + $0x28] sm:$0xff] }
 0x1ee   :  { %v1437_v0 = vsel %vm540_vm2, %v1435_v34, %v8908_v18  ;;  %v9070_v18 = vpop.permute.xlu1 %1665 }
 0x1ef   :  { %v1696_v23 = vrot.slane %v9070_v18, 3 }
 0x1f0   :  { %2607 = vmatmul.mubr.bf16.gmra.mrb[44].mxu0 %v855_v8 }
 0x1f1   :  { %2744 = vmatprep.mubr.bf16.mxu0 %v1586_v63  ;;  %v1697_v8 = vsel %vm540_vm2, %v1694_v57, %v1696_v23 }
 0x1f2   :  { %2648 = vmatmul.mubr.bf16.vlgmr.msra.gmra.mrb[32].mxu1 %v1139_v51  ;;  %v1718_v34 = vmul.bf16 %v1697_v8, %v1620_v61 }
 0x1f3   :  { %7625 = vmatpush3.bf16.msra.mxu1 %v8821_v49  ;;  %2655 = vmatprep.mubr.bf16.mxu1 %v8906_v13  ;;  %v7808_v49 = vld [vmem:[#allocation11 + $0x220] sm:$0xff]   ;;  %v7811_v13 = vld [vmem:[#allocation11 + $0x238] sm:$0xff]  }
 0x1f4   :  { %7626 = vmatprep.subr.bf16.mxu1 %v7805_v47 }
 0x1f7   :  { %7627 = vmatpush3.bf16.msra.mxu1 %v7805_v47 }
 0x1f8   :  { %7628 = vmatprep.subr.bf16.mxu1 %v7806_v3  ;;  %2745 = vmatmul.mubr.bf16.vlgmr.msra.gmra.mrb[48].mxu0 %v1437_v0 }
 0x1f9   :  { %2752 = vmatprep.mubr.bf16.mxu0 %v8915_v37  ;;  %v1533_v37 = vpop.permute.xlu1 %1532 }
 0x1fa   :  { %2656 = vmatmul.mubr.bf16.gmra.mrb[36].mxu1 %v8919_v45  ;;  %v9074_v45 = vpop.permute.xlu0 %1669 }
 0x1fb   :  { %2663 = vmatprep.mubr.bf16.mxu1 %v8926_v38  ;;  %7629 = vmatpush3.bf16.msra.mxu1 %v7806_v3  ;;  %v1555_v38 = vrot.slane %v1533_v37, 4 }
 0x1fc   :  { %7630 = vmatprep.subr.bf16.mxu1 %v7807_v33 }
 0x1fd   :  { %v1574_v60 = vmul.bf16 %v1555_v38, %v1476_v36  ;;  %v1674_v63 = vpop.permute.xlu1 %1673 }
 0x1fe   :  { %v1700_v3 = vrot.slane %v1674_v63, 3 }
 0x1ff   :  { %7631 = vmatpush3.bf16.msra.mxu1 %v7807_v33  ;;  %v1599_v31 = vrot.slane %v1574_v60, 4 }
 0x200   :  { %7632 = vmatprep.subr.bf16.mxu1 %v7808_v49  ;;  %2753 = vmatmul.mubr.bf16.gmra.mrb[52].mxu0 %v8930_v30  ;;  %v9079_v30 = vld [vmem:[#allocation4 + $0x48] sm:$0xff] }
 0x201   :  { %2760 = vmatprep.mubr.bf16.mxu0 %v8936_v25  ;;  %v1178_v25 = vld [vmem:[#allocation4 + $0x48] sm:$0x1f] }
 0x202   :  { %2664 = vmatmul.mubr.bf16.gmra.mrb[40].mxu1 %v8939_v32  ;;  %v9563_v32 = vrot.slane %v8794_v11, 4  ;;  %v1692_v11 = vrot.slane %v8718_v50, 3 }
 0x203   :  { %2671 = vmatprep.mubr.bf16.mxu1 %v8950_v35  ;;  %7633 = vmatpush3.bf16.msra.mxu1 %v7808_v49  ;;  %v1738_v49 = vrot.slane %v1718_v34, 5 }
 0x204   :  { %7634 = vmatprep.subr.bf16.mxu1 %v7809_v20  ;;  %v1556_v35 = vsel %vm390_vm0, %v9563_v32, %v1555_v38  ;;  %v1682_v32 = vpop.permute.xlu1 %1681 }
 0x207   :  { %7635 = vmatpush3.bf16.msra.mxu1 %v7809_v20  ;;  %v1621_v20 = vld [vmem:[#allocation4 + $0x30] sm:$0xff] }
 0x208   :  { %7636 = vmatprep.subr.bf16.mxu1 %v7810_v5  ;;  %2761 = vmatmul.mubr.bf16.gmra.mrb[56].mxu0 %v8953_v10  ;;  %v1384_v10 = vpop.permute.xlu0 %1383 }
 0x209   :  { %2768 = vmatprep.mubr.bf16.mxu0 %v8959_v26  ;;  %v1573_v26 = vmul.bf16 %v1556_v35, %v9079_v30 }
 0x20a   :  { %2672 = vmatmul.mubr.bf16.gmra.mrb[44].mxu1 %v8962_v2  ;;  %v9564_v2 = vrot.slane %v8564_v16, 3 }
 0x20b   :  { %2679 = vmatprep.mubr.bf16.mxu1 %v8971_v54  ;;  %7637 = vmatpush3.bf16.msra.mxu1 %v7810_v5  ;;  %v1622_v5 = vld [vmem:[#allocation4 + $0x38] sm:$0xff] }
 0x20c   :  { %7638 = vmatprep.subr.bf16.mxu1 %v7811_v13  ;;  %v1276_v54 = vmul.bf16 %v9564_v2, %v1178_v25  ;;  %v1678_v25 = vpop.permute.xlu0 %1677 }
 0x20f   :  { %7639 = vmatpush3.bf16.msra.mxu1 %v7811_v13 }
 0x210   :  { %2769 = vmatmul.mubr.bf16.gmra.mrb[60].mxu0 %v8974_v28  ;;  %v1406_v28 = vrot.slane %v1384_v10, 5  ;;  %v1702_v10 = vrot.slane %v1678_v25, 3 }
 0x211   :  { %2776 = vmatprep.mubr.bf16.mxu0 %v8981_v53  ;;  %v1691_v53 = vrot.slane %v8662_v17, 3 }
 0x212   :  { %2680 = vmatmul.mubr.bf16.gmra.mrb[48].mxu1 %v8992_v58  ;;  %v1597_v58 = vrot.slane %v1573_v26, 4  ;;  %v1425_v47 = vmul.bf16 %v1406_v28, %v1327_v59  ;;  %v1704_v26 = vrot.slane %v1682_v32, 3 }
 0x213   :  { %2687 = vmatprep.mubr.bf16.mxu1 %v8995_v14  ;;  %v1301_v14 = vrot.slane %v1276_v54, 5  ;;  %v1693_v16 = vsel %vm540_vm2, %v1691_v53, %v1692_v11 }
 0x214   :  { %v1598_v17 = vsel %vm390_vm0, %v8983_v21, %v1597_v58  ;;  %v1600_v56 = vsel %vm390_vm0, %v1597_v58, %v1599_v31  ;;  %v1450_v33 = vrot.slane %v1425_v47, 3 }
 0x218   :  { %2777 = vmatmul.mubr.bf16.gmra.mrb[64].mxu0 %v8998_v43  ;;  %v9565_v43 = vrot.slane %v8748_v41, 5  ;;  %v1302_v41 = vsel %vm497_vm1, %v9008_v9, %v1301_v14 }
 0x219   :  { %2784 = vmatprep.mubr.bf16.mxu0 %v9003_v24  ;;  %v1618_v24 = vld [vmem:[#allocation4 + $0x18] sm:$0xff] }
 0x21a   :  { %2688 = vmatmul.mubr.bf16.gmra.mrb[52].mxu1 %v9006_v39  ;;  %v1407_v44 = vsel %vm497_vm1, %v9565_v43, %v1406_v28  ;;  %v1716_v55 = vmul.bf16 %v1693_v16, %v1618_v24  ;;  %v1705_v28 = vsel %vm540_vm2, %v1702_v10, %v1704_v26  ;;  %v1625_v24 = vld [vmem:[#allocation4 + $0x50] sm:$0x1f] }
 0x21b   :  { %2695 = vmatprep.mubr.bf16.mxu1 %v9022_v62  ;;  %v1424_v39 = vmul.bf16 %v9079_v30, %v1407_v44  ;;  %v9566_v62 = vld [vmem:[#allocation52_spill] sm:$0xff]  ;;  %v1722_v14 = vmul.bf16 %v1705_v28, %v9079_v30  ;;  %v1723_v16 = vmul.bf16 %v1704_v26, %v1625_v24 }
 0x21c   :  { %v9567_v50 = vrot.slane %v9566_v62, 4  ;;  %v1734_v52 = vrot.slane %v1716_v55, 5 }
 0x21d   :  { %v1448_v6 = vrot.slane %v1424_v39, 3  ;;  %v1746_v43 = vrot.slane %v1722_v14, 5 }
 0x21e   :  { %v1127_v40 = vmul.bf16 %v9567_v50, %v1029_v29 }
 0x21f   :  { %v1449_v9 = vsel %vm540_vm2, %v9010_v19, %v1448_v6  ;;  %v1698_v19 = vrot.slane %v9074_v45, 3 }
 0x220   :  { %2785 = vmatmul.mubr.bf16.gmra.mrb[68].mxu0 %v9026_v48  ;;  %v1715_v48 = vmul.bf16 %v1691_v53, %v1617_v7  ;;  %v1152_v21 = vrot.slane %v1127_v40, 4 }
 0x221   :  { %2792 = vmatprep.mubr.bf16.mxu0 %v1598_v17  ;;  %v1699_v13 = vsel %vm540_vm2, %v1696_v23, %v1698_v19  ;;  %v1701_v18 = vsel %vm540_vm2, %v1698_v19, %v1700_v3  ;;  %v1748_v17 = vrot.slane %v1723_v16, 5 }
 0x222   :  { %2696 = vmatmul.mubr.bf16.gmra.mrb[56].mxu1 %v9033_v27  ;;  %v1695_v27 = vsel %vm540_vm2, %v1692_v11, %v1694_v57  ;;  %v1733_v42 = vrot.slane %v1715_v48, 5  ;;  %v1153_v46 = vsel %vm390_vm0, %v9028_v4, %v1152_v21  ;;  %v1451_v4 = vsel %vm540_vm2, %v1448_v6, %v1450_v33 }
 0x223   :  { %2703 = vmatprep.mubr.bf16.mxu1 %v1302_v41  ;;  %v1717_v1 = vmul.bf16 %v1695_v27, %v1619_v15  ;;  %v1719_v38 = vmul.bf16 %v1699_v13, %v1621_v20  ;;  %v1720_v35 = vmul.bf16 %v1701_v18, %v1622_v5  ;;  %v1703_v11 = vsel %vm540_vm2, %v1700_v3, %v1702_v10 }
 0x224   :  { %v1735_v51 = vsel %vm497_vm1, %v1733_v42, %v1734_v52  ;;  %v1721_v29 = vmul.bf16 %v1703_v11, %v8672_v12  ;;  %v1749_v62 = vsel %vm497_vm1, %v1746_v43, %v1748_v17  ;;  %v9131_v12 = vld [vmem:[#allocation12] ss:$0 sm:$0xff] }
 0x225   :  { %v1736_v0 = vrot.slane %v1717_v1, 5  ;;  %v1740_v2 = vrot.slane %v1719_v38, 5  ;;  %v1742_v54 = vrot.slane %v1720_v35, 5 }
 0x226   :  { %v1744_v44 = vrot.slane %v1721_v29, 5 }
 0x227   :  { %v1737_v37 = vsel %vm497_vm1, %v1734_v52, %v1736_v0  ;;  %v1739_v45 = vsel %vm497_vm1, %v1736_v0, %v1738_v49  ;;  %v1741_v53 = vsel %vm497_vm1, %v1738_v49, %v1740_v2  ;;  %v1743_v58 = vsel %vm497_vm1, %v1740_v2, %v1742_v54 }
 0x228   :  { %2793 = vmatmul.mubr.bf16.gmra.mrb[72].mxu0 %v1449_v9  ;;  %v1745_v36 = vsel %vm497_vm1, %v1742_v54, %v1744_v44  ;;  %v1747_v39 = vsel %vm497_vm1, %v1744_v44, %v1746_v43 }
 0x229   :  { %2800 = vmatprep.mubr.bf16.mxu0 %v1600_v56 }
 0x22a   :  { %2704 = vmatmul.mubr.bf16.gmra.mrb[60].mxu1 %v1153_v46 }
 0x22b   :  { %7640 = vmatprep.mubr.bf16.mxu1 %v1735_v51 }
 0x230   :  { %2801 = vmatmul.mubr.bf16.gmra.mrb[76].mxu0 %v1451_v4 }
 0x232   :  { %7641 = vmatmul.mubr.bf16.vlgmr.msra.gmra.mrb[64].mxu1 %v1737_v37 }
 0x233   :  { %7644 = vmatprep.mubr.bf16.mxu1 %v1739_v45 }
 0x23a   :  { %7645 = vmatmul.mubr.bf16.gmra.mrb[68].mxu1 %v1741_v53 }
 0x23b   :  { %7648 = vmatprep.mubr.bf16.mxu1 %v1743_v58 }
 0x242   :  { %7649 = vmatmul.mubr.bf16.gmra.mrb[72].mxu1 %v1745_v36 }
 0x243   :  { %7652 = vmatprep.mubr.bf16.mxu1 %v1747_v39 }
 0x24a   :  { %7653 = vmatmul.mubr.bf16.gmra.mrb[76].mxu1 %v1749_v62 }
 0x283   :  { %v7277_v50 = vpop.f32.mrb[0].mxu1 }
 0x284   :  { %v7278_v40 = vpop.f32.mrb[1].mxu1 }
 0x285   :  { %v7279_v30 = vadd.f32 %v7278_v40, %v7277_v50  ;;  %v7280_v7 = vpop.f32.mrb[2].mxu1 }
 0x286   :  { %v7281_v41 = vpop.f32.mrb[3].mxu1 }
 0x287   :  { %v7282_v55 = vadd.f32 %v7281_v41, %v7280_v7  ;;  %v2456_v60 = vadd.f32 %v7279_v30, %v9131_v12 }
 0x289   :  { %v2459_v48 = vadd.f32 %v7282_v55, %v9131_v12 }
 0x28a   :  { %v7341_v22 = vpop.f32.mrb[16].mxu0 }
 0x28b   :  { %v7342_v57 = vpop.f32.mrb[17].mxu0  ;;  %v7283_v6 = vpop.f32.mrb[4].mxu1 }
 0x28c   :  { %v7343_v23 = vadd.f32 %v7342_v57, %v7341_v22  ;;  %v7344_v21 = vpop.f32.mrb[18].mxu0  ;;  %v7284_v52 = vpop.f32.mrb[5].mxu1 }
 0x28d   :  { %v7345_v15 = vpop.f32.mrb[19].mxu0  ;;  %v7285_v31 = vadd.f32 %v7284_v52, %v7283_v6  ;;  %v7286_v59 = vpop.f32.mrb[6].mxu1 }
 0x28e   :  { %v9135_v61 = vadd.f32 %v7343_v23, %v2456_v60  ;;  %v7346_v27 = vadd.f32 %v7345_v15, %v7344_v21  ;;  %v7287_v9 = vpop.f32.mrb[7].mxu1 }
 0x28f   :  { %v7288_v42 = vadd.f32 %v7287_v9, %v7286_v59  ;;  %v2464_v56 = vadd.f32 %v7285_v31, %v9131_v12 }
 0x290   :  { %v9137_v8 = vadd.f32 %v7346_v27, %v2459_v48 }
 0x291   :  { %v2467_v63 = vadd.f32 %v7288_v42, %v9131_v12 }
 0x292   :  { %v7347_v46 = vpop.f32.mrb[20].mxu0 }
 0x293   :  { %v7348_v1 = vpop.f32.mrb[21].mxu0  ;;  %v7289_v47 = vpop.f32.mrb[8].mxu1 }
 0x294   :  { %v7349_v51 = vadd.f32 %v7348_v1, %v7347_v46  ;;  %v7350_v34 = vpop.f32.mrb[22].mxu0  ;;  %v7290_v19 = vpop.f32.mrb[9].mxu1 }
 0x295   :  { %v7351_v3 = vpop.f32.mrb[23].mxu0  ;;  %v7291_v0 = vadd.f32 %v7290_v19, %v7289_v47  ;;  %v7292_v33 = vpop.f32.mrb[10].mxu1 }
 0x296   :  { %v9141_v49 = vadd.f32 %v7349_v51, %v2464_v56  ;;  %v7352_v20 = vadd.f32 %v7351_v3, %v7350_v34  ;;  %v7293_v5 = vpop.f32.mrb[11].mxu1 }
 0x297   :  { %v7294_v13 = vadd.f32 %v7293_v5, %v7292_v33  ;;  %v2472_v18 = vadd.f32 %v7291_v0, %v9131_v12 }
 0x298   :  { %v9143_v4 = vadd.f32 %v7352_v20, %v2467_v63 }
 0x299   :  { %v2475_v32 = vadd.f32 %v7294_v13, %v9131_v12 }
 0x29a   :  { %v7353_v37 = vpop.f32.mrb[24].mxu0 }
 0x29b   :  { %v7354_v38 = vpop.f32.mrb[25].mxu0  ;;  %v7295_v25 = vpop.f32.mrb[12].mxu1 }
 0x29c   :  { %v7355_v45 = vadd.f32 %v7354_v38, %v7353_v37  ;;  %v7356_v35 = vpop.f32.mrb[26].mxu0  ;;  %v7296_v10 = vpop.f32.mrb[13].mxu1 }
 0x29d   :  { %v7357_v26 = vpop.f32.mrb[27].mxu0  ;;  %v7297_v2 = vadd.f32 %v7296_v10, %v7295_v25  ;;  %v7298_v54 = vpop.f32.mrb[14].mxu1 }
 0x29e   :  { %v9147_v28 = vadd.f32 %v7355_v45, %v2472_v18  ;;  %v7358_v53 = vadd.f32 %v7357_v26, %v7356_v35  ;;  %v7299_v11 = vpop.f32.mrb[15].mxu1 }
 0x29f   :  { %v7300_v58 = vadd.f32 %v7299_v11, %v7298_v54  ;;  %v2480_v29 = vadd.f32 %v7297_v2, %v9131_v12 }
 0x2a0   :  { %v9149_v14 = vadd.f32 %v7358_v53, %v2475_v32 }
 0x2a1   :  { %v2483_v36 = vadd.f32 %v7300_v58, %v9131_v12 }
 0x2a3   :  { %v7359_v43 = vpop.f32.mrb[28].mxu0 }
 0x2a4   :  { %v7360_v44 = vpop.f32.mrb[29].mxu0 }
 0x2a5   :  { %v7301_v24 = vpop.f32.mrb[16].mxu1  ;;  %v7361_v39 = vadd.f32 %v7360_v44, %v7359_v43  ;;  %v7362_v16 = vpop.f32.mrb[30].mxu0 }
 0x2a6   :  { %v7302_v17 = vpop.f32.mrb[17].mxu1  ;;  %v7363_v62 = vpop.f32.mrb[31].mxu0 }
 0x2a7   :  { %v7303_v50 = vadd.f32 %v7302_v17, %v7301_v24  ;;  %v7304_v40 = vpop.f32.mrb[18].mxu1  ;;  %v9153_v30 = vadd.f32 %v7361_v39, %v2480_v29  ;;  %v7364_v7 = vadd.f32 %v7363_v62, %v7362_v16 }
 0x2a8   :  { %v7305_v41 = vpop.f32.mrb[19].mxu1 }
 0x2a9   :  { %v7306_v55 = vadd.f32 %v7305_v41, %v7304_v40  ;;  %v9155_v60 = vadd.f32 %v7364_v7, %v2483_v36  ;;  %v2488_v22 = vadd.f32 %v7303_v50, %v9131_v12 }
 0x2ab   :  { %v7365_v57 = vpop.f32.mrb[32].mxu0  ;;  %v2491_v23 = vadd.f32 %v7306_v55, %v9131_v12 }
 0x2ac   :  { %v7366_v6 = vpop.f32.mrb[33].mxu0 }
 0x2ad   :  { %v7307_v48 = vpop.f32.mrb[20].mxu1  ;;  %v7367_v21 = vadd.f32 %v7366_v6, %v7365_v57  ;;  %v7368_v52 = vpop.f32.mrb[34].mxu0 }
 0x2ae   :  { %v7308_v15 = vpop.f32.mrb[21].mxu1  ;;  %v7369_v31 = vpop.f32.mrb[35].mxu0 }
 0x2af   :  { %v7309_v59 = vadd.f32 %v7308_v15, %v7307_v48  ;;  %v7310_v27 = vpop.f32.mrb[22].mxu1  ;;  %v9159_v9 = vadd.f32 %v7367_v21, %v2488_v22  ;;  %v7370_v42 = vadd.f32 %v7369_v31, %v7368_v52 }
 0x2b0   :  { %v7311_v56 = vpop.f32.mrb[23].mxu1 }
 0x2b1   :  { %v7312_v46 = vadd.f32 %v7311_v56, %v7310_v27  ;;  %v9161_v1 = vadd.f32 %v7370_v42, %v2491_v23  ;;  %v2496_v47 = vadd.f32 %v7309_v59, %v9131_v12 }
 0x2b3   :  { %v7371_v63 = vpop.f32.mrb[36].mxu0  ;;  %v2499_v19 = vadd.f32 %v7312_v46, %v9131_v12 }
 0x2b4   :  { %v7372_v51 = vpop.f32.mrb[37].mxu0 }
 0x2b5   :  { %v7313_v34 = vpop.f32.mrb[24].mxu1  ;;  %v7373_v3 = vadd.f32 %v7372_v51, %v7371_v63  ;;  %v7374_v0 = vpop.f32.mrb[38].mxu0 }
 0x2b6   :  { %v7314_v33 = vpop.f32.mrb[25].mxu1  ;;  %v7375_v20 = vpop.f32.mrb[39].mxu0 }
 0x2b7   :  { %v7315_v5 = vadd.f32 %v7314_v33, %v7313_v34  ;;  %v7316_v13 = vpop.f32.mrb[26].mxu1  ;;  %v9165_v18 = vadd.f32 %v7373_v3, %v2496_v47  ;;  %v7376_v37 = vadd.f32 %v7375_v20, %v7374_v0 }
 0x2b8   :  { %v7317_v38 = vpop.f32.mrb[27].mxu1 }
 0x2b9   :  { %v7318_v25 = vadd.f32 %v7317_v38, %v7316_v13  ;;  %v9167_v32 = vadd.f32 %v7376_v37, %v2499_v19  ;;  %v2504_v45 = vadd.f32 %v7315_v5, %v9131_v12 }
 0x2bb   :  { %v7377_v35 = vpop.f32.mrb[40].mxu0  ;;  %v2507_v2 = vadd.f32 %v7318_v25, %v9131_v12 }
 0x2bc   :  { %v7378_v10 = vpop.f32.mrb[41].mxu0 }
 0x2bd   :  { %v7319_v26 = vpop.f32.mrb[28].mxu1  ;;  %v7379_v54 = vadd.f32 %v7378_v10, %v7377_v35  ;;  %v7380_v53 = vpop.f32.mrb[42].mxu0 }
 0x2be   :  { %v7320_v11 = vpop.f32.mrb[29].mxu1  ;;  %v7381_v58 = vpop.f32.mrb[43].mxu0 }
 0x2bf   :  { %v7321_v29 = vadd.f32 %v7320_v11, %v7319_v26  ;;  %v7322_v43 = vpop.f32.mrb[30].mxu1  ;;  %v9171_v44 = vadd.f32 %v7379_v54, %v2504_v45  ;;  %v7382_v24 = vadd.f32 %v7381_v58, %v7380_v53 }
 0x2c0   :  { %v7323_v36 = vpop.f32.mrb[31].mxu1 }
 0x2c1   :  { %v7324_v39 = vadd.f32 %v7323_v36, %v7322_v43  ;;  %v9173_v16 = vadd.f32 %v7382_v24, %v2507_v2  ;;  %v2512_v17 = vadd.f32 %v7321_v29, %v9131_v12 }
 0x2c3   :  { %v7383_v62 = vpop.f32.mrb[44].mxu0  ;;  %v2515_v7 = vadd.f32 %v7324_v39, %v9131_v12 }
 0x2c4   :  { %v7384_v50 = vpop.f32.mrb[45].mxu0 }
 0x2c5   :  { %v7405_v40 = vpop.f32.mrb[32].mxu1  ;;  %v7385_v41 = vadd.f32 %v7384_v50, %v7383_v62  ;;  %v7386_v55 = vpop.f32.mrb[46].mxu0 }
 0x2c6   :  { %v7406_v22 = vpop.f32.mrb[33].mxu1  ;;  %v7387_v57 = vpop.f32.mrb[47].mxu0 }
 0x2c7   :  { %v7407_v6 = vadd.f32 %v7406_v22, %v7405_v40  ;;  %v7408_v48 = vpop.f32.mrb[34].mxu1  ;;  %v9177_v23 = vadd.f32 %v7385_v41, %v2512_v17  ;;  %v7388_v21 = vadd.f32 %v7387_v57, %v7386_v55 }
 0x2c8   :  { %v7409_v52 = vpop.f32.mrb[35].mxu1 }
 0x2c9   :  { %v2650_v15 = vadd.f32 %v7407_v6, %v9135_v61  ;;  %v7410_v31 = vadd.f32 %v7409_v52, %v7408_v48  ;;  %v9180_v59 = vadd.f32 %v7388_v21, %v2515_v7 }
 0x2cb   :  { %v2653_v27 = vadd.f32 %v7410_v31, %v9137_v8  ;;  %v7469_v42 = vpop.f32.mrb[48].mxu0 }
 0x2cc   :  { %v7470_v56 = vpop.f32.mrb[49].mxu0 }
 0x2cd   :  { %v7411_v12 = vpop.f32.mrb[36].mxu1  ;;  %v7471_v46 = vadd.f32 %v7470_v56, %v7469_v42  ;;  %v7472_v47 = vpop.f32.mrb[50].mxu0 }
 0x2ce   :  { %v7412_v63 = vpop.f32.mrb[37].mxu1  ;;  %v7473_v51 = vpop.f32.mrb[51].mxu0 }
 0x2cf   :  { %v7413_v34 = vadd.f32 %v7412_v63, %v7411_v12  ;;  %v7414_v19 = vpop.f32.mrb[38].mxu1  ;;  %v7474_v3 = vadd.f32 %v7473_v51, %v7472_v47  ;;  %v9183_v33 = vadd.f32 %v7471_v46, %v2650_v15 }
 0x2d0   :  { %v7415_v0 = vpop.f32.mrb[39].mxu1 }
 0x2d1   :  { %v2658_v61 = vadd.f32 %v7413_v34, %v9141_v49  ;;  %v7416_v20 = vadd.f32 %v7415_v0, %v7414_v19  ;;  %v9186_v5 = vadd.f32 %v7474_v3, %v2653_v27 }
 0x2d3   :  { %v2661_v8 = vadd.f32 %v7416_v20, %v9143_v4  ;;  %v7475_v13 = vpop.f32.mrb[52].mxu0 }
 0x2d4   :  { %v7476_v37 = vpop.f32.mrb[53].mxu0 }
 0x2d5   :  { %v7417_v38 = vpop.f32.mrb[40].mxu1  ;;  %v7477_v25 = vadd.f32 %v7476_v37, %v7475_v13  ;;  %v7478_v45 = vpop.f32.mrb[54].mxu0 }
 0x2d6   :  { %v7418_v35 = vpop.f32.mrb[41].mxu1  ;;  %v7479_v10 = vpop.f32.mrb[55].mxu0 }
 0x2d7   :  { %v7419_v26 = vadd.f32 %v7418_v35, %v7417_v38  ;;  %v7420_v2 = vpop.f32.mrb[42].mxu1  ;;  %v7480_v54 = vadd.f32 %v7479_v10, %v7478_v45  ;;  %v9189_v11 = vadd.f32 %v7477_v25, %v2658_v61 }
 0x2d8   :  { %v7421_v53 = vpop.f32.mrb[43].mxu1 }
 0x2d9   :  { %v2666_v49 = vadd.f32 %v7419_v26, %v9147_v28  ;;  %v7422_v58 = vadd.f32 %v7421_v53, %v7420_v2  ;;  %v9192_v29 = vadd.f32 %v7480_v54, %v2661_v8 }
 0x2db   :  { %v2669_v4 = vadd.f32 %v7422_v58, %v9149_v14  ;;  %v7481_v43 = vpop.f32.mrb[56].mxu0 }
 0x2dc   :  { %v7482_v24 = vpop.f32.mrb[57].mxu0 }
 0x2dd   :  { %v7423_v36 = vpop.f32.mrb[44].mxu1  ;;  %v7483_v39 = vadd.f32 %v7482_v24, %v7481_v43  ;;  %v7484_v17 = vpop.f32.mrb[58].mxu0 }
 0x2de   :  { %v7424_v62 = vpop.f32.mrb[45].mxu1  ;;  %v7485_v50 = vpop.f32.mrb[59].mxu0 }
 0x2df   :  { %v7425_v40 = vadd.f32 %v7424_v62, %v7423_v36  ;;  %v7426_v7 = vpop.f32.mrb[46].mxu1  ;;  %v7486_v41 = vadd.f32 %v7485_v50, %v7484_v17  ;;  %v9195_v22 = vadd.f32 %v7483_v39, %v2666_v49 }
 0x2e0   :  { %v7427_v55 = vpop.f32.mrb[47].mxu1 }
 0x2e1   :  { %v2674_v28 = vadd.f32 %v7425_v40, %v9153_v30  ;;  %v7428_v57 = vadd.f32 %v7427_v55, %v7426_v7  ;;  %v9198_v6 = vadd.f32 %v7486_v41, %v2669_v4 }
 0x2e3   :  { %v2677_v14 = vadd.f32 %v7428_v57, %v9155_v60  ;;  %v7487_v48 = vpop.f32.mrb[60].mxu0 }
 0x2e4   :  { %v7488_v21 = vpop.f32.mrb[61].mxu0 }
 0x2e5   :  { %v7429_v52 = vpop.f32.mrb[48].mxu1  ;;  %v7489_v15 = vadd.f32 %v7488_v21, %v7487_v48  ;;  %v7490_v31 = vpop.f32.mrb[62].mxu0 }
 0x2e6   :  { %v7430_v27 = vpop.f32.mrb[49].mxu1  ;;  %v7491_v42 = vpop.f32.mrb[63].mxu0 }
 0x2e7   :  { %v7431_v56 = vadd.f32 %v7430_v27, %v7429_v52  ;;  %v7432_v12 = vpop.f32.mrb[50].mxu1  ;;  %v7492_v46 = vadd.f32 %v7491_v42, %v7490_v31  ;;  %v9201_v63 = vadd.f32 %v7489_v15, %v2674_v28 }
 0x2e8   :  { %v7433_v47 = vpop.f32.mrb[51].mxu1 }
 0x2e9   :  { %v2682_v30 = vadd.f32 %v7431_v56, %v9159_v9  ;;  %v7434_v51 = vadd.f32 %v7433_v47, %v7432_v12  ;;  %v9204_v34 = vadd.f32 %v7492_v46, %v2677_v14 }
 0x2eb   :  { %v2685_v60 = vadd.f32 %v7434_v51, %v9161_v1  ;;  %v7493_v19 = vpop.f32.mrb[64].mxu0 }
 0x2ec   :  { %v7494_v3 = vpop.f32.mrb[65].mxu0 }
 0x2ed   :  { %v7435_v0 = vpop.f32.mrb[52].mxu1  ;;  %v7495_v61 = vadd.f32 %v7494_v3, %v7493_v19  ;;  %v7496_v20 = vpop.f32.mrb[66].mxu0 }
 0x2ee   :  { %v7436_v8 = vpop.f32.mrb[53].mxu1  ;;  %v7497_v13 = vpop.f32.mrb[67].mxu0 }
 0x2ef   :  { %v7437_v37 = vadd.f32 %v7436_v8, %v7435_v0  ;;  %v7438_v38 = vpop.f32.mrb[54].mxu1  ;;  %v7498_v25 = vadd.f32 %v7497_v13, %v7496_v20  ;;  %v9207_v35 = vadd.f32 %v7495_v61, %v2682_v30 }
 0x2f0   :  { %v7439_v45 = vpop.f32.mrb[55].mxu1 }
 0x2f1   :  { %v2690_v9 = vadd.f32 %v7437_v37, %v9165_v18  ;;  %v7440_v10 = vadd.f32 %v7439_v45, %v7438_v38  ;;  %v9210_v26 = vadd.f32 %v7498_v25, %v2685_v60 }
 0x2f3   :  { %v2693_v1 = vadd.f32 %v7440_v10, %v9167_v32  ;;  %v7499_v2 = vpop.f32.mrb[68].mxu0 }
 0x2f4   :  { %v7500_v54 = vpop.f32.mrb[69].mxu0 }
 0x2f5   :  { %v7441_v53 = vpop.f32.mrb[56].mxu1  ;;  %v7501_v49 = vadd.f32 %v7500_v54, %v7499_v2  ;;  %v7502_v58 = vpop.f32.mrb[70].mxu0 }
 0x2f6   :  { %v7442_v4 = vpop.f32.mrb[57].mxu1  ;;  %v7503_v43 = vpop.f32.mrb[71].mxu0 }
 0x2f7   :  { %v7443_v24 = vadd.f32 %v7442_v4, %v7441_v53  ;;  %v7444_v36 = vpop.f32.mrb[58].mxu1  ;;  %v7504_v39 = vadd.f32 %v7503_v43, %v7502_v58  ;;  %v2787_v62 = vadd.f32 %v7501_v49, %v2690_v9 }
 0x2f8   :  { %v7445_v17 = vpop.f32.mrb[59].mxu1 }
 0x2f9   :  { %v2698_v50 = vadd.f32 %v7443_v24, %v9171_v44  ;;  %v7446_v18 = vadd.f32 %v7445_v17, %v7444_v36  ;;  %v9214_v40 = vadd.f32 %v7504_v39, %v2693_v1 }
 0x2fb   :  { %v2701_v7 = vadd.f32 %v7446_v18, %v9173_v16  ;;  %v7505_v32 = vpop.f32.mrb[72].mxu0 }
 0x2fc   :  { %v7506_v41 = vpop.f32.mrb[73].mxu0 }
 0x2fd   :  { %v7447_v55 = vpop.f32.mrb[60].mxu1  ;;  %v7507_v28 = vadd.f32 %v7506_v41, %v7505_v32  ;;  %v7508_v57 = vpop.f32.mrb[74].mxu0 }
 0x2fe   :  { %v7448_v14 = vpop.f32.mrb[61].mxu1  ;;  %v7509_v48 = vpop.f32.mrb[75].mxu0 }
 0x2ff   :  { %v7449_v21 = vadd.f32 %v7448_v14, %v7447_v55  ;;  %v7450_v52 = vpop.f32.mrb[62].mxu1  ;;  %v7510_v15 = vadd.f32 %v7509_v48, %v7508_v57  ;;  %v9217_v27 = vadd.f32 %v7507_v28, %v2698_v50 }
 0x300   :  { %v7451_v31 = vpop.f32.mrb[63].mxu1 }
 0x301   :  { %v2706_v44 = vadd.f32 %v7449_v21, %v9177_v23  ;;  %v7452_v42 = vadd.f32 %v7451_v31, %v7450_v52  ;;  %v9220_v56 = vadd.f32 %v7510_v15, %v2701_v7 }
 0x303   :  { %v2709_v16 = vadd.f32 %v7452_v42, %v9180_v59  ;;  %v7511_v12 = vpop.f32.mrb[76].mxu0 }
 0x304   :  { %v7512_v46 = vpop.f32.mrb[77].mxu0 }
 0x305   :  { %v7642_v47 = vpop.f32.mrb[64].mxu1  ;;  %v7513_v30 = vadd.f32 %v7512_v46, %v7511_v12  ;;  %v7514_v51 = vpop.f32.mrb[78].mxu0 }
 0x306   :  { %v2852_v60 = vadd.f32 %v7642_v47, %v9189_v11  ;;  %v2843_v19 = vpop.f32.mrb[65].mxu1  ;;  %v7515_v3 = vpop.f32.mrb[79].mxu0 }
 0x307   :  { %v2844_v0 = vadd.f32 %v2843_v19, %v9183_v33  ;;  %v7643_v61 = vpop.f32.mrb[66].mxu1  ;;  %v7516_v20 = vadd.f32 %v7515_v3, %v7514_v51  ;;  %v2803_v13 = vadd.f32 %v7513_v30, %v2706_v44 }
 0x308   :  { %v2855_v23 = vadd.f32 %v7643_v61, %v9192_v29  ;;  %v2846_v8 = vpop.f32.mrb[67].mxu1  ;;  %v2908_v59 = vmax.f32 %v2852_v60, 0.0 }
 0x309   :  { %v2847_v37 = vadd.f32 %v2846_v8, %v9186_v5  ;;  %v2806_v25 = vadd.f32 %v7516_v20, %v2709_v16  ;;  %v2906_v45 = vmax.f32 %v2844_v0, 0.0 }
 0x30a   :  { %v2909_v38 = vmax.f32 %v2855_v23, 0.0 }
 0x30b   :  { %v2907_v9 = vmax.f32 %v2847_v37, 0.0 }
 0x30c   :  { %v2923_v10 = vpack.c.bf16 %v2909_v38, %v2908_v59 }
 0x30d   :  { %v2922_v1 = vpack.c.bf16 %v2907_v9, %v2906_v45  ;;  %v7646_v11 = vpop.f32.mrb[68].mxu1 }
 0x30e   :  { %2931 = vst [vmem:[#allocation6 + $0x8] sm:$0xff] %v2923_v10  ;;  %v2868_v2 = vadd.f32 %v7646_v11, %v9201_v63  ;;  %v2859_v33 = vpop.f32.mrb[69].mxu1 }
 0x30f   :  { %2930 = vst [vmem:[#allocation6] sm:$0xff] %v2922_v1  ;;  %v2860_v54 = vadd.f32 %v2859_v33, %v9195_v22  ;;  %v7647_v29 = vpop.f32.mrb[70].mxu1 }
 0x310   :  { %v2871_v53 = vadd.f32 %v7647_v29, %v9204_v34  ;;  %v2862_v49 = vpop.f32.mrb[71].mxu1  ;;  %v2912_v58 = vmax.f32 %v2868_v2, 0.0 }
 0x311   :  { %v2863_v5 = vadd.f32 %v2862_v49, %v9198_v6  ;;  %v2910_v43 = vmax.f32 %v2860_v54, 0.0 }
 0x312   :  { %v2913_v4 = vmax.f32 %v2871_v53, 0.0 }
 0x313   :  { %v2911_v24 = vmax.f32 %v2863_v5, 0.0 }
 0x314   :  { %v2925_v36 = vpack.c.bf16 %v2913_v4, %v2912_v58 }
 0x315   :  { %v2924_v39 = vpack.c.bf16 %v2911_v24, %v2910_v43  ;;  %v7650_v17 = vpop.f32.mrb[72].mxu1 }
 0x316   :  { %2933 = vst [vmem:[#allocation6 + $0x18] sm:$0xff] %v2925_v36  ;;  %v2884_v50 = vadd.f32 %v7650_v17, %v2787_v62  ;;  %v2875_v63 = vpop.f32.mrb[73].mxu1 }
 0x317   :  { %2932 = vst [vmem:[#allocation6 + $0x10] sm:$0xff] %v2924_v39  ;;  %v2876_v18 = vadd.f32 %v2875_v63, %v9207_v35  ;;  %v7651_v22 = vpop.f32.mrb[74].mxu1 }
 0x318   :  { %v2887_v7 = vadd.f32 %v7651_v22, %v9214_v40  ;;  %v2878_v34 = vpop.f32.mrb[75].mxu1  ;;  %v2916_v6 = vmax.f32 %v2884_v50, 0.0 }
 0x319   :  { %v2879_v32 = vadd.f32 %v2878_v34, %v9210_v26  ;;  %v2914_v55 = vmax.f32 %v2876_v18, 0.0 }
 0x31a   :  { %v2917_v41 = vmax.f32 %v2887_v7, 0.0 }
 0x31b   :  { %v2915_v28 = vmax.f32 %v2879_v32, 0.0 }
 0x31c   :  { %v2927_v57 = vpack.c.bf16 %v2917_v41, %v2916_v6 }
 0x31d   :  { %v2926_v14 = vpack.c.bf16 %v2915_v28, %v2914_v55  ;;  %v7654_v48 = vpop.f32.mrb[76].mxu1 }
 0x31e   :  { %2935 = vst [vmem:[#allocation6 + $0x28] sm:$0xff] %v2927_v57  ;;  %v2900_v21 = vadd.f32 %v7654_v48, %v2803_v13  ;;  %v2891_v62 = vpop.f32.mrb[77].mxu1 }
 0x31f   :  { %2934 = vst [vmem:[#allocation6 + $0x20] sm:$0xff] %v2926_v14  ;;  %v2892_v52 = vadd.f32 %v2891_v62, %v9217_v27  ;;  %v7655_v35 = vpop.f32.mrb[78].mxu1 }
 0x320   :  { %v2903_v15 = vadd.f32 %v7655_v35, %v2806_v25  ;;  %v2894_v31 = vpop.f32.mrb[79].mxu1  ;;  %v2920_v44 = vmax.f32 %v2900_v21, 0.0 }
 0x321   :  { %v2895_v40 = vadd.f32 %v2894_v31, %v9220_v56  ;;  %v2918_v42 = vmax.f32 %v2892_v52, 0.0 }
 0x322   :  { %v2921_v26 = vmax.f32 %v2903_v15, 0.0 }
 0x323   :  { %v2919_v16 = vmax.f32 %v2895_v40, 0.0 }
 0x324   :  { %v2929_v12 = vpack.c.bf16 %v2921_v26, %v2920_v44 }
 0x325   :  { %v2928_v46 = vpack.c.bf16 %v2919_v16, %v2918_v42 }
 0x326   :  { %2937 = vst [vmem:[#allocation6 + $0x38] sm:$0xff] %v2929_v12 }
 0x327   :  { %2936 = vst [vmem:[#allocation6 + $0x30] sm:$0xff] %v2928_v46 }
 0x328   :  { %7998 = dma.done.wait [#allocation3], 131072 }
 0x329   :  { %7999 = vsyncadd [#allocation3], 4294836224  ;;  %v9569_v47 = vmov 0   ;;  %v2963_v27 = vld [vmem:[#allocation2 + $0x88] sm:$0xff]  ;;  %v2962_v51 = vld [vmem:[#allocation2 + $0x80] sm:$0xff] }
 0x32a   :  { %3013 = vmatprep.mubr.bf16.mxu0 %v9569_v47  ;;  %3054 = vmatprep.mubr.bf16.mxu1 %v9569_v47  ;;  %v2945_v30 = vld [vmem:[#allocation2 + $0x8] sm:$0xff]  ;;  %v2944_v56 = vld [vmem:[#allocation2] sm:$0xff]  ;;  %v2965_v60 = vld [vmem:[#allocation2 + $0x98] sm:$0xff] }
 0x32b   :  { %2981 = vmatprep.subr.bf16.mxu0 %v2963_v27  ;;  %3022 = vmatprep.subr.bf16.mxu1 %v2945_v30  ;;  %v2947_v19 = vld [vmem:[#allocation2 + $0x18] sm:$0xff]  ;;  %v2964_v3 = vld [vmem:[#allocation2 + $0x90] sm:$0xff]  ;;  %v2967_v61 = vld [vmem:[#allocation2 + $0xa8] sm:$0xff] }
 0x32c   :  { %2982 = vmatpush1.bf16.msra.mxu0 %v2962_v51  ;;  %3023 = vmatpush1.bf16.msra.mxu1 %v2944_v56  ;;  %v2946_v0 = vld [vmem:[#allocation2 + $0x10] sm:$0xff]  ;;  %v2949_v20 = vld [vmem:[#allocation2 + $0x28] sm:$0xff]  ;;  %v2966_v23 = vld [vmem:[#allocation2 + $0xa0] sm:$0xff] }
 0x32d   :  { %2983 = vmatprep.subr.bf16.mxu0 %v2965_v60  ;;  %3024 = vmatprep.subr.bf16.mxu1 %v2947_v19  ;;  %v2948_v8 = vld [vmem:[#allocation2 + $0x20] sm:$0xff]  ;;  %v2969_v13 = vld [vmem:[#allocation2 + $0xb8] sm:$0xff]  ;;  %v2968_v59 = vld [vmem:[#allocation2 + $0xb0] sm:$0xff] }
 0x32e   :  { %v2951_v37 = vld [vmem:[#allocation2 + $0x38] sm:$0xff]  ;;  %v2950_v38 = vld [vmem:[#allocation2 + $0x30] sm:$0xff]  ;;  %v2971_v25 = vld [vmem:[#allocation2 + $0xc8] sm:$0xff] }
 0x32f   :  { %v2953_v45 = vld [vmem:[#allocation2 + $0x48] sm:$0xff]  ;;  %v2970_v9 = vld [vmem:[#allocation2 + $0xc0] sm:$0xff]  ;;  %v2973_v1 = vld [vmem:[#allocation2 + $0xd8] sm:$0xff] }
 0x330   :  { %2984 = vmatpush1.bf16.msra.mxu0 %v2964_v3  ;;  %3025 = vmatpush1.bf16.msra.mxu1 %v2946_v0  ;;  %v2952_v10 = vld [vmem:[#allocation2 + $0x40] sm:$0xff]  ;;  %v2955_v11 = vld [vmem:[#allocation2 + $0x58] sm:$0xff]  ;;  %v2972_v2 = vld [vmem:[#allocation2 + $0xd0] sm:$0xff] }
 0x331   :  { %2985 = vmatprep.subr.bf16.mxu0 %v2967_v61  ;;  %3026 = vmatprep.subr.bf16.mxu1 %v2949_v20  ;;  %v2954_v33 = vld [vmem:[#allocation2 + $0x50] sm:$0xff]  ;;  %v2975_v54 = vld [vmem:[#allocation2 + $0xe8] sm:$0xff]  ;;  %v2974_v53 = vld [vmem:[#allocation2 + $0xe0] sm:$0xff] }
 0x332   :  { %v2957_v29 = vld [vmem:[#allocation2 + $0x68] sm:$0xff]  ;;  %v2956_v49 = vld [vmem:[#allocation2 + $0x60] sm:$0xff]  ;;  %v2977_v5 = vld [vmem:[#allocation2 + $0xf8] sm:$0xff] }
 0x333   :  { %v2959_v58 = vld [vmem:[#allocation2 + $0x78] sm:$0xff]  ;;  %v2976_v43 = vld [vmem:[#allocation2 + $0xf0] sm:$0xff]  ;;  %v3066_v36 = vld [vmem:[#allocation2 + $0x108] sm:$0xff] }
 0x334   :  { %2986 = vmatpush1.bf16.msra.mxu0 %v2966_v23  ;;  %3027 = vmatpush1.bf16.msra.mxu1 %v2948_v8  ;;  %v2960_v4 = vld [vmem:[#allocation6] sm:$0x2]  ;;  %v2958_v24 = vld [vmem:[#allocation2 + $0x70] sm:$0xff]  ;;  %v3130_v39 = vld [vmem:[#allocation2 + $0x188] sm:$0xff] }
 0x335   :  { %2987 = vmatprep.subr.bf16.mxu0 %v2969_v13  ;;  %3028 = vmatprep.subr.bf16.mxu1 %v2951_v37  ;;  %v2979_v17 = vrot.slane %v2960_v4, 1  ;;  %v2943_v50 = vld [vmem:[#allocation6] sm:$0x1]  ;;  %v3065_v63 = vld [vmem:[#allocation2 + $0x100] sm:$0xff]  ;;  %v3067_v34 = vld [vmem:[#allocation2 + $0x110] sm:$0xff] }
 0x336   :  { %v3129_v18 = vld [vmem:[#allocation2 + $0x180] sm:$0xff]  ;;  %v3068_v22 = vld [vmem:[#allocation2 + $0x118] sm:$0xff]  ;;  %v3131_v32 = vld [vmem:[#allocation2 + $0x190] sm:$0xff] }
 0x337   :  { %v3132_v7 = vld [vmem:[#allocation2 + $0x198] sm:$0xff]  ;;  %v3070_v6 = vld [vmem:[#allocation2 + $0x128] sm:$0xff]  ;;  %v3069_v55 = vld [vmem:[#allocation2 + $0x120] sm:$0xff] }
 0x338   :  { %2988 = vmatpush1.bf16.msra.mxu0 %v2968_v59  ;;  %3029 = vmatpush1.bf16.msra.mxu1 %v2950_v38  ;;  %v3134_v41 = vld [vmem:[#allocation2 + $0x1a8] sm:$0xff]  ;;  %v3133_v28 = vld [vmem:[#allocation2 + $0x1a0] sm:$0xff]  ;;  %v3072_v57 = vld [vmem:[#allocation2 + $0x138] sm:$0xff] }
 0x339   :  { %2989 = vmatprep.subr.bf16.mxu0 %v2971_v25  ;;  %3030 = vmatprep.subr.bf16.mxu1 %v2953_v45  ;;  %v3136_v14 = vld [vmem:[#allocation2 + $0x1b8] sm:$0xff]  ;;  %v3071_v48 = vld [vmem:[#allocation2 + $0x130] sm:$0xff]  ;;  %v3074_v62 = vld [vmem:[#allocation2 + $0x148] sm:$0xff] }
 0x33a   :  { %v3135_v21 = vld [vmem:[#allocation2 + $0x1b0] sm:$0xff]  ;;  %v3138_v52 = vld [vmem:[#allocation2 + $0x1c8] sm:$0xff]  ;;  %v3073_v35 = vld [vmem:[#allocation2 + $0x140] sm:$0xff] }
 0x33b   :  { %v3137_v15 = vld [vmem:[#allocation2 + $0x1c0] sm:$0xff]  ;;  %v3076_v31 = vld [vmem:[#allocation2 + $0x158] sm:$0xff]  ;;  %v3075_v44 = vld [vmem:[#allocation2 + $0x150] sm:$0xff] }
 0x33c   :  { %2990 = vmatpush1.bf16.msra.mxu0 %v2970_v9  ;;  %3031 = vmatpush1.bf16.msra.mxu1 %v2952_v10  ;;  %v3140_v40 = vld [vmem:[#allocation2 + $0x1d8] sm:$0xff]  ;;  %v3139_v26 = vld [vmem:[#allocation2 + $0x1d0] sm:$0xff]  ;;  %v3078_v42 = vld [vmem:[#allocation2 + $0x168] sm:$0xff] }
 0x33d   :  { %2991 = vmatprep.subr.bf16.mxu0 %v2973_v1  ;;  %3032 = vmatprep.subr.bf16.mxu1 %v2955_v11  ;;  %v3142_v16 = vld [vmem:[#allocation2 + $0x1e8] sm:$0xff]  ;;  %v3077_v12 = vld [vmem:[#allocation2 + $0x160] sm:$0xff]  ;;  %v3080_v27 = vld [vmem:[#allocation2 + $0x178] sm:$0xff] }
 0x33e   :  { %v3141_v46 = vld [vmem:[#allocation2 + $0x1e0] sm:$0xff]  ;;  %v3144_v30 = vld [vmem:[#allocation2 + $0x1f8] sm:$0xff]  ;;  %v3079_v60 = vld [vmem:[#allocation2 + $0x170] sm:$0xff] }
 0x33f   :  { %v3063_v51 = vld [vmem:[#allocation6] sm:$0x4]  ;;  %v3127_v56 = vld [vmem:[#allocation6] sm:$0x8]  ;;  %v3143_v19 = vld [vmem:[#allocation2 + $0x1f0] sm:$0xff] }
 0x340   :  { %2992 = vmatpush1.bf16.msra.mxu0 %v2972_v2  ;;  %3033 = vmatpush1.bf16.msra.mxu1 %v2954_v33  ;;  %v3194_v3 = vld [vmem:[#allocation2 + $0x208] sm:$0xff]  ;;  %v3082_v61 = vrot.slane %v3063_v51, 2  ;;  %v3146_v20 = vrot.slane %v3127_v56, 3  ;;  %v3193_v23 = vld [vmem:[#allocation2 + $0x200] sm:$0xff]  ;;  %v3196_v13 = vld [vmem:[#allocation2 + $0x218] sm:$0xff] }
 0x341   :  { %2993 = vmatprep.subr.bf16.mxu0 %v2975_v54  ;;  %3034 = vmatprep.subr.bf16.mxu1 %v2957_v29  ;;  %v3258_v0 = vld [vmem:[#allocation2 + $0x288] sm:$0xff]  ;;  %v3257_v8 = vld [vmem:[#allocation2 + $0x280] sm:$0xff]  ;;  %v3260_v37 = vld [vmem:[#allocation2 + $0x298] sm:$0xff] }
 0x342   :  { %v3195_v59 = vld [vmem:[#allocation2 + $0x210] sm:$0xff]  ;;  %v3198_v25 = vld [vmem:[#allocation2 + $0x228] sm:$0xff]  ;;  %v3197_v9 = vld [vmem:[#allocation2 + $0x220] sm:$0xff] }
 0x343   :  { %v3259_v38 = vld [vmem:[#allocation2 + $0x290] sm:$0xff]  ;;  %v3262_v45 = vld [vmem:[#allocation2 + $0x2a8] sm:$0xff]  ;;  %v3261_v10 = vld [vmem:[#allocation2 + $0x2a0] sm:$0xff] }
 0x344   :  { %2994 = vmatpush1.bf16.msra.mxu0 %v2974_v53  ;;  %3035 = vmatpush1.bf16.msra.mxu1 %v2956_v49  ;;  %v3200_v1 = vld [vmem:[#allocation2 + $0x238] sm:$0xff]  ;;  %v3199_v2 = vld [vmem:[#allocation2 + $0x230] sm:$0xff]  ;;  %v3202_v54 = vld [vmem:[#allocation2 + $0x248] sm:$0xff] }
 0x345   :  { %2995 = vmatprep.subr.bf16.mxu0 %v2977_v5  ;;  %3036 = vmatprep.subr.bf16.mxu1 %v2959_v58  ;;  %v3264_v11 = vld [vmem:[#allocation2 + $0x2b8] sm:$0xff]  ;;  %v3263_v33 = vld [vmem:[#allocation2 + $0x2b0] sm:$0xff]  ;;  %v3266_v29 = vld [vmem:[#allocation2 + $0x2c8] sm:$0xff] }
 0x346   :  { %v3201_v53 = vld [vmem:[#allocation2 + $0x240] sm:$0xff]  ;;  %v3204_v5 = vld [vmem:[#allocation2 + $0x258] sm:$0xff]  ;;  %v3203_v4 = vld [vmem:[#allocation2 + $0x250] sm:$0xff] }
 0x347   :  { %v3265_v49 = vld [vmem:[#allocation2 + $0x2c0] sm:$0xff]  ;;  %v3268_v58 = vld [vmem:[#allocation2 + $0x2d8] sm:$0xff]  ;;  %v3331_v56 = vld [vmem:[#allocation2 + $0x350] sm:$0xff] }
 0x348   :  { %2996 = vmatpush1.bf16.msra.mxu0 %v2976_v43  ;;  %3037 = vmatpush1.bf16.msra.mxu1 %v2958_v24  ;;  %v3267_v43 = vld [vmem:[#allocation2 + $0x2d0] sm:$0xff]  ;;  %v3206_v24 = vld [vmem:[#allocation2 + $0x268] sm:$0xff]  ;;  %v3396_v51 = vld [vmem:[#allocation2 + $0x3d8] sm:$0xff] }
 0x349   :  { %3084 = vmatprep.subr.bf16.mxu0 %v3066_v36  ;;  %3148 = vmatprep.subr.bf16.mxu1 %v3130_v39  ;;  %v3270_v36 = vld [vmem:[#allocation2 + $0x2e8] sm:$0xff]  ;;  %v3205_v39 = vld [vmem:[#allocation2 + $0x260] sm:$0xff] }
 0x34b   :  { %3014 = vmatmul.mubr.bf16.vlgmr.msra.gmra.mrb[80].mxu0 %v2979_v17  ;;  %3055 = vmatmul.mubr.bf16.vlgmr.msra.gmra.mrb[80].mxu1 %v2943_v50  ;;  %v3269_v17 = vld [vmem:[#allocation2 + $0x2e0] sm:$0xff]  ;;  %v3208_v50 = vld [vmem:[#allocation2 + $0x278] sm:$0xff] }
 0x34c   :  { %3085 = vmatpush1.bf16.msra.mxu0 %v3065_v63  ;;  %3149 = vmatpush1.bf16.msra.mxu1 %v3129_v18  ;;  %v3272_v63 = vld [vmem:[#allocation2 + $0x2f8] sm:$0xff] }
 0x34d   :  { %3086 = vmatprep.subr.bf16.mxu0 %v3068_v22  ;;  %3150 = vmatprep.subr.bf16.mxu1 %v3132_v7  ;;  %v3191_v18 = vld [vmem:[#allocation6] sm:$0x10]  ;;  %v3255_v22 = vld [vmem:[#allocation6] sm:$0x20]  ;;  %v3207_v7 = vld [vmem:[#allocation2 + $0x270] sm:$0xff] }
 0x34e   :  { %3116 = vmatprep.mubr.bf16.mxu0 %v9569_v47  ;;  %3180 = vmatprep.mubr.bf16.mxu1 %v9569_v47 }
 0x350   :  { %3087 = vmatpush1.bf16.msra.mxu0 %v3067_v34  ;;  %3151 = vmatpush1.bf16.msra.mxu1 %v3131_v32  ;;  %v3271_v34 = vld [vmem:[#allocation2 + $0x2f0] sm:$0xff]  ;;  %v3322_v32 = vld [vmem:[#allocation2 + $0x308] sm:$0xff] }
 0x351   :  { %3088 = vmatprep.subr.bf16.mxu0 %v3070_v6  ;;  %3152 = vmatprep.subr.bf16.mxu1 %v3134_v41  ;;  %v3386_v6 = vld [vmem:[#allocation2 + $0x388] sm:$0xff]  ;;  %v3210_v41 = vrot.slane %v3191_v18, 4  ;;  %v3521_v18 = vld [vmem:[#allocation2 + $0x4d8] sm:$0xff] }
 0x354   :  { %3089 = vmatpush1.bf16.msra.mxu0 %v3069_v55  ;;  %3153 = vmatpush1.bf16.msra.mxu1 %v3133_v28  ;;  %v3274_v55 = vrot.slane %v3255_v22, 5  ;;  %v3321_v28 = vld [vmem:[#allocation2 + $0x300] sm:$0xff]  ;;  %v3459_v22 = vld [vmem:[#allocation2 + $0x450] sm:$0xff] }
 0x355   :  { %3090 = vmatprep.subr.bf16.mxu0 %v3072_v57  ;;  %3154 = vmatprep.subr.bf16.mxu1 %v3136_v14  ;;  %v3385_v57 = vld [vmem:[#allocation2 + $0x380] sm:$0xff]  ;;  %v3324_v14 = vld [vmem:[#allocation2 + $0x318] sm:$0xff] }
 0x358   :  { %3091 = vmatpush1.bf16.msra.mxu0 %v3071_v48  ;;  %3155 = vmatpush1.bf16.msra.mxu1 %v3135_v21  ;;  %v3388_v48 = vld [vmem:[#allocation2 + $0x398] sm:$0xff]  ;;  %v3323_v21 = vld [vmem:[#allocation2 + $0x310] sm:$0xff] }
 0x359   :  { %3092 = vmatprep.subr.bf16.mxu0 %v3074_v62  ;;  %3156 = vmatprep.subr.bf16.mxu1 %v3138_v52  ;;  %v3387_v62 = vld [vmem:[#allocation2 + $0x390] sm:$0xff]  ;;  %v3326_v52 = vld [vmem:[#allocation2 + $0x328] sm:$0xff] }
 0x35c   :  { %3093 = vmatpush1.bf16.msra.mxu0 %v3073_v35  ;;  %3157 = vmatpush1.bf16.msra.mxu1 %v3137_v15  ;;  %v3390_v35 = vld [vmem:[#allocation2 + $0x3a8] sm:$0xff]  ;;  %v3325_v15 = vld [vmem:[#allocation2 + $0x320] sm:$0xff] }
 0x35d   :  { %3094 = vmatprep.subr.bf16.mxu0 %v3076_v31  ;;  %3158 = vmatprep.subr.bf16.mxu1 %v3140_v40  ;;  %v3389_v31 = vld [vmem:[#allocation2 + $0x3a0] sm:$0xff]  ;;  %v3328_v40 = vld [vmem:[#allocation2 + $0x338] sm:$0xff] }
 0x360   :  { %3095 = vmatpush1.bf16.msra.mxu0 %v3075_v44  ;;  %3159 = vmatpush1.bf16.msra.mxu1 %v3139_v26  ;;  %v3392_v44 = vld [vmem:[#allocation2 + $0x3b8] sm:$0xff]  ;;  %v3327_v26 = vld [vmem:[#allocation2 + $0x330] sm:$0xff] }
 0x361   :  { %3096 = vmatprep.subr.bf16.mxu0 %v3078_v42  ;;  %3160 = vmatprep.subr.bf16.mxu1 %v3142_v16  ;;  %v3391_v42 = vld [vmem:[#allocation2 + $0x3b0] sm:$0xff]  ;;  %v3330_v16 = vld [vmem:[#allocation2 + $0x348] sm:$0xff] }
 0x364   :  { %3097 = vmatpush1.bf16.msra.mxu0 %v3077_v12  ;;  %3161 = vmatpush1.bf16.msra.mxu1 %v3141_v46  ;;  %v3394_v12 = vld [vmem:[#allocation2 + $0x3c8] sm:$0xff]  ;;  %v3329_v46 = vld [vmem:[#allocation2 + $0x340] sm:$0xff] }
 0x365   :  { %3098 = vmatprep.subr.bf16.mxu0 %v3080_v27  ;;  %3162 = vmatprep.subr.bf16.mxu1 %v3144_v30  ;;  %v3393_v27 = vld [vmem:[#allocation2 + $0x3c0] sm:$0xff]  ;;  %v3332_v30 = vld [vmem:[#allocation2 + $0x358] sm:$0xff] }
 0x368   :  { %3099 = vmatpush1.bf16.msra.mxu0 %v3079_v60  ;;  %3163 = vmatpush1.bf16.msra.mxu1 %v3143_v19  ;;  %v3395_v60 = vld [vmem:[#allocation2 + $0x3d0] sm:$0xff]  ;;  %v3334_v19 = vld [vmem:[#allocation2 + $0x368] sm:$0xff] }
 0x369   :  { %3212 = vmatprep.subr.bf16.mxu0 %v3194_v3  ;;  %3276 = vmatprep.subr.bf16.mxu1 %v3258_v0  ;;  %v3398_v3 = vld [vmem:[#allocation2 + $0x3e8] sm:$0xff]  ;;  %v3333_v0 = vld [vmem:[#allocation2 + $0x360] sm:$0xff] }
 0x36b   :  { %3117 = vmatmul.mubr.bf16.vlgmr.msra.gmra.mrb[84].mxu0 %v3082_v61  ;;  %3181 = vmatmul.mubr.bf16.vlgmr.msra.gmra.mrb[84].mxu1 %v3146_v20  ;;  %v3397_v61 = vld [vmem:[#allocation2 + $0x3e0] sm:$0xff]  ;;  %v3336_v20 = vld [vmem:[#allocation2 + $0x378] sm:$0xff] }
 0x36c   :  { %3213 = vmatpush1.bf16.msra.mxu0 %v3193_v23  ;;  %3277 = vmatpush1.bf16.msra.mxu1 %v3257_v8  ;;  %v3400_v23 = vld [vmem:[#allocation2 + $0x3f8] sm:$0xff] }
 0x36d   :  { %3214 = vmatprep.subr.bf16.mxu0 %v3196_v13  ;;  %3278 = vmatprep.subr.bf16.mxu1 %v3260_v37  ;;  %v3319_v8 = vld [vmem:[#allocation6] sm:$0x40]  ;;  %v3383_v13 = vld [vmem:[#allocation6] sm:$0x80]  ;;  %v3335_v37 = vld [vmem:[#allocation2 + $0x370] sm:$0xff] }
 0x36e   :  { %3244 = vmatprep.mubr.bf16.mxu0 %v9569_v47  ;;  %3308 = vmatprep.mubr.bf16.mxu1 %v9569_v47 }
 0x370   :  { %3215 = vmatpush1.bf16.msra.mxu0 %v3195_v59  ;;  %3279 = vmatpush1.bf16.msra.mxu1 %v3259_v38  ;;  %v3399_v59 = vld [vmem:[#allocation2 + $0x3f0] sm:$0xff]  ;;  %v3450_v38 = vld [vmem:[#allocation2 + $0x408] sm:$0xff] }
 0x371   :  { %3216 = vmatprep.subr.bf16.mxu0 %v3198_v25  ;;  %3280 = vmatprep.subr.bf16.mxu1 %v3262_v45  ;;  %v3511_v25 = vld [vmem:[#allocation2 + $0x488] sm:$0xff]  ;;  %v3338_v45 = vrot.slane %v3319_v8, 6  ;;  %v3584_v8 = vld [vmem:[#allocation2 + $0x550] sm:$0xff] }
 0x374   :  { %3217 = vmatpush1.bf16.msra.mxu0 %v3197_v9  ;;  %3281 = vmatpush1.bf16.msra.mxu1 %v3261_v10  ;;  %v3402_v9 = vrot.slane %v3383_v13, 7  ;;  %v3449_v10 = vld [vmem:[#allocation2 + $0x400] sm:$0xff]  ;;  %v3648_v13 = vld [vmem:[#allocation2 + $0x5d0] sm:$0xff] }
 0x375   :  { %3218 = vmatprep.subr.bf16.mxu0 %v3200_v1  ;;  %3282 = vmatprep.subr.bf16.mxu1 %v3264_v11  ;;  %v3510_v1 = vld [vmem:[#allocation2 + $0x480] sm:$0xff]  ;;  %v3452_v11 = vld [vmem:[#allocation2 + $0x418] sm:$0xff] }
 0x378   :  { %3219 = vmatpush1.bf16.msra.mxu0 %v3199_v2  ;;  %3283 = vmatpush1.bf16.msra.mxu1 %v3263_v33  ;;  %v3513_v2 = vld [vmem:[#allocation2 + $0x498] sm:$0xff]  ;;  %v3451_v33 = vld [vmem:[#allocation2 + $0x410] sm:$0xff] }
 0x379   :  { %3220 = vmatprep.subr.bf16.mxu0 %v3202_v54  ;;  %3284 = vmatprep.subr.bf16.mxu1 %v3266_v29  ;;  %v3512_v54 = vld [vmem:[#allocation2 + $0x490] sm:$0xff]  ;;  %v3454_v29 = vld [vmem:[#allocation2 + $0x428] sm:$0xff] }
 0x37c   :  { %3221 = vmatpush1.bf16.msra.mxu0 %v3201_v53  ;;  %3285 = vmatpush1.bf16.msra.mxu1 %v3265_v49  ;;  %v3515_v53 = vld [vmem:[#allocation2 + $0x4a8] sm:$0xff]  ;;  %v3453_v49 = vld [vmem:[#allocation2 + $0x420] sm:$0xff] }
 0x37d   :  { %3222 = vmatprep.subr.bf16.mxu0 %v3204_v5  ;;  %3286 = vmatprep.subr.bf16.mxu1 %v3268_v58  ;;  %v3514_v5 = vld [vmem:[#allocation2 + $0x4a0] sm:$0xff]  ;;  %v3456_v58 = vld [vmem:[#allocation2 + $0x438] sm:$0xff] }
 0x380   :  { %3223 = vmatpush1.bf16.msra.mxu0 %v3203_v4  ;;  %3287 = vmatpush1.bf16.msra.mxu1 %v3267_v43  ;;  %v3517_v4 = vld [vmem:[#allocation2 + $0x4b8] sm:$0xff]  ;;  %v3455_v43 = vld [vmem:[#allocation2 + $0x430] sm:$0xff] }
 0x381   :  { %3224 = vmatprep.subr.bf16.mxu0 %v3206_v24  ;;  %3288 = vmatprep.subr.bf16.mxu1 %v3270_v36  ;;  %v3516_v24 = vld [vmem:[#allocation2 + $0x4b0] sm:$0xff]  ;;  %v3458_v36 = vld [vmem:[#allocation2 + $0x448] sm:$0xff] }
 0x384   :  { %3225 = vmatpush1.bf16.msra.mxu0 %v3205_v39  ;;  %3289 = vmatpush1.bf16.msra.mxu1 %v3269_v17  ;;  %v3519_v39 = vld [vmem:[#allocation2 + $0x4c8] sm:$0xff]  ;;  %v3457_v17 = vld [vmem:[#allocation2 + $0x440] sm:$0xff] }
 0x385   :  { %3226 = vmatprep.subr.bf16.mxu0 %v3208_v50  ;;  %3290 = vmatprep.subr.bf16.mxu1 %v3272_v63  ;;  %v3518_v50 = vld [vmem:[#allocation2 + $0x4c0] sm:$0xff]  ;;  %v3460_v63 = vld [vmem:[#allocation2 + $0x458] sm:$0xff] }
 0x388   :  { %3227 = vmatpush1.bf16.msra.mxu0 %v3207_v7  ;;  %3291 = vmatpush1.bf16.msra.mxu1 %v3271_v34  ;;  %v3520_v7 = vld [vmem:[#allocation2 + $0x4d0] sm:$0xff]  ;;  %v3462_v34 = vld [vmem:[#allocation2 + $0x468] sm:$0xff] }
 0x389   :  { %3340 = vmatprep.subr.bf16.mxu0 %v3322_v32  ;;  %3404 = vmatprep.subr.bf16.mxu1 %v3386_v6  ;;  %v3523_v32 = vld [vmem:[#allocation2 + $0x4e8] sm:$0xff]  ;;  %v3461_v6 = vld [vmem:[#allocation2 + $0x460] sm:$0xff] }
 0x38b   :  { %3245 = vmatmul.mubr.bf16.vlgmr.msra.gmra.mrb[88].mxu0 %v3210_v41  ;;  %3309 = vmatmul.mubr.bf16.vlgmr.msra.gmra.mrb[88].mxu1 %v3274_v55  ;;  %v3522_v41 = vld [vmem:[#allocation2 + $0x4e0] sm:$0xff]  ;;  %v3464_v55 = vld [vmem:[#allocation2 + $0x478] sm:$0xff] }
 0x38c   :  { %3341 = vmatpush1.bf16.msra.mxu0 %v3321_v28  ;;  %3405 = vmatpush1.bf16.msra.mxu1 %v3385_v57  ;;  %v3525_v28 = vld [vmem:[#allocation2 + $0x4f8] sm:$0xff]  ;;  %v3508_v57 = vld [vmem:[#allocation6 + $0x8] sm:$0x2] }
 0x38d   :  { %3342 = vmatprep.subr.bf16.mxu0 %v3324_v14  ;;  %3406 = vmatprep.subr.bf16.mxu1 %v3388_v48  ;;  %v3463_v14 = vld [vmem:[#allocation2 + $0x470] sm:$0xff] }
 0x38e   :  { %3372 = vmatprep.mubr.bf16.mxu0 %v9569_v47  ;;  %3436 = vmatprep.mubr.bf16.mxu1 %v9569_v47  ;;  %v3524_v48 = vld [vmem:[#allocation2 + $0x4f0] sm:$0xff] }
 0x390   :  { %3343 = vmatpush1.bf16.msra.mxu0 %v3323_v21  ;;  %3407 = vmatpush1.bf16.msra.mxu1 %v3387_v62  ;;  %v3575_v21 = vld [vmem:[#allocation2 + $0x508] sm:$0xff] }
 0x391   :  { %3344 = vmatprep.subr.bf16.mxu0 %v3326_v52  ;;  %3408 = vmatprep.subr.bf16.mxu1 %v3390_v35  ;;  %v3639_v62 = vld [vmem:[#allocation2 + $0x588] sm:$0xff]  ;;  %v3527_v52 = vrot.slane %v3508_v57, 1  ;;  %v3447_v35 = vld [vmem:[#allocation6 + $0x8] sm:$0x1]  ;;  %v3712_v57 = vld [vmem:[#allocation2 + $0x650] sm:$0xff] }
 0x394   :  { %3345 = vmatpush1.bf16.msra.mxu0 %v3325_v15  ;;  %3409 = vmatpush1.bf16.msra.mxu1 %v3389_v31  ;;  %v3574_v15 = vld [vmem:[#allocation2 + $0x500] sm:$0xff] }
 0x395   :  { %3346 = vmatprep.subr.bf16.mxu0 %v3328_v40  ;;  %3410 = vmatprep.subr.bf16.mxu1 %v3392_v44  ;;  %v3638_v31 = vld [vmem:[#allocation2 + $0x580] sm:$0xff]  ;;  %v3577_v40 = vld [vmem:[#allocation2 + $0x518] sm:$0xff] }
 0x396   :  { %v3641_v44 = vld [vmem:[#allocation2 + $0x598] sm:$0xff] }
 0x398   :  { %3347 = vmatpush1.bf16.msra.mxu0 %v3327_v26  ;;  %3411 = vmatpush1.bf16.msra.mxu1 %v3391_v42  ;;  %v3576_v26 = vld [vmem:[#allocation2 + $0x510] sm:$0xff] }
 0x399   :  { %3348 = vmatprep.subr.bf16.mxu0 %v3330_v16  ;;  %3412 = vmatprep.subr.bf16.mxu1 %v3394_v12  ;;  %v3640_v42 = vld [vmem:[#allocation2 + $0x590] sm:$0xff]  ;;  %v3579_v16 = vld [vmem:[#allocation2 + $0x528] sm:$0xff] }
 0x39a   :  { %v3643_v12 = vld [vmem:[#allocation2 + $0x5a8] sm:$0xff] }
 0x39c   :  { %3349 = vmatpush1.bf16.msra.mxu0 %v3329_v46  ;;  %3413 = vmatpush1.bf16.msra.mxu1 %v3393_v27  ;;  %v3578_v46 = vld [vmem:[#allocation2 + $0x520] sm:$0xff] }
 0x39d   :  { %3350 = vmatprep.subr.bf16.mxu0 %v3332_v30  ;;  %3414 = vmatprep.subr.bf16.mxu1 %v3396_v51  ;;  %v3642_v27 = vld [vmem:[#allocation2 + $0x5a0] sm:$0xff]  ;;  %v3581_v30 = vld [vmem:[#allocation2 + $0x538] sm:$0xff] }
 0x39e   :  { %v3645_v51 = vld [vmem:[#allocation2 + $0x5b8] sm:$0xff] }
 0x3a0   :  { %3351 = vmatpush1.bf16.msra.mxu0 %v3331_v56  ;;  %3415 = vmatpush1.bf16.msra.mxu1 %v3395_v60  ;;  %v3580_v56 = vld [vmem:[#allocation2 + $0x530] sm:$0xff] }
 0x3a1   :  { %3352 = vmatprep.subr.bf16.mxu0 %v3334_v19  ;;  %3416 = vmatprep.subr.bf16.mxu1 %v3398_v3  ;;  %v3644_v60 = vld [vmem:[#allocation2 + $0x5b0] sm:$0xff]  ;;  %v3583_v19 = vld [vmem:[#allocation2 + $0x548] sm:$0xff] }
 0x3a2   :  { %v3647_v3 = vld [vmem:[#allocation2 + $0x5c8] sm:$0xff] }
 0x3a4   :  { %3353 = vmatpush1.bf16.msra.mxu0 %v3333_v0  ;;  %3417 = vmatpush1.bf16.msra.mxu1 %v3397_v61  ;;  %v3582_v0 = vld [vmem:[#allocation2 + $0x540] sm:$0xff] }
 0x3a5   :  { %3354 = vmatprep.subr.bf16.mxu0 %v3336_v20  ;;  %3418 = vmatprep.subr.bf16.mxu1 %v3400_v23  ;;  %v3646_v61 = vld [vmem:[#allocation2 + $0x5c0] sm:$0xff]  ;;  %v3585_v20 = vld [vmem:[#allocation2 + $0x558] sm:$0xff] }
 0x3a6   :  { %v3649_v23 = vld [vmem:[#allocation2 + $0x5d8] sm:$0xff] }
 0x3a8   :  { %3355 = vmatpush1.bf16.msra.mxu0 %v3335_v37  ;;  %3419 = vmatpush1.bf16.msra.mxu1 %v3399_v59  ;;  %v3587_v37 = vld [vmem:[#allocation2 + $0x568] sm:$0xff] }
 0x3a9   :  { %3465 = vmatprep.subr.bf16.mxu0 %v3450_v38  ;;  %3529 = vmatprep.subr.bf16.mxu1 %v3511_v25  ;;  %v3651_v59 = vld [vmem:[#allocation2 + $0x5e8] sm:$0xff]  ;;  %v3586_v38 = vld [vmem:[#allocation2 + $0x560] sm:$0xff] }
 0x3aa   :  { %v3650_v25 = vld [vmem:[#allocation2 + $0x5e0] sm:$0xff] }
 0x3ab   :  { %3373 = vmatmul.mubr.bf16.vlgmr.msra.gmra.mrb[92].mxu0 %v3338_v45  ;;  %3437 = vmatmul.mubr.bf16.vlgmr.msra.gmra.mrb[92].mxu1 %v3402_v9  ;;  %v3589_v45 = vld [vmem:[#allocation2 + $0x578] sm:$0xff] }
 0x3ac   :  { %3466 = vmatpush1.bf16.msra.mxu0 %v3449_v10  ;;  %3530 = vmatpush1.bf16.msra.mxu1 %v3510_v1  ;;  %v3653_v9 = vld [vmem:[#allocation2 + $0x5f8] sm:$0xff]  ;;  %v3572_v10 = vld [vmem:[#allocation6 + $0x8] sm:$0x4]  ;;  %v3636_v1 = vld [vmem:[#allocation6 + $0x8] sm:$0x8] }
 0x3ad   :  { %3467 = vmatprep.subr.bf16.mxu0 %v3452_v11  ;;  %3531 = vmatprep.subr.bf16.mxu1 %v3513_v2  ;;  %v3588_v11 = vld [vmem:[#allocation2 + $0x570] sm:$0xff] }
 0x3ae   :  { %3497 = vmatprep.mubr.bf16.mxu0 %v9569_v47  ;;  %3561 = vmatprep.mubr.bf16.mxu1 %v9569_v47  ;;  %v3652_v2 = vld [vmem:[#allocation2 + $0x5f0] sm:$0xff] }
 0x3b0   :  { %3468 = vmatpush1.bf16.msra.mxu0 %v3451_v33  ;;  %3532 = vmatpush1.bf16.msra.mxu1 %v3512_v54  ;;  %v3703_v33 = vld [vmem:[#allocation2 + $0x608] sm:$0xff] }
 0x3b1   :  { %3469 = vmatprep.subr.bf16.mxu0 %v3454_v29  ;;  %3533 = vmatprep.subr.bf16.mxu1 %v3515_v53  ;;  %v3767_v54 = vld [vmem:[#allocation2 + $0x688] sm:$0xff]  ;;  %v3591_v29 = vrot.slane %v3572_v10, 2  ;;  %v3655_v53 = vrot.slane %v3636_v1, 3  ;;  %v3905_v10 = vld [vmem:[#allocation2 + $0x7d8] sm:$0xff]  ;;  %v3840_v1 = vld [vmem:[#allocation2 + $0x750] sm:$0xff] }
 0x3b4   :  { %3470 = vmatpush1.bf16.msra.mxu0 %v3453_v49  ;;  %3534 = vmatpush1.bf16.msra.mxu1 %v3514_v5  ;;  %v3702_v49 = vld [vmem:[#allocation2 + $0x600] sm:$0xff] }
 0x3b5   :  { %3471 = vmatprep.subr.bf16.mxu0 %v3456_v58  ;;  %3535 = vmatprep.subr.bf16.mxu1 %v3517_v4  ;;  %v3766_v5 = vld [vmem:[#allocation2 + $0x680] sm:$0xff]  ;;  %v3705_v58 = vld [vmem:[#allocation2 + $0x618] sm:$0xff] }
 0x3b6   :  { %v3769_v4 = vld [vmem:[#allocation2 + $0x698] sm:$0xff] }
 0x3b8   :  { %3472 = vmatpush1.bf16.msra.mxu0 %v3455_v43  ;;  %3536 = vmatpush1.bf16.msra.mxu1 %v3516_v24  ;;  %v3704_v43 = vld [vmem:[#allocation2 + $0x610] sm:$0xff] }
 0x3b9   :  { %3473 = vmatprep.subr.bf16.mxu0 %v3458_v36  ;;  %3537 = vmatprep.subr.bf16.mxu1 %v3519_v39  ;;  %v3768_v24 = vld [vmem:[#allocation2 + $0x690] sm:$0xff]  ;;  %v3707_v36 = vld [vmem:[#allocation2 + $0x628] sm:$0xff] }
 0x3ba   :  { %v3771_v39 = vld [vmem:[#allocation2 + $0x6a8] sm:$0xff] }
 0x3bc   :  { %3474 = vmatpush1.bf16.msra.mxu0 %v3457_v17  ;;  %3538 = vmatpush1.bf16.msra.mxu1 %v3518_v50  ;;  %v3706_v17 = vld [vmem:[#allocation2 + $0x620] sm:$0xff] }
 0x3bd   :  { %3475 = vmatprep.subr.bf16.mxu0 %v3460_v63  ;;  %3539 = vmatprep.subr.bf16.mxu1 %v3521_v18  ;;  %v3770_v50 = vld [vmem:[#allocation2 + $0x6a0] sm:$0xff]  ;;  %v3709_v63 = vld [vmem:[#allocation2 + $0x638] sm:$0xff] }
 0x3be   :  { %v3773_v18 = vld [vmem:[#allocation2 + $0x6b8] sm:$0xff] }
 0x3c0   :  { %3476 = vmatpush1.bf16.msra.mxu0 %v3459_v22  ;;  %3540 = vmatpush1.bf16.msra.mxu1 %v3520_v7  ;;  %v3708_v22 = vld [vmem:[#allocation2 + $0x630] sm:$0xff] }
 0x3c1   :  { %3477 = vmatprep.subr.bf16.mxu0 %v3462_v34  ;;  %3541 = vmatprep.subr.bf16.mxu1 %v3523_v32  ;;  %v3772_v7 = vld [vmem:[#allocation2 + $0x6b0] sm:$0xff]  ;;  %v3711_v34 = vld [vmem:[#allocation2 + $0x648] sm:$0xff] }
 0x3c2   :  { %v3775_v32 = vld [vmem:[#allocation2 + $0x6c8] sm:$0xff] }
 0x3c4   :  { %3478 = vmatpush1.bf16.msra.mxu0 %v3461_v6  ;;  %3542 = vmatpush1.bf16.msra.mxu1 %v3522_v41  ;;  %v3710_v6 = vld [vmem:[#allocation2 + $0x640] sm:$0xff] }
 0x3c5   :  { %3479 = vmatprep.subr.bf16.mxu0 %v3464_v55  ;;  %3543 = vmatprep.subr.bf16.mxu1 %v3525_v28  ;;  %v3774_v41 = vld [vmem:[#allocation2 + $0x6c0] sm:$0xff]  ;;  %v3713_v55 = vld [vmem:[#allocation2 + $0x658] sm:$0xff] }
 0x3c6   :  { %v3777_v28 = vld [vmem:[#allocation2 + $0x6d8] sm:$0xff] }
 0x3c8   :  { %3480 = vmatpush1.bf16.msra.mxu0 %v3463_v14  ;;  %3544 = vmatpush1.bf16.msra.mxu1 %v3524_v48  ;;  %v3776_v14 = vld [vmem:[#allocation2 + $0x6d0] sm:$0xff]  ;;  %v3715_v48 = vld [vmem:[#allocation2 + $0x668] sm:$0xff] }
 0x3c9   :  { %3593 = vmatprep.subr.bf16.mxu0 %v3575_v21  ;;  %3657 = vmatprep.subr.bf16.mxu1 %v3639_v62  ;;  %v3779_v21 = vld [vmem:[#allocation2 + $0x6e8] sm:$0xff]  ;;  %v3714_v62 = vld [vmem:[#allocation2 + $0x660] sm:$0xff] }
 0x3cb   :  { %3498 = vmatmul.mubr.bf16.vlgmr.msra.gmra.mrb[96].mxu0 %v3447_v35  ;;  %3562 = vmatmul.mubr.bf16.vlgmr.msra.gmra.mrb[96].mxu1 %v3527_v52  ;;  %v3778_v52 = vld [vmem:[#allocation2 + $0x6e0] sm:$0xff]  ;;  %v3717_v35 = vld [vmem:[#allocation2 + $0x678] sm:$0xff] }
 0x3cc   :  { %3594 = vmatpush1.bf16.msra.mxu0 %v3574_v15  ;;  %3658 = vmatpush1.bf16.msra.mxu1 %v3638_v31  ;;  %v3781_v15 = vld [vmem:[#allocation2 + $0x6f8] sm:$0xff]  ;;  %v3700_v31 = vld [vmem:[#allocation6 + $0x8] sm:$0x10] }
 0x3cd   :  { %3595 = vmatprep.subr.bf16.mxu0 %v3577_v40  ;;  %3659 = vmatprep.subr.bf16.mxu1 %v3641_v44  ;;  %v3764_v40 = vld [vmem:[#allocation6 + $0x8] sm:$0x20]  ;;  %v3716_v44 = vld [vmem:[#allocation2 + $0x670] sm:$0xff] }
 0x3ce   :  { %3625 = vmatprep.mubr.bf16.mxu0 %v9569_v47  ;;  %3689 = vmatprep.mubr.bf16.mxu1 %v9569_v47 }
 0x3d0   :  { %3596 = vmatpush1.bf16.msra.mxu0 %v3576_v26  ;;  %3660 = vmatpush1.bf16.msra.mxu1 %v3640_v42  ;;  %v3780_v26 = vld [vmem:[#allocation2 + $0x6f0] sm:$0xff]  ;;  %v3831_v42 = vld [vmem:[#allocation2 + $0x708] sm:$0xff] }
 0x3d1   :  { %3597 = vmatprep.subr.bf16.mxu0 %v3579_v16  ;;  %3661 = vmatprep.subr.bf16.mxu1 %v3643_v12  ;;  %v3895_v16 = vld [vmem:[#allocation2 + $0x788] sm:$0xff]  ;;  %v3719_v12 = vrot.slane %v3700_v31, 4  ;;  %v4023_v31 = vld [vmem:[#allocation2 + $0x8a0] sm:$0xff] }
 0x3d4   :  { %3598 = vmatpush1.bf16.msra.mxu0 %v3578_v46  ;;  %3662 = vmatpush1.bf16.msra.mxu1 %v3642_v27  ;;  %v3783_v46 = vrot.slane %v3764_v40, 5  ;;  %v3830_v27 = vld [vmem:[#allocation2 + $0x700] sm:$0xff]  ;;  %v3965_v40 = vld [vmem:[#allocation2 + $0x838] sm:$0xff] }
 0x3d5   :  { %3599 = vmatprep.subr.bf16.mxu0 %v3581_v30  ;;  %3663 = vmatprep.subr.bf16.mxu1 %v3645_v51  ;;  %v3894_v30 = vld [vmem:[#allocation2 + $0x780] sm:$0xff]  ;;  %v3833_v51 = vld [vmem:[#allocation2 + $0x718] sm:$0xff] }
 0x3d8   :  { %3600 = vmatpush1.bf16.msra.mxu0 %v3580_v56  ;;  %3664 = vmatpush1.bf16.msra.mxu1 %v3644_v60  ;;  %v3897_v56 = vld [vmem:[#allocation2 + $0x798] sm:$0xff]  ;;  %v3832_v60 = vld [vmem:[#allocation2 + $0x710] sm:$0xff] }
 0x3d9   :  { %3601 = vmatprep.subr.bf16.mxu0 %v3583_v19  ;;  %3665 = vmatprep.subr.bf16.mxu1 %v3647_v3  ;;  %v3896_v19 = vld [vmem:[#allocation2 + $0x790] sm:$0xff]  ;;  %v3835_v3 = vld [vmem:[#allocation2 + $0x728] sm:$0xff] }
 0x3dc   :  { %3602 = vmatpush1.bf16.msra.mxu0 %v3582_v0  ;;  %3666 = vmatpush1.bf16.msra.mxu1 %v3646_v61  ;;  %v3899_v0 = vld [vmem:[#allocation2 + $0x7a8] sm:$0xff]  ;;  %v3834_v61 = vld [vmem:[#allocation2 + $0x720] sm:$0xff] }
 0x3dd   :  { %3603 = vmatprep.subr.bf16.mxu0 %v3585_v20  ;;  %3667 = vmatprep.subr.bf16.mxu1 %v3649_v23  ;;  %v3898_v20 = vld [vmem:[#allocation2 + $0x7a0] sm:$0xff]  ;;  %v3837_v23 = vld [vmem:[#allocation2 + $0x738] sm:$0xff] }
 0x3e0   :  { %3604 = vmatpush1.bf16.msra.mxu0 %v3584_v8  ;;  %3668 = vmatpush1.bf16.msra.mxu1 %v3648_v13  ;;  %v3901_v8 = vld [vmem:[#allocation2 + $0x7b8] sm:$0xff]  ;;  %v3836_v13 = vld [vmem:[#allocation2 + $0x730] sm:$0xff] }
 0x3e1   :  { %3605 = vmatprep.subr.bf16.mxu0 %v3587_v37  ;;  %3669 = vmatprep.subr.bf16.mxu1 %v3651_v59  ;;  %v3900_v37 = vld [vmem:[#allocation2 + $0x7b0] sm:$0xff]  ;;  %v3839_v59 = vld [vmem:[#allocation2 + $0x748] sm:$0xff] }
 0x3e4   :  { %3606 = vmatpush1.bf16.msra.mxu0 %v3586_v38  ;;  %3670 = vmatpush1.bf16.msra.mxu1 %v3650_v25  ;;  %v3903_v38 = vld [vmem:[#allocation2 + $0x7c8] sm:$0xff]  ;;  %v3838_v25 = vld [vmem:[#allocation2 + $0x740] sm:$0xff] }
 0x3e5   :  { %3607 = vmatprep.subr.bf16.mxu0 %v3589_v45  ;;  %3671 = vmatprep.subr.bf16.mxu1 %v3653_v9  ;;  %v3902_v45 = vld [vmem:[#allocation2 + $0x7c0] sm:$0xff]  ;;  %v3841_v9 = vld [vmem:[#allocation2 + $0x758] sm:$0xff] }
 0x3e8   :  { %3608 = vmatpush1.bf16.msra.mxu0 %v3588_v11  ;;  %3672 = vmatpush1.bf16.msra.mxu1 %v3652_v2  ;;  %v3904_v11 = vld [vmem:[#allocation2 + $0x7d0] sm:$0xff] }
 0x3e9   :  { %3721 = vmatprep.subr.bf16.mxu0 %v3703_v33  ;;  %3785 = vmatprep.subr.bf16.mxu1 %v3767_v54  ;;  %v3843_v54 = vld [vmem:[#allocation2 + $0x768] sm:$0xff] }
 0x3eb   :  { %3626 = vmatmul.mubr.bf16.vlgmr.msra.gmra.mrb[100].mxu0 %v3591_v29  ;;  %3690 = vmatmul.mubr.bf16.vlgmr.msra.gmra.mrb[100].mxu1 %v3655_v53  ;;  %v3907_v29 = vld [vmem:[#allocation2 + $0x7e8] sm:$0xff] }
 0x3ec   :  { %3722 = vmatpush1.bf16.msra.mxu0 %v3702_v49  ;;  %3786 = vmatpush1.bf16.msra.mxu1 %v3766_v5 }
 0x3ed   :  { %3723 = vmatprep.subr.bf16.mxu0 %v3705_v58  ;;  %3787 = vmatprep.subr.bf16.mxu1 %v3769_v4 }
 0x3ee   :  { %3753 = vmatprep.mubr.bf16.mxu0 %v9569_v47  ;;  %3817 = vmatprep.mubr.bf16.mxu1 %v9569_v47 }
 0x3f0   :  { %3724 = vmatpush1.bf16.msra.mxu0 %v3704_v43  ;;  %3788 = vmatpush1.bf16.msra.mxu1 %v3768_v24 }
 0x3f1   :  { %3725 = vmatprep.subr.bf16.mxu0 %v3707_v36  ;;  %3789 = vmatprep.subr.bf16.mxu1 %v3771_v39  ;;  %v3842_v39 = vld [vmem:[#allocation2 + $0x760] sm:$0xff] }
 0x3f4   :  { %3726 = vmatpush1.bf16.msra.mxu0 %v3706_v17  ;;  %3790 = vmatpush1.bf16.msra.mxu1 %v3770_v50  ;;  %v3906_v17 = vld [vmem:[#allocation2 + $0x7e0] sm:$0xff]  ;;  %v3845_v50 = vld [vmem:[#allocation2 + $0x778] sm:$0xff] }
 0x3f5   :  { %3727 = vmatprep.subr.bf16.mxu0 %v3709_v63  ;;  %3791 = vmatprep.subr.bf16.mxu1 %v3773_v18  ;;  %v3909_v63 = vld [vmem:[#allocation2 + $0x7f8] sm:$0xff]  ;;  %v3828_v18 = vld [vmem:[#allocation6 + $0x8] sm:$0x40] }
 0x3f8   :  { %3728 = vmatpush1.bf16.msra.mxu0 %v3708_v22  ;;  %3792 = vmatpush1.bf16.msra.mxu1 %v3772_v7  ;;  %v3892_v22 = vld [vmem:[#allocation6 + $0x8] sm:$0x80]  ;;  %v3844_v7 = vld [vmem:[#allocation2 + $0x770] sm:$0xff] }
 0x3f9   :  { %3729 = vmatprep.subr.bf16.mxu0 %v3711_v34  ;;  %3793 = vmatprep.subr.bf16.mxu1 %v3775_v32  ;;  %v3908_v34 = vld [vmem:[#allocation2 + $0x7f0] sm:$0xff]  ;;  %v3959_v32 = vld [vmem:[#allocation2 + $0x808] sm:$0xff] }
 0x3fc   :  { %3730 = vmatpush1.bf16.msra.mxu0 %v3710_v6  ;;  %3794 = vmatpush1.bf16.msra.mxu1 %v3774_v41  ;;  %v4020_v6 = vld [vmem:[#allocation2 + $0x888] sm:$0xff]  ;;  %v3847_v41 = vrot.slane %v3828_v18, 6  ;;  %v4087_v18 = vld [vmem:[#allocation2 + $0x920] sm:$0xff] }
 0x3fd   :  { %3731 = vmatprep.subr.bf16.mxu0 %v3713_v55  ;;  %3795 = vmatprep.subr.bf16.mxu1 %v3777_v28  ;;  %v3911_v55 = vrot.slane %v3892_v22, 7  ;;  %v3958_v28 = vld [vmem:[#allocation2 + $0x800] sm:$0xff] }
 0x3fe   :  { %v4151_v22 = vld [vmem:[#allocation2 + $0x9a0] sm:$0xff] }
 0x400   :  { %3732 = vmatpush1.bf16.msra.mxu0 %v3712_v57  ;;  %3796 = vmatpush1.bf16.msra.mxu1 %v3776_v14  ;;  %v4019_v57 = vld [vmem:[#allocation2 + $0x880] sm:$0xff]  ;;  %v3961_v14 = vld [vmem:[#allocation2 + $0x818] sm:$0xff] }
 0x401   :  { %3733 = vmatprep.subr.bf16.mxu0 %v3715_v48  ;;  %3797 = vmatprep.subr.bf16.mxu1 %v3779_v21  ;;  %v4022_v48 = vld [vmem:[#allocation2 + $0x898] sm:$0xff]  ;;  %v3960_v21 = vld [vmem:[#allocation2 + $0x810] sm:$0xff] }
 0x404   :  { %3734 = vmatpush1.bf16.msra.mxu0 %v3714_v62  ;;  %3798 = vmatpush1.bf16.msra.mxu1 %v3778_v52  ;;  %v4021_v62 = vld [vmem:[#allocation2 + $0x890] sm:$0xff]  ;;  %v3963_v52 = vld [vmem:[#allocation2 + $0x828] sm:$0xff] }
 0x405   :  { %3735 = vmatprep.subr.bf16.mxu0 %v3717_v35  ;;  %3799 = vmatprep.subr.bf16.mxu1 %v3781_v15  ;;  %v4024_v35 = vld [vmem:[#allocation2 + $0x8a8] sm:$0xff]  ;;  %v3962_v15 = vld [vmem:[#allocation2 + $0x820] sm:$0xff] }
 0x408   :  { %3736 = vmatpush1.bf16.msra.mxu0 %v3716_v44  ;;  %3800 = vmatpush1.bf16.msra.mxu1 %v3780_v26  ;;  %v4026_v44 = vld [vmem:[#allocation2 + $0x8b8] sm:$0xff]  ;;  %v3964_v26 = vld [vmem:[#allocation2 + $0x830] sm:$0xff] }
 0x409   :  { %3849 = vmatprep.subr.bf16.mxu0 %v3831_v42  ;;  %3913 = vmatprep.subr.bf16.mxu1 %v3895_v16  ;;  %v4025_v42 = vld [vmem:[#allocation2 + $0x8b0] sm:$0xff]  ;;  %v3967_v16 = vld [vmem:[#allocation2 + $0x848] sm:$0xff] }
 0x40b   :  { %3754 = vmatmul.mubr.bf16.vlgmr.msra.gmra.mrb[104].mxu0 %v3719_v12  ;;  %3818 = vmatmul.mubr.bf16.vlgmr.msra.gmra.mrb[104].mxu1 %v3783_v46  ;;  %v4028_v12 = vld [vmem:[#allocation2 + $0x8c8] sm:$0xff]  ;;  %v3966_v46 = vld [vmem:[#allocation2 + $0x840] sm:$0xff] }
 0x40c   :  { %3850 = vmatpush1.bf16.msra.mxu0 %v3830_v27  ;;  %3914 = vmatpush1.bf16.msra.mxu1 %v3894_v30  ;;  %v4027_v27 = vld [vmem:[#allocation2 + $0x8c0] sm:$0xff]  ;;  %v3969_v30 = vld [vmem:[#allocation2 + $0x858] sm:$0xff] }
 0x40d   :  { %3851 = vmatprep.subr.bf16.mxu0 %v3833_v51  ;;  %3915 = vmatprep.subr.bf16.mxu1 %v3897_v56  ;;  %v4030_v51 = vld [vmem:[#allocation2 + $0x8d8] sm:$0xff]  ;;  %v3968_v56 = vld [vmem:[#allocation2 + $0x850] sm:$0xff] }
 0x40e   :  { %3881 = vmatprep.mubr.bf16.mxu0 %v9569_v47  ;;  %3945 = vmatprep.mubr.bf16.mxu1 %v9569_v47 }
 0x410   :  { %3852 = vmatpush1.bf16.msra.mxu0 %v3832_v60  ;;  %3916 = vmatpush1.bf16.msra.mxu1 %v3896_v19  ;;  %v4029_v60 = vld [vmem:[#allocation2 + $0x8d0] sm:$0xff] }
 0x411   :  { %3853 = vmatprep.subr.bf16.mxu0 %v3835_v3  ;;  %3917 = vmatprep.subr.bf16.mxu1 %v3899_v0  ;;  %v3971_v0 = vld [vmem:[#allocation2 + $0x868] sm:$0xff] }
 0x414   :  { %3854 = vmatpush1.bf16.msra.mxu0 %v3834_v61  ;;  %3918 = vmatpush1.bf16.msra.mxu1 %v3898_v20  ;;  %v4032_v61 = vld [vmem:[#allocation2 + $0x8e8] sm:$0xff] }
 0x415   :  { %3855 = vmatprep.subr.bf16.mxu0 %v3837_v23  ;;  %3919 = vmatprep.subr.bf16.mxu1 %v3901_v8 }
 0x418   :  { %3856 = vmatpush1.bf16.msra.mxu0 %v3836_v13  ;;  %3920 = vmatpush1.bf16.msra.mxu1 %v3900_v37 }
 0x419   :  { %3857 = vmatprep.subr.bf16.mxu0 %v3839_v59  ;;  %3921 = vmatprep.subr.bf16.mxu1 %v3903_v38 }
 0x41c   :  { %3858 = vmatpush1.bf16.msra.mxu0 %v3838_v25  ;;  %3922 = vmatpush1.bf16.msra.mxu1 %v3902_v45 }
 0x41d   :  { %3859 = vmatprep.subr.bf16.mxu0 %v3841_v9  ;;  %3923 = vmatprep.subr.bf16.mxu1 %v3905_v10  ;;  %v3970_v9 = vld [vmem:[#allocation2 + $0x860] sm:$0xff] }
 0x41e   :  { %v3015_v2 = vpop.f32.mrb[80].mxu0  ;;  %v3056_v33 = vpop.f32.mrb[80].mxu1  ;;  %v4031_v10 = vld [vmem:[#allocation2 + $0x8e0] sm:$0xff] }
 0x41f   :  { %v9252_v53 = vadd.f32 %v3056_v33, %v3015_v2  ;;  %v3017_v49 = vpop.f32.mrb[81].mxu0  ;;  %v3058_v5 = vpop.f32.mrb[81].mxu1  ;;  %v4034_v2 = vld [vmem:[#allocation2 + $0x8f8] sm:$0xff]  ;;  %v4017_v33 = vld [vmem:[#allocation6 + $0x10] sm:$0x2] }
 0x420   :  { %v9254_v58 = vadd.f32 %v3058_v5, %v3017_v49  ;;  %v3019_v4 = vpop.f32.mrb[82].mxu0  ;;  %v3060_v43 = vpop.f32.mrb[82].mxu1  ;;  %3860 = vmatpush1.bf16.msra.mxu0 %v3840_v1  ;;  %3924 = vmatpush1.bf16.msra.mxu1 %v3904_v11  ;;  %v3973_v11 = vld [vmem:[#allocation2 + $0x878] sm:$0xff]  ;;  %v4148_v49 = vld [vmem:[#allocation2 + $0x988] sm:$0xff]  ;;  %v4036_v5 = vrot.slane %v4017_v33, 1  ;;  %v4215_v33 = vld [vmem:[#allocation2 + $0xa20] sm:$0xff] }
 0x421   :  { %v3020_v24 = vpop.f32.mrb[83].mxu0  ;;  %v3061_v36 = vpop.f32.mrb[83].mxu1  ;;  %3861 = vmatprep.subr.bf16.mxu0 %v3843_v54  ;;  %3925 = vmatprep.subr.bf16.mxu1 %v3907_v29  ;;  %v3972_v54 = vld [vmem:[#allocation2 + $0x870] sm:$0xff]  ;;  %v4083_v4 = vld [vmem:[#allocation2 + $0x900] sm:$0xff] }
 0x422   :  { %v4033_v29 = vld [vmem:[#allocation2 + $0x8f0] sm:$0xff]  ;;  %v4147_v43 = vld [vmem:[#allocation2 + $0x980] sm:$0xff]  ;;  %v4086_v24 = vld [vmem:[#allocation2 + $0x918] sm:$0xff] }
 0x423   :  { %v4150_v36 = vld [vmem:[#allocation2 + $0x998] sm:$0xff] }
 0x424   :  { %3862 = vmatpush1.bf16.msra.mxu0 %v3842_v39  ;;  %3926 = vmatpush1.bf16.msra.mxu1 %v3906_v17  ;;  %v4085_v39 = vld [vmem:[#allocation2 + $0x910] sm:$0xff] }
 0x425   :  { %3863 = vmatprep.subr.bf16.mxu0 %v3845_v50  ;;  %3927 = vmatprep.subr.bf16.mxu1 %v3909_v63  ;;  %v4149_v17 = vld [vmem:[#allocation2 + $0x990] sm:$0xff]  ;;  %v4088_v50 = vld [vmem:[#allocation2 + $0x928] sm:$0xff] }
 0x426   :  { %v4152_v63 = vld [vmem:[#allocation2 + $0x9a8] sm:$0xff] }
 0x428   :  { %3864 = vmatpush1.bf16.msra.mxu0 %v3844_v7  ;;  %3928 = vmatpush1.bf16.msra.mxu1 %v3908_v34  ;;  %v4090_v7 = vld [vmem:[#allocation2 + $0x938] sm:$0xff] }
 0x429   :  { %3974 = vmatprep.subr.bf16.mxu0 %v3959_v32  ;;  %4038 = vmatprep.subr.bf16.mxu1 %v4020_v6  ;;  %v4154_v34 = vld [vmem:[#allocation2 + $0x9b8] sm:$0xff]  ;;  %v4089_v32 = vld [vmem:[#allocation2 + $0x930] sm:$0xff] }
 0x42a   :  { %v4153_v6 = vld [vmem:[#allocation2 + $0x9b0] sm:$0xff] }
 0x42b   :  { %3882 = vmatmul.mubr.bf16.vlgmr.msra.gmra.mrb[108].mxu0 %v3847_v41  ;;  %3946 = vmatmul.mubr.bf16.vlgmr.msra.gmra.mrb[108].mxu1 %v3911_v55  ;;  %v4092_v41 = vld [vmem:[#allocation2 + $0x948] sm:$0xff] }
 0x42c   :  { %3975 = vmatpush1.bf16.msra.mxu0 %v3958_v28  ;;  %4039 = vmatpush1.bf16.msra.mxu1 %v4019_v57  ;;  %v4156_v55 = vld [vmem:[#allocation2 + $0x9c8] sm:$0xff]  ;;  %v4091_v28 = vld [vmem:[#allocation2 + $0x940] sm:$0xff] }
 0x42d   :  { %3976 = vmatprep.subr.bf16.mxu0 %v3961_v14  ;;  %4040 = vmatprep.subr.bf16.mxu1 %v4022_v48  ;;  %v4155_v57 = vld [vmem:[#allocation2 + $0x9c0] sm:$0xff]  ;;  %v4094_v14 = vld [vmem:[#allocation2 + $0x958] sm:$0xff] }
 0x42e   :  { %4006 = vmatprep.mubr.bf16.mxu0 %v9569_v47  ;;  %4070 = vmatprep.mubr.bf16.mxu1 %v9569_v47  ;;  %v4158_v48 = vld [vmem:[#allocation2 + $0x9d8] sm:$0xff] }
 0x430   :  { %3977 = vmatpush1.bf16.msra.mxu0 %v3960_v21  ;;  %4041 = vmatpush1.bf16.msra.mxu1 %v4021_v62  ;;  %v4093_v21 = vld [vmem:[#allocation2 + $0x950] sm:$0xff] }
 0x431   :  { %3978 = vmatprep.subr.bf16.mxu0 %v3963_v52  ;;  %4042 = vmatprep.subr.bf16.mxu1 %v4024_v35  ;;  %v4157_v62 = vld [vmem:[#allocation2 + $0x9d0] sm:$0xff] }
 0x434   :  { %3979 = vmatpush1.bf16.msra.mxu0 %v3962_v15  ;;  %4043 = vmatpush1.bf16.msra.mxu1 %v4023_v31  ;;  %v4096_v15 = vld [vmem:[#allocation2 + $0x968] sm:$0xff] }
 0x435   :  { %3980 = vmatprep.subr.bf16.mxu0 %v3965_v40  ;;  %4044 = vmatprep.subr.bf16.mxu1 %v4026_v44  ;;  %v4160_v31 = vld [vmem:[#allocation2 + $0x9e8] sm:$0xff] }
 0x438   :  { %3981 = vmatpush1.bf16.msra.mxu0 %v3964_v26  ;;  %4045 = vmatpush1.bf16.msra.mxu1 %v4025_v42 }
 0x439   :  { %3982 = vmatprep.subr.bf16.mxu0 %v3967_v16  ;;  %4046 = vmatprep.subr.bf16.mxu1 %v4028_v12 }
 0x43c   :  { %3983 = vmatpush1.bf16.msra.mxu0 %v3966_v46  ;;  %4047 = vmatpush1.bf16.msra.mxu1 %v4027_v27 }
 0x43d   :  { %3984 = vmatprep.subr.bf16.mxu0 %v3969_v30  ;;  %4048 = vmatprep.subr.bf16.mxu1 %v4030_v51  ;;  %v4095_v51 = vld [vmem:[#allocation2 + $0x960] sm:$0xff] }
 0x43e   :  { %v3118_v19 = vpop.f32.mrb[84].mxu0  ;;  %v3182_v3 = vpop.f32.mrb[84].mxu1 }
 0x43f   :  { %v3125_v20 = vadd.f32 %v3118_v19, %v9252_v53  ;;  %v3120_v23 = vpop.f32.mrb[85].mxu0  ;;  %v3184_v8 = vpop.f32.mrb[85].mxu1  ;;  %v4084_v53 = vld [vmem:[#allocation2 + $0x908] sm:$0xff]  ;;  %v4098_v19 = vld [vmem:[#allocation2 + $0x978] sm:$0xff] }
 0x440   :  { %v3126_v13 = vadd.f32 %v3120_v23, %v9254_v58  ;;  %v3122_v37 = vpop.f32.mrb[86].mxu0  ;;  %v3186_v59 = vpop.f32.mrb[86].mxu1  ;;  %3985 = vmatpush1.bf16.msra.mxu0 %v3968_v56  ;;  %4049 = vmatpush1.bf16.msra.mxu1 %v4029_v60  ;;  %v3956_v58 = vld [vmem:[#allocation6 + $0x10] sm:$0x1]  ;;  %v4159_v56 = vld [vmem:[#allocation2 + $0x9e0] sm:$0xff]  ;;  %v4161_v23 = vld [vmem:[#allocation2 + $0x9f0] sm:$0xff] }
 0x441   :  { %v9260_v38 = vadd.f32 %v3182_v3, %v3125_v20  ;;  %v3123_v25 = vpop.f32.mrb[87].mxu0  ;;  %v3187_v45 = vpop.f32.mrb[87].mxu1  ;;  %3986 = vmatprep.subr.bf16.mxu0 %v3971_v0  ;;  %4050 = vmatprep.subr.bf16.mxu1 %v4032_v61  ;;  %v4162_v3 = vld [vmem:[#allocation2 + $0x9f8] sm:$0xff]  ;;  %v4081_v0 = vld [vmem:[#allocation6 + $0x10] sm:$0x4]  ;;  %v4097_v20 = vld [vmem:[#allocation2 + $0x970] sm:$0xff] }
 0x442   :  { %v9262_v1 = vadd.f32 %v3184_v8, %v3126_v13  ;;  %v4145_v61 = vld [vmem:[#allocation6 + $0x10] sm:$0x8]  ;;  %v4100_v37 = vrot.slane %v4081_v0, 2  ;;  %v4275_v25 = vld [vmem:[#allocation2 + $0xa80] sm:$0xff]  ;;  %v4214_v45 = vld [vmem:[#allocation2 + $0xa18] sm:$0xff] }
 0x443   :  { %v4212_v8 = vld [vmem:[#allocation2 + $0xa08] sm:$0xff]  ;;  %v4164_v59 = vrot.slane %v4145_v61, 3  ;;  %v4343_v61 = vld [vmem:[#allocation2 + $0xb20] sm:$0xff] }
 0x444   :  { %3987 = vmatpush1.bf16.msra.mxu0 %v3970_v9  ;;  %4051 = vmatpush1.bf16.msra.mxu1 %v4031_v10  ;;  %v4276_v13 = vld [vmem:[#allocation2 + $0xa88] sm:$0xff]  ;;  %v4278_v9 = vld [vmem:[#allocation2 + $0xa98] sm:$0xff]  ;;  %v4213_v10 = vld [vmem:[#allocation2 + $0xa10] sm:$0xff] }
 0x445   :  { %3988 = vmatprep.subr.bf16.mxu0 %v3973_v11  ;;  %4052 = vmatprep.subr.bf16.mxu1 %v4034_v2  ;;  %v4216_v11 = vld [vmem:[#allocation2 + $0xa28] sm:$0xff] }
 0x446   :  { %v4280_v2 = vld [vmem:[#allocation2 + $0xaa8] sm:$0xff] }
 0x447   :  { %v4408_v0 = vld [vmem:[#allocation2 + $0xba8] sm:$0xff] }
 0x448   :  { %3989 = vmatpush1.bf16.msra.mxu0 %v3972_v54  ;;  %4053 = vmatpush1.bf16.msra.mxu1 %v4033_v29  ;;  %v4279_v54 = vld [vmem:[#allocation2 + $0xaa0] sm:$0xff]  ;;  %v4218_v29 = vld [vmem:[#allocation2 + $0xa38] sm:$0xff] }
 0x449   :  { %4102 = vmatprep.subr.bf16.mxu0 %v4084_v53  ;;  %4166 = vmatprep.subr.bf16.mxu1 %v4148_v49  ;;  %v4282_v53 = vld [vmem:[#allocation2 + $0xab8] sm:$0xff]  ;;  %v4217_v49 = vld [vmem:[#allocation2 + $0xa30] sm:$0xff] }
 0x44b   :  { %4007 = vmatmul.mubr.bf16.vlgmr.msra.gmra.mrb[112].mxu0 %v3956_v58  ;;  %4071 = vmatmul.mubr.bf16.vlgmr.msra.gmra.mrb[112].mxu1 %v4036_v5  ;;  %v4281_v5 = vld [vmem:[#allocation2 + $0xab0] sm:$0xff]  ;;  %v4220_v58 = vld [vmem:[#allocation2 + $0xa48] sm:$0xff] }
 0x44c   :  { %4103 = vmatpush1.bf16.msra.mxu0 %v4083_v4  ;;  %4167 = vmatpush1.bf16.msra.mxu1 %v4147_v43  ;;  %v4284_v4 = vld [vmem:[#allocation2 + $0xac8] sm:$0xff]  ;;  %v4219_v43 = vld [vmem:[#allocation2 + $0xa40] sm:$0xff] }
 0x44d   :  { %4104 = vmatprep.subr.bf16.mxu0 %v4086_v24  ;;  %4168 = vmatprep.subr.bf16.mxu1 %v4150_v36  ;;  %v4283_v24 = vld [vmem:[#allocation2 + $0xac0] sm:$0xff]  ;;  %v4222_v36 = vld [vmem:[#allocation2 + $0xa58] sm:$0xff] }
 0x44e   :  { %4134 = vmatprep.mubr.bf16.mxu0 %v9569_v47  ;;  %4198 = vmatprep.mubr.bf16.mxu1 %v9569_v47 }
 0x450   :  { %4105 = vmatpush1.bf16.msra.mxu0 %v4085_v39  ;;  %4169 = vmatpush1.bf16.msra.mxu1 %v4149_v17  ;;  %v4286_v39 = vld [vmem:[#allocation2 + $0xad8] sm:$0xff]  ;;  %v4221_v17 = vld [vmem:[#allocation2 + $0xa50] sm:$0xff] }
 0x451   :  { %4106 = vmatprep.subr.bf16.mxu0 %v4088_v50  ;;  %4170 = vmatprep.subr.bf16.mxu1 %v4152_v63  ;;  %v4285_v50 = vld [vmem:[#allocation2 + $0xad0] sm:$0xff] }
 0x454   :  { %4107 = vmatpush1.bf16.msra.mxu0 %v4087_v18  ;;  %4171 = vmatpush1.bf16.msra.mxu1 %v4151_v22  ;;  %v4224_v22 = vld [vmem:[#allocation2 + $0xa68] sm:$0xff] }
 0x455   :  { %4108 = vmatprep.subr.bf16.mxu0 %v4090_v7  ;;  %4172 = vmatprep.subr.bf16.mxu1 %v4154_v34  ;;  %v4288_v7 = vld [vmem:[#allocation2 + $0xae8] sm:$0xff] }
 0x458   :  { %4109 = vmatpush1.bf16.msra.mxu0 %v4089_v32  ;;  %4173 = vmatpush1.bf16.msra.mxu1 %v4153_v6 }
 0x459   :  { %4110 = vmatprep.subr.bf16.mxu0 %v4092_v41  ;;  %4174 = vmatprep.subr.bf16.mxu1 %v4156_v55 }
 0x45c   :  { %4111 = vmatpush1.bf16.msra.mxu0 %v4091_v28  ;;  %4175 = vmatpush1.bf16.msra.mxu1 %v4155_v57 }
 0x45d   :  { %4112 = vmatprep.subr.bf16.mxu0 %v4094_v14  ;;  %4176 = vmatprep.subr.bf16.mxu1 %v4158_v48 }
 0x45e   :  { %v3246_v52 = vpop.f32.mrb[88].mxu0  ;;  %v3310_v35 = vpop.f32.mrb[88].mxu1 }
 0x45f   :  { %v3253_v40 = vadd.f32 %v3246_v52, %v9260_v38  ;;  %v3248_v44 = vpop.f32.mrb[89].mxu0  ;;  %v3312_v26 = vpop.f32.mrb[89].mxu1  ;;  %v4211_v38 = vld [vmem:[#allocation2 + $0xa00] sm:$0xff] }
 0x460   :  { %v3254_v42 = vadd.f32 %v3248_v44, %v9262_v1  ;;  %v3250_v16 = vpop.f32.mrb[90].mxu0  ;;  %v3314_v12 = vpop.f32.mrb[90].mxu1  ;;  %4113 = vmatpush1.bf16.msra.mxu0 %v4093_v21  ;;  %4177 = vmatpush1.bf16.msra.mxu1 %v4157_v62  ;;  %v4277_v1 = vld [vmem:[#allocation2 + $0xa90] sm:$0xff]  ;;  %v4223_v21 = vld [vmem:[#allocation2 + $0xa60] sm:$0xff] }
 0x461   :  { %v9268_v46 = vadd.f32 %v3310_v35, %v3253_v40  ;;  %v3251_v27 = vpop.f32.mrb[91].mxu0  ;;  %v3315_v30 = vpop.f32.mrb[91].mxu1  ;;  %4114 = vmatprep.subr.bf16.mxu0 %v4096_v15  ;;  %4178 = vmatprep.subr.bf16.mxu1 %v4160_v31  ;;  %v4287_v62 = vld [vmem:[#allocation2 + $0xae0] sm:$0xff]  ;;  %v4226_v35 = vld [vmem:[#allocation2 + $0xa78] sm:$0xff]  ;;  %v4209_v31 = vld [vmem:[#allocation6 + $0x10] sm:$0x10] }
 0x462   :  { %v9270_v60 = vadd.f32 %v3312_v26, %v3254_v42  ;;  %v4290_v15 = vld [vmem:[#allocation2 + $0xaf8] sm:$0xff]  ;;  %v4273_v40 = vld [vmem:[#allocation6 + $0x10] sm:$0x20]  ;;  %v4225_v44 = vld [vmem:[#allocation2 + $0xa70] sm:$0xff]  ;;  %v4228_v12 = vrot.slane %v4209_v31, 4 }
 0x463   :  { %v4289_v26 = vld [vmem:[#allocation2 + $0xaf0] sm:$0xff]  ;;  %v4340_v42 = vld [vmem:[#allocation2 + $0xb08] sm:$0xff]  ;;  %v4339_v27 = vld [vmem:[#allocation2 + $0xb00] sm:$0xff] }
 0x464   :  { %4115 = vmatpush1.bf16.msra.mxu0 %v4095_v51  ;;  %4179 = vmatpush1.bf16.msra.mxu1 %v4159_v56  ;;  %v4404_v16 = vld [vmem:[#allocation2 + $0xb88] sm:$0xff]  ;;  %v4403_v30 = vld [vmem:[#allocation2 + $0xb80] sm:$0xff]  ;;  %v4342_v51 = vld [vmem:[#allocation2 + $0xb18] sm:$0xff] }
 0x465   :  { %4116 = vmatprep.subr.bf16.mxu0 %v4098_v19  ;;  %4180 = vmatprep.subr.bf16.mxu1 %v4162_v3  ;;  %v4406_v56 = vld [vmem:[#allocation2 + $0xb98] sm:$0xff]  ;;  %v4405_v19 = vld [vmem:[#allocation2 + $0xb90] sm:$0xff]  ;;  %v4344_v3 = vld [vmem:[#allocation2 + $0xb28] sm:$0xff] }
 0x466   :  { %v4533_v31 = vld [vmem:[#allocation2 + $0xca8] sm:$0xff] }
 0x468   :  { %4117 = vmatpush1.bf16.msra.mxu0 %v4097_v20  ;;  %4181 = vmatpush1.bf16.msra.mxu1 %v4161_v23  ;;  %v4407_v20 = vld [vmem:[#allocation2 + $0xba0] sm:$0xff]  ;;  %v4346_v23 = vld [vmem:[#allocation2 + $0xb38] sm:$0xff] }
 0x469   :  { %4230 = vmatprep.subr.bf16.mxu0 %v4212_v8  ;;  %4294 = vmatprep.subr.bf16.mxu1 %v4276_v13  ;;  %v4410_v8 = vld [vmem:[#allocation2 + $0xbb8] sm:$0xff]  ;;  %v4345_v13 = vld [vmem:[#allocation2 + $0xb30] sm:$0xff] }
 0x46b   :  { %4135 = vmatmul.mubr.bf16.vlgmr.msra.gmra.mrb[116].mxu0 %v4100_v37  ;;  %4199 = vmatmul.mubr.bf16.vlgmr.msra.gmra.mrb[116].mxu1 %v4164_v59  ;;  %v4409_v37 = vld [vmem:[#allocation2 + $0xbb0] sm:$0xff]  ;;  %v4348_v59 = vld [vmem:[#allocation2 + $0xb48] sm:$0xff] }
 0x46c   :  { %4231 = vmatpush1.bf16.msra.mxu0 %v4211_v38  ;;  %4295 = vmatpush1.bf16.msra.mxu1 %v4275_v25  ;;  %v4412_v38 = vld [vmem:[#allocation2 + $0xbc8] sm:$0xff]  ;;  %v4347_v25 = vld [vmem:[#allocation2 + $0xb40] sm:$0xff] }
 0x46d   :  { %4232 = vmatprep.subr.bf16.mxu0 %v4214_v45  ;;  %4296 = vmatprep.subr.bf16.mxu1 %v4278_v9  ;;  %v4411_v45 = vld [vmem:[#allocation2 + $0xbc0] sm:$0xff]  ;;  %v4350_v9 = vld [vmem:[#allocation2 + $0xb58] sm:$0xff] }
 0x46e   :  { %4262 = vmatprep.mubr.bf16.mxu0 %v9569_v47  ;;  %4326 = vmatprep.mubr.bf16.mxu1 %v9569_v47 }
 0x470   :  { %4233 = vmatpush1.bf16.msra.mxu0 %v4213_v10  ;;  %4297 = vmatpush1.bf16.msra.mxu1 %v4277_v1  ;;  %v4414_v10 = vld [vmem:[#allocation2 + $0xbd8] sm:$0xff]  ;;  %v4349_v1 = vld [vmem:[#allocation2 + $0xb50] sm:$0xff] }
 0x471   :  { %4234 = vmatprep.subr.bf16.mxu0 %v4216_v11  ;;  %4298 = vmatprep.subr.bf16.mxu1 %v4280_v2  ;;  %v4413_v11 = vld [vmem:[#allocation2 + $0xbd0] sm:$0xff] }
 0x474   :  { %4235 = vmatpush1.bf16.msra.mxu0 %v4215_v33  ;;  %4299 = vmatpush1.bf16.msra.mxu1 %v4279_v54  ;;  %v4352_v54 = vld [vmem:[#allocation2 + $0xb68] sm:$0xff] }
 0x475   :  { %4236 = vmatprep.subr.bf16.mxu0 %v4218_v29  ;;  %4300 = vmatprep.subr.bf16.mxu1 %v4282_v53  ;;  %v4416_v29 = vld [vmem:[#allocation2 + $0xbe8] sm:$0xff] }
 0x478   :  { %4237 = vmatpush1.bf16.msra.mxu0 %v4217_v49  ;;  %4301 = vmatpush1.bf16.msra.mxu1 %v4281_v5 }
 0x479   :  { %4238 = vmatprep.subr.bf16.mxu0 %v4220_v58  ;;  %4302 = vmatprep.subr.bf16.mxu1 %v4284_v4 }
 0x47c   :  { %4239 = vmatpush1.bf16.msra.mxu0 %v4219_v43  ;;  %4303 = vmatpush1.bf16.msra.mxu1 %v4283_v24 }
 0x47d   :  { %4240 = vmatprep.subr.bf16.mxu0 %v4222_v36  ;;  %4304 = vmatprep.subr.bf16.mxu1 %v4286_v39 }
 0x47e   :  { %v3374_v63 = vpop.f32.mrb[92].mxu0  ;;  %v3438_v18 = vpop.f32.mrb[92].mxu1 }
 0x47f   :  { %v3381_v34 = vadd.f32 %v3374_v63, %v9268_v46  ;;  %v3376_v32 = vpop.f32.mrb[93].mxu0  ;;  %v3440_v6 = vpop.f32.mrb[93].mxu1  ;;  %v4292_v46 = vrot.slane %v4273_v40, 5  ;;  %v4471_v40 = vld [vmem:[#allocation2 + $0xc20] sm:$0xff] }
 0x480   :  { %v3382_v41 = vadd.f32 %v3376_v32, %v9270_v60  ;;  %v3378_v55 = vpop.f32.mrb[94].mxu0  ;;  %v3442_v28 = vpop.f32.mrb[94].mxu1  ;;  %4241 = vmatpush1.bf16.msra.mxu0 %v4221_v17  ;;  %4305 = vmatpush1.bf16.msra.mxu1 %v4285_v50  ;;  %v4341_v60 = vld [vmem:[#allocation2 + $0xb10] sm:$0xff]  ;;  %v4351_v17 = vld [vmem:[#allocation2 + $0xb60] sm:$0xff] }
 0x481   :  { %v9276_v57 = vadd.f32 %v3438_v18, %v3381_v34  ;;  %v3379_v14 = vpop.f32.mrb[95].mxu0  ;;  %v3443_v48 = vpop.f32.mrb[95].mxu1  ;;  %4242 = vmatprep.subr.bf16.mxu0 %v4224_v22  ;;  %4306 = vmatprep.subr.bf16.mxu1 %v4288_v7  ;;  %v4415_v50 = vld [vmem:[#allocation2 + $0xbe0] sm:$0xff]  ;;  %v4354_v18 = vld [vmem:[#allocation2 + $0xb78] sm:$0xff]  ;;  %v4337_v7 = vld [vmem:[#allocation6 + $0x10] sm:$0x40] }
 0x482   :  { %v9278_v52 = vadd.f32 %v3440_v6, %v3382_v41  ;;  %v4418_v22 = vld [vmem:[#allocation2 + $0xbf8] sm:$0xff]  ;;  %v4401_v34 = vld [vmem:[#allocation6 + $0x10] sm:$0x80]  ;;  %v4353_v32 = vld [vmem:[#allocation2 + $0xb70] sm:$0xff]  ;;  %v4356_v28 = vrot.slane %v4337_v7, 6 }
 0x483   :  { %v4417_v6 = vld [vmem:[#allocation2 + $0xbf0] sm:$0xff]  ;;  %v4468_v41 = vld [vmem:[#allocation2 + $0xc08] sm:$0xff]  ;;  %v4467_v14 = vld [vmem:[#allocation2 + $0xc00] sm:$0xff] }
 0x484   :  { %4243 = vmatpush1.bf16.msra.mxu0 %v4223_v21  ;;  %4307 = vmatpush1.bf16.msra.mxu1 %v4287_v62  ;;  %v4529_v55 = vld [vmem:[#allocation2 + $0xc88] sm:$0xff]  ;;  %v4528_v48 = vld [vmem:[#allocation2 + $0xc80] sm:$0xff]  ;;  %v4470_v21 = vld [vmem:[#allocation2 + $0xc18] sm:$0xff] }
 0x485   :  { %4244 = vmatprep.subr.bf16.mxu0 %v4226_v35  ;;  %4308 = vmatprep.subr.bf16.mxu1 %v4290_v15  ;;  %v4531_v62 = vld [vmem:[#allocation2 + $0xc98] sm:$0xff]  ;;  %v4530_v35 = vld [vmem:[#allocation2 + $0xc90] sm:$0xff]  ;;  %v4472_v15 = vld [vmem:[#allocation2 + $0xc28] sm:$0xff] }
 0x486   :  { %v4596_v7 = vld [vmem:[#allocation2 + $0xd20] sm:$0xff] }
 0x488   :  { %4245 = vmatpush1.bf16.msra.mxu0 %v4225_v44  ;;  %4309 = vmatpush1.bf16.msra.mxu1 %v4289_v26  ;;  %v4532_v44 = vld [vmem:[#allocation2 + $0xca0] sm:$0xff]  ;;  %v4474_v26 = vld [vmem:[#allocation2 + $0xc38] sm:$0xff] }
 0x489   :  { %4358 = vmatprep.subr.bf16.mxu0 %v4340_v42  ;;  %4422 = vmatprep.subr.bf16.mxu1 %v4404_v16  ;;  %v4535_v42 = vld [vmem:[#allocation2 + $0xcb8] sm:$0xff]  ;;  %v4473_v16 = vld [vmem:[#allocation2 + $0xc30] sm:$0xff] }
 0x48b   :  { %4263 = vmatmul.mubr.bf16.vlgmr.msra.gmra.mrb[120].mxu0 %v4228_v12  ;;  %4327 = vmatmul.mubr.bf16.vlgmr.msra.gmra.mrb[120].mxu1 %v4292_v46  ;;  %v4534_v12 = vld [vmem:[#allocation2 + $0xcb0] sm:$0xff]  ;;  %v4476_v46 = vld [vmem:[#allocation2 + $0xc48] sm:$0xff] }
 0x48c   :  { %4359 = vmatpush1.bf16.msra.mxu0 %v4339_v27  ;;  %4423 = vmatpush1.bf16.msra.mxu1 %v4403_v30  ;;  %v4537_v27 = vld [vmem:[#allocation2 + $0xcc8] sm:$0xff]  ;;  %v4475_v30 = vld [vmem:[#allocation2 + $0xc40] sm:$0xff] }
 0x48d   :  { %4360 = vmatprep.subr.bf16.mxu0 %v4342_v51  ;;  %4424 = vmatprep.subr.bf16.mxu1 %v4406_v56  ;;  %v4536_v51 = vld [vmem:[#allocation2 + $0xcc0] sm:$0xff]  ;;  %v4478_v56 = vld [vmem:[#allocation2 + $0xc58] sm:$0xff] }
 0x48e   :  { %4390 = vmatprep.mubr.bf16.mxu0 %v9569_v47  ;;  %4454 = vmatprep.mubr.bf16.mxu1 %v9569_v47 }
 0x490   :  { %4361 = vmatpush1.bf16.msra.mxu0 %v4341_v60  ;;  %4425 = vmatpush1.bf16.msra.mxu1 %v4405_v19  ;;  %v4539_v60 = vld [vmem:[#allocation2 + $0xcd8] sm:$0xff]  ;;  %v4477_v19 = vld [vmem:[#allocation2 + $0xc50] sm:$0xff] }
 0x491   :  { %4362 = vmatprep.subr.bf16.mxu0 %v4344_v3  ;;  %4426 = vmatprep.subr.bf16.mxu1 %v4408_v0  ;;  %v4538_v3 = vld [vmem:[#allocation2 + $0xcd0] sm:$0xff] }
 0x494   :  { %4363 = vmatpush1.bf16.msra.mxu0 %v4343_v61  ;;  %4427 = vmatpush1.bf16.msra.mxu1 %v4407_v20  ;;  %v4480_v20 = vld [vmem:[#allocation2 + $0xc68] sm:$0xff] }
 0x495   :  { %4364 = vmatprep.subr.bf16.mxu0 %v4346_v23  ;;  %4428 = vmatprep.subr.bf16.mxu1 %v4410_v8  ;;  %v4541_v23 = vld [vmem:[#allocation2 + $0xce8] sm:$0xff] }
 0x498   :  { %4365 = vmatpush1.bf16.msra.mxu0 %v4345_v13  ;;  %4429 = vmatpush1.bf16.msra.mxu1 %v4409_v37 }
 0x499   :  { %4366 = vmatprep.subr.bf16.mxu0 %v4348_v59  ;;  %4430 = vmatprep.subr.bf16.mxu1 %v4412_v38 }
 0x49c   :  { %4367 = vmatpush1.bf16.msra.mxu0 %v4347_v25  ;;  %4431 = vmatpush1.bf16.msra.mxu1 %v4411_v45 }
 0x49d   :  { %4368 = vmatprep.subr.bf16.mxu0 %v4350_v9  ;;  %4432 = vmatprep.subr.bf16.mxu1 %v4414_v10 }
 0x49e   :  { %v3499_v2 = vpop.f32.mrb[96].mxu0  ;;  %v3563_v33 = vpop.f32.mrb[96].mxu1 }
 0x49f   :  { %v3506_v53 = vadd.f32 %v3499_v2, %v9276_v57  ;;  %v3501_v49 = vpop.f32.mrb[97].mxu0  ;;  %v3565_v5 = vpop.f32.mrb[97].mxu1  ;;  %v4420_v57 = vrot.slane %v4401_v34, 7  ;;  %v4660_v34 = vld [vmem:[#allocation2 + $0xda0] sm:$0xff] }
 0x4a0   :  { %v3507_v58 = vadd.f32 %v3501_v49, %v9278_v52  ;;  %v3503_v4 = vpop.f32.mrb[98].mxu0  ;;  %v3567_v43 = vpop.f32.mrb[98].mxu1  ;;  %4369 = vmatpush1.bf16.msra.mxu0 %v4349_v1  ;;  %4433 = vmatpush1.bf16.msra.mxu1 %v4413_v11  ;;  %v4469_v52 = vld [vmem:[#allocation2 + $0xc10] sm:$0xff]  ;;  %v4479_v1 = vld [vmem:[#allocation2 + $0xc60] sm:$0xff] }
 0x4a1   :  { %v9284_v24 = vadd.f32 %v3563_v33, %v3506_v53  ;;  %v3504_v36 = vpop.f32.mrb[99].mxu0  ;;  %v3568_v39 = vpop.f32.mrb[99].mxu1  ;;  %4370 = vmatprep.subr.bf16.mxu0 %v4352_v54  ;;  %4434 = vmatprep.subr.bf16.mxu1 %v4416_v29  ;;  %v4540_v11 = vld [vmem:[#allocation2 + $0xce0] sm:$0xff]  ;;  %v4482_v33 = vld [vmem:[#allocation2 + $0xc78] sm:$0xff]  ;;  %v4526_v29 = vld [vmem:[#allocation6 + $0x18] sm:$0x2] }
 0x4a2   :  { %v9286_v63 = vadd.f32 %v3565_v5, %v3507_v58  ;;  %v4543_v54 = vld [vmem:[#allocation2 + $0xcf8] sm:$0xff]  ;;  %v4481_v53 = vld [vmem:[#allocation2 + $0xc70] sm:$0xff]  ;;  %v4593_v5 = vld [vmem:[#allocation2 + $0xd08] sm:$0xff]  ;;  %v4545_v4 = vrot.slane %v4526_v29, 1 }
 0x4a3   :  { %v4542_v49 = vld [vmem:[#allocation2 + $0xcf0] sm:$0xff]  ;;  %v4657_v58 = vld [vmem:[#allocation2 + $0xd88] sm:$0xff]  ;;  %v4656_v36 = vld [vmem:[#allocation2 + $0xd80] sm:$0xff] }
 0x4a4   :  { %4371 = vmatpush1.bf16.msra.mxu0 %v4351_v17  ;;  %4435 = vmatpush1.bf16.msra.mxu1 %v4415_v50  ;;  %v4465_v43 = vld [vmem:[#allocation6 + $0x18] sm:$0x1]  ;;  %v4595_v39 = vld [vmem:[#allocation2 + $0xd18] sm:$0xff]  ;;  %v4724_v29 = vld [vmem:[#allocation2 + $0xe20] sm:$0xff] }
 0x4a5   :  { %4372 = vmatprep.subr.bf16.mxu0 %v4354_v18  ;;  %4436 = vmatprep.subr.bf16.mxu1 %v4418_v22  ;;  %v4659_v17 = vld [vmem:[#allocation2 + $0xd98] sm:$0xff]  ;;  %v4594_v50 = vld [vmem:[#allocation2 + $0xd10] sm:$0xff]  ;;  %v4597_v18 = vld [vmem:[#allocation2 + $0xd28] sm:$0xff] }
 0x4a6   :  { %v4661_v22 = vld [vmem:[#allocation2 + $0xda8] sm:$0xff] }
 0x4a8   :  { %4373 = vmatpush1.bf16.msra.mxu0 %v4353_v32  ;;  %4437 = vmatpush1.bf16.msra.mxu1 %v4417_v6  ;;  %v4599_v32 = vld [vmem:[#allocation2 + $0xd38] sm:$0xff] }
 0x4a9   :  { %4483 = vmatprep.subr.bf16.mxu0 %v4468_v41  ;;  %4547 = vmatprep.subr.bf16.mxu1 %v4529_v55  ;;  %v4663_v6 = vld [vmem:[#allocation2 + $0xdb8] sm:$0xff]  ;;  %v4598_v41 = vld [vmem:[#allocation2 + $0xd30] sm:$0xff] }
 0x4aa   :  { %v4662_v55 = vld [vmem:[#allocation2 + $0xdb0] sm:$0xff] }
 0x4ab   :  { %4391 = vmatmul.mubr.bf16.vlgmr.msra.gmra.mrb[124].mxu0 %v4356_v28  ;;  %4455 = vmatmul.mubr.bf16.vlgmr.msra.gmra.mrb[124].mxu1 %v4420_v57  ;;  %v4601_v28 = vld [vmem:[#allocation2 + $0xd48] sm:$0xff] }
 0x4ac   :  { %4484 = vmatpush1.bf16.msra.mxu0 %v4467_v14  ;;  %4548 = vmatpush1.bf16.msra.mxu1 %v4528_v48  ;;  %v4665_v57 = vld [vmem:[#allocation2 + $0xdc8] sm:$0xff]  ;;  %v4600_v14 = vld [vmem:[#allocation2 + $0xd40] sm:$0xff] }
 0x4ad   :  { %4485 = vmatprep.subr.bf16.mxu0 %v4470_v21  ;;  %4549 = vmatprep.subr.bf16.mxu1 %v4531_v62  ;;  %v4664_v48 = vld [vmem:[#allocation2 + $0xdc0] sm:$0xff]  ;;  %v4603_v21 = vld [vmem:[#allocation2 + $0xd58] sm:$0xff] }
 0x4ae   :  { %4515 = vmatprep.mubr.bf16.mxu0 %v9569_v47  ;;  %4579 = vmatprep.mubr.bf16.mxu1 %v9569_v47  ;;  %v4667_v62 = vld [vmem:[#allocation2 + $0xdd8] sm:$0xff] }
 0x4b0   :  { %4486 = vmatpush1.bf16.msra.mxu0 %v4469_v52  ;;  %4550 = vmatpush1.bf16.msra.mxu1 %v4530_v35  ;;  %v4602_v52 = vld [vmem:[#allocation2 + $0xd50] sm:$0xff] }
 0x4b1   :  { %4487 = vmatprep.subr.bf16.mxu0 %v4472_v15  ;;  %4551 = vmatprep.subr.bf16.mxu1 %v4533_v31  ;;  %v4666_v35 = vld [vmem:[#allocation2 + $0xdd0] sm:$0xff] }
 0x4b4   :  { %4488 = vmatpush1.bf16.msra.mxu0 %v4471_v40  ;;  %4552 = vmatpush1.bf16.msra.mxu1 %v4532_v44  ;;  %v4605_v40 = vld [vmem:[#allocation2 + $0xd68] sm:$0xff] }
 0x4b5   :  { %4489 = vmatprep.subr.bf16.mxu0 %v4474_v26  ;;  %4553 = vmatprep.subr.bf16.mxu1 %v4535_v42  ;;  %v4669_v44 = vld [vmem:[#allocation2 + $0xde8] sm:$0xff] }
 0x4b8   :  { %4490 = vmatpush1.bf16.msra.mxu0 %v4473_v16  ;;  %4554 = vmatpush1.bf16.msra.mxu1 %v4534_v12 }
 0x4b9   :  { %4491 = vmatprep.subr.bf16.mxu0 %v4476_v46  ;;  %4555 = vmatprep.subr.bf16.mxu1 %v4537_v27 }
 0x4bc   :  { %4492 = vmatpush1.bf16.msra.mxu0 %v4475_v30  ;;  %4556 = vmatpush1.bf16.msra.mxu1 %v4536_v51 }
 0x4bd   :  { %4493 = vmatprep.subr.bf16.mxu0 %v4478_v56  ;;  %4557 = vmatprep.subr.bf16.mxu1 %v4539_v60  ;;  %v4604_v60 = vld [vmem:[#allocation2 + $0xd60] sm:$0xff] }
 0x4be   :  { %v3627_v0 = vpop.f32.mrb[100].mxu0  ;;  %v3691_v61 = vpop.f32.mrb[100].mxu1 }
 0x4bf   :  { %v3634_v8 = vadd.f32 %v3627_v0, %v9284_v24  ;;  %v3629_v13 = vpop.f32.mrb[101].mxu0  ;;  %v3693_v37 = vpop.f32.mrb[101].mxu1  ;;  %v4592_v24 = vld [vmem:[#allocation2 + $0xd00] sm:$0xff]  ;;  %v4607_v0 = vld [vmem:[#allocation2 + $0xd78] sm:$0xff] }
 0x4c0   :  { %v3635_v59 = vadd.f32 %v3629_v13, %v9286_v63  ;;  %v3631_v38 = vpop.f32.mrb[102].mxu0  ;;  %v3695_v25 = vpop.f32.mrb[102].mxu1  ;;  %4494 = vmatpush1.bf16.msra.mxu0 %v4477_v19  ;;  %4558 = vmatpush1.bf16.msra.mxu1 %v4538_v3  ;;  %v4658_v63 = vld [vmem:[#allocation2 + $0xd90] sm:$0xff]  ;;  %v4668_v19 = vld [vmem:[#allocation2 + $0xde0] sm:$0xff] }
 0x4c1   :  { %v9292_v45 = vadd.f32 %v3691_v61, %v3634_v8  ;;  %v3632_v9 = vpop.f32.mrb[103].mxu0  ;;  %v3696_v10 = vpop.f32.mrb[103].mxu1  ;;  %4495 = vmatprep.subr.bf16.mxu0 %v4480_v20  ;;  %4559 = vmatprep.subr.bf16.mxu1 %v4541_v23  ;;  %v4671_v61 = vld [vmem:[#allocation2 + $0xdf8] sm:$0xff]  ;;  %v4590_v20 = vld [vmem:[#allocation6 + $0x18] sm:$0x4] }
 0x4c2   :  { %v9294_v2 = vadd.f32 %v3693_v37, %v3635_v59  ;;  %v4654_v23 = vld [vmem:[#allocation6 + $0x18] sm:$0x8]  ;;  %v4721_v37 = vld [vmem:[#allocation2 + $0xe08] sm:$0xff]  ;;  %v4609_v38 = vrot.slane %v4590_v20, 2  ;;  %v4784_v9 = vld [vmem:[#allocation2 + $0xe80] sm:$0xff] }
 0x4c3   :  { %v4606_v8 = vld [vmem:[#allocation2 + $0xd70] sm:$0xff]  ;;  %v4785_v59 = vld [vmem:[#allocation2 + $0xe88] sm:$0xff]  ;;  %v4673_v25 = vrot.slane %v4654_v23, 3  ;;  %v4723_v10 = vld [vmem:[#allocation2 + $0xe18] sm:$0xff] }
 0x4c4   :  { %4496 = vmatpush1.bf16.msra.mxu0 %v4479_v1  ;;  %4560 = vmatpush1.bf16.msra.mxu1 %v4540_v11  ;;  %v4670_v13 = vld [vmem:[#allocation2 + $0xdf0] sm:$0xff]  ;;  %v4787_v1 = vld [vmem:[#allocation2 + $0xe98] sm:$0xff]  ;;  %v4917_v20 = vld [vmem:[#allocation2 + $0xfa8] sm:$0xff] }
 0x4c5   :  { %4497 = vmatprep.subr.bf16.mxu0 %v4482_v33  ;;  %4561 = vmatprep.subr.bf16.mxu1 %v4543_v54  ;;  %v4722_v11 = vld [vmem:[#allocation2 + $0xe10] sm:$0xff]  ;;  %v4725_v33 = vld [vmem:[#allocation2 + $0xe28] sm:$0xff]  ;;  %v4852_v23 = vld [vmem:[#allocation2 + $0xf20] sm:$0xff] }
 0x4c6   :  { %v4789_v54 = vld [vmem:[#allocation2 + $0xea8] sm:$0xff] }
 0x4c8   :  { %4498 = vmatpush1.bf16.msra.mxu0 %v4481_v53  ;;  %4562 = vmatpush1.bf16.msra.mxu1 %v4542_v49  ;;  %v4788_v53 = vld [vmem:[#allocation2 + $0xea0] sm:$0xff]  ;;  %v4727_v49 = vld [vmem:[#allocation2 + $0xe38] sm:$0xff] }
 0x4c9   :  { %4611 = vmatprep.subr.bf16.mxu0 %v4593_v5  ;;  %4675 = vmatprep.subr.bf16.mxu1 %v4657_v58  ;;  %v4791_v5 = vld [vmem:[#allocation2 + $0xeb8] sm:$0xff]  ;;  %v4726_v58 = vld [vmem:[#allocation2 + $0xe30] sm:$0xff] }
 0x4cb   :  { %4516 = vmatmul.mubr.bf16.vlgmr.msra.gmra.mrb[128].mxu0 %v4465_v43  ;;  %4580 = vmatmul.mubr.bf16.vlgmr.msra.gmra.mrb[128].mxu1 %v4545_v4  ;;  %v4790_v4 = vld [vmem:[#allocation2 + $0xeb0] sm:$0xff]  ;;  %v4729_v43 = vld [vmem:[#allocation2 + $0xe48] sm:$0xff] }
 0x4cc   :  { %4612 = vmatpush1.bf16.msra.mxu0 %v4592_v24  ;;  %4676 = vmatpush1.bf16.msra.mxu1 %v4656_v36  ;;  %v4793_v24 = vld [vmem:[#allocation2 + $0xec8] sm:$0xff]  ;;  %v4728_v36 = vld [vmem:[#allocation2 + $0xe40] sm:$0xff] }
 0x4cd   :  { %4613 = vmatprep.subr.bf16.mxu0 %v4595_v39  ;;  %4677 = vmatprep.subr.bf16.mxu1 %v4659_v17  ;;  %v4792_v39 = vld [vmem:[#allocation2 + $0xec0] sm:$0xff]  ;;  %v4731_v17 = vld [vmem:[#allocation2 + $0xe58] sm:$0xff] }
 0x4ce   :  { %4643 = vmatprep.mubr.bf16.mxu0 %v9569_v47  ;;  %4707 = vmatprep.mubr.bf16.mxu1 %v9569_v47 }
 0x4d0   :  { %4614 = vmatpush1.bf16.msra.mxu0 %v4594_v50  ;;  %4678 = vmatpush1.bf16.msra.mxu1 %v4658_v63  ;;  %v4795_v50 = vld [vmem:[#allocation2 + $0xed8] sm:$0xff]  ;;  %v4730_v63 = vld [vmem:[#allocation2 + $0xe50] sm:$0xff] }
 0x4d1   :  { %4615 = vmatprep.subr.bf16.mxu0 %v4597_v18  ;;  %4679 = vmatprep.subr.bf16.mxu1 %v4661_v22  ;;  %v4794_v18 = vld [vmem:[#allocation2 + $0xed0] sm:$0xff] }
 0x4d4   :  { %4616 = vmatpush1.bf16.msra.mxu0 %v4596_v7  ;;  %4680 = vmatpush1.bf16.msra.mxu1 %v4660_v34  ;;  %v4733_v34 = vld [vmem:[#allocation2 + $0xe68] sm:$0xff] }
 0x4d5   :  { %4617 = vmatprep.subr.bf16.mxu0 %v4599_v32  ;;  %4681 = vmatprep.subr.bf16.mxu1 %v4663_v6  ;;  %v4797_v32 = vld [vmem:[#allocation2 + $0xee8] sm:$0xff] }
 0x4d8   :  { %4618 = vmatpush1.bf16.msra.mxu0 %v4598_v41  ;;  %4682 = vmatpush1.bf16.msra.mxu1 %v4662_v55 }
 0x4d9   :  { %4619 = vmatprep.subr.bf16.mxu0 %v4601_v28  ;;  %4683 = vmatprep.subr.bf16.mxu1 %v4665_v57 }
 0x4dc   :  { %4620 = vmatpush1.bf16.msra.mxu0 %v4600_v14  ;;  %4684 = vmatpush1.bf16.msra.mxu1 %v4664_v48 }
 0x4dd   :  { %4621 = vmatprep.subr.bf16.mxu0 %v4603_v21  ;;  %4685 = vmatprep.subr.bf16.mxu1 %v4667_v62 }
 0x4de   :  { %v3755_v15 = vpop.f32.mrb[104].mxu0  ;;  %v3819_v31 = vpop.f32.mrb[104].mxu1 }
 0x4df   :  { %v3762_v26 = vadd.f32 %v3755_v15, %v9292_v45  ;;  %v3757_v42 = vpop.f32.mrb[105].mxu0  ;;  %v3821_v16 = vpop.f32.mrb[105].mxu1  ;;  %v4720_v45 = vld [vmem:[#allocation2 + $0xe00] sm:$0xff] }
 0x4e0   :  { %v3763_v12 = vadd.f32 %v3757_v42, %v9294_v2  ;;  %v3759_v46 = vpop.f32.mrb[106].mxu0  ;;  %v3823_v27 = vpop.f32.mrb[106].mxu1  ;;  %4622 = vmatpush1.bf16.msra.mxu0 %v4602_v52  ;;  %4686 = vmatpush1.bf16.msra.mxu1 %v4666_v35  ;;  %v4786_v2 = vld [vmem:[#allocation2 + $0xe90] sm:$0xff]  ;;  %v4732_v52 = vld [vmem:[#allocation2 + $0xe60] sm:$0xff] }
 0x4e1   :  { %v9300_v30 = vadd.f32 %v3819_v31, %v3762_v26  ;;  %v3760_v51 = vpop.f32.mrb[107].mxu0  ;;  %v3824_v56 = vpop.f32.mrb[107].mxu1  ;;  %4623 = vmatprep.subr.bf16.mxu0 %v4605_v40  ;;  %4687 = vmatprep.subr.bf16.mxu1 %v4669_v44  ;;  %v4796_v35 = vld [vmem:[#allocation2 + $0xee0] sm:$0xff]  ;;  %v4735_v31 = vld [vmem:[#allocation2 + $0xe78] sm:$0xff]  ;;  %v4718_v44 = vld [vmem:[#allocation6 + $0x18] sm:$0x10] }
 0x4e2   :  { %v9302_v3 = vadd.f32 %v3821_v16, %v3763_v12  ;;  %v4799_v40 = vld [vmem:[#allocation2 + $0xef8] sm:$0xff]  ;;  %v4782_v26 = vld [vmem:[#allocation6 + $0x18] sm:$0x20]  ;;  %v4849_v12 = vld [vmem:[#allocation2 + $0xf08] sm:$0xff]  ;;  %v4737_v27 = vrot.slane %v4718_v44, 4 }
 0x4e3   :  { %v4734_v42 = vld [vmem:[#allocation2 + $0xe70] sm:$0xff]  ;;  %v4913_v46 = vld [vmem:[#allocation2 + $0xf88] sm:$0xff]  ;;  %v4848_v51 = vld [vmem:[#allocation2 + $0xf00] sm:$0xff] }
 0x4e4   :  { %4624 = vmatpush1.bf16.msra.mxu0 %v4604_v60  ;;  %4688 = vmatpush1.bf16.msra.mxu1 %v4668_v19  ;;  %v4798_v16 = vld [vmem:[#allocation2 + $0xef0] sm:$0xff]  ;;  %v4912_v56 = vld [vmem:[#allocation2 + $0xf80] sm:$0xff]  ;;  %v4851_v60 = vld [vmem:[#allocation2 + $0xf18] sm:$0xff] }
 0x4e5   :  { %4625 = vmatprep.subr.bf16.mxu0 %v4607_v0  ;;  %4689 = vmatprep.subr.bf16.mxu1 %v4671_v61  ;;  %v4915_v19 = vld [vmem:[#allocation2 + $0xf98] sm:$0xff]  ;;  %v4914_v0 = vld [vmem:[#allocation2 + $0xf90] sm:$0xff]  ;;  %v4853_v61 = vld [vmem:[#allocation2 + $0xf28] sm:$0xff] }
 0x4e6   :  { %v5042_v44 = vld [vmem:[#allocation2 + $0x10a8] sm:$0xff] }
 0x4e8   :  { %4626 = vmatpush1.bf16.msra.mxu0 %v4606_v8  ;;  %4690 = vmatpush1.bf16.msra.mxu1 %v4670_v13  ;;  %v4916_v8 = vld [vmem:[#allocation2 + $0xfa0] sm:$0xff]  ;;  %v4855_v13 = vld [vmem:[#allocation2 + $0xf38] sm:$0xff] }
 0x4e9   :  { %4739 = vmatprep.subr.bf16.mxu0 %v4721_v37  ;;  %4803 = vmatprep.subr.bf16.mxu1 %v4785_v59  ;;  %v4919_v37 = vld [vmem:[#allocation2 + $0xfb8] sm:$0xff]  ;;  %v4854_v59 = vld [vmem:[#allocation2 + $0xf30] sm:$0xff] }
 0x4eb   :  { %4644 = vmatmul.mubr.bf16.vlgmr.msra.gmra.mrb[132].mxu0 %v4609_v38  ;;  %4708 = vmatmul.mubr.bf16.vlgmr.msra.gmra.mrb[132].mxu1 %v4673_v25  ;;  %v4918_v38 = vld [vmem:[#allocation2 + $0xfb0] sm:$0xff]  ;;  %v4857_v25 = vld [vmem:[#allocation2 + $0xf48] sm:$0xff] }
 0x4ec   :  { %4740 = vmatpush1.bf16.msra.mxu0 %v4720_v45  ;;  %4804 = vmatpush1.bf16.msra.mxu1 %v4784_v9  ;;  %v4921_v45 = vld [vmem:[#allocation2 + $0xfc8] sm:$0xff]  ;;  %v4856_v9 = vld [vmem:[#allocation2 + $0xf40] sm:$0xff] }
 0x4ed   :  { %4741 = vmatprep.subr.bf16.mxu0 %v4723_v10  ;;  %4805 = vmatprep.subr.bf16.mxu1 %v4787_v1  ;;  %v4920_v10 = vld [vmem:[#allocation2 + $0xfc0] sm:$0xff]  ;;  %v4859_v1 = vld [vmem:[#allocation2 + $0xf58] sm:$0xff] }
 0x4ee   :  { %4771 = vmatprep.mubr.bf16.mxu0 %v9569_v47  ;;  %4835 = vmatprep.mubr.bf16.mxu1 %v9569_v47 }
 0x4f0   :  { %4742 = vmatpush1.bf16.msra.mxu0 %v4722_v11  ;;  %4806 = vmatpush1.bf16.msra.mxu1 %v4786_v2  ;;  %v4923_v11 = vld [vmem:[#allocation2 + $0xfd8] sm:$0xff]  ;;  %v4858_v2 = vld [vmem:[#allocation2 + $0xf50] sm:$0xff] }
 0x4f1   :  { %4743 = vmatprep.subr.bf16.mxu0 %v4725_v33  ;;  %4807 = vmatprep.subr.bf16.mxu1 %v4789_v54  ;;  %v4922_v33 = vld [vmem:[#allocation2 + $0xfd0] sm:$0xff] }
 0x4f4   :  { %4744 = vmatpush1.bf16.msra.mxu0 %v4724_v29  ;;  %4808 = vmatpush1.bf16.msra.mxu1 %v4788_v53  ;;  %v4861_v53 = vld [vmem:[#allocation2 + $0xf68] sm:$0xff] }
 0x4f5   :  { %4745 = vmatprep.subr.bf16.mxu0 %v4727_v49  ;;  %4809 = vmatprep.subr.bf16.mxu1 %v4791_v5  ;;  %v4925_v49 = vld [vmem:[#allocation2 + $0xfe8] sm:$0xff] }
 0x4f8   :  { %4746 = vmatpush1.bf16.msra.mxu0 %v4726_v58  ;;  %4810 = vmatpush1.bf16.msra.mxu1 %v4790_v4 }
 0x4f9   :  { %4747 = vmatprep.subr.bf16.mxu0 %v4729_v43  ;;  %4811 = vmatprep.subr.bf16.mxu1 %v4793_v24 }
 0x4fc   :  { %4748 = vmatpush1.bf16.msra.mxu0 %v4728_v36  ;;  %4812 = vmatpush1.bf16.msra.mxu1 %v4792_v39 }
 0x4fd   :  { %4749 = vmatprep.subr.bf16.mxu0 %v4731_v17  ;;  %4813 = vmatprep.subr.bf16.mxu1 %v4795_v50 }
 0x4fe   :  { %v3883_v22 = vpop.f32.mrb[108].mxu0  ;;  %v3947_v7 = vpop.f32.mrb[108].mxu1 }
 0x4ff   :  { %v3890_v6 = vadd.f32 %v3883_v22, %v9300_v30  ;;  %v3885_v41 = vpop.f32.mrb[109].mxu0  ;;  %v3949_v55 = vpop.f32.mrb[109].mxu1  ;;  %v4801_v30 = vrot.slane %v4782_v26, 5  ;;  %v4980_v26 = vld [vmem:[#allocation2 + $0x1020] sm:$0xff] }
 0x500   :  { %v3891_v28 = vadd.f32 %v3885_v41, %v9302_v3  ;;  %v3887_v57 = vpop.f32.mrb[110].mxu0  ;;  %v3951_v14 = vpop.f32.mrb[110].mxu1  ;;  %4750 = vmatpush1.bf16.msra.mxu0 %v4730_v63  ;;  %4814 = vmatpush1.bf16.msra.mxu1 %v4794_v18  ;;  %v4850_v3 = vld [vmem:[#allocation2 + $0xf10] sm:$0xff]  ;;  %v4860_v63 = vld [vmem:[#allocation2 + $0xf60] sm:$0xff] }
 0x501   :  { %v9308_v48 = vadd.f32 %v3947_v7, %v3890_v6  ;;  %v3888_v21 = vpop.f32.mrb[111].mxu0  ;;  %v3952_v62 = vpop.f32.mrb[111].mxu1  ;;  %4751 = vmatprep.subr.bf16.mxu0 %v4733_v34  ;;  %4815 = vmatprep.subr.bf16.mxu1 %v4797_v32  ;;  %v4924_v18 = vld [vmem:[#allocation2 + $0xfe0] sm:$0xff]  ;;  %v4863_v7 = vld [vmem:[#allocation2 + $0xf78] sm:$0xff]  ;;  %v4846_v32 = vld [vmem:[#allocation6 + $0x18] sm:$0x40] }
 0x502   :  { %v9310_v15 = vadd.f32 %v3949_v55, %v3891_v28  ;;  %v4927_v34 = vld [vmem:[#allocation2 + $0xff8] sm:$0xff]  ;;  %v4910_v6 = vld [vmem:[#allocation6 + $0x18] sm:$0x80]  ;;  %v4977_v28 = vld [vmem:[#allocation2 + $0x1008] sm:$0xff]  ;;  %v4865_v14 = vrot.slane %v4846_v32, 6 }
 0x503   :  { %v4862_v41 = vld [vmem:[#allocation2 + $0xf70] sm:$0xff]  ;;  %v5038_v57 = vld [vmem:[#allocation2 + $0x1088] sm:$0xff]  ;;  %v4976_v21 = vld [vmem:[#allocation2 + $0x1000] sm:$0xff] }
 0x504   :  { %4752 = vmatpush1.bf16.msra.mxu0 %v4732_v52  ;;  %4816 = vmatpush1.bf16.msra.mxu1 %v4796_v35  ;;  %v4926_v55 = vld [vmem:[#allocation2 + $0xff0] sm:$0xff]  ;;  %v5037_v62 = vld [vmem:[#allocation2 + $0x1080] sm:$0xff]  ;;  %v4979_v52 = vld [vmem:[#allocation2 + $0x1018] sm:$0xff] }
 0x505   :  { %4753 = vmatprep.subr.bf16.mxu0 %v4735_v31  ;;  %4817 = vmatprep.subr.bf16.mxu1 %v4799_v40  ;;  %v5040_v35 = vld [vmem:[#allocation2 + $0x1098] sm:$0xff]  ;;  %v5039_v31 = vld [vmem:[#allocation2 + $0x1090] sm:$0xff]  ;;  %v4981_v40 = vld [vmem:[#allocation2 + $0x1028] sm:$0xff] }
 0x506   :  { %v5105_v32 = vld [vmem:[#allocation2 + $0x1120] sm:$0xff] }
 0x508   :  { %4754 = vmatpush1.bf16.msra.mxu0 %v4734_v42  ;;  %4818 = vmatpush1.bf16.msra.mxu1 %v4798_v16  ;;  %v5041_v42 = vld [vmem:[#allocation2 + $0x10a0] sm:$0xff]  ;;  %v4983_v16 = vld [vmem:[#allocation2 + $0x1038] sm:$0xff] }
 0x509   :  { %4867 = vmatprep.subr.bf16.mxu0 %v4849_v12  ;;  %4931 = vmatprep.subr.bf16.mxu1 %v4913_v46  ;;  %v5044_v12 = vld [vmem:[#allocation2 + $0x10b8] sm:$0xff]  ;;  %v4982_v46 = vld [vmem:[#allocation2 + $0x1030] sm:$0xff] }
 0x50b   :  { %4772 = vmatmul.mubr.bf16.vlgmr.msra.gmra.mrb[136].mxu0 %v4737_v27  ;;  %4836 = vmatmul.mubr.bf16.vlgmr.msra.gmra.mrb[136].mxu1 %v4801_v30  ;;  %v5043_v27 = vld [vmem:[#allocation2 + $0x10b0] sm:$0xff]  ;;  %v4985_v30 = vld [vmem:[#allocation2 + $0x1048] sm:$0xff] }
 0x50c   :  { %4868 = vmatpush1.bf16.msra.mxu0 %v4848_v51  ;;  %4932 = vmatpush1.bf16.msra.mxu1 %v4912_v56  ;;  %v5046_v51 = vld [vmem:[#allocation2 + $0x10c8] sm:$0xff]  ;;  %v4984_v56 = vld [vmem:[#allocation2 + $0x1040] sm:$0xff] }
 0x50d   :  { %4869 = vmatprep.subr.bf16.mxu0 %v4851_v60  ;;  %4933 = vmatprep.subr.bf16.mxu1 %v4915_v19  ;;  %v5045_v60 = vld [vmem:[#allocation2 + $0x10c0] sm:$0xff]  ;;  %v4987_v19 = vld [vmem:[#allocation2 + $0x1058] sm:$0xff] }
 0x50e   :  { %4899 = vmatprep.mubr.bf16.mxu0 %v9569_v47  ;;  %4963 = vmatprep.mubr.bf16.mxu1 %v9569_v47 }
 0x510   :  { %4870 = vmatpush1.bf16.msra.mxu0 %v4850_v3  ;;  %4934 = vmatpush1.bf16.msra.mxu1 %v4914_v0  ;;  %v5048_v3 = vld [vmem:[#allocation2 + $0x10d8] sm:$0xff]  ;;  %v4986_v0 = vld [vmem:[#allocation2 + $0x1050] sm:$0xff] }
 0x511   :  { %4871 = vmatprep.subr.bf16.mxu0 %v4853_v61  ;;  %4935 = vmatprep.subr.bf16.mxu1 %v4917_v20  ;;  %v5047_v61 = vld [vmem:[#allocation2 + $0x10d0] sm:$0xff] }
 0x514   :  { %4872 = vmatpush1.bf16.msra.mxu0 %v4852_v23  ;;  %4936 = vmatpush1.bf16.msra.mxu1 %v4916_v8  ;;  %v4989_v8 = vld [vmem:[#allocation2 + $0x1068] sm:$0xff] }
 0x515   :  { %4873 = vmatprep.subr.bf16.mxu0 %v4855_v13  ;;  %4937 = vmatprep.subr.bf16.mxu1 %v4919_v37  ;;  %v5050_v13 = vld [vmem:[#allocation2 + $0x10e8] sm:$0xff] }
 0x518   :  { %4874 = vmatpush1.bf16.msra.mxu0 %v4854_v59  ;;  %4938 = vmatpush1.bf16.msra.mxu1 %v4918_v38 }
 0x519   :  { %4875 = vmatprep.subr.bf16.mxu0 %v4857_v25  ;;  %4939 = vmatprep.subr.bf16.mxu1 %v4921_v45 }
 0x51c   :  { %4876 = vmatpush1.bf16.msra.mxu0 %v4856_v9  ;;  %4940 = vmatpush1.bf16.msra.mxu1 %v4920_v10 }
 0x51d   :  { %4877 = vmatprep.subr.bf16.mxu0 %v4859_v1  ;;  %4941 = vmatprep.subr.bf16.mxu1 %v4923_v11 }
 0x51e   :  { %v4008_v54 = vpop.f32.mrb[112].mxu0  ;;  %v4072_v29 = vpop.f32.mrb[112].mxu1 }
 0x51f   :  { %v4015_v5 = vadd.f32 %v4008_v54, %v9308_v48  ;;  %v4010_v58 = vpop.f32.mrb[113].mxu0  ;;  %v4074_v4 = vpop.f32.mrb[113].mxu1  ;;  %v4929_v48 = vrot.slane %v4910_v6, 7  ;;  %v5169_v6 = vld [vmem:[#allocation2 + $0x11a0] sm:$0xff] }
 0x520   :  { %v4016_v43 = vadd.f32 %v4010_v58, %v9310_v15  ;;  %v4012_v24 = vpop.f32.mrb[114].mxu0  ;;  %v4076_v36 = vpop.f32.mrb[114].mxu1  ;;  %4878 = vmatpush1.bf16.msra.mxu0 %v4858_v2  ;;  %4942 = vmatpush1.bf16.msra.mxu1 %v4922_v33  ;;  %v4978_v15 = vld [vmem:[#allocation2 + $0x1010] sm:$0xff]  ;;  %v4988_v2 = vld [vmem:[#allocation2 + $0x1060] sm:$0xff] }
 0x521   :  { %v9316_v39 = vadd.f32 %v4072_v29, %v4015_v5  ;;  %v4013_v17 = vpop.f32.mrb[115].mxu0  ;;  %v4077_v50 = vpop.f32.mrb[115].mxu1  ;;  %4879 = vmatprep.subr.bf16.mxu0 %v4861_v53  ;;  %4943 = vmatprep.subr.bf16.mxu1 %v4925_v49  ;;  %v5049_v33 = vld [vmem:[#allocation2 + $0x10e0] sm:$0xff]  ;;  %v4991_v29 = vld [vmem:[#allocation2 + $0x1078] sm:$0xff]  ;;  %v4990_v5 = vld [vmem:[#allocation2 + $0x1070] sm:$0xff] }
 0x522   :  { %v9318_v22 = vadd.f32 %v4074_v4, %v4016_v43  ;;  %v5052_v53 = vld [vmem:[#allocation2 + $0x10f8] sm:$0xff]  ;;  %v5051_v58 = vld [vmem:[#allocation2 + $0x10f0] sm:$0xff]  ;;  %v5102_v4 = vld [vmem:[#allocation2 + $0x1108] sm:$0xff] }
 0x523   :  { %v5035_v49 = vld [vmem:[#allocation6 + $0x20] sm:$0x2]  ;;  %v5166_v43 = vld [vmem:[#allocation2 + $0x1188] sm:$0xff]  ;;  %v4974_v36 = vld [vmem:[#allocation6 + $0x20] sm:$0x1] }
 0x524   :  { %4880 = vmatpush1.bf16.msra.mxu0 %v4860_v63  ;;  %4944 = vmatpush1.bf16.msra.mxu1 %v4924_v18  ;;  %v5054_v24 = vrot.slane %v5035_v49, 1  ;;  %v5165_v17 = vld [vmem:[#allocation2 + $0x1180] sm:$0xff]  ;;  %v5104_v50 = vld [vmem:[#allocation2 + $0x1118] sm:$0xff]  ;;  %v5103_v18 = vld [vmem:[#allocation2 + $0x1110] sm:$0xff] }
 0x525   :  { %4881 = vmatprep.subr.bf16.mxu0 %v4863_v7  ;;  %4945 = vmatprep.subr.bf16.mxu1 %v4927_v34  ;;  %v5168_v63 = vld [vmem:[#allocation2 + $0x1198] sm:$0xff]  ;;  %v5106_v7 = vld [vmem:[#allocation2 + $0x1128] sm:$0xff]  ;;  %v5233_v49 = vld [vmem:[#allocation2 + $0x1220] sm:$0xff] }
 0x526   :  { %v5170_v34 = vld [vmem:[#allocation2 + $0x11a8] sm:$0xff] }
 0x528   :  { %4882 = vmatpush1.bf16.msra.mxu0 %v4862_v41  ;;  %4946 = vmatpush1.bf16.msra.mxu1 %v4926_v55  ;;  %v5108_v41 = vld [vmem:[#allocation2 + $0x1138] sm:$0xff] }
 0x529   :  { %4992 = vmatprep.subr.bf16.mxu0 %v4977_v28  ;;  %5056 = vmatprep.subr.bf16.mxu1 %v5038_v57  ;;  %v5172_v55 = vld [vmem:[#allocation2 + $0x11b8] sm:$0xff]  ;;  %v5107_v28 = vld [vmem:[#allocation2 + $0x1130] sm:$0xff] }
 0x52a   :  { %v5171_v57 = vld [vmem:[#allocation2 + $0x11b0] sm:$0xff] }
 0x52b   :  { %4900 = vmatmul.mubr.bf16.vlgmr.msra.gmra.mrb[140].mxu0 %v4865_v14  ;;  %4964 = vmatmul.mubr.bf16.vlgmr.msra.gmra.mrb[140].mxu1 %v4929_v48  ;;  %v5110_v14 = vld [vmem:[#allocation2 + $0x1148] sm:$0xff] }
 0x52c   :  { %4993 = vmatpush1.bf16.msra.mxu0 %v4976_v21  ;;  %5057 = vmatpush1.bf16.msra.mxu1 %v5037_v62  ;;  %v5174_v48 = vld [vmem:[#allocation2 + $0x11c8] sm:$0xff]  ;;  %v5109_v21 = vld [vmem:[#allocation2 + $0x1140] sm:$0xff] }
 0x52d   :  { %4994 = vmatprep.subr.bf16.mxu0 %v4979_v52  ;;  %5058 = vmatprep.subr.bf16.mxu1 %v5040_v35  ;;  %v5173_v62 = vld [vmem:[#allocation2 + $0x11c0] sm:$0xff]  ;;  %v5112_v52 = vld [vmem:[#allocation2 + $0x1158] sm:$0xff] }
 0x52e   :  { %5024 = vmatprep.mubr.bf16.mxu0 %v9569_v47  ;;  %5088 = vmatprep.mubr.bf16.mxu1 %v9569_v47  ;;  %v5176_v35 = vld [vmem:[#allocation2 + $0x11d8] sm:$0xff] }
 0x530   :  { %4995 = vmatpush1.bf16.msra.mxu0 %v4978_v15  ;;  %5059 = vmatpush1.bf16.msra.mxu1 %v5039_v31  ;;  %v5111_v15 = vld [vmem:[#allocation2 + $0x1150] sm:$0xff] }
 0x531   :  { %4996 = vmatprep.subr.bf16.mxu0 %v4981_v40  ;;  %5060 = vmatprep.subr.bf16.mxu1 %v5042_v44  ;;  %v5175_v31 = vld [vmem:[#allocation2 + $0x11d0] sm:$0xff] }
 0x534   :  { %4997 = vmatpush1.bf16.msra.mxu0 %v4980_v26  ;;  %5061 = vmatpush1.bf16.msra.mxu1 %v5041_v42  ;;  %v5114_v26 = vld [vmem:[#allocation2 + $0x1168] sm:$0xff] }
 0x535   :  { %4998 = vmatprep.subr.bf16.mxu0 %v4983_v16  ;;  %5062 = vmatprep.subr.bf16.mxu1 %v5044_v12  ;;  %v5178_v42 = vld [vmem:[#allocation2 + $0x11e8] sm:$0xff] }
 0x538   :  { %4999 = vmatpush1.bf16.msra.mxu0 %v4982_v46  ;;  %5063 = vmatpush1.bf16.msra.mxu1 %v5043_v27 }
 0x539   :  { %5000 = vmatprep.subr.bf16.mxu0 %v4985_v30  ;;  %5064 = vmatprep.subr.bf16.mxu1 %v5046_v51 }
 0x53c   :  { %5001 = vmatpush1.bf16.msra.mxu0 %v4984_v56  ;;  %5065 = vmatpush1.bf16.msra.mxu1 %v5045_v60 }
 0x53d   :  { %5002 = vmatprep.subr.bf16.mxu0 %v4987_v19  ;;  %5066 = vmatprep.subr.bf16.mxu1 %v5048_v3  ;;  %v5113_v3 = vld [vmem:[#allocation2 + $0x1160] sm:$0xff] }
 0x53e   :  { %v4136_v20 = vpop.f32.mrb[116].mxu0  ;;  %v4200_v23 = vpop.f32.mrb[116].mxu1 }
 0x53f   :  { %v4143_v37 = vadd.f32 %v4136_v20, %v9316_v39  ;;  %v4138_v59 = vpop.f32.mrb[117].mxu0  ;;  %v4202_v38 = vpop.f32.mrb[117].mxu1  ;;  %v5101_v39 = vld [vmem:[#allocation2 + $0x1100] sm:$0xff]  ;;  %v5116_v20 = vld [vmem:[#allocation2 + $0x1178] sm:$0xff] }
 0x540   :  { %v4144_v25 = vadd.f32 %v4138_v59, %v9318_v22  ;;  %v4140_v45 = vpop.f32.mrb[118].mxu0  ;;  %v4204_v9 = vpop.f32.mrb[118].mxu1  ;;  %5003 = vmatpush1.bf16.msra.mxu0 %v4986_v0  ;;  %5067 = vmatpush1.bf16.msra.mxu1 %v5047_v61  ;;  %v5167_v22 = vld [vmem:[#allocation2 + $0x1190] sm:$0xff]  ;;  %v5177_v0 = vld [vmem:[#allocation2 + $0x11e0] sm:$0xff] }
 0x541   :  { %v9324_v10 = vadd.f32 %v4200_v23, %v4143_v37  ;;  %v4141_v1 = vpop.f32.mrb[119].mxu0  ;;  %v4205_v11 = vpop.f32.mrb[119].mxu1  ;;  %5004 = vmatprep.subr.bf16.mxu0 %v4989_v8  ;;  %5068 = vmatprep.subr.bf16.mxu1 %v5050_v13  ;;  %v5180_v23 = vld [vmem:[#allocation2 + $0x11f8] sm:$0xff]  ;;  %v5115_v37 = vld [vmem:[#allocation2 + $0x1170] sm:$0xff] }
 0x542   :  { %v9326_v54 = vadd.f32 %v4202_v38, %v4144_v25  ;;  %v5099_v8 = vld [vmem:[#allocation6 + $0x20] sm:$0x4]  ;;  %v5163_v13 = vld [vmem:[#allocation6 + $0x20] sm:$0x8]  ;;  %v5179_v59 = vld [vmem:[#allocation2 + $0x11f0] sm:$0xff] }
 0x543   :  { %v5230_v38 = vld [vmem:[#allocation2 + $0x1208] sm:$0xff]  ;;  %v5118_v45 = vrot.slane %v5099_v8, 2  ;;  %v5182_v9 = vrot.slane %v5163_v13, 3  ;;  %v5293_v1 = vld [vmem:[#allocation2 + $0x1280] sm:$0xff]  ;;  %v5232_v11 = vld [vmem:[#allocation2 + $0x1218] sm:$0xff] }
 0x544   :  { %5005 = vmatpush1.bf16.msra.mxu0 %v4988_v2  ;;  %5069 = vmatpush1.bf16.msra.mxu1 %v5049_v33  ;;  %v5294_v25 = vld [vmem:[#allocation2 + $0x1288] sm:$0xff]  ;;  %v5296_v2 = vld [vmem:[#allocation2 + $0x1298] sm:$0xff]  ;;  %v5231_v33 = vld [vmem:[#allocation2 + $0x1210] sm:$0xff] }
 0x545   :  { %5006 = vmatprep.subr.bf16.mxu0 %v4991_v29  ;;  %5070 = vmatprep.subr.bf16.mxu1 %v5052_v53  ;;  %v5234_v29 = vld [vmem:[#allocation2 + $0x1228] sm:$0xff]  ;;  %v5361_v13 = vld [vmem:[#allocation2 + $0x1320] sm:$0xff] }
 0x546   :  { %v5298_v53 = vld [vmem:[#allocation2 + $0x12a8] sm:$0xff] }
 0x547   :  { %v5426_v8 = vld [vmem:[#allocation2 + $0x13a8] sm:$0xff] }
 0x548   :  { %5007 = vmatpush1.bf16.msra.mxu0 %v4990_v5  ;;  %5071 = vmatpush1.bf16.msra.mxu1 %v5051_v58  ;;  %v5297_v5 = vld [vmem:[#allocation2 + $0x12a0] sm:$0xff]  ;;  %v5236_v58 = vld [vmem:[#allocation2 + $0x1238] sm:$0xff] }
 0x549   :  { %5120 = vmatprep.subr.bf16.mxu0 %v5102_v4  ;;  %5184 = vmatprep.subr.bf16.mxu1 %v5166_v43  ;;  %v5300_v4 = vld [vmem:[#allocation2 + $0x12b8] sm:$0xff]  ;;  %v5235_v43 = vld [vmem:[#allocation2 + $0x1230] sm:$0xff] }
 0x54b   :  { %5025 = vmatmul.mubr.bf16.vlgmr.msra.gmra.mrb[144].mxu0 %v4974_v36  ;;  %5089 = vmatmul.mubr.bf16.vlgmr.msra.gmra.mrb[144].mxu1 %v5054_v24  ;;  %v5299_v24 = vld [vmem:[#allocation2 + $0x12b0] sm:$0xff]  ;;  %v5238_v36 = vld [vmem:[#allocation2 + $0x1248] sm:$0xff] }
 0x54c   :  { %5121 = vmatpush1.bf16.msra.mxu0 %v5101_v39  ;;  %5185 = vmatpush1.bf16.msra.mxu1 %v5165_v17  ;;  %v5302_v39 = vld [vmem:[#allocation2 + $0x12c8] sm:$0xff]  ;;  %v5237_v17 = vld [vmem:[#allocation2 + $0x1240] sm:$0xff] }
 0x54d   :  { %5122 = vmatprep.subr.bf16.mxu0 %v5104_v50  ;;  %5186 = vmatprep.subr.bf16.mxu1 %v5168_v63  ;;  %v5301_v50 = vld [vmem:[#allocation2 + $0x12c0] sm:$0xff]  ;;  %v5240_v63 = vld [vmem:[#allocation2 + $0x1258] sm:$0xff] }
 0x54e   :  { %5152 = vmatprep.mubr.bf16.mxu0 %v9569_v47  ;;  %5216 = vmatprep.mubr.bf16.mxu1 %v9569_v47 }
 0x550   :  { %5123 = vmatpush1.bf16.msra.mxu0 %v5103_v18  ;;  %5187 = vmatpush1.bf16.msra.mxu1 %v5167_v22  ;;  %v5304_v18 = vld [vmem:[#allocation2 + $0x12d8] sm:$0xff]  ;;  %v5239_v22 = vld [vmem:[#allocation2 + $0x1250] sm:$0xff] }
 0x551   :  { %5124 = vmatprep.subr.bf16.mxu0 %v5106_v7  ;;  %5188 = vmatprep.subr.bf16.mxu1 %v5170_v34  ;;  %v5303_v7 = vld [vmem:[#allocation2 + $0x12d0] sm:$0xff] }
 0x554   :  { %5125 = vmatpush1.bf16.msra.mxu0 %v5105_v32  ;;  %5189 = vmatpush1.bf16.msra.mxu1 %v5169_v6  ;;  %v5242_v6 = vld [vmem:[#allocation2 + $0x1268] sm:$0xff] }
 0x555   :  { %5126 = vmatprep.subr.bf16.mxu0 %v5108_v41  ;;  %5190 = vmatprep.subr.bf16.mxu1 %v5172_v55  ;;  %v5306_v41 = vld [vmem:[#allocation2 + $0x12e8] sm:$0xff] }
 0x558   :  { %5127 = vmatpush1.bf16.msra.mxu0 %v5107_v28  ;;  %5191 = vmatpush1.bf16.msra.mxu1 %v5171_v57 }
 0x559   :  { %5128 = vmatprep.subr.bf16.mxu0 %v5110_v14  ;;  %5192 = vmatprep.subr.bf16.mxu1 %v5174_v48 }
 0x55c   :  { %5129 = vmatpush1.bf16.msra.mxu0 %v5109_v21  ;;  %5193 = vmatpush1.bf16.msra.mxu1 %v5173_v62 }
 0x55d   :  { %5130 = vmatprep.subr.bf16.mxu0 %v5112_v52  ;;  %5194 = vmatprep.subr.bf16.mxu1 %v5176_v35 }
 0x55e   :  { %v4264_v40 = vpop.f32.mrb[120].mxu0  ;;  %v4328_v44 = vpop.f32.mrb[120].mxu1 }
 0x55f   :  { %v4271_v16 = vadd.f32 %v4264_v40, %v9324_v10  ;;  %v4266_v12 = vpop.f32.mrb[121].mxu0  ;;  %v4330_v46 = vpop.f32.mrb[121].mxu1  ;;  %v5229_v10 = vld [vmem:[#allocation2 + $0x1200] sm:$0xff] }
 0x560   :  { %v4272_v27 = vadd.f32 %v4266_v12, %v9326_v54  ;;  %v4268_v30 = vpop.f32.mrb[122].mxu0  ;;  %v4332_v51 = vpop.f32.mrb[122].mxu1  ;;  %5131 = vmatpush1.bf16.msra.mxu0 %v5111_v15  ;;  %5195 = vmatpush1.bf16.msra.mxu1 %v5175_v31  ;;  %v5295_v54 = vld [vmem:[#allocation2 + $0x1290] sm:$0xff]  ;;  %v5241_v15 = vld [vmem:[#allocation2 + $0x1260] sm:$0xff] }
 0x561   :  { %v9332_v56 = vadd.f32 %v4328_v44, %v4271_v16  ;;  %v4269_v60 = vpop.f32.mrb[123].mxu0  ;;  %v4333_v19 = vpop.f32.mrb[123].mxu1  ;;  %5132 = vmatprep.subr.bf16.mxu0 %v5114_v26  ;;  %5196 = vmatprep.subr.bf16.mxu1 %v5178_v42  ;;  %v5305_v31 = vld [vmem:[#allocation2 + $0x12e0] sm:$0xff]  ;;  %v5244_v44 = vld [vmem:[#allocation2 + $0x1278] sm:$0xff]  ;;  %v5243_v12 = vld [vmem:[#allocation2 + $0x1270] sm:$0xff] }
 0x562   :  { %v9334_v61 = vadd.f32 %v4330_v46, %v4272_v27  ;;  %v5308_v26 = vld [vmem:[#allocation2 + $0x12f8] sm:$0xff]  ;;  %v5307_v46 = vld [vmem:[#allocation2 + $0x12f0] sm:$0xff]  ;;  %v5358_v27 = vld [vmem:[#allocation2 + $0x1308] sm:$0xff] }
 0x563   :  { %v5227_v42 = vld [vmem:[#allocation6 + $0x20] sm:$0x10]  ;;  %v5291_v16 = vld [vmem:[#allocation6 + $0x20] sm:$0x20]  ;;  %v5422_v30 = vld [vmem:[#allocation2 + $0x1388] sm:$0xff] }
 0x564   :  { %5133 = vmatpush1.bf16.msra.mxu0 %v5113_v3  ;;  %5197 = vmatpush1.bf16.msra.mxu1 %v5177_v0  ;;  %v5246_v51 = vrot.slane %v5227_v42, 4  ;;  %v5357_v60 = vld [vmem:[#allocation2 + $0x1300] sm:$0xff]  ;;  %v5360_v3 = vld [vmem:[#allocation2 + $0x1318] sm:$0xff]  ;;  %v5551_v42 = vld [vmem:[#allocation2 + $0x14a8] sm:$0xff] }
 0x565   :  { %5134 = vmatprep.subr.bf16.mxu0 %v5116_v20  ;;  %5198 = vmatprep.subr.bf16.mxu1 %v5180_v23  ;;  %v5421_v19 = vld [vmem:[#allocation2 + $0x1380] sm:$0xff]  ;;  %v5424_v0 = vld [vmem:[#allocation2 + $0x1398] sm:$0xff]  ;;  %v5423_v20 = vld [vmem:[#allocation2 + $0x1390] sm:$0xff] }
 0x566   :  { %v5362_v23 = vld [vmem:[#allocation2 + $0x1328] sm:$0xff] }
 0x568   :  { %5135 = vmatpush1.bf16.msra.mxu0 %v5115_v37  ;;  %5199 = vmatpush1.bf16.msra.mxu1 %v5179_v59  ;;  %v5425_v37 = vld [vmem:[#allocation2 + $0x13a0] sm:$0xff]  ;;  %v5364_v59 = vld [vmem:[#allocation2 + $0x1338] sm:$0xff] }
 0x569   :  { %5248 = vmatprep.subr.bf16.mxu0 %v5230_v38  ;;  %5312 = vmatprep.subr.bf16.mxu1 %v5294_v25  ;;  %v5428_v38 = vld [vmem:[#allocation2 + $0x13b8] sm:$0xff]  ;;  %v5363_v25 = vld [vmem:[#allocation2 + $0x1330] sm:$0xff] }
 0x56b   :  { %5153 = vmatmul.mubr.bf16.vlgmr.msra.gmra.mrb[148].mxu0 %v5118_v45  ;;  %5217 = vmatmul.mubr.bf16.vlgmr.msra.gmra.mrb[148].mxu1 %v5182_v9  ;;  %v5427_v45 = vld [vmem:[#allocation2 + $0x13b0] sm:$0xff]  ;;  %v5366_v9 = vld [vmem:[#allocation2 + $0x1348] sm:$0xff] }
 0x56c   :  { %5249 = vmatpush1.bf16.msra.mxu0 %v5229_v10  ;;  %5313 = vmatpush1.bf16.msra.mxu1 %v5293_v1  ;;  %v5430_v10 = vld [vmem:[#allocation2 + $0x13c8] sm:$0xff]  ;;  %v5365_v1 = vld [vmem:[#allocation2 + $0x1340] sm:$0xff] }
 0x56d   :  { %5250 = vmatprep.subr.bf16.mxu0 %v5232_v11  ;;  %5314 = vmatprep.subr.bf16.mxu1 %v5296_v2  ;;  %v5429_v11 = vld [vmem:[#allocation2 + $0x13c0] sm:$0xff]  ;;  %v5368_v2 = vld [vmem:[#allocation2 + $0x1358] sm:$0xff] }
 0x56e   :  { %5280 = vmatprep.mubr.bf16.mxu0 %v9569_v47  ;;  %5344 = vmatprep.mubr.bf16.mxu1 %v9569_v47 }
 0x570   :  { %5251 = vmatpush1.bf16.msra.mxu0 %v5231_v33  ;;  %5315 = vmatpush1.bf16.msra.mxu1 %v5295_v54  ;;  %v5432_v33 = vld [vmem:[#allocation2 + $0x13d8] sm:$0xff]  ;;  %v5367_v54 = vld [vmem:[#allocation2 + $0x1350] sm:$0xff] }
 0x571   :  { %5252 = vmatprep.subr.bf16.mxu0 %v5234_v29  ;;  %5316 = vmatprep.subr.bf16.mxu1 %v5298_v53  ;;  %v5431_v29 = vld [vmem:[#allocation2 + $0x13d0] sm:$0xff] }
 0x574   :  { %5253 = vmatpush1.bf16.msra.mxu0 %v5233_v49  ;;  %5317 = vmatpush1.bf16.msra.mxu1 %v5297_v5  ;;  %v5370_v5 = vld [vmem:[#allocation2 + $0x1368] sm:$0xff] }
 0x575   :  { %5254 = vmatprep.subr.bf16.mxu0 %v5236_v58  ;;  %5318 = vmatprep.subr.bf16.mxu1 %v5300_v4  ;;  %v5434_v58 = vld [vmem:[#allocation2 + $0x13e8] sm:$0xff] }
 0x578   :  { %5255 = vmatpush1.bf16.msra.mxu0 %v5235_v43  ;;  %5319 = vmatpush1.bf16.msra.mxu1 %v5299_v24 }
 0x579   :  { %5256 = vmatprep.subr.bf16.mxu0 %v5238_v36  ;;  %5320 = vmatprep.subr.bf16.mxu1 %v5302_v39 }
 0x57c   :  { %5257 = vmatpush1.bf16.msra.mxu0 %v5237_v17  ;;  %5321 = vmatpush1.bf16.msra.mxu1 %v5301_v50 }
 0x57d   :  { %5258 = vmatprep.subr.bf16.mxu0 %v5240_v63  ;;  %5322 = vmatprep.subr.bf16.mxu1 %v5304_v18 }
 0x57e   :  { %v4392_v34 = vpop.f32.mrb[124].mxu0  ;;  %v4456_v32 = vpop.f32.mrb[124].mxu1 }
 0x57f   :  { %v4399_v55 = vadd.f32 %v4392_v34, %v9332_v56  ;;  %v4394_v28 = vpop.f32.mrb[125].mxu0  ;;  %v4458_v57 = vpop.f32.mrb[125].mxu1  ;;  %v5310_v56 = vrot.slane %v5291_v16, 5  ;;  %v5489_v16 = vld [vmem:[#allocation2 + $0x1420] sm:$0xff] }
 0x580   :  { %v4400_v14 = vadd.f32 %v4394_v28, %v9334_v61  ;;  %v4396_v48 = vpop.f32.mrb[126].mxu0  ;;  %v4460_v21 = vpop.f32.mrb[126].mxu1  ;;  %5259 = vmatpush1.bf16.msra.mxu0 %v5239_v22  ;;  %5323 = vmatpush1.bf16.msra.mxu1 %v5303_v7  ;;  %v5359_v61 = vld [vmem:[#allocation2 + $0x1310] sm:$0xff]  ;;  %v5369_v22 = vld [vmem:[#allocation2 + $0x1360] sm:$0xff] }
 0x581   :  { %v9340_v62 = vadd.f32 %v4456_v32, %v4399_v55  ;;  %v4397_v52 = vpop.f32.mrb[127].mxu0  ;;  %v4461_v35 = vpop.f32.mrb[127].mxu1  ;;  %5260 = vmatprep.subr.bf16.mxu0 %v5242_v6  ;;  %5324 = vmatprep.subr.bf16.mxu1 %v5306_v41  ;;  %v5433_v7 = vld [vmem:[#allocation2 + $0x13e0] sm:$0xff]  ;;  %v5372_v32 = vld [vmem:[#allocation2 + $0x1378] sm:$0xff]  ;;  %v5371_v28 = vld [vmem:[#allocation2 + $0x1370] sm:$0xff] }
 0x582   :  { %v9342_v40 = vadd.f32 %v4458_v57, %v4400_v14  ;;  %v5436_v6 = vld [vmem:[#allocation2 + $0x13f8] sm:$0xff]  ;;  %v5435_v57 = vld [vmem:[#allocation2 + $0x13f0] sm:$0xff]  ;;  %v5486_v14 = vld [vmem:[#allocation2 + $0x1408] sm:$0xff] }
 0x583   :  { %v5355_v41 = vld [vmem:[#allocation6 + $0x20] sm:$0x40]  ;;  %v5419_v55 = vld [vmem:[#allocation6 + $0x20] sm:$0x80]  ;;  %v5547_v48 = vld [vmem:[#allocation2 + $0x1488] sm:$0xff] }
 0x584   :  { %5261 = vmatpush1.bf16.msra.mxu0 %v5241_v15  ;;  %5325 = vmatpush1.bf16.msra.mxu1 %v5305_v31  ;;  %v5374_v21 = vrot.slane %v5355_v41, 6  ;;  %v5485_v52 = vld [vmem:[#allocation2 + $0x1400] sm:$0xff]  ;;  %v5488_v15 = vld [vmem:[#allocation2 + $0x1418] sm:$0xff] }
 0x585   :  { %5262 = vmatprep.subr.bf16.mxu0 %v5244_v44  ;;  %5326 = vmatprep.subr.bf16.mxu1 %v5308_v26  ;;  %v5546_v35 = vld [vmem:[#allocation2 + $0x1480] sm:$0xff]  ;;  %v5549_v31 = vld [vmem:[#allocation2 + $0x1498] sm:$0xff]  ;;  %v5548_v44 = vld [vmem:[#allocation2 + $0x1490] sm:$0xff] }
 0x586   :  { %v5490_v26 = vld [vmem:[#allocation2 + $0x1428] sm:$0xff]  ;;  %v5614_v41 = vld [vmem:[#allocation2 + $0x1520] sm:$0xff] }
 0x588   :  { %5263 = vmatpush1.bf16.msra.mxu0 %v5243_v12  ;;  %5327 = vmatpush1.bf16.msra.mxu1 %v5307_v46  ;;  %v5550_v12 = vld [vmem:[#allocation2 + $0x14a0] sm:$0xff]  ;;  %v5492_v46 = vld [vmem:[#allocation2 + $0x1438] sm:$0xff] }
 0x589   :  { %5376 = vmatprep.subr.bf16.mxu0 %v5358_v27  ;;  %5440 = vmatprep.subr.bf16.mxu1 %v5422_v30  ;;  %v5553_v27 = vld [vmem:[#allocation2 + $0x14b8] sm:$0xff]  ;;  %v5491_v30 = vld [vmem:[#allocation2 + $0x1430] sm:$0xff] }
 0x58b   :  { %5281 = vmatmul.mubr.bf16.vlgmr.msra.gmra.mrb[152].mxu0 %v5246_v51  ;;  %5345 = vmatmul.mubr.bf16.vlgmr.msra.gmra.mrb[152].mxu1 %v5310_v56  ;;  %v5552_v51 = vld [vmem:[#allocation2 + $0x14b0] sm:$0xff]  ;;  %v5494_v56 = vld [vmem:[#allocation2 + $0x1448] sm:$0xff] }
 0x58c   :  { %5377 = vmatpush1.bf16.msra.mxu0 %v5357_v60  ;;  %5441 = vmatpush1.bf16.msra.mxu1 %v5421_v19  ;;  %v5555_v60 = vld [vmem:[#allocation2 + $0x14c8] sm:$0xff]  ;;  %v5493_v19 = vld [vmem:[#allocation2 + $0x1440] sm:$0xff] }
 0x58d   :  { %5378 = vmatprep.subr.bf16.mxu0 %v5360_v3  ;;  %5442 = vmatprep.subr.bf16.mxu1 %v5424_v0  ;;  %v5554_v3 = vld [vmem:[#allocation2 + $0x14c0] sm:$0xff]  ;;  %v5496_v0 = vld [vmem:[#allocation2 + $0x1458] sm:$0xff] }
 0x58e   :  { %5408 = vmatprep.mubr.bf16.mxu0 %v9569_v47  ;;  %5472 = vmatprep.mubr.bf16.mxu1 %v9569_v47 }
 0x590   :  { %5379 = vmatpush1.bf16.msra.mxu0 %v5359_v61  ;;  %5443 = vmatpush1.bf16.msra.mxu1 %v5423_v20  ;;  %v5557_v61 = vld [vmem:[#allocation2 + $0x14d8] sm:$0xff]  ;;  %v5495_v20 = vld [vmem:[#allocation2 + $0x1450] sm:$0xff] }
 0x591   :  { %5380 = vmatprep.subr.bf16.mxu0 %v5362_v23  ;;  %5444 = vmatprep.subr.bf16.mxu1 %v5426_v8  ;;  %v5556_v23 = vld [vmem:[#allocation2 + $0x14d0] sm:$0xff] }
 0x594   :  { %5381 = vmatpush1.bf16.msra.mxu0 %v5361_v13  ;;  %5445 = vmatpush1.bf16.msra.mxu1 %v5425_v37  ;;  %v5498_v37 = vld [vmem:[#allocation2 + $0x1468] sm:$0xff] }
 0x595   :  { %5382 = vmatprep.subr.bf16.mxu0 %v5364_v59  ;;  %5446 = vmatprep.subr.bf16.mxu1 %v5428_v38  ;;  %v5559_v59 = vld [vmem:[#allocation2 + $0x14e8] sm:$0xff] }
 0x598   :  { %5383 = vmatpush1.bf16.msra.mxu0 %v5363_v25  ;;  %5447 = vmatpush1.bf16.msra.mxu1 %v5427_v45 }
 0x599   :  { %5384 = vmatprep.subr.bf16.mxu0 %v5366_v9  ;;  %5448 = vmatprep.subr.bf16.mxu1 %v5430_v10 }
 0x59c   :  { %5385 = vmatpush1.bf16.msra.mxu0 %v5365_v1  ;;  %5449 = vmatpush1.bf16.msra.mxu1 %v5429_v11 }
 0x59d   :  { %5386 = vmatprep.subr.bf16.mxu0 %v5368_v2  ;;  %5450 = vmatprep.subr.bf16.mxu1 %v5432_v33 }
 0x59e   :  { %v4517_v53 = vpop.f32.mrb[128].mxu0  ;;  %v4581_v49 = vpop.f32.mrb[128].mxu1 }
 0x59f   :  { %v4524_v4 = vadd.f32 %v4517_v53, %v9340_v62  ;;  %v4519_v43 = vpop.f32.mrb[129].mxu0  ;;  %v4583_v24 = vpop.f32.mrb[129].mxu1  ;;  %v5438_v62 = vrot.slane %v5419_v55, 7  ;;  %v5678_v55 = vld [vmem:[#allocation2 + $0x15a0] sm:$0xff] }
 0x5a0   :  { %v4525_v36 = vadd.f32 %v4519_v43, %v9342_v40  ;;  %v4521_v39 = vpop.f32.mrb[130].mxu0  ;;  %v4585_v17 = vpop.f32.mrb[130].mxu1  ;;  %5387 = vmatpush1.bf16.msra.mxu0 %v5367_v54  ;;  %5451 = vmatpush1.bf16.msra.mxu1 %v5431_v29  ;;  %v5487_v40 = vld [vmem:[#allocation2 + $0x1410] sm:$0xff]  ;;  %v5497_v54 = vld [vmem:[#allocation2 + $0x1460] sm:$0xff] }
 0x5a1   :  { %v9348_v50 = vadd.f32 %v4581_v49, %v4524_v4  ;;  %v4522_v63 = vpop.f32.mrb[131].mxu0  ;;  %v4586_v18 = vpop.f32.mrb[131].mxu1  ;;  %5388 = vmatprep.subr.bf16.mxu0 %v5370_v5  ;;  %5452 = vmatprep.subr.bf16.mxu1 %v5434_v58  ;;  %v5558_v29 = vld [vmem:[#allocation2 + $0x14e0] sm:$0xff]  ;;  %v5500_v49 = vld [vmem:[#allocation2 + $0x1478] sm:$0xff]  ;;  %v5499_v4 = vld [vmem:[#allocation2 + $0x1470] sm:$0xff] }
 0x5a2   :  { %v9350_v34 = vadd.f32 %v4583_v24, %v4525_v36  ;;  %v5561_v5 = vld [vmem:[#allocation2 + $0x14f8] sm:$0xff]  ;;  %v5544_v58 = vld [vmem:[#allocation6 + $0x28] sm:$0x2]  ;;  %v5560_v43 = vld [vmem:[#allocation2 + $0x14f0] sm:$0xff] }
 0x5a3   :  { %v5611_v24 = vld [vmem:[#allocation2 + $0x1508] sm:$0xff]  ;;  %v5563_v39 = vrot.slane %v5544_v58, 1  ;;  %v5483_v17 = vld [vmem:[#allocation6 + $0x28] sm:$0x1]  ;;  %v5613_v18 = vld [vmem:[#allocation2 + $0x1518] sm:$0xff] }
 0x5a4   :  { %5389 = vmatpush1.bf16.msra.mxu0 %v5369_v22  ;;  %5453 = vmatpush1.bf16.msra.mxu1 %v5433_v7  ;;  %v5675_v36 = vld [vmem:[#allocation2 + $0x1588] sm:$0xff]  ;;  %v5674_v63 = vld [vmem:[#allocation2 + $0x1580] sm:$0xff]  ;;  %v5677_v22 = vld [vmem:[#allocation2 + $0x1598] sm:$0xff] }
 0x5a5   :  { %5390 = vmatprep.subr.bf16.mxu0 %v5372_v32  ;;  %5454 = vmatprep.subr.bf16.mxu1 %v5436_v6  ;;  %v5612_v7 = vld [vmem:[#allocation2 + $0x1510] sm:$0xff]  ;;  %v5615_v32 = vld [vmem:[#allocation2 + $0x1528] sm:$0xff]  ;;  %v5742_v58 = vld [vmem:[#allocation2 + $0x1620] sm:$0xff] }
 0x5a6   :  { %v5679_v6 = vld [vmem:[#allocation2 + $0x15a8] sm:$0xff] }
 0x5a8   :  { %5391 = vmatpush1.bf16.msra.mxu0 %v5371_v28  ;;  %5455 = vmatpush1.bf16.msra.mxu1 %v5435_v57  ;;  %v5617_v28 = vld [vmem:[#allocation2 + $0x1538] sm:$0xff] }
 0x5a9   :  { %5501 = vmatprep.subr.bf16.mxu0 %v5486_v14  ;;  %5565 = vmatprep.subr.bf16.mxu1 %v5547_v48  ;;  %v5681_v57 = vld [vmem:[#allocation2 + $0x15b8] sm:$0xff]  ;;  %v5616_v14 = vld [vmem:[#allocation2 + $0x1530] sm:$0xff] }
 0x5aa   :  { %v5680_v48 = vld [vmem:[#allocation2 + $0x15b0] sm:$0xff] }
 0x5ab   :  { %5409 = vmatmul.mubr.bf16.vlgmr.msra.gmra.mrb[156].mxu0 %v5374_v21  ;;  %5473 = vmatmul.mubr.bf16.vlgmr.msra.gmra.mrb[156].mxu1 %v5438_v62  ;;  %v5619_v21 = vld [vmem:[#allocation2 + $0x1548] sm:$0xff] }
 0x5ac   :  { %5502 = vmatpush1.bf16.msra.mxu0 %v5485_v52  ;;  %5566 = vmatpush1.bf16.msra.mxu1 %v5546_v35  ;;  %v5683_v62 = vld [vmem:[#allocation2 + $0x15c8] sm:$0xff]  ;;  %v5618_v52 = vld [vmem:[#allocation2 + $0x1540] sm:$0xff] }
 0x5ad   :  { %5503 = vmatprep.subr.bf16.mxu0 %v5488_v15  ;;  %5567 = vmatprep.subr.bf16.mxu1 %v5549_v31  ;;  %v5682_v35 = vld [vmem:[#allocation2 + $0x15c0] sm:$0xff]  ;;  %v5621_v15 = vld [vmem:[#allocation2 + $0x1558] sm:$0xff] }
 0x5ae   :  { %5533 = vmatprep.mubr.bf16.mxu0 %v9569_v47  ;;  %5597 = vmatprep.mubr.bf16.mxu1 %v9569_v47  ;;  %v5685_v31 = vld [vmem:[#allocation2 + $0x15d8] sm:$0xff] }
 0x5b0   :  { %5504 = vmatpush1.bf16.msra.mxu0 %v5487_v40  ;;  %5568 = vmatpush1.bf16.msra.mxu1 %v5548_v44  ;;  %v5620_v40 = vld [vmem:[#allocation2 + $0x1550] sm:$0xff] }
 0x5b1   :  { %5505 = vmatprep.subr.bf16.mxu0 %v5490_v26  ;;  %5569 = vmatprep.subr.bf16.mxu1 %v5551_v42  ;;  %v5684_v44 = vld [vmem:[#allocation2 + $0x15d0] sm:$0xff] }
 0x5b4   :  { %5506 = vmatpush1.bf16.msra.mxu0 %v5489_v16  ;;  %5570 = vmatpush1.bf16.msra.mxu1 %v5550_v12  ;;  %v5623_v16 = vld [vmem:[#allocation2 + $0x1568] sm:$0xff] }
 0x5b5   :  { %5507 = vmatprep.subr.bf16.mxu0 %v5492_v46  ;;  %5571 = vmatprep.subr.bf16.mxu1 %v5553_v27  ;;  %v5687_v12 = vld [vmem:[#allocation2 + $0x15e8] sm:$0xff] }
 0x5b8   :  { %5508 = vmatpush1.bf16.msra.mxu0 %v5491_v30  ;;  %5572 = vmatpush1.bf16.msra.mxu1 %v5552_v51 }
 0x5b9   :  { %5509 = vmatprep.subr.bf16.mxu0 %v5494_v56  ;;  %5573 = vmatprep.subr.bf16.mxu1 %v5555_v60 }
 0x5bc   :  { %5510 = vmatpush1.bf16.msra.mxu0 %v5493_v19  ;;  %5574 = vmatpush1.bf16.msra.mxu1 %v5554_v3 }
 0x5bd   :  { %5511 = vmatprep.subr.bf16.mxu0 %v5496_v0  ;;  %5575 = vmatprep.subr.bf16.mxu1 %v5557_v61  ;;  %v5622_v61 = vld [vmem:[#allocation2 + $0x1560] sm:$0xff] }
 0x5be   :  { %v4645_v8 = vpop.f32.mrb[132].mxu0  ;;  %v4709_v13 = vpop.f32.mrb[132].mxu1 }
 0x5bf   :  { %v4652_v38 = vadd.f32 %v4645_v8, %v9348_v50  ;;  %v4647_v25 = vpop.f32.mrb[133].mxu0  ;;  %v4711_v45 = vpop.f32.mrb[133].mxu1  ;;  %v5610_v50 = vld [vmem:[#allocation2 + $0x1500] sm:$0xff]  ;;  %v5625_v8 = vld [vmem:[#allocation2 + $0x1578] sm:$0xff] }
 0x5c0   :  { %v4653_v9 = vadd.f32 %v4647_v25, %v9350_v34  ;;  %v4649_v10 = vpop.f32.mrb[134].mxu0  ;;  %v4713_v1 = vpop.f32.mrb[134].mxu1  ;;  %5512 = vmatpush1.bf16.msra.mxu0 %v5495_v20  ;;  %5576 = vmatpush1.bf16.msra.mxu1 %v5556_v23  ;;  %v5676_v34 = vld [vmem:[#allocation2 + $0x1590] sm:$0xff]  ;;  %v5686_v20 = vld [vmem:[#allocation2 + $0x15e0] sm:$0xff] }
 0x5c1   :  { %v9356_v11 = vadd.f32 %v4709_v13, %v4652_v38  ;;  %v4650_v2 = vpop.f32.mrb[135].mxu0  ;;  %v4714_v33 = vpop.f32.mrb[135].mxu1  ;;  %5513 = vmatprep.subr.bf16.mxu0 %v5498_v37  ;;  %5577 = vmatprep.subr.bf16.mxu1 %v5559_v59  ;;  %v5689_v13 = vld [vmem:[#allocation2 + $0x15f8] sm:$0xff]  ;;  %v5608_v37 = vld [vmem:[#allocation6 + $0x28] sm:$0x4]  ;;  %v5624_v38 = vld [vmem:[#allocation2 + $0x1570] sm:$0xff] }
 0x5c2   :  { %v9358_v53 = vadd.f32 %v4711_v45, %v4653_v9  ;;  %v5672_v59 = vld [vmem:[#allocation6 + $0x28] sm:$0x8]  ;;  %v5688_v25 = vld [vmem:[#allocation2 + $0x15f0] sm:$0xff]  ;;  %v5739_v45 = vld [vmem:[#allocation2 + $0x1608] sm:$0xff]  ;;  %v5627_v10 = vrot.slane %v5608_v37, 2 }
 0x5c3   :  { %v5803_v9 = vld [vmem:[#allocation2 + $0x1688] sm:$0xff]  ;;  %v5691_v1 = vrot.slane %v5672_v59, 3  ;;  %v5802_v2 = vld [vmem:[#allocation2 + $0x1680] sm:$0xff]  ;;  %v5741_v33 = vld [vmem:[#allocation2 + $0x1618] sm:$0xff] }
 0x5c4   :  { %5514 = vmatpush1.bf16.msra.mxu0 %v5497_v54  ;;  %5578 = vmatpush1.bf16.msra.mxu1 %v5558_v29  ;;  %v5805_v54 = vld [vmem:[#allocation2 + $0x1698] sm:$0xff]  ;;  %v5740_v29 = vld [vmem:[#allocation2 + $0x1610] sm:$0xff]  ;;  %v5935_v37 = vld [vmem:[#allocation2 + $0x17a8] sm:$0xff] }
 0x5c5   :  { %5515 = vmatprep.subr.bf16.mxu0 %v5500_v49  ;;  %5579 = vmatprep.subr.bf16.mxu1 %v5561_v5  ;;  %v5743_v49 = vld [vmem:[#allocation2 + $0x1628] sm:$0xff]  ;;  %v5870_v59 = vld [vmem:[#allocation2 + $0x1720] sm:$0xff] }
 0x5c6   :  { %v5807_v5 = vld [vmem:[#allocation2 + $0x16a8] sm:$0xff] }
 0x5c8   :  { %5516 = vmatpush1.bf16.msra.mxu0 %v5499_v4  ;;  %5580 = vmatpush1.bf16.msra.mxu1 %v5560_v43  ;;  %v5806_v4 = vld [vmem:[#allocation2 + $0x16a0] sm:$0xff]  ;;  %v5745_v43 = vld [vmem:[#allocation2 + $0x1638] sm:$0xff] }
 0x5c9   :  { %5629 = vmatprep.subr.bf16.mxu0 %v5611_v24  ;;  %5693 = vmatprep.subr.bf16.mxu1 %v5675_v36  ;;  %v5809_v24 = vld [vmem:[#allocation2 + $0x16b8] sm:$0xff]  ;;  %v5744_v36 = vld [vmem:[#allocation2 + $0x1630] sm:$0xff] }
 0x5cb   :  { %5534 = vmatmul.mubr.bf16.vlgmr.msra.gmra.mrb[160].mxu0 %v5483_v17  ;;  %5598 = vmatmul.mubr.bf16.vlgmr.msra.gmra.mrb[160].mxu1 %v5563_v39  ;;  %v5808_v39 = vld [vmem:[#allocation2 + $0x16b0] sm:$0xff]  ;;  %v5747_v17 = vld [vmem:[#allocation2 + $0x1648] sm:$0xff] }
 0x5cc   :  { %5630 = vmatpush1.bf16.msra.mxu0 %v5610_v50  ;;  %5694 = vmatpush1.bf16.msra.mxu1 %v5674_v63  ;;  %v5811_v50 = vld [vmem:[#allocation2 + $0x16c8] sm:$0xff]  ;;  %v5746_v63 = vld [vmem:[#allocation2 + $0x1640] sm:$0xff] }
 0x5cd   :  { %5631 = vmatprep.subr.bf16.mxu0 %v5613_v18  ;;  %5695 = vmatprep.subr.bf16.mxu1 %v5677_v22  ;;  %v5810_v18 = vld [vmem:[#allocation2 + $0x16c0] sm:$0xff]  ;;  %v5749_v22 = vld [vmem:[#allocation2 + $0x1658] sm:$0xff] }
 0x5ce   :  { %5661 = vmatprep.mubr.bf16.mxu0 %v9569_v47  ;;  %5725 = vmatprep.mubr.bf16.mxu1 %v9569_v47 }
 0x5d0   :  { %5632 = vmatpush1.bf16.msra.mxu0 %v5612_v7  ;;  %5696 = vmatpush1.bf16.msra.mxu1 %v5676_v34  ;;  %v5813_v7 = vld [vmem:[#allocation2 + $0x16d8] sm:$0xff]  ;;  %v5748_v34 = vld [vmem:[#allocation2 + $0x1650] sm:$0xff] }
 0x5d1   :  { %5633 = vmatprep.subr.bf16.mxu0 %v5615_v32  ;;  %5697 = vmatprep.subr.bf16.mxu1 %v5679_v6  ;;  %v5812_v32 = vld [vmem:[#allocation2 + $0x16d0] sm:$0xff] }
 0x5d4   :  { %5634 = vmatpush1.bf16.msra.mxu0 %v5614_v41  ;;  %5698 = vmatpush1.bf16.msra.mxu1 %v5678_v55  ;;  %v5751_v55 = vld [vmem:[#allocation2 + $0x1668] sm:$0xff] }
 0x5d5   :  { %5635 = vmatprep.subr.bf16.mxu0 %v5617_v28  ;;  %5699 = vmatprep.subr.bf16.mxu1 %v5681_v57  ;;  %v5815_v28 = vld [vmem:[#allocation2 + $0x16e8] sm:$0xff] }
 0x5d8   :  { %5636 = vmatpush1.bf16.msra.mxu0 %v5616_v14  ;;  %5700 = vmatpush1.bf16.msra.mxu1 %v5680_v48 }
 0x5d9   :  { %5637 = vmatprep.subr.bf16.mxu0 %v5619_v21  ;;  %5701 = vmatprep.subr.bf16.mxu1 %v5683_v62 }
 0x5dc   :  { %5638 = vmatpush1.bf16.msra.mxu0 %v5618_v52  ;;  %5702 = vmatpush1.bf16.msra.mxu1 %v5682_v35 }
 0x5dd   :  { %5639 = vmatprep.subr.bf16.mxu0 %v5621_v15  ;;  %5703 = vmatprep.subr.bf16.mxu1 %v5685_v31 }
 0x5de   :  { %v4773_v26 = vpop.f32.mrb[136].mxu0  ;;  %v4837_v42 = vpop.f32.mrb[136].mxu1 }
 0x5df   :  { %v4780_v46 = vadd.f32 %v4773_v26, %v9356_v11  ;;  %v4775_v27 = vpop.f32.mrb[137].mxu0  ;;  %v4839_v30 = vpop.f32.mrb[137].mxu1  ;;  %v5738_v11 = vld [vmem:[#allocation2 + $0x1600] sm:$0xff] }
 0x5e0   :  { %v4781_v51 = vadd.f32 %v4775_v27, %v9358_v53  ;;  %v4777_v56 = vpop.f32.mrb[138].mxu0  ;;  %v4841_v60 = vpop.f32.mrb[138].mxu1  ;;  %5640 = vmatpush1.bf16.msra.mxu0 %v5620_v40  ;;  %5704 = vmatpush1.bf16.msra.mxu1 %v5684_v44  ;;  %v5804_v53 = vld [vmem:[#allocation2 + $0x1690] sm:$0xff]  ;;  %v5750_v40 = vld [vmem:[#allocation2 + $0x1660] sm:$0xff] }
 0x5e1   :  { %v9364_v19 = vadd.f32 %v4837_v42, %v4780_v46  ;;  %v4778_v3 = vpop.f32.mrb[139].mxu0  ;;  %v4842_v0 = vpop.f32.mrb[139].mxu1  ;;  %5641 = vmatprep.subr.bf16.mxu0 %v5623_v16  ;;  %5705 = vmatprep.subr.bf16.mxu1 %v5687_v12  ;;  %v5814_v44 = vld [vmem:[#allocation2 + $0x16e0] sm:$0xff]  ;;  %v5753_v42 = vld [vmem:[#allocation2 + $0x1678] sm:$0xff]  ;;  %v5752_v27 = vld [vmem:[#allocation2 + $0x1670] sm:$0xff] }
 0x5e2   :  { %v9366_v23 = vadd.f32 %v4839_v30, %v4781_v51  ;;  %v5817_v16 = vld [vmem:[#allocation2 + $0x16f8] sm:$0xff]  ;;  %v5736_v12 = vld [vmem:[#allocation6 + $0x28] sm:$0x10]  ;;  %v5800_v46 = vld [vmem:[#allocation6 + $0x28] sm:$0x20] }
 0x5e3   :  { %v5816_v30 = vld [vmem:[#allocation2 + $0x16f0] sm:$0xff]  ;;  %v5867_v51 = vld [vmem:[#allocation2 + $0x1708] sm:$0xff]  ;;  %v5755_v60 = vrot.slane %v5736_v12, 4  ;;  %v5866_v3 = vld [vmem:[#allocation2 + $0x1700] sm:$0xff] }
 0x5e4   :  { %5642 = vmatpush1.bf16.msra.mxu0 %v5622_v61  ;;  %5706 = vmatpush1.bf16.msra.mxu1 %v5686_v20  ;;  %v5931_v56 = vld [vmem:[#allocation2 + $0x1788] sm:$0xff]  ;;  %v5930_v0 = vld [vmem:[#allocation2 + $0x1780] sm:$0xff]  ;;  %v5869_v61 = vld [vmem:[#allocation2 + $0x1718] sm:$0xff] }
 0x5e5   :  { %5643 = vmatprep.subr.bf16.mxu0 %v5625_v8  ;;  %5707 = vmatprep.subr.bf16.mxu1 %v5689_v13  ;;  %v5933_v20 = vld [vmem:[#allocation2 + $0x1798] sm:$0xff]  ;;  %v5932_v8 = vld [vmem:[#allocation2 + $0x1790] sm:$0xff]  ;;  %v5871_v13 = vld [vmem:[#allocation2 + $0x1728] sm:$0xff] }
 0x5e6   :  { %v6060_v12 = vld [vmem:[#allocation2 + $0x18a8] sm:$0xff] }
 0x5e8   :  { %5644 = vmatpush1.bf16.msra.mxu0 %v5624_v38  ;;  %5708 = vmatpush1.bf16.msra.mxu1 %v5688_v25  ;;  %v5934_v38 = vld [vmem:[#allocation2 + $0x17a0] sm:$0xff]  ;;  %v5873_v25 = vld [vmem:[#allocation2 + $0x1738] sm:$0xff] }
 0x5e9   :  { %5757 = vmatprep.subr.bf16.mxu0 %v5739_v45  ;;  %5821 = vmatprep.subr.bf16.mxu1 %v5803_v9  ;;  %v5937_v45 = vld [vmem:[#allocation2 + $0x17b8] sm:$0xff]  ;;  %v5872_v9 = vld [vmem:[#allocation2 + $0x1730] sm:$0xff] }
 0x5eb   :  { %5662 = vmatmul.mubr.bf16.vlgmr.msra.gmra.mrb[164].mxu0 %v5627_v10  ;;  %5726 = vmatmul.mubr.bf16.vlgmr.msra.gmra.mrb[164].mxu1 %v5691_v1  ;;  %v5936_v10 = vld [vmem:[#allocation2 + $0x17b0] sm:$0xff]  ;;  %v5875_v1 = vld [vmem:[#allocation2 + $0x1748] sm:$0xff] }
 0x5ec   :  { %5758 = vmatpush1.bf16.msra.mxu0 %v5738_v11  ;;  %5822 = vmatpush1.bf16.msra.mxu1 %v5802_v2  ;;  %v5939_v11 = vld [vmem:[#allocation2 + $0x17c8] sm:$0xff]  ;;  %v5874_v2 = vld [vmem:[#allocation2 + $0x1740] sm:$0xff] }
 0x5ed   :  { %5759 = vmatprep.subr.bf16.mxu0 %v5741_v33  ;;  %5823 = vmatprep.subr.bf16.mxu1 %v5805_v54  ;;  %v5938_v33 = vld [vmem:[#allocation2 + $0x17c0] sm:$0xff]  ;;  %v5877_v54 = vld [vmem:[#allocation2 + $0x1758] sm:$0xff] }
 0x5ee   :  { %5789 = vmatprep.mubr.bf16.mxu0 %v9569_v47  ;;  %5853 = vmatprep.mubr.bf16.mxu1 %v9569_v47 }
 0x5f0   :  { %5760 = vmatpush1.bf16.msra.mxu0 %v5740_v29  ;;  %5824 = vmatpush1.bf16.msra.mxu1 %v5804_v53  ;;  %v5941_v29 = vld [vmem:[#allocation2 + $0x17d8] sm:$0xff]  ;;  %v5876_v53 = vld [vmem:[#allocation2 + $0x1750] sm:$0xff] }
 0x5f1   :  { %5761 = vmatprep.subr.bf16.mxu0 %v5743_v49  ;;  %5825 = vmatprep.subr.bf16.mxu1 %v5807_v5  ;;  %v5940_v49 = vld [vmem:[#allocation2 + $0x17d0] sm:$0xff] }
 0x5f4   :  { %5762 = vmatpush1.bf16.msra.mxu0 %v5742_v58  ;;  %5826 = vmatpush1.bf16.msra.mxu1 %v5806_v4  ;;  %v5879_v4 = vld [vmem:[#allocation2 + $0x1768] sm:$0xff] }
 0x5f5   :  { %5763 = vmatprep.subr.bf16.mxu0 %v5745_v43  ;;  %5827 = vmatprep.subr.bf16.mxu1 %v5809_v24  ;;  %v5943_v43 = vld [vmem:[#allocation2 + $0x17e8] sm:$0xff] }
 0x5f8   :  { %5764 = vmatpush1.bf16.msra.mxu0 %v5744_v36  ;;  %5828 = vmatpush1.bf16.msra.mxu1 %v5808_v39 }
 0x5f9   :  { %5765 = vmatprep.subr.bf16.mxu0 %v5747_v17  ;;  %5829 = vmatprep.subr.bf16.mxu1 %v5811_v50 }
 0x5fc   :  { %5766 = vmatpush1.bf16.msra.mxu0 %v5746_v63  ;;  %5830 = vmatpush1.bf16.msra.mxu1 %v5810_v18 }
 0x5fd   :  { %5767 = vmatprep.subr.bf16.mxu0 %v5749_v22  ;;  %5831 = vmatprep.subr.bf16.mxu1 %v5813_v7 }
 0x5fe   :  { %v4901_v6 = vpop.f32.mrb[140].mxu0  ;;  %v4965_v41 = vpop.f32.mrb[140].mxu1 }
 0x5ff   :  { %v4908_v57 = vadd.f32 %v4901_v6, %v9364_v19  ;;  %v4903_v14 = vpop.f32.mrb[141].mxu0  ;;  %v4967_v48 = vpop.f32.mrb[141].mxu1  ;;  %v5819_v19 = vrot.slane %v5800_v46, 5  ;;  %v5998_v46 = vld [vmem:[#allocation2 + $0x1820] sm:$0xff] }
 0x600   :  { %v4909_v21 = vadd.f32 %v4903_v14, %v9366_v23  ;;  %v4905_v62 = vpop.f32.mrb[142].mxu0  ;;  %v4969_v52 = vpop.f32.mrb[142].mxu1  ;;  %5768 = vmatpush1.bf16.msra.mxu0 %v5748_v34  ;;  %5832 = vmatpush1.bf16.msra.mxu1 %v5812_v32  ;;  %v5868_v23 = vld [vmem:[#allocation2 + $0x1710] sm:$0xff]  ;;  %v5878_v34 = vld [vmem:[#allocation2 + $0x1760] sm:$0xff] }
 0x601   :  { %v9372_v35 = vadd.f32 %v4965_v41, %v4908_v57  ;;  %v4906_v15 = vpop.f32.mrb[143].mxu0  ;;  %v4970_v31 = vpop.f32.mrb[143].mxu1  ;;  %5769 = vmatprep.subr.bf16.mxu0 %v5751_v55  ;;  %5833 = vmatprep.subr.bf16.mxu1 %v5815_v28  ;;  %v5942_v32 = vld [vmem:[#allocation2 + $0x17e0] sm:$0xff]  ;;  %v5881_v41 = vld [vmem:[#allocation2 + $0x1778] sm:$0xff]  ;;  %v5880_v14 = vld [vmem:[#allocation2 + $0x1770] sm:$0xff] }
 0x602   :  { %v9374_v26 = vadd.f32 %v4967_v48, %v4909_v21  ;;  %v5945_v55 = vld [vmem:[#allocation2 + $0x17f8] sm:$0xff]  ;;  %v5864_v28 = vld [vmem:[#allocation6 + $0x28] sm:$0x40]  ;;  %v5928_v57 = vld [vmem:[#allocation6 + $0x28] sm:$0x80] }
 0x603   :  { %v5944_v48 = vld [vmem:[#allocation2 + $0x17f0] sm:$0xff]  ;;  %v5995_v21 = vld [vmem:[#allocation2 + $0x1808] sm:$0xff]  ;;  %v5883_v52 = vrot.slane %v5864_v28, 6  ;;  %v5994_v15 = vld [vmem:[#allocation2 + $0x1800] sm:$0xff] }
 0x604   :  { %5770 = vmatpush1.bf16.msra.mxu0 %v5750_v40  ;;  %5834 = vmatpush1.bf16.msra.mxu1 %v5814_v44  ;;  %v6056_v62 = vld [vmem:[#allocation2 + $0x1888] sm:$0xff]  ;;  %v6055_v31 = vld [vmem:[#allocation2 + $0x1880] sm:$0xff]  ;;  %v5997_v40 = vld [vmem:[#allocation2 + $0x1818] sm:$0xff] }
 0x605   :  { %5771 = vmatprep.subr.bf16.mxu0 %v5753_v42  ;;  %5835 = vmatprep.subr.bf16.mxu1 %v5817_v16  ;;  %v6058_v44 = vld [vmem:[#allocation2 + $0x1898] sm:$0xff]  ;;  %v6057_v42 = vld [vmem:[#allocation2 + $0x1890] sm:$0xff]  ;;  %v5999_v16 = vld [vmem:[#allocation2 + $0x1828] sm:$0xff] }
 0x606   :  { %v6123_v28 = vld [vmem:[#allocation2 + $0x1920] sm:$0xff] }
 0x608   :  { %5772 = vmatpush1.bf16.msra.mxu0 %v5752_v27  ;;  %5836 = vmatpush1.bf16.msra.mxu1 %v5816_v30  ;;  %v6059_v27 = vld [vmem:[#allocation2 + $0x18a0] sm:$0xff]  ;;  %v6001_v30 = vld [vmem:[#allocation2 + $0x1838] sm:$0xff] }
 0x609   :  { %5885 = vmatprep.subr.bf16.mxu0 %v5867_v51  ;;  %5949 = vmatprep.subr.bf16.mxu1 %v5931_v56  ;;  %v6062_v51 = vld [vmem:[#allocation2 + $0x18b8] sm:$0xff]  ;;  %v6000_v56 = vld [vmem:[#allocation2 + $0x1830] sm:$0xff] }
 0x60b   :  { %5790 = vmatmul.mubr.bf16.vlgmr.msra.gmra.mrb[168].mxu0 %v5755_v60  ;;  %5854 = vmatmul.mubr.bf16.vlgmr.msra.gmra.mrb[168].mxu1 %v5819_v19  ;;  %v6061_v60 = vld [vmem:[#allocation2 + $0x18b0] sm:$0xff]  ;;  %v6003_v19 = vld [vmem:[#allocation2 + $0x1848] sm:$0xff] }
 0x60c   :  { %5886 = vmatpush1.bf16.msra.mxu0 %v5866_v3  ;;  %5950 = vmatpush1.bf16.msra.mxu1 %v5930_v0  ;;  %v6064_v3 = vld [vmem:[#allocation2 + $0x18c8] sm:$0xff]  ;;  %v6002_v0 = vld [vmem:[#allocation2 + $0x1840] sm:$0xff] }
 0x60d   :  { %5887 = vmatprep.subr.bf16.mxu0 %v5869_v61  ;;  %5951 = vmatprep.subr.bf16.mxu1 %v5933_v20  ;;  %v6063_v61 = vld [vmem:[#allocation2 + $0x18c0] sm:$0xff]  ;;  %v6005_v20 = vld [vmem:[#allocation2 + $0x1858] sm:$0xff] }
 0x60e   :  { %5917 = vmatprep.mubr.bf16.mxu0 %v9569_v47  ;;  %5981 = vmatprep.mubr.bf16.mxu1 %v9569_v47 }
 0x610   :  { %5888 = vmatpush1.bf16.msra.mxu0 %v5868_v23  ;;  %5952 = vmatpush1.bf16.msra.mxu1 %v5932_v8  ;;  %v6066_v23 = vld [vmem:[#allocation2 + $0x18d8] sm:$0xff]  ;;  %v6004_v8 = vld [vmem:[#allocation2 + $0x1850] sm:$0xff] }
 0x611   :  { %5889 = vmatprep.subr.bf16.mxu0 %v5871_v13  ;;  %5953 = vmatprep.subr.bf16.mxu1 %v5935_v37  ;;  %v6065_v13 = vld [vmem:[#allocation2 + $0x18d0] sm:$0xff] }
 0x614   :  { %5890 = vmatpush1.bf16.msra.mxu0 %v5870_v59  ;;  %5954 = vmatpush1.bf16.msra.mxu1 %v5934_v38  ;;  %v6007_v38 = vld [vmem:[#allocation2 + $0x1868] sm:$0xff] }
 0x615   :  { %5891 = vmatprep.subr.bf16.mxu0 %v5873_v25  ;;  %5955 = vmatprep.subr.bf16.mxu1 %v5937_v45  ;;  %v6068_v25 = vld [vmem:[#allocation2 + $0x18e8] sm:$0xff] }
 0x618   :  { %5892 = vmatpush1.bf16.msra.mxu0 %v5872_v9  ;;  %5956 = vmatpush1.bf16.msra.mxu1 %v5936_v10 }
 0x619   :  { %5893 = vmatprep.subr.bf16.mxu0 %v5875_v1  ;;  %5957 = vmatprep.subr.bf16.mxu1 %v5939_v11 }
 0x61c   :  { %5894 = vmatpush1.bf16.msra.mxu0 %v5874_v2  ;;  %5958 = vmatpush1.bf16.msra.mxu1 %v5938_v33 }
 0x61d   :  { %5895 = vmatprep.subr.bf16.mxu0 %v5877_v54  ;;  %5959 = vmatprep.subr.bf16.mxu1 %v5941_v29 }
 0x61e   :  { %v5026_v5 = vpop.f32.mrb[144].mxu0  ;;  %v5090_v58 = vpop.f32.mrb[144].mxu1 }
 0x61f   :  { %v5033_v24 = vadd.f32 %v5026_v5, %v9372_v35  ;;  %v5028_v36 = vpop.f32.mrb[145].mxu0  ;;  %v5092_v39 = vpop.f32.mrb[145].mxu1  ;;  %v5947_v35 = vrot.slane %v5928_v57, 7  ;;  %v6187_v57 = vld [vmem:[#allocation2 + $0x19a0] sm:$0xff] }
 0x620   :  { %v5034_v17 = vadd.f32 %v5028_v36, %v9374_v26  ;;  %v5030_v50 = vpop.f32.mrb[146].mxu0  ;;  %v5094_v63 = vpop.f32.mrb[146].mxu1  ;;  %5896 = vmatpush1.bf16.msra.mxu0 %v5876_v53  ;;  %5960 = vmatpush1.bf16.msra.mxu1 %v5940_v49  ;;  %v5996_v26 = vld [vmem:[#allocation2 + $0x1810] sm:$0xff]  ;;  %v6006_v53 = vld [vmem:[#allocation2 + $0x1860] sm:$0xff] }
 0x621   :  { %v9380_v18 = vadd.f32 %v5090_v58, %v5033_v24  ;;  %v5031_v22 = vpop.f32.mrb[147].mxu0  ;;  %v5095_v7 = vpop.f32.mrb[147].mxu1  ;;  %5897 = vmatprep.subr.bf16.mxu0 %v5879_v4  ;;  %5961 = vmatprep.subr.bf16.mxu1 %v5943_v43  ;;  %v6067_v49 = vld [vmem:[#allocation2 + $0x18e0] sm:$0xff]  ;;  %v6009_v58 = vld [vmem:[#allocation2 + $0x1878] sm:$0xff]  ;;  %v6053_v43 = vld [vmem:[#allocation6 + $0x30] sm:$0x2] }
 0x622   :  { %v9382_v6 = vadd.f32 %v5092_v39, %v5034_v17  ;;  %v6070_v4 = vld [vmem:[#allocation2 + $0x18f8] sm:$0xff]  ;;  %v6008_v24 = vld [vmem:[#allocation2 + $0x1870] sm:$0xff]  ;;  %v6120_v39 = vld [vmem:[#allocation2 + $0x1908] sm:$0xff]  ;;  %v6072_v50 = vrot.slane %v6053_v43, 1 }
 0x623   :  { %v6069_v36 = vld [vmem:[#allocation2 + $0x18f0] sm:$0xff]  ;;  %v6184_v17 = vld [vmem:[#allocation2 + $0x1988] sm:$0xff]  ;;  %v6183_v22 = vld [vmem:[#allocation2 + $0x1980] sm:$0xff] }
 0x624   :  { %5898 = vmatpush1.bf16.msra.mxu0 %v5878_v34  ;;  %5962 = vmatpush1.bf16.msra.mxu1 %v5942_v32  ;;  %v5992_v63 = vld [vmem:[#allocation6 + $0x30] sm:$0x1]  ;;  %v6122_v7 = vld [vmem:[#allocation2 + $0x1918] sm:$0xff]  ;;  %v6121_v32 = vld [vmem:[#allocation2 + $0x1910] sm:$0xff] }
 0x625   :  { %5899 = vmatprep.subr.bf16.mxu0 %v5881_v41  ;;  %5963 = vmatprep.subr.bf16.mxu1 %v5945_v55  ;;  %v6186_v34 = vld [vmem:[#allocation2 + $0x1998] sm:$0xff]  ;;  %v6124_v41 = vld [vmem:[#allocation2 + $0x1928] sm:$0xff]  ;;  %v6251_v43 = vld [vmem:[#allocation2 + $0x1a20] sm:$0xff] }
 0x626   :  { %v6188_v55 = vld [vmem:[#allocation2 + $0x19a8] sm:$0xff] }
 0x628   :  { %5900 = vmatpush1.bf16.msra.mxu0 %v5880_v14  ;;  %5964 = vmatpush1.bf16.msra.mxu1 %v5944_v48  ;;  %v6126_v14 = vld [vmem:[#allocation2 + $0x1938] sm:$0xff] }
 0x629   :  { %6010 = vmatprep.subr.bf16.mxu0 %v5995_v21  ;;  %6074 = vmatprep.subr.bf16.mxu1 %v6056_v62  ;;  %v6190_v48 = vld [vmem:[#allocation2 + $0x19b8] sm:$0xff]  ;;  %v6125_v21 = vld [vmem:[#allocation2 + $0x1930] sm:$0xff] }
 0x62a   :  { %v6189_v62 = vld [vmem:[#allocation2 + $0x19b0] sm:$0xff] }
 0x62b   :  { %5918 = vmatmul.mubr.bf16.vlgmr.msra.gmra.mrb[172].mxu0 %v5883_v52  ;;  %5982 = vmatmul.mubr.bf16.vlgmr.msra.gmra.mrb[172].mxu1 %v5947_v35  ;;  %v6128_v52 = vld [vmem:[#allocation2 + $0x1948] sm:$0xff] }
 0x62c   :  { %6011 = vmatpush1.bf16.msra.mxu0 %v5994_v15  ;;  %6075 = vmatpush1.bf16.msra.mxu1 %v6055_v31  ;;  %v6192_v35 = vld [vmem:[#allocation2 + $0x19c8] sm:$0xff]  ;;  %v6127_v15 = vld [vmem:[#allocation2 + $0x1940] sm:$0xff] }
 0x62d   :  { %6012 = vmatprep.subr.bf16.mxu0 %v5997_v40  ;;  %6076 = vmatprep.subr.bf16.mxu1 %v6058_v44  ;;  %v6191_v31 = vld [vmem:[#allocation2 + $0x19c0] sm:$0xff]  ;;  %v6130_v40 = vld [vmem:[#allocation2 + $0x1958] sm:$0xff] }
 0x62e   :  { %6042 = vmatprep.mubr.bf16.mxu0 %v9569_v47  ;;  %6106 = vmatprep.mubr.bf16.mxu1 %v9569_v47  ;;  %v6194_v44 = vld [vmem:[#allocation2 + $0x19d8] sm:$0xff] }
 0x630   :  { %6013 = vmatpush1.bf16.msra.mxu0 %v5996_v26  ;;  %6077 = vmatpush1.bf16.msra.mxu1 %v6057_v42  ;;  %v6129_v26 = vld [vmem:[#allocation2 + $0x1950] sm:$0xff] }
 0x631   :  { %6014 = vmatprep.subr.bf16.mxu0 %v5999_v16  ;;  %6078 = vmatprep.subr.bf16.mxu1 %v6060_v12  ;;  %v6193_v42 = vld [vmem:[#allocation2 + $0x19d0] sm:$0xff] }
 0x634   :  { %6015 = vmatpush1.bf16.msra.mxu0 %v5998_v46  ;;  %6079 = vmatpush1.bf16.msra.mxu1 %v6059_v27  ;;  %v6132_v46 = vld [vmem:[#allocation2 + $0x1968] sm:$0xff] }
 0x635   :  { %6016 = vmatprep.subr.bf16.mxu0 %v6001_v30  ;;  %6080 = vmatprep.subr.bf16.mxu1 %v6062_v51  ;;  %v6196_v27 = vld [vmem:[#allocation2 + $0x19e8] sm:$0xff] }
 0x638   :  { %6017 = vmatpush1.bf16.msra.mxu0 %v6000_v56  ;;  %6081 = vmatpush1.bf16.msra.mxu1 %v6061_v60 }
 0x639   :  { %6018 = vmatprep.subr.bf16.mxu0 %v6003_v19  ;;  %6082 = vmatprep.subr.bf16.mxu1 %v6064_v3 }
 0x63c   :  { %6019 = vmatpush1.bf16.msra.mxu0 %v6002_v0  ;;  %6083 = vmatpush1.bf16.msra.mxu1 %v6063_v61 }
 0x63d   :  { %6020 = vmatprep.subr.bf16.mxu0 %v6005_v20  ;;  %6084 = vmatprep.subr.bf16.mxu1 %v6066_v23  ;;  %v6131_v23 = vld [vmem:[#allocation2 + $0x1960] sm:$0xff] }
 0x63e   :  { %v5154_v37 = vpop.f32.mrb[148].mxu0  ;;  %v5218_v59 = vpop.f32.mrb[148].mxu1 }
 0x63f   :  { %v5161_v45 = vadd.f32 %v5154_v37, %v9380_v18  ;;  %v5156_v9 = vpop.f32.mrb[149].mxu0  ;;  %v5220_v10 = vpop.f32.mrb[149].mxu1  ;;  %v6119_v18 = vld [vmem:[#allocation2 + $0x1900] sm:$0xff]  ;;  %v6134_v37 = vld [vmem:[#allocation2 + $0x1978] sm:$0xff] }
 0x640   :  { %v5162_v1 = vadd.f32 %v5156_v9, %v9382_v6  ;;  %v5158_v11 = vpop.f32.mrb[150].mxu0  ;;  %v5222_v2 = vpop.f32.mrb[150].mxu1  ;;  %6021 = vmatpush1.bf16.msra.mxu0 %v6004_v8  ;;  %6085 = vmatpush1.bf16.msra.mxu1 %v6065_v13  ;;  %v6185_v6 = vld [vmem:[#allocation2 + $0x1990] sm:$0xff]  ;;  %v6195_v8 = vld [vmem:[#allocation2 + $0x19e0] sm:$0xff] }
 0x641   :  { %v9388_v33 = vadd.f32 %v5218_v59, %v5161_v45  ;;  %v5159_v54 = vpop.f32.mrb[151].mxu0  ;;  %v5223_v29 = vpop.f32.mrb[151].mxu1  ;;  %6022 = vmatprep.subr.bf16.mxu0 %v6007_v38  ;;  %6086 = vmatprep.subr.bf16.mxu1 %v6068_v25  ;;  %v6198_v59 = vld [vmem:[#allocation2 + $0x19f8] sm:$0xff]  ;;  %v6117_v38 = vld [vmem:[#allocation6 + $0x30] sm:$0x4]  ;;  %v6133_v45 = vld [vmem:[#allocation2 + $0x1970] sm:$0xff] }
 0x642   :  { %v9390_v5 = vadd.f32 %v5220_v10, %v5162_v1  ;;  %v6181_v25 = vld [vmem:[#allocation6 + $0x30] sm:$0x8]  ;;  %v6197_v9 = vld [vmem:[#allocation2 + $0x19f0] sm:$0xff]  ;;  %v6136_v11 = vrot.slane %v6117_v38, 2  ;;  %v6311_v54 = vld [vmem:[#allocation2 + $0x1a80] sm:$0xff] }
 0x643   :  { %v6248_v10 = vld [vmem:[#allocation2 + $0x1a08] sm:$0xff]  ;;  %v6200_v2 = vrot.slane %v6181_v25, 3  ;;  %v6250_v29 = vld [vmem:[#allocation2 + $0x1a18] sm:$0xff]  ;;  %v6379_v25 = vld [vmem:[#allocation2 + $0x1b20] sm:$0xff] }
 0x644   :  { %6023 = vmatpush1.bf16.msra.mxu0 %v6006_v53  ;;  %6087 = vmatpush1.bf16.msra.mxu1 %v6067_v49  ;;  %v6312_v1 = vld [vmem:[#allocation2 + $0x1a88] sm:$0xff]  ;;  %v6314_v53 = vld [vmem:[#allocation2 + $0x1a98] sm:$0xff]  ;;  %v6249_v49 = vld [vmem:[#allocation2 + $0x1a10] sm:$0xff] }
 0x645   :  { %6024 = vmatprep.subr.bf16.mxu0 %v6009_v58  ;;  %6088 = vmatprep.subr.bf16.mxu1 %v6070_v4  ;;  %v6252_v58 = vld [vmem:[#allocation2 + $0x1a28] sm:$0xff] }
 0x646   :  { %v6316_v4 = vld [vmem:[#allocation2 + $0x1aa8] sm:$0xff] }
 0x647   :  { %v6444_v38 = vld [vmem:[#allocation2 + $0x1ba8] sm:$0xff] }
 0x648   :  { %6025 = vmatpush1.bf16.msra.mxu0 %v6008_v24  ;;  %6089 = vmatpush1.bf16.msra.mxu1 %v6069_v36  ;;  %v6315_v24 = vld [vmem:[#allocation2 + $0x1aa0] sm:$0xff]  ;;  %v6254_v36 = vld [vmem:[#allocation2 + $0x1a38] sm:$0xff] }
 0x649   :  { %6138 = vmatprep.subr.bf16.mxu0 %v6120_v39  ;;  %6202 = vmatprep.subr.bf16.mxu1 %v6184_v17  ;;  %v6318_v39 = vld [vmem:[#allocation2 + $0x1ab8] sm:$0xff]  ;;  %v6253_v17 = vld [vmem:[#allocation2 + $0x1a30] sm:$0xff] }
 0x64b   :  { %6043 = vmatmul.mubr.bf16.vlgmr.msra.gmra.mrb[176].mxu0 %v5992_v63  ;;  %6107 = vmatmul.mubr.bf16.vlgmr.msra.gmra.mrb[176].mxu1 %v6072_v50  ;;  %v6317_v50 = vld [vmem:[#allocation2 + $0x1ab0] sm:$0xff]  ;;  %v6256_v63 = vld [vmem:[#allocation2 + $0x1a48] sm:$0xff] }
 0x64c   :  { %6139 = vmatpush1.bf16.msra.mxu0 %v6119_v18  ;;  %6203 = vmatpush1.bf16.msra.mxu1 %v6183_v22  ;;  %v6320_v18 = vld [vmem:[#allocation2 + $0x1ac8] sm:$0xff]  ;;  %v6255_v22 = vld [vmem:[#allocation2 + $0x1a40] sm:$0xff] }
 0x64d   :  { %6140 = vmatprep.subr.bf16.mxu0 %v6122_v7  ;;  %6204 = vmatprep.subr.bf16.mxu1 %v6186_v34  ;;  %v6319_v7 = vld [vmem:[#allocation2 + $0x1ac0] sm:$0xff]  ;;  %v6258_v34 = vld [vmem:[#allocation2 + $0x1a58] sm:$0xff] }
 0x64e   :  { %6170 = vmatprep.mubr.bf16.mxu0 %v9569_v47  ;;  %6234 = vmatprep.mubr.bf16.mxu1 %v9569_v47 }
 0x650   :  { %6141 = vmatpush1.bf16.msra.mxu0 %v6121_v32  ;;  %6205 = vmatpush1.bf16.msra.mxu1 %v6185_v6  ;;  %v6322_v32 = vld [vmem:[#allocation2 + $0x1ad8] sm:$0xff]  ;;  %v6257_v6 = vld [vmem:[#allocation2 + $0x1a50] sm:$0xff] }
 0x651   :  { %6142 = vmatprep.subr.bf16.mxu0 %v6124_v41  ;;  %6206 = vmatprep.subr.bf16.mxu1 %v6188_v55  ;;  %v6321_v41 = vld [vmem:[#allocation2 + $0x1ad0] sm:$0xff] }
 0x654   :  { %6143 = vmatpush1.bf16.msra.mxu0 %v6123_v28  ;;  %6207 = vmatpush1.bf16.msra.mxu1 %v6187_v57  ;;  %v6260_v57 = vld [vmem:[#allocation2 + $0x1a68] sm:$0xff] }
 0x655   :  { %6144 = vmatprep.subr.bf16.mxu0 %v6126_v14  ;;  %6208 = vmatprep.subr.bf16.mxu1 %v6190_v48  ;;  %v6324_v14 = vld [vmem:[#allocation2 + $0x1ae8] sm:$0xff] }
 0x658   :  { %6145 = vmatpush1.bf16.msra.mxu0 %v6125_v21  ;;  %6209 = vmatpush1.bf16.msra.mxu1 %v6189_v62 }
 0x659   :  { %6146 = vmatprep.subr.bf16.mxu0 %v6128_v52  ;;  %6210 = vmatprep.subr.bf16.mxu1 %v6192_v35 }
 0x65c   :  { %6147 = vmatpush1.bf16.msra.mxu0 %v6127_v15  ;;  %6211 = vmatpush1.bf16.msra.mxu1 %v6191_v31 }
 0x65d   :  { %6148 = vmatprep.subr.bf16.mxu0 %v6130_v40  ;;  %6212 = vmatprep.subr.bf16.mxu1 %v6194_v44 }
 0x65e   :  { %v5282_v16 = vpop.f32.mrb[152].mxu0  ;;  %v5346_v12 = vpop.f32.mrb[152].mxu1 }
 0x65f   :  { %v5289_v30 = vadd.f32 %v5282_v16, %v9388_v33  ;;  %v5284_v51 = vpop.f32.mrb[153].mxu0  ;;  %v5348_v56 = vpop.f32.mrb[153].mxu1  ;;  %v6247_v33 = vld [vmem:[#allocation2 + $0x1a00] sm:$0xff] }
 0x660   :  { %v5290_v60 = vadd.f32 %v5284_v51, %v9390_v5  ;;  %v5286_v19 = vpop.f32.mrb[154].mxu0  ;;  %v5350_v3 = vpop.f32.mrb[154].mxu1  ;;  %6149 = vmatpush1.bf16.msra.mxu0 %v6129_v26  ;;  %6213 = vmatpush1.bf16.msra.mxu1 %v6193_v42  ;;  %v6313_v5 = vld [vmem:[#allocation2 + $0x1a90] sm:$0xff]  ;;  %v6259_v26 = vld [vmem:[#allocation2 + $0x1a60] sm:$0xff] }
 0x661   :  { %v9396_v0 = vadd.f32 %v5346_v12, %v5289_v30  ;;  %v5287_v61 = vpop.f32.mrb[155].mxu0  ;;  %v5351_v20 = vpop.f32.mrb[155].mxu1  ;;  %6150 = vmatprep.subr.bf16.mxu0 %v6132_v46  ;;  %6214 = vmatprep.subr.bf16.mxu1 %v6196_v27  ;;  %v6323_v42 = vld [vmem:[#allocation2 + $0x1ae0] sm:$0xff]  ;;  %v6262_v12 = vld [vmem:[#allocation2 + $0x1a78] sm:$0xff]  ;;  %v6245_v27 = vld [vmem:[#allocation6 + $0x30] sm:$0x10] }
 0x662   :  { %v9398_v13 = vadd.f32 %v5348_v56, %v5290_v60  ;;  %v6326_v46 = vld [vmem:[#allocation2 + $0x1af8] sm:$0xff]  ;;  %v6309_v30 = vld [vmem:[#allocation6 + $0x30] sm:$0x20]  ;;  %v6261_v51 = vld [vmem:[#allocation2 + $0x1a70] sm:$0xff]  ;;  %v6264_v3 = vrot.slane %v6245_v27, 4 }
 0x663   :  { %v6325_v56 = vld [vmem:[#allocation2 + $0x1af0] sm:$0xff]  ;;  %v6376_v60 = vld [vmem:[#allocation2 + $0x1b08] sm:$0xff]  ;;  %v6375_v61 = vld [vmem:[#allocation2 + $0x1b00] sm:$0xff] }
 0x664   :  { %6151 = vmatpush1.bf16.msra.mxu0 %v6131_v23  ;;  %6215 = vmatpush1.bf16.msra.mxu1 %v6195_v8  ;;  %v6440_v19 = vld [vmem:[#allocation2 + $0x1b88] sm:$0xff]  ;;  %v6439_v20 = vld [vmem:[#allocation2 + $0x1b80] sm:$0xff]  ;;  %v6378_v23 = vld [vmem:[#allocation2 + $0x1b18] sm:$0xff] }
 0x665   :  { %6152 = vmatprep.subr.bf16.mxu0 %v6134_v37  ;;  %6216 = vmatprep.subr.bf16.mxu1 %v6198_v59  ;;  %v6442_v8 = vld [vmem:[#allocation2 + $0x1b98] sm:$0xff]  ;;  %v6441_v37 = vld [vmem:[#allocation2 + $0x1b90] sm:$0xff]  ;;  %v6380_v59 = vld [vmem:[#allocation2 + $0x1b28] sm:$0xff] }
 0x666   :  { %v6569_v27 = vld [vmem:[#allocation2 + $0x1ca8] sm:$0xff] }
 0x668   :  { %6153 = vmatpush1.bf16.msra.mxu0 %v6133_v45  ;;  %6217 = vmatpush1.bf16.msra.mxu1 %v6197_v9  ;;  %v6443_v45 = vld [vmem:[#allocation2 + $0x1ba0] sm:$0xff]  ;;  %v6382_v9 = vld [vmem:[#allocation2 + $0x1b38] sm:$0xff] }
 0x669   :  { %6266 = vmatprep.subr.bf16.mxu0 %v6248_v10  ;;  %6330 = vmatprep.subr.bf16.mxu1 %v6312_v1  ;;  %v6446_v10 = vld [vmem:[#allocation2 + $0x1bb8] sm:$0xff]  ;;  %v6381_v1 = vld [vmem:[#allocation2 + $0x1b30] sm:$0xff] }
 0x66b   :  { %6171 = vmatmul.mubr.bf16.vlgmr.msra.gmra.mrb[180].mxu0 %v6136_v11  ;;  %6235 = vmatmul.mubr.bf16.vlgmr.msra.gmra.mrb[180].mxu1 %v6200_v2  ;;  %v6445_v11 = vld [vmem:[#allocation2 + $0x1bb0] sm:$0xff]  ;;  %v6384_v2 = vld [vmem:[#allocation2 + $0x1b48] sm:$0xff] }
 0x66c   :  { %6267 = vmatpush1.bf16.msra.mxu0 %v6247_v33  ;;  %6331 = vmatpush1.bf16.msra.mxu1 %v6311_v54  ;;  %v6448_v33 = vld [vmem:[#allocation2 + $0x1bc8] sm:$0xff]  ;;  %v6383_v54 = vld [vmem:[#allocation2 + $0x1b40] sm:$0xff] }
 0x66d   :  { %6268 = vmatprep.subr.bf16.mxu0 %v6250_v29  ;;  %6332 = vmatprep.subr.bf16.mxu1 %v6314_v53  ;;  %v6447_v29 = vld [vmem:[#allocation2 + $0x1bc0] sm:$0xff]  ;;  %v6386_v53 = vld [vmem:[#allocation2 + $0x1b58] sm:$0xff] }
 0x66e   :  { %6298 = vmatprep.mubr.bf16.mxu0 %v9569_v47  ;;  %6362 = vmatprep.mubr.bf16.mxu1 %v9569_v47 }
 0x670   :  { %6269 = vmatpush1.bf16.msra.mxu0 %v6249_v49  ;;  %6333 = vmatpush1.bf16.msra.mxu1 %v6313_v5  ;;  %v6450_v49 = vld [vmem:[#allocation2 + $0x1bd8] sm:$0xff]  ;;  %v6385_v5 = vld [vmem:[#allocation2 + $0x1b50] sm:$0xff] }
 0x671   :  { %6270 = vmatprep.subr.bf16.mxu0 %v6252_v58  ;;  %6334 = vmatprep.subr.bf16.mxu1 %v6316_v4  ;;  %v6449_v58 = vld [vmem:[#allocation2 + $0x1bd0] sm:$0xff] }
 0x674   :  { %6271 = vmatpush1.bf16.msra.mxu0 %v6251_v43  ;;  %6335 = vmatpush1.bf16.msra.mxu1 %v6315_v24  ;;  %v6388_v24 = vld [vmem:[#allocation2 + $0x1b68] sm:$0xff] }
 0x675   :  { %6272 = vmatprep.subr.bf16.mxu0 %v6254_v36  ;;  %6336 = vmatprep.subr.bf16.mxu1 %v6318_v39  ;;  %v6452_v36 = vld [vmem:[#allocation2 + $0x1be8] sm:$0xff] }
 0x678   :  { %6273 = vmatpush1.bf16.msra.mxu0 %v6253_v17  ;;  %6337 = vmatpush1.bf16.msra.mxu1 %v6317_v50 }
 0x679   :  { %6274 = vmatprep.subr.bf16.mxu0 %v6256_v63  ;;  %6338 = vmatprep.subr.bf16.mxu1 %v6320_v18 }
 0x67c   :  { %6275 = vmatpush1.bf16.msra.mxu0 %v6255_v22  ;;  %6339 = vmatpush1.bf16.msra.mxu1 %v6319_v7 }
 0x67d   :  { %6276 = vmatprep.subr.bf16.mxu0 %v6258_v34  ;;  %6340 = vmatprep.subr.bf16.mxu1 %v6322_v32 }
 0x67e   :  { %v5410_v55 = vpop.f32.mrb[156].mxu0  ;;  %v5474_v28 = vpop.f32.mrb[156].mxu1 }
 0x67f   :  { %v5417_v48 = vadd.f32 %v5410_v55, %v9396_v0  ;;  %v5412_v21 = vpop.f32.mrb[157].mxu0  ;;  %v5476_v62 = vpop.f32.mrb[157].mxu1  ;;  %v6328_v0 = vrot.slane %v6309_v30, 5  ;;  %v6507_v30 = vld [vmem:[#allocation2 + $0x1c20] sm:$0xff] }
 0x680   :  { %v5418_v52 = vadd.f32 %v5412_v21, %v9398_v13  ;;  %v5414_v35 = vpop.f32.mrb[158].mxu0  ;;  %v5478_v15 = vpop.f32.mrb[158].mxu1  ;;  %6277 = vmatpush1.bf16.msra.mxu0 %v6257_v6  ;;  %6341 = vmatpush1.bf16.msra.mxu1 %v6321_v41  ;;  %v6377_v13 = vld [vmem:[#allocation2 + $0x1b10] sm:$0xff]  ;;  %v6387_v6 = vld [vmem:[#allocation2 + $0x1b60] sm:$0xff] }
 0x681   :  { %v9404_v31 = vadd.f32 %v5474_v28, %v5417_v48  ;;  %v5415_v40 = vpop.f32.mrb[159].mxu0  ;;  %v5479_v44 = vpop.f32.mrb[159].mxu1  ;;  %6278 = vmatprep.subr.bf16.mxu0 %v6260_v57  ;;  %6342 = vmatprep.subr.bf16.mxu1 %v6324_v14  ;;  %v6451_v41 = vld [vmem:[#allocation2 + $0x1be0] sm:$0xff]  ;;  %v6390_v28 = vld [vmem:[#allocation2 + $0x1b78] sm:$0xff]  ;;  %v6373_v14 = vld [vmem:[#allocation6 + $0x30] sm:$0x40] }
 0x682   :  { %v9406_v16 = vadd.f32 %v5476_v62, %v5418_v52  ;;  %v6454_v57 = vld [vmem:[#allocation2 + $0x1bf8] sm:$0xff]  ;;  %v6437_v48 = vld [vmem:[#allocation6 + $0x30] sm:$0x80]  ;;  %v6389_v21 = vld [vmem:[#allocation2 + $0x1b70] sm:$0xff]  ;;  %v6392_v15 = vrot.slane %v6373_v14, 6 }
 0x683   :  { %v6453_v62 = vld [vmem:[#allocation2 + $0x1bf0] sm:$0xff]  ;;  %v6504_v52 = vld [vmem:[#allocation2 + $0x1c08] sm:$0xff]  ;;  %v6503_v40 = vld [vmem:[#allocation2 + $0x1c00] sm:$0xff] }
 0x684   :  { %6279 = vmatpush1.bf16.msra.mxu0 %v6259_v26  ;;  %6343 = vmatpush1.bf16.msra.mxu1 %v6323_v42  ;;  %v6565_v35 = vld [vmem:[#allocation2 + $0x1c88] sm:$0xff]  ;;  %v6564_v44 = vld [vmem:[#allocation2 + $0x1c80] sm:$0xff]  ;;  %v6506_v26 = vld [vmem:[#allocation2 + $0x1c18] sm:$0xff] }
 0x685   :  { %6280 = vmatprep.subr.bf16.mxu0 %v6262_v12  ;;  %6344 = vmatprep.subr.bf16.mxu1 %v6326_v46  ;;  %v6567_v42 = vld [vmem:[#allocation2 + $0x1c98] sm:$0xff]  ;;  %v6566_v12 = vld [vmem:[#allocation2 + $0x1c90] sm:$0xff]  ;;  %v6508_v46 = vld [vmem:[#allocation2 + $0x1c28] sm:$0xff] }
 0x686   :  { %v6632_v14 = vld [vmem:[#allocation2 + $0x1d20] sm:$0xff] }
 0x688   :  { %6281 = vmatpush1.bf16.msra.mxu0 %v6261_v51  ;;  %6345 = vmatpush1.bf16.msra.mxu1 %v6325_v56  ;;  %v6568_v51 = vld [vmem:[#allocation2 + $0x1ca0] sm:$0xff]  ;;  %v6510_v56 = vld [vmem:[#allocation2 + $0x1c38] sm:$0xff] }
 0x689   :  { %6394 = vmatprep.subr.bf16.mxu0 %v6376_v60  ;;  %6458 = vmatprep.subr.bf16.mxu1 %v6440_v19  ;;  %v6571_v60 = vld [vmem:[#allocation2 + $0x1cb8] sm:$0xff]  ;;  %v6509_v19 = vld [vmem:[#allocation2 + $0x1c30] sm:$0xff] }
 0x68b   :  { %6299 = vmatmul.mubr.bf16.vlgmr.msra.gmra.mrb[184].mxu0 %v6264_v3  ;;  %6363 = vmatmul.mubr.bf16.vlgmr.msra.gmra.mrb[184].mxu1 %v6328_v0  ;;  %v6570_v3 = vld [vmem:[#allocation2 + $0x1cb0] sm:$0xff]  ;;  %v6512_v0 = vld [vmem:[#allocation2 + $0x1c48] sm:$0xff] }
 0x68c   :  { %6395 = vmatpush1.bf16.msra.mxu0 %v6375_v61  ;;  %6459 = vmatpush1.bf16.msra.mxu1 %v6439_v20  ;;  %v6573_v61 = vld [vmem:[#allocation2 + $0x1cc8] sm:$0xff]  ;;  %v6511_v20 = vld [vmem:[#allocation2 + $0x1c40] sm:$0xff] }
 0x68d   :  { %6396 = vmatprep.subr.bf16.mxu0 %v6378_v23  ;;  %6460 = vmatprep.subr.bf16.mxu1 %v6442_v8  ;;  %v6572_v23 = vld [vmem:[#allocation2 + $0x1cc0] sm:$0xff]  ;;  %v6514_v8 = vld [vmem:[#allocation2 + $0x1c58] sm:$0xff] }
 0x68e   :  { %6426 = vmatprep.mubr.bf16.mxu0 %v9569_v47  ;;  %6490 = vmatprep.mubr.bf16.mxu1 %v9569_v47 }
 0x690   :  { %6397 = vmatpush1.bf16.msra.mxu0 %v6377_v13  ;;  %6461 = vmatpush1.bf16.msra.mxu1 %v6441_v37  ;;  %v6575_v13 = vld [vmem:[#allocation2 + $0x1cd8] sm:$0xff]  ;;  %v6513_v37 = vld [vmem:[#allocation2 + $0x1c50] sm:$0xff] }
 0x691   :  { %6398 = vmatprep.subr.bf16.mxu0 %v6380_v59  ;;  %6462 = vmatprep.subr.bf16.mxu1 %v6444_v38  ;;  %v6574_v59 = vld [vmem:[#allocation2 + $0x1cd0] sm:$0xff] }
 0x694   :  { %6399 = vmatpush1.bf16.msra.mxu0 %v6379_v25  ;;  %6463 = vmatpush1.bf16.msra.mxu1 %v6443_v45  ;;  %v6516_v45 = vld [vmem:[#allocation2 + $0x1c68] sm:$0xff] }
 0x695   :  { %6400 = vmatprep.subr.bf16.mxu0 %v6382_v9  ;;  %6464 = vmatprep.subr.bf16.mxu1 %v6446_v10  ;;  %v6577_v9 = vld [vmem:[#allocation2 + $0x1ce8] sm:$0xff] }
 0x698   :  { %6401 = vmatpush1.bf16.msra.mxu0 %v6381_v1  ;;  %6465 = vmatpush1.bf16.msra.mxu1 %v6445_v11 }
 0x699   :  { %6402 = vmatprep.subr.bf16.mxu0 %v6384_v2  ;;  %6466 = vmatprep.subr.bf16.mxu1 %v6448_v33 }
 0x69c   :  { %6403 = vmatpush1.bf16.msra.mxu0 %v6383_v54  ;;  %6467 = vmatpush1.bf16.msra.mxu1 %v6447_v29 }
 0x69d   :  { %6404 = vmatprep.subr.bf16.mxu0 %v6386_v53  ;;  %6468 = vmatprep.subr.bf16.mxu1 %v6450_v49 }
 0x69e   :  { %v5535_v4 = vpop.f32.mrb[160].mxu0  ;;  %v5599_v43 = vpop.f32.mrb[160].mxu1 }
 0x69f   :  { %v5542_v39 = vadd.f32 %v5535_v4, %v9404_v31  ;;  %v5537_v17 = vpop.f32.mrb[161].mxu0  ;;  %v5601_v50 = vpop.f32.mrb[161].mxu1  ;;  %v6456_v31 = vrot.slane %v6437_v48, 7  ;;  %v6696_v48 = vld [vmem:[#allocation2 + $0x1da0] sm:$0xff] }
 0x6a0   :  { %v5543_v63 = vadd.f32 %v5537_v17, %v9406_v16  ;;  %v5539_v18 = vpop.f32.mrb[162].mxu0  ;;  %v5603_v22 = vpop.f32.mrb[162].mxu1  ;;  %6405 = vmatpush1.bf16.msra.mxu0 %v6385_v5  ;;  %6469 = vmatpush1.bf16.msra.mxu1 %v6449_v58  ;;  %v6505_v16 = vld [vmem:[#allocation2 + $0x1c10] sm:$0xff]  ;;  %v6515_v5 = vld [vmem:[#allocation2 + $0x1c60] sm:$0xff] }
 0x6a1   :  { %v9412_v7 = vadd.f32 %v5599_v43, %v5542_v39  ;;  %v5540_v34 = vpop.f32.mrb[163].mxu0  ;;  %v5604_v32 = vpop.f32.mrb[163].mxu1  ;;  %6406 = vmatprep.subr.bf16.mxu0 %v6388_v24  ;;  %6470 = vmatprep.subr.bf16.mxu1 %v6452_v36  ;;  %v6576_v58 = vld [vmem:[#allocation2 + $0x1ce0] sm:$0xff]  ;;  %v6518_v43 = vld [vmem:[#allocation2 + $0x1c78] sm:$0xff]  ;;  %v6562_v36 = vld [vmem:[#allocation6 + $0x38] sm:$0x2] }
 0x6a2   :  { %v9414_v55 = vadd.f32 %v5601_v50, %v5543_v63  ;;  %v6579_v24 = vld [vmem:[#allocation2 + $0x1cf8] sm:$0xff]  ;;  %v6517_v39 = vld [vmem:[#allocation2 + $0x1c70] sm:$0xff]  ;;  %v6629_v50 = vld [vmem:[#allocation2 + $0x1d08] sm:$0xff]  ;;  %v6581_v18 = vrot.slane %v6562_v36, 1 }
 0x6a3   :  { %v6578_v17 = vld [vmem:[#allocation2 + $0x1cf0] sm:$0xff]  ;;  %v6693_v63 = vld [vmem:[#allocation2 + $0x1d88] sm:$0xff]  ;;  %v6692_v34 = vld [vmem:[#allocation2 + $0x1d80] sm:$0xff] }
 0x6a4   :  { %6407 = vmatpush1.bf16.msra.mxu0 %v6387_v6  ;;  %6471 = vmatpush1.bf16.msra.mxu1 %v6451_v41  ;;  %v6501_v22 = vld [vmem:[#allocation6 + $0x38] sm:$0x1]  ;;  %v6631_v32 = vld [vmem:[#allocation2 + $0x1d18] sm:$0xff]  ;;  %v6760_v36 = vld [vmem:[#allocation2 + $0x1e20] sm:$0xff] }
 0x6a5   :  { %6408 = vmatprep.subr.bf16.mxu0 %v6390_v28  ;;  %6472 = vmatprep.subr.bf16.mxu1 %v6454_v57  ;;  %v6695_v6 = vld [vmem:[#allocation2 + $0x1d98] sm:$0xff]  ;;  %v6630_v41 = vld [vmem:[#allocation2 + $0x1d10] sm:$0xff]  ;;  %v6633_v28 = vld [vmem:[#allocation2 + $0x1d28] sm:$0xff] }
 0x6a6   :  { %v6697_v57 = vld [vmem:[#allocation2 + $0x1da8] sm:$0xff] }
 0x6a8   :  { %6409 = vmatpush1.bf16.msra.mxu0 %v6389_v21  ;;  %6473 = vmatpush1.bf16.msra.mxu1 %v6453_v62  ;;  %v6635_v21 = vld [vmem:[#allocation2 + $0x1d38] sm:$0xff] }
 0x6a9   :  { %6519 = vmatprep.subr.bf16.mxu0 %v6504_v52  ;;  %6583 = vmatprep.subr.bf16.mxu1 %v6565_v35  ;;  %v6699_v62 = vld [vmem:[#allocation2 + $0x1db8] sm:$0xff]  ;;  %v6634_v52 = vld [vmem:[#allocation2 + $0x1d30] sm:$0xff] }
 0x6aa   :  { %v6698_v35 = vld [vmem:[#allocation2 + $0x1db0] sm:$0xff] }
 0x6ab   :  { %6427 = vmatmul.mubr.bf16.vlgmr.msra.gmra.mrb[188].mxu0 %v6392_v15  ;;  %6491 = vmatmul.mubr.bf16.vlgmr.msra.gmra.mrb[188].mxu1 %v6456_v31  ;;  %v6637_v15 = vld [vmem:[#allocation2 + $0x1d48] sm:$0xff] }
 0x6ac   :  { %6520 = vmatpush1.bf16.msra.mxu0 %v6503_v40  ;;  %6584 = vmatpush1.bf16.msra.mxu1 %v6564_v44  ;;  %v6701_v31 = vld [vmem:[#allocation2 + $0x1dc8] sm:$0xff]  ;;  %v6636_v40 = vld [vmem:[#allocation2 + $0x1d40] sm:$0xff] }
 0x6ad   :  { %6521 = vmatprep.subr.bf16.mxu0 %v6506_v26  ;;  %6585 = vmatprep.subr.bf16.mxu1 %v6567_v42  ;;  %v6700_v44 = vld [vmem:[#allocation2 + $0x1dc0] sm:$0xff]  ;;  %v6639_v26 = vld [vmem:[#allocation2 + $0x1d58] sm:$0xff] }
 0x6ae   :  { %6551 = vmatprep.mubr.bf16.mxu0 %v9569_v47  ;;  %6615 = vmatprep.mubr.bf16.mxu1 %v9569_v47  ;;  %v6703_v42 = vld [vmem:[#allocation2 + $0x1dd8] sm:$0xff] }
 0x6b0   :  { %6522 = vmatpush1.bf16.msra.mxu0 %v6505_v16  ;;  %6586 = vmatpush1.bf16.msra.mxu1 %v6566_v12  ;;  %v6638_v16 = vld [vmem:[#allocation2 + $0x1d50] sm:$0xff] }
 0x6b1   :  { %6523 = vmatprep.subr.bf16.mxu0 %v6508_v46  ;;  %6587 = vmatprep.subr.bf16.mxu1 %v6569_v27  ;;  %v6702_v12 = vld [vmem:[#allocation2 + $0x1dd0] sm:$0xff] }
 0x6b4   :  { %6524 = vmatpush1.bf16.msra.mxu0 %v6507_v30  ;;  %6588 = vmatpush1.bf16.msra.mxu1 %v6568_v51  ;;  %v6641_v30 = vld [vmem:[#allocation2 + $0x1d68] sm:$0xff] }
 0x6b5   :  { %6525 = vmatprep.subr.bf16.mxu0 %v6510_v56  ;;  %6589 = vmatprep.subr.bf16.mxu1 %v6571_v60  ;;  %v6705_v51 = vld [vmem:[#allocation2 + $0x1de8] sm:$0xff] }
 0x6b8   :  { %6526 = vmatpush1.bf16.msra.mxu0 %v6509_v19  ;;  %6590 = vmatpush1.bf16.msra.mxu1 %v6570_v3 }
 0x6b9   :  { %6527 = vmatprep.subr.bf16.mxu0 %v6512_v0  ;;  %6591 = vmatprep.subr.bf16.mxu1 %v6573_v61 }
 0x6bc   :  { %6528 = vmatpush1.bf16.msra.mxu0 %v6511_v20  ;;  %6592 = vmatpush1.bf16.msra.mxu1 %v6572_v23 }
 0x6bd   :  { %6529 = vmatprep.subr.bf16.mxu0 %v6514_v8  ;;  %6593 = vmatprep.subr.bf16.mxu1 %v6575_v13  ;;  %v6640_v13 = vld [vmem:[#allocation2 + $0x1d60] sm:$0xff] }
 0x6be   :  { %v5663_v38 = vpop.f32.mrb[164].mxu0  ;;  %v5727_v25 = vpop.f32.mrb[164].mxu1 }
 0x6bf   :  { %v5670_v10 = vadd.f32 %v5663_v38, %v9412_v7  ;;  %v5665_v1 = vpop.f32.mrb[165].mxu0  ;;  %v5729_v11 = vpop.f32.mrb[165].mxu1  ;;  %v6628_v7 = vld [vmem:[#allocation2 + $0x1d00] sm:$0xff]  ;;  %v6643_v38 = vld [vmem:[#allocation2 + $0x1d78] sm:$0xff] }
 0x6c0   :  { %v5671_v2 = vadd.f32 %v5665_v1, %v9414_v55  ;;  %v5667_v33 = vpop.f32.mrb[166].mxu0  ;;  %v5731_v54 = vpop.f32.mrb[166].mxu1  ;;  %6530 = vmatpush1.bf16.msra.mxu0 %v6513_v37  ;;  %6594 = vmatpush1.bf16.msra.mxu1 %v6574_v59  ;;  %v6694_v55 = vld [vmem:[#allocation2 + $0x1d90] sm:$0xff]  ;;  %v6704_v37 = vld [vmem:[#allocation2 + $0x1de0] sm:$0xff] }
 0x6c1   :  { %v9420_v29 = vadd.f32 %v5727_v25, %v5670_v10  ;;  %v5668_v53 = vpop.f32.mrb[167].mxu0  ;;  %v5732_v49 = vpop.f32.mrb[167].mxu1  ;;  %6531 = vmatprep.subr.bf16.mxu0 %v6516_v45  ;;  %6595 = vmatprep.subr.bf16.mxu1 %v6577_v9  ;;  %v6707_v25 = vld [vmem:[#allocation2 + $0x1df8] sm:$0xff]  ;;  %v6626_v45 = vld [vmem:[#allocation6 + $0x38] sm:$0x4] }
 0x6c2   :  { %v9422_v4 = vadd.f32 %v5729_v11, %v5671_v2  ;;  %v6690_v9 = vld [vmem:[#allocation6 + $0x38] sm:$0x8]  ;;  %v6757_v11 = vld [vmem:[#allocation2 + $0x1e08] sm:$0xff]  ;;  %v6645_v33 = vrot.slane %v6626_v45, 2  ;;  %v6820_v53 = vld [vmem:[#allocation2 + $0x1e80] sm:$0xff] }
 0x6c3   :  { %v6642_v10 = vld [vmem:[#allocation2 + $0x1d70] sm:$0xff]  ;;  %v6821_v2 = vld [vmem:[#allocation2 + $0x1e88] sm:$0xff]  ;;  %v6709_v54 = vrot.slane %v6690_v9, 3  ;;  %v6759_v49 = vld [vmem:[#allocation2 + $0x1e18] sm:$0xff] }
 0x6c4   :  { %6532 = vmatpush1.bf16.msra.mxu0 %v6515_v5  ;;  %6596 = vmatpush1.bf16.msra.mxu1 %v6576_v58  ;;  %v6706_v1 = vld [vmem:[#allocation2 + $0x1df0] sm:$0xff]  ;;  %v6823_v5 = vld [vmem:[#allocation2 + $0x1e98] sm:$0xff]  ;;  %v6953_v45 = vld [vmem:[#allocation2 + $0x1fa8] sm:$0xff] }
 0x6c5   :  { %6533 = vmatprep.subr.bf16.mxu0 %v6518_v43  ;;  %6597 = vmatprep.subr.bf16.mxu1 %v6579_v24  ;;  %v6758_v58 = vld [vmem:[#allocation2 + $0x1e10] sm:$0xff]  ;;  %v6761_v43 = vld [vmem:[#allocation2 + $0x1e28] sm:$0xff]  ;;  %v6888_v9 = vld [vmem:[#allocation2 + $0x1f20] sm:$0xff] }
 0x6c6   :  { %v6825_v24 = vld [vmem:[#allocation2 + $0x1ea8] sm:$0xff] }
 0x6c8   :  { %6534 = vmatpush1.bf16.msra.mxu0 %v6517_v39  ;;  %6598 = vmatpush1.bf16.msra.mxu1 %v6578_v17  ;;  %v6824_v39 = vld [vmem:[#allocation2 + $0x1ea0] sm:$0xff]  ;;  %v6763_v17 = vld [vmem:[#allocation2 + $0x1e38] sm:$0xff] }
 0x6c9   :  { %6647 = vmatprep.subr.bf16.mxu0 %v6629_v50  ;;  %6711 = vmatprep.subr.bf16.mxu1 %v6693_v63  ;;  %v6827_v50 = vld [vmem:[#allocation2 + $0x1eb8] sm:$0xff]  ;;  %v6762_v63 = vld [vmem:[#allocation2 + $0x1e30] sm:$0xff] }
 0x6cb   :  { %6552 = vmatmul.mubr.bf16.vlgmr.msra.gmra.mrb[192].mxu0 %v6501_v22  ;;  %6616 = vmatmul.mubr.bf16.vlgmr.msra.gmra.mrb[192].mxu1 %v6581_v18  ;;  %v6826_v18 = vld [vmem:[#allocation2 + $0x1eb0] sm:$0xff]  ;;  %v6765_v22 = vld [vmem:[#allocation2 + $0x1e48] sm:$0xff] }
 0x6cc   :  { %6648 = vmatpush1.bf16.msra.mxu0 %v6628_v7  ;;  %6712 = vmatpush1.bf16.msra.mxu1 %v6692_v34  ;;  %v6829_v7 = vld [vmem:[#allocation2 + $0x1ec8] sm:$0xff]  ;;  %v6764_v34 = vld [vmem:[#allocation2 + $0x1e40] sm:$0xff] }
 0x6cd   :  { %6649 = vmatprep.subr.bf16.mxu0 %v6631_v32  ;;  %6713 = vmatprep.subr.bf16.mxu1 %v6695_v6  ;;  %v6828_v32 = vld [vmem:[#allocation2 + $0x1ec0] sm:$0xff]  ;;  %v6767_v6 = vld [vmem:[#allocation2 + $0x1e58] sm:$0xff] }
 0x6ce   :  { %6679 = vmatprep.mubr.bf16.mxu0 %v9569_v47  ;;  %6743 = vmatprep.mubr.bf16.mxu1 %v9569_v47 }
 0x6d0   :  { %6650 = vmatpush1.bf16.msra.mxu0 %v6630_v41  ;;  %6714 = vmatpush1.bf16.msra.mxu1 %v6694_v55  ;;  %v6831_v41 = vld [vmem:[#allocation2 + $0x1ed8] sm:$0xff]  ;;  %v6766_v55 = vld [vmem:[#allocation2 + $0x1e50] sm:$0xff] }
 0x6d1   :  { %6651 = vmatprep.subr.bf16.mxu0 %v6633_v28  ;;  %6715 = vmatprep.subr.bf16.mxu1 %v6697_v57  ;;  %v6830_v28 = vld [vmem:[#allocation2 + $0x1ed0] sm:$0xff] }
 0x6d4   :  { %6652 = vmatpush1.bf16.msra.mxu0 %v6632_v14  ;;  %6716 = vmatpush1.bf16.msra.mxu1 %v6696_v48  ;;  %v6769_v48 = vld [vmem:[#allocation2 + $0x1e68] sm:$0xff] }
 0x6d5   :  { %6653 = vmatprep.subr.bf16.mxu0 %v6635_v21  ;;  %6717 = vmatprep.subr.bf16.mxu1 %v6699_v62  ;;  %v6833_v21 = vld [vmem:[#allocation2 + $0x1ee8] sm:$0xff] }
 0x6d8   :  { %6654 = vmatpush1.bf16.msra.mxu0 %v6634_v52  ;;  %6718 = vmatpush1.bf16.msra.mxu1 %v6698_v35 }
 0x6d9   :  { %6655 = vmatprep.subr.bf16.mxu0 %v6637_v15  ;;  %6719 = vmatprep.subr.bf16.mxu1 %v6701_v31 }
 0x6dc   :  { %6656 = vmatpush1.bf16.msra.mxu0 %v6636_v40  ;;  %6720 = vmatpush1.bf16.msra.mxu1 %v6700_v44 }
 0x6dd   :  { %6657 = vmatprep.subr.bf16.mxu0 %v6639_v26  ;;  %6721 = vmatprep.subr.bf16.mxu1 %v6703_v42 }
 0x6de   :  { %v5791_v46 = vpop.f32.mrb[168].mxu0  ;;  %v5855_v27 = vpop.f32.mrb[168].mxu1 }
 0x6df   :  { %v5798_v56 = vadd.f32 %v5791_v46, %v9420_v29  ;;  %v5793_v60 = vpop.f32.mrb[169].mxu0  ;;  %v5857_v19 = vpop.f32.mrb[169].mxu1  ;;  %v6756_v29 = vld [vmem:[#allocation2 + $0x1e00] sm:$0xff] }
 0x6e0   :  { %v5799_v3 = vadd.f32 %v5793_v60, %v9422_v4  ;;  %v5795_v0 = vpop.f32.mrb[170].mxu0  ;;  %v5859_v61 = vpop.f32.mrb[170].mxu1  ;;  %6658 = vmatpush1.bf16.msra.mxu0 %v6638_v16  ;;  %6722 = vmatpush1.bf16.msra.mxu1 %v6702_v12  ;;  %v6822_v4 = vld [vmem:[#allocation2 + $0x1e90] sm:$0xff]  ;;  %v6768_v16 = vld [vmem:[#allocation2 + $0x1e60] sm:$0xff] }
 0x6e1   :  { %v9428_v20 = vadd.f32 %v5855_v27, %v5798_v56  ;;  %v5796_v23 = vpop.f32.mrb[171].mxu0  ;;  %v5860_v8 = vpop.f32.mrb[171].mxu1  ;;  %6659 = vmatprep.subr.bf16.mxu0 %v6641_v30  ;;  %6723 = vmatprep.subr.bf16.mxu1 %v6705_v51  ;;  %v6832_v12 = vld [vmem:[#allocation2 + $0x1ee0] sm:$0xff]  ;;  %v6771_v27 = vld [vmem:[#allocation2 + $0x1e78] sm:$0xff]  ;;  %v6754_v51 = vld [vmem:[#allocation6 + $0x38] sm:$0x10] }
 0x6e2   :  { %v9430_v59 = vadd.f32 %v5857_v19, %v5799_v3  ;;  %v6835_v30 = vld [vmem:[#allocation2 + $0x1ef8] sm:$0xff]  ;;  %v6818_v56 = vld [vmem:[#allocation6 + $0x38] sm:$0x20]  ;;  %v6885_v3 = vld [vmem:[#allocation2 + $0x1f08] sm:$0xff]  ;;  %v6773_v61 = vrot.slane %v6754_v51, 4 }
 0x6e3   :  { %v6770_v60 = vld [vmem:[#allocation2 + $0x1e70] sm:$0xff]  ;;  %v6949_v0 = vld [vmem:[#allocation2 + $0x1f88] sm:$0xff]  ;;  %v6884_v23 = vld [vmem:[#allocation2 + $0x1f00] sm:$0xff] }
 0x6e4   :  { %6660 = vmatpush1.bf16.msra.mxu0 %v6640_v13  ;;  %6724 = vmatpush1.bf16.msra.mxu1 %v6704_v37  ;;  %v6834_v19 = vld [vmem:[#allocation2 + $0x1ef0] sm:$0xff]  ;;  %v6948_v8 = vld [vmem:[#allocation2 + $0x1f80] sm:$0xff]  ;;  %v6887_v13 = vld [vmem:[#allocation2 + $0x1f18] sm:$0xff] }
 0x6e5   :  { %6661 = vmatprep.subr.bf16.mxu0 %v6643_v38  ;;  %6725 = vmatprep.subr.bf16.mxu1 %v6707_v25  ;;  %v6951_v37 = vld [vmem:[#allocation2 + $0x1f98] sm:$0xff]  ;;  %v6950_v38 = vld [vmem:[#allocation2 + $0x1f90] sm:$0xff]  ;;  %v6889_v25 = vld [vmem:[#allocation2 + $0x1f28] sm:$0xff] }
 0x6e8   :  { %6662 = vmatpush1.bf16.msra.mxu0 %v6642_v10  ;;  %6726 = vmatpush1.bf16.msra.mxu1 %v6706_v1  ;;  %v6952_v10 = vld [vmem:[#allocation2 + $0x1fa0] sm:$0xff]  ;;  %v6891_v1 = vld [vmem:[#allocation2 + $0x1f38] sm:$0xff] }
 0x6e9   :  { %6775 = vmatprep.subr.bf16.mxu0 %v6757_v11  ;;  %6839 = vmatprep.subr.bf16.mxu1 %v6821_v2  ;;  %v6955_v11 = vld [vmem:[#allocation2 + $0x1fb8] sm:$0xff]  ;;  %v6890_v2 = vld [vmem:[#allocation2 + $0x1f30] sm:$0xff] }
 0x6eb   :  { %6680 = vmatmul.mubr.bf16.vlgmr.msra.gmra.mrb[196].mxu0 %v6645_v33  ;;  %6744 = vmatmul.mubr.bf16.vlgmr.msra.gmra.mrb[196].mxu1 %v6709_v54  ;;  %v6954_v33 = vld [vmem:[#allocation2 + $0x1fb0] sm:$0xff]  ;;  %v6893_v54 = vld [vmem:[#allocation2 + $0x1f48] sm:$0xff] }
 0x6ec   :  { %6776 = vmatpush1.bf16.msra.mxu0 %v6756_v29  ;;  %6840 = vmatpush1.bf16.msra.mxu1 %v6820_v53  ;;  %v6957_v29 = vld [vmem:[#allocation2 + $0x1fc8] sm:$0xff]  ;;  %v6956_v53 = vld [vmem:[#allocation2 + $0x1fc0] sm:$0xff] }
 0x6ed   :  { %6777 = vmatprep.subr.bf16.mxu0 %v6759_v49  ;;  %6841 = vmatprep.subr.bf16.mxu1 %v6823_v5  ;;  %v6895_v49 = vld [vmem:[#allocation2 + $0x1f58] sm:$0xff] }
 0x6ee   :  { %6807 = vmatprep.mubr.bf16.mxu0 %v9569_v47  ;;  %6871 = vmatprep.mubr.bf16.mxu1 %v9569_v47  ;;  %v6959_v5 = vld [vmem:[#allocation2 + $0x1fd8] sm:$0xff] }
 0x6f0   :  { %6778 = vmatpush1.bf16.msra.mxu0 %v6758_v58  ;;  %6842 = vmatpush1.bf16.msra.mxu1 %v6822_v4  ;;  %v6894_v58 = vld [vmem:[#allocation2 + $0x1f50] sm:$0xff] }
 0x6f1   :  { %6779 = vmatprep.subr.bf16.mxu0 %v6761_v43  ;;  %6843 = vmatprep.subr.bf16.mxu1 %v6825_v24  ;;  %v6958_v4 = vld [vmem:[#allocation2 + $0x1fd0] sm:$0xff] }
 0x6f4   :  { %6780 = vmatpush1.bf16.msra.mxu0 %v6760_v36  ;;  %6844 = vmatpush1.bf16.msra.mxu1 %v6824_v39  ;;  %v6897_v36 = vld [vmem:[#allocation2 + $0x1f68] sm:$0xff] }
 0x6f5   :  { %6781 = vmatprep.subr.bf16.mxu0 %v6763_v17  ;;  %6845 = vmatprep.subr.bf16.mxu1 %v6827_v50  ;;  %v6961_v39 = vld [vmem:[#allocation2 + $0x1fe8] sm:$0xff] }
 0x6f8   :  { %6782 = vmatpush1.bf16.msra.mxu0 %v6762_v63  ;;  %6846 = vmatpush1.bf16.msra.mxu1 %v6826_v18 }
 0x6f9   :  { %6783 = vmatprep.subr.bf16.mxu0 %v6765_v22  ;;  %6847 = vmatprep.subr.bf16.mxu1 %v6829_v7 }
 0x6fc   :  { %6784 = vmatpush1.bf16.msra.mxu0 %v6764_v34  ;;  %6848 = vmatpush1.bf16.msra.mxu1 %v6828_v32 }
 0x6fd   :  { %6785 = vmatprep.subr.bf16.mxu0 %v6767_v6  ;;  %6849 = vmatprep.subr.bf16.mxu1 %v6831_v41  ;;  %v6896_v41 = vld [vmem:[#allocation2 + $0x1f60] sm:$0xff] }
 0x6fe   :  { %v5919_v57 = vpop.f32.mrb[172].mxu0  ;;  %v5983_v14 = vpop.f32.mrb[172].mxu1 }
 0x6ff   :  { %v5926_v62 = vadd.f32 %v5919_v57, %v9428_v20  ;;  %v5921_v52 = vpop.f32.mrb[173].mxu0  ;;  %v5985_v35 = vpop.f32.mrb[173].mxu1  ;;  %v6837_v20 = vrot.slane %v6818_v56, 5  ;;  %v6899_v57 = vld [vmem:[#allocation2 + $0x1f78] sm:$0xff] }
 0x700   :  { %v5927_v15 = vadd.f32 %v5921_v52, %v9430_v59  ;;  %v5923_v31 = vpop.f32.mrb[174].mxu0  ;;  %v5987_v40 = vpop.f32.mrb[174].mxu1  ;;  %6786 = vmatpush1.bf16.msra.mxu0 %v6766_v55  ;;  %6850 = vmatpush1.bf16.msra.mxu1 %v6830_v28  ;;  %v6886_v59 = vld [vmem:[#allocation2 + $0x1f10] sm:$0xff]  ;;  %v6960_v55 = vld [vmem:[#allocation2 + $0x1fe0] sm:$0xff] }
 0x701   :  { %v9436_v44 = vadd.f32 %v5983_v14, %v5926_v62  ;;  %v5924_v26 = vpop.f32.mrb[175].mxu0  ;;  %v5988_v42 = vpop.f32.mrb[175].mxu1  ;;  %6787 = vmatprep.subr.bf16.mxu0 %v6769_v48  ;;  %6851 = vmatprep.subr.bf16.mxu1 %v6833_v21  ;;  %v6963_v14 = vld [vmem:[#allocation2 + $0x1ff8] sm:$0xff]  ;;  %v6882_v48 = vld [vmem:[#allocation6 + $0x38] sm:$0x40] }
 0x702   :  { %v9438_v46 = vadd.f32 %v5985_v35, %v5927_v15  ;;  %v6946_v21 = vld [vmem:[#allocation6 + $0x38] sm:$0x80]  ;;  %v6901_v35 = vrot.slane %v6882_v48, 6 }
 0x703   :  { %v6898_v62 = vld [vmem:[#allocation2 + $0x1f70] sm:$0xff]  ;;  %v6965_v15 = vrot.slane %v6946_v21, 7 }
 0x704   :  { %6788 = vmatpush1.bf16.msra.mxu0 %v6768_v16  ;;  %6852 = vmatpush1.bf16.msra.mxu1 %v6832_v12  ;;  %v6962_v52 = vld [vmem:[#allocation2 + $0x1ff0] sm:$0xff] }
 0x705   :  { %6789 = vmatprep.subr.bf16.mxu0 %v6771_v27  ;;  %6853 = vmatprep.subr.bf16.mxu1 %v6835_v30  ;;  %v7037_v48 = vld [vmem:[#allocation17 + $0x58] sm:$0xff] }
 0x708   :  { %6790 = vmatpush1.bf16.msra.mxu0 %v6770_v60  ;;  %6854 = vmatpush1.bf16.msra.mxu1 %v6834_v19 }
 0x709   :  { %6903 = vmatprep.subr.bf16.mxu0 %v6885_v3  ;;  %6967 = vmatprep.subr.bf16.mxu1 %v6949_v0 }
 0x70b   :  { %6808 = vmatmul.mubr.bf16.vlgmr.msra.gmra.mrb[200].mxu0 %v6773_v61  ;;  %6872 = vmatmul.mubr.bf16.vlgmr.msra.gmra.mrb[200].mxu1 %v6837_v20 }
 0x70c   :  { %6904 = vmatpush1.bf16.msra.mxu0 %v6884_v23  ;;  %6968 = vmatpush1.bf16.msra.mxu1 %v6948_v8 }
 0x70d   :  { %6905 = vmatprep.subr.bf16.mxu0 %v6887_v13  ;;  %6969 = vmatprep.subr.bf16.mxu1 %v6951_v37 }
 0x70e   :  { %6935 = vmatprep.mubr.bf16.mxu0 %v9569_v47  ;;  %6999 = vmatprep.mubr.bf16.mxu1 %v9569_v47  ;;  %v6892_v47 = vld [vmem:[#allocation2 + $0x1f40] sm:$0xff] }
 0x710   :  { %6906 = vmatpush1.bf16.msra.mxu0 %v6886_v59  ;;  %6970 = vmatpush1.bf16.msra.mxu1 %v6950_v38 }
 0x711   :  { %6907 = vmatprep.subr.bf16.mxu0 %v6889_v25  ;;  %6971 = vmatprep.subr.bf16.mxu1 %v6953_v45  ;;  %v7042_v25 = vld [vmem:[#allocation17 + $0x80] sm:$0xff]  ;;  %v7043_v45 = vld [vmem:[#allocation17 + $0x88] sm:$0xff] }
 0x714   :  { %6908 = vmatpush1.bf16.msra.mxu0 %v6888_v9  ;;  %6972 = vmatpush1.bf16.msra.mxu1 %v6952_v10  ;;  %v7026_v9 = vld [vmem:[#allocation17] sm:$0xff]  ;;  %v7688_v10 = vpack.c.bf16 %v7043_v45, %v7042_v25 }
 0x715   :  { %6909 = vmatprep.subr.bf16.mxu0 %v6891_v1  ;;  %6973 = vmatprep.subr.bf16.mxu1 %v6955_v11  ;;  %v7027_v1 = vld [vmem:[#allocation17 + $0x8] sm:$0xff]  ;;  %v7044_v11 = vld [vmem:[#allocation17 + $0x90] sm:$0xff] }
 0x718   :  { %6910 = vmatpush1.bf16.msra.mxu0 %v6890_v2  ;;  %6974 = vmatpush1.bf16.msra.mxu1 %v6954_v33  ;;  %v7045_v2 = vld [vmem:[#allocation17 + $0x98] sm:$0xff]  ;;  %v7690_v33 = vpack.c.bf16 %v7027_v1, %v7026_v9 }
 0x719   :  { %6911 = vmatprep.subr.bf16.mxu0 %v6893_v54  ;;  %6975 = vmatprep.subr.bf16.mxu1 %v6957_v29  ;;  %v7692_v54 = vpack.c.bf16 %v7045_v2, %v7044_v11  ;;  %v7028_v29 = vld [vmem:[#allocation17 + $0x10] sm:$0xff] }
 0x71c   :  { %6912 = vmatpush1.bf16.msra.mxu0 %v6892_v47  ;;  %6976 = vmatpush1.bf16.msra.mxu1 %v6956_v53  ;;  %v7029_v47 = vld [vmem:[#allocation17 + $0x18] sm:$0xff]  ;;  %v7046_v53 = vld [vmem:[#allocation17 + $0xa0] sm:$0xff] }
 0x71d   :  { %6913 = vmatprep.subr.bf16.mxu0 %v6895_v49  ;;  %6977 = vmatprep.subr.bf16.mxu1 %v6959_v5  ;;  %v7047_v49 = vld [vmem:[#allocation17 + $0xa8] sm:$0xff]  ;;  %v7694_v5 = vpack.c.bf16 %v7029_v47, %v7028_v29 }
 0x71e   :  { %v6044_v43 = vpop.f32.mrb[176].mxu0  ;;  %v6108_v24 = vpop.f32.mrb[176].mxu1 }
 0x71f   :  { %v6051_v17 = vadd.f32 %v6044_v43, %v9436_v44  ;;  %v6046_v50 = vpop.f32.mrb[177].mxu0  ;;  %v6110_v63 = vpop.f32.mrb[177].mxu1  ;;  %v7031_v43 = vld [vmem:[#allocation17 + $0x28] sm:$0xff] }
 0x720   :  { %v6052_v18 = vadd.f32 %v6046_v50, %v9438_v46  ;;  %v6048_v22 = vpop.f32.mrb[178].mxu0  ;;  %v6112_v7 = vpop.f32.mrb[178].mxu1  ;;  %6914 = vmatpush1.bf16.msra.mxu0 %v6894_v58  ;;  %6978 = vmatpush1.bf16.msra.mxu1 %v6958_v4  ;;  %v7696_v58 = vpack.c.bf16 %v7047_v49, %v7046_v53  ;;  %v7030_v4 = vld [vmem:[#allocation17 + $0x20] sm:$0xff]  ;;  %v7032_v50 = vld [vmem:[#allocation17 + $0x30] sm:$0xff] }
 0x721   :  { %v6115_v34 = vadd.f32 %v6108_v24, %v6051_v17  ;;  %v6049_v32 = vpop.f32.mrb[179].mxu0  ;;  %v6113_v6 = vpop.f32.mrb[179].mxu1  ;;  %6915 = vmatprep.subr.bf16.mxu0 %v6897_v36  ;;  %6979 = vmatprep.subr.bf16.mxu1 %v6961_v39  ;;  %v7048_v24 = vld [vmem:[#allocation17 + $0xb0] sm:$0xff]  ;;  %v7049_v36 = vld [vmem:[#allocation17 + $0xb8] sm:$0xff]  ;;  %v7698_v39 = vpack.c.bf16 %v7031_v43, %v7030_v4  ;;  %v7051_v22 = vld [vmem:[#allocation17 + $0xc8] sm:$0xff] }
 0x722   :  { %v6116_v28 = vadd.f32 %v6110_v63, %v6052_v18  ;;  %v7700_v17 = vpack.c.bf16 %v7049_v36, %v7048_v24  ;;  %v7033_v63 = vld [vmem:[#allocation17 + $0x38] sm:$0xff]  ;;  %v7050_v18 = vld [vmem:[#allocation17 + $0xc0] sm:$0xff]  ;;  %v7035_v6 = vld [vmem:[#allocation17 + $0x48] sm:$0xff] }
 0x723   :  { %v7702_v7 = vpack.c.bf16 %v7033_v63, %v7032_v50  ;;  %v7034_v32 = vld [vmem:[#allocation17 + $0x40] sm:$0xff] }
 0x724   :  { %6916 = vmatpush1.bf16.msra.mxu0 %v6896_v41  ;;  %6980 = vmatpush1.bf16.msra.mxu1 %v6960_v55  ;;  %v7052_v41 = vld [vmem:[#allocation17 + $0xd0] sm:$0xff]  ;;  %v7053_v55 = vld [vmem:[#allocation17 + $0xd8] sm:$0xff] }
 0x725   :  { %6917 = vmatprep.subr.bf16.mxu0 %v6899_v57  ;;  %6981 = vmatprep.subr.bf16.mxu1 %v6963_v14  ;;  %v7708_v57 = vpack.c.bf16 %v7053_v55, %v7052_v41  ;;  %v7036_v14 = vld [vmem:[#allocation17 + $0x50] sm:$0xff] }
 0x726   :  { %v7710_v21 = vpack.c.bf16 %v7037_v48, %v7036_v14 }
 0x728   :  { %6918 = vmatpush1.bf16.msra.mxu0 %v6898_v62  ;;  %6982 = vmatpush1.bf16.msra.mxu1 %v6962_v52 }
 0x729   :  { %7689 = vmatprep.subr.bf16.mxu0 %v7688_v10 }
 0x72b   :  { %6936 = vmatmul.mubr.bf16.vlgmr.msra.gmra.mrb[204].mxu0 %v6901_v35  ;;  %7000 = vmatmul.mubr.bf16.vlgmr.msra.gmra.mrb[204].mxu1 %v6965_v15  ;;  %v7054_v35 = vld [vmem:[#allocation17 + $0xe0] sm:$0xff]  ;;  %v7055_v15 = vld [vmem:[#allocation17 + $0xe8] sm:$0xff] }
 0x72c   :  { %7691 = vmatpush3.bf16.msra.mxu0 %v7690_v33 }
 0x72d   :  { %7693 = vmatprep.subr.bf16.mxu0 %v7692_v54 }
 0x730   :  { %7695 = vmatpush3.bf16.msra.mxu0 %v7694_v5 }
 0x731   :  { %7697 = vmatprep.subr.bf16.mxu0 %v7696_v58 }
 0x734   :  { %7699 = vmatpush3.bf16.msra.mxu0 %v7698_v39 }
 0x735   :  { %7701 = vmatprep.subr.bf16.mxu0 %v7700_v17 }
 0x738   :  { %7703 = vmatpush3.bf16.msra.mxu0 %v7702_v7 }
 0x73e   :  { %v6172_v31 = vpop.f32.mrb[180].mxu0  ;;  %v6236_v40 = vpop.f32.mrb[180].mxu1 }
 0x73f   :  { %v6179_v44 = vadd.f32 %v6172_v31, %v6115_v34  ;;  %v6174_v26 = vpop.f32.mrb[181].mxu0  ;;  %v6238_v42 = vpop.f32.mrb[181].mxu1  ;;  %v7704_v34 = vpack.c.bf16 %v7051_v22, %v7050_v18 }
 0x740   :  { %v6180_v16 = vadd.f32 %v6174_v26, %v6116_v28  ;;  %v6176_v12 = vpop.f32.mrb[182].mxu0  ;;  %v6240_v46 = vpop.f32.mrb[182].mxu1  ;;  %v7706_v28 = vpack.c.bf16 %v7035_v6, %v7034_v32  ;;  %v7712_v26 = vpack.c.bf16 %v7055_v15, %v7054_v35 }
 0x741   :  { %v6243_v27 = vadd.f32 %v6236_v40, %v6179_v44  ;;  %v6177_v30 = vpop.f32.mrb[183].mxu0  ;;  %v6241_v51 = vpop.f32.mrb[183].mxu1  ;;  %7705 = vmatprep.subr.bf16.mxu0 %v7704_v34 }
 0x742   :  { %v6244_v56 = vadd.f32 %v6238_v42, %v6180_v16  ;;  %7707 = vmatpush3.bf16.msra.mxu0 %v7706_v28  ;;  %v7038_v42 = vld [vmem:[#allocation17 + $0x60] sm:$0xff]  ;;  %v7039_v16 = vld [vmem:[#allocation17 + $0x68] sm:$0xff] }
 0x743   :  { %7709 = vmatprep.subr.bf16.mxu0 %v7708_v57  ;;  %v7714_v30 = vpack.c.bf16 %v7039_v16, %v7038_v42  ;;  %v7012_v57 = vlaneseq }
 0x745   :  { %v7013_v14 = vshrl.u32 %v7012_v57, 7 }
 0x746   :  { %7711 = vmatpush3.bf16.msra.mxu0 %v7710_v21  ;;  %v7010_v21 = vld [vmem:[#allocation15] sm:$0x3] }
 0x747   :  { %7713 = vmatprep.subr.bf16.mxu0 %v7712_v26  ;;  %v7014_v48 = vsub.s32 0, %v7013_v14 }
 0x74a   :  { %7715 = vmatpush3.bf16.msra.mxu0 %v7714_v30 }
 0x75e   :  { %v6300_v60 = vpop.f32.mrb[184].mxu0  ;;  %v6364_v19 = vpop.f32.mrb[184].mxu1 }
 0x75f   :  { %v6307_v3 = vadd.f32 %v6300_v60, %v6243_v27  ;;  %v6302_v0 = vpop.f32.mrb[185].mxu0  ;;  %v6366_v61 = vpop.f32.mrb[185].mxu1 }
 0x760   :  { %v6308_v20 = vadd.f32 %v6302_v0, %v6244_v56  ;;  %v6304_v23 = vpop.f32.mrb[186].mxu0  ;;  %v6368_v8 = vpop.f32.mrb[186].mxu1  ;;  %v7057_v0 = vld [vmem:[#allocation17 + $0xf8] sm:$0xff] }
 0x761   :  { %v6371_v13 = vadd.f32 %v6364_v19, %v6307_v3  ;;  %v6305_v37 = vpop.f32.mrb[187].mxu0  ;;  %v6369_v59 = vpop.f32.mrb[187].mxu1  ;;  %v7056_v3 = vld [vmem:[#allocation17 + $0xf0] sm:$0xff]  ;;  %v7041_v23 = vld [vmem:[#allocation17 + $0x78] sm:$0xff] }
 0x762   :  { %v6372_v38 = vadd.f32 %v6366_v61, %v6308_v20  ;;  %v7716_v61 = vpack.c.bf16 %v7057_v0, %v7056_v3  ;;  %v7040_v20 = vld [vmem:[#allocation17 + $0x70] sm:$0xff] }
 0x763   :  { %v7718_v8 = vpack.c.bf16 %v7041_v23, %v7040_v20 }
 0x764   :  { %7717 = vmatprep.subr.bf16.mxu0 %v7716_v61  ;;  %v7227_v61 = vld [vmem:[#allocation18] ss:$0 sm:$0xff] }
 0x765   :  { %7719 = vmatpush3.bf16.msra.mxu0 %v7718_v8 }
 0x77e   :  { %v6428_v62 = vpop.f32.mrb[188].mxu0  ;;  %v6492_v52 = vpop.f32.mrb[188].mxu1 }
 0x77f   :  { %v6435_v31 = vadd.f32 %v6428_v62, %v6371_v13  ;;  %v6430_v40 = vpop.f32.mrb[189].mxu0  ;;  %v6494_v44 = vpop.f32.mrb[189].mxu1  ;;  %v7018_v62 = vsub.s32 1, %v7013_v14 }
 0x780   :  { %v6436_v12 = vadd.f32 %v6430_v40, %v6372_v38  ;;  %v6432_v46 = vpop.f32.mrb[190].mxu0  ;;  %v6496_v27 = vpop.f32.mrb[190].mxu1 }
 0x781   :  { %v6499_v51 = vadd.f32 %v6492_v52, %v6435_v31  ;;  %v6433_v56 = vpop.f32.mrb[191].mxu0  ;;  %v6497_v60 = vpop.f32.mrb[191].mxu1  ;;  %v7015_v31 = vrot.slane %v7010_v21, %v7014_v48  ;;  %v7019_v42 = vrot.slane %v7010_v21, %v7018_v62 }
 0x782   :  { %v6500_v19 = vadd.f32 %v6494_v44, %v6436_v12 }
 0x79e   :  { %v6553_v13 = vpop.f32.mrb[192].mxu0  ;;  %v6617_v37 = vpop.f32.mrb[192].mxu1 }
 0x79f   :  { %v6560_v59 = vadd.f32 %v6553_v13, %v6499_v51  ;;  %v6555_v38 = vpop.f32.mrb[193].mxu0  ;;  %v6619_v25 = vpop.f32.mrb[193].mxu1 }
 0x7a0   :  { %v6561_v45 = vadd.f32 %v6555_v38, %v6500_v19  ;;  %v6557_v9 = vpop.f32.mrb[194].mxu0  ;;  %v6621_v10 = vpop.f32.mrb[194].mxu1 }
 0x7a1   :  { %v6624_v1 = vadd.f32 %v6617_v37, %v6560_v59  ;;  %v6558_v11 = vpop.f32.mrb[195].mxu0  ;;  %v6622_v2 = vpop.f32.mrb[195].mxu1 }
 0x7a2   :  { %v6625_v33 = vadd.f32 %v6619_v25, %v6561_v45 }
 0x7be   :  { %v6681_v54 = vpop.f32.mrb[196].mxu0  ;;  %v6745_v29 = vpop.f32.mrb[196].mxu1 }
 0x7bf   :  { %v6688_v47 = vadd.f32 %v6681_v54, %v6624_v1  ;;  %v6683_v53 = vpop.f32.mrb[197].mxu0  ;;  %v6747_v49 = vpop.f32.mrb[197].mxu1 }
 0x7c0   :  { %v6689_v5 = vadd.f32 %v6683_v53, %v6625_v33  ;;  %v6685_v58 = vpop.f32.mrb[198].mxu0  ;;  %v6749_v4 = vpop.f32.mrb[198].mxu1 }
 0x7c1   :  { %v6752_v43 = vadd.f32 %v6745_v29, %v6688_v47  ;;  %v6686_v24 = vpop.f32.mrb[199].mxu0  ;;  %v6750_v36 = vpop.f32.mrb[199].mxu1 }
 0x7c2   :  { %v6753_v39 = vadd.f32 %v6747_v49, %v6689_v5 }
 0x7de   :  { %v6809_v17 = vpop.f32.mrb[200].mxu0  ;;  %v6873_v50 = vpop.f32.mrb[200].mxu1 }
 0x7df   :  { %v6816_v63 = vadd.f32 %v6809_v17, %v6752_v43  ;;  %v6811_v18 = vpop.f32.mrb[201].mxu0  ;;  %v6875_v22 = vpop.f32.mrb[201].mxu1 }
 0x7e0   :  { %v6817_v7 = vadd.f32 %v6811_v18, %v6753_v39  ;;  %v6813_v34 = vpop.f32.mrb[202].mxu0  ;;  %v6877_v32 = vpop.f32.mrb[202].mxu1 }
 0x7e1   :  { %v6880_v6 = vadd.f32 %v6873_v50, %v6816_v63  ;;  %v6814_v41 = vpop.f32.mrb[203].mxu0  ;;  %v6878_v55 = vpop.f32.mrb[203].mxu1 }
 0x7e2   :  { %v6881_v28 = vadd.f32 %v6875_v22, %v6817_v7 }
 0x7fe   :  { %v6937_v52 = vpop.f32.mrb[204].mxu0  ;;  %v7001_v35 = vpop.f32.mrb[204].mxu1 }
 0x7ff   :  { %v6944_v15 = vadd.f32 %v6937_v52, %v6880_v6  ;;  %v6939_v40 = vpop.f32.mrb[205].mxu0  ;;  %v7003_v44 = vpop.f32.mrb[205].mxu1 }
 0x800   :  { %v6945_v26 = vadd.f32 %v6939_v40, %v6881_v28  ;;  %v6941_v16 = vpop.f32.mrb[206].mxu0  ;;  %v7005_v12 = vpop.f32.mrb[206].mxu1 }
 0x801   :  { %v7008_v46 = vadd.f32 %v7001_v35, %v6944_v15  ;;  %v6942_v27 = vpop.f32.mrb[207].mxu0  ;;  %v7006_v30 = vpop.f32.mrb[207].mxu1 }
 0x802   :  { %v7009_v51 = vadd.f32 %v7003_v44, %v6945_v26 }
 0x803   :  { %v7022_v56 = vadd.f32 %v7015_v31, %v7008_v46 }
 0x804   :  { %v7023_v60 = vadd.f32 %v7019_v42, %v7009_v51 }
 0x805   :  { %v7024_v3 = vmax.f32 %v7022_v56, 0.0 }
 0x806   :  { %v7025_v19 = vmax.f32 %v7023_v60, 0.0 }
 0x808   :  { %7129 = vmatprep.mubr.f32.mxu0 %v7025_v19 }
 0x809   :  { %7130 = vmatmul.mubr.f32.vlgmr.msra.gmra.mrb[208].mxu0 %v7024_v3 }
 0x8dc   :  { %v7565_v0 = vpop.f32.mrb[208].mxu0 }
 0x8dd   :  { %v7566_v20 = vpop.f32.mrb[209].mxu0 }
 0x8de   :  { %v7567_v23 = vadd.f32 %v7566_v20, %v7565_v0 }
 0x8e0   :  { %v7132_v8 = vadd.f32 %v7567_v23, %v7227_v61 }
 0x8e2   :  { %7135 = vst [vmem:[%s9457_s10] sm:$0x3] %v7132_v8 }
 0x8e3   :  { %7140 = vsyncpa [#allocation8], 1 }
 0x8e4   :  { %7141 = vsyncpa [#allocation10], 1 }
 0x8e5   :  { %7142 = vsyncpa [#allocation13], 1 }
 0x8e6   :  { %7143 = vsyncpa [#allocation16], 1 }
 0x8e7   :  { %7144 = vsyncpa [#allocation19], 1 }
 0x8e8   :  { %7145 = vsyncmov [#allocation3] }
 0x8eb   :  { %s7146_s15 = vpop.sfrf %7145 }
 0x8ec   :  { %p7228_p8 = scmp.ne.s32.totalorder %s7146_s15, 0 }
 0x8ee   :  { %7150 = shalt.err (%p7228_p8)  }

</bundles_post_ra>
